<compile_context>
chip_gen: v7x
topology: tpu7x:2x2x1
jax: 0.10.0
libtpu: 0.0.40
codegen_flags: <defaults>
</compile_context>

<pallas_src>
import functools

import jax
import jax.numpy as jnp
from jax.experimental import pallas as pl
from jax.experimental.pallas import tpu as pltpu


_VMEM_LIMIT = 40 * 1024 * 1024   # explicit scoped-VMEM budget (safe on v5e/v6e/v7x)
_MAX_TILE_M = 512                # M-tile upper bound (HBM-bound kernels like big tiles)
_ROW_CHUNK = 128                 # in-kernel row chunk for the 3x3/s1 conv (vreg budget)


# ---------------------------------------------------------------------------
# Small helpers
# ---------------------------------------------------------------------------
def _round_up(x, m):
    return ((x + m - 1) // m) * m


def _cdiv(a, b):
    return -(-a // b)


def _pick_tile_m(m, max_tile=_MAX_TILE_M):
    """Tile M into >= 2 grid steps (v7x has 2 TCs), sized near ceil(M/nsteps)."""
    nsteps = max(2, _cdiv(m, max_tile))
    tm = _round_up(_cdiv(m, nsteps), 8)
    return max(8, min(tm, _round_up(m, 8)))


def _compiler_params():
    return pltpu.CompilerParams(
        dimension_semantics=("parallel",),
        vmem_limit_bytes=_VMEM_LIMIT,
    )


def _const_spec(block_shape, index_map):
    """BlockSpec for an operand whose block never changes -> single-buffered."""
    return pl.BlockSpec(block_shape, index_map, pipeline_mode=pl.Buffered(1))


# ---------------------------------------------------------------------------
# Pallas kernels
# ---------------------------------------------------------------------------
def _matmul_bn_relu_kernel(x_ref, w_ref, scale_ref, bias_ref, o_ref):
    """One M-tile: single long-K matmul (bf16 in, f32 acc) + BN + ReLU."""
    acc = jnp.dot(x_ref[...], w_ref[...], preferred_element_type=jnp.float32)
    y = acc * scale_ref[...] + bias_ref[...]
    o_ref[...] = jnp.maximum(y, 0.0).astype(o_ref.dtype)


def _conv3x3s1_kernel(p_ref, w_ref, scale_ref, bias_ref, o_ref, *, wp):
    """3x3 / stride-1 / pad-1 conv + BN + ReLU for ONE image.

    p_ref: (1, Rp, Cin) bf16  -- zero-padded image, rows flattened as h*Wp + w
    w_ref: (9, Cin, Cout) bf16 -- per-tap weight matrices, tap = dy*3 + dx
    o_ref: (1, Mo, Cout)       -- "full padded-width" outputs; the 2 garbage
                                  columns per row are dropped by the wrapper.
    The 9 taps are 9 shifted static slices of the VMEM-resident image tile,
    so no im2col patch array ever touches HBM.
    """
    mo = o_ref.shape[1]
    scale = scale_ref[...]
    bias = bias_ref[...]
    for q0 in range(0, mo, _ROW_CHUNK):          # chunk rows: bounded live ranges
        rows = min(_ROW_CHUNK, mo - q0)
        acc = None
        for dy in range(3):
            for dx in range(3):
                t = dy * 3 + dx
                shift = q0 + dy * wp + dx
                lhs = p_ref[0, shift:shift + rows, :]
                part = jnp.dot(lhs, w_ref[t], preferred_element_type=jnp.float32)
                acc = part if acc is None else acc + part
        y = jnp.maximum(acc * scale + bias, 0.0)
        o_ref[0, q0:q0 + rows, :] = y.astype(o_ref.dtype)


def _tail_kernel(p0_ref, w0_ref, s0_ref, b0_ref,
                 p1_ref, w1_ref, s1_ref, b1_ref,
                 pool_ref, o_ref):
    """Fused branch tails written directly into the concatenated output slab.

    channels [0:384)    = branch0 3x3/s2 conv+BN+ReLU
    channels [384:640)  = branch1 final 3x3/s2 conv+BN+ReLU
    channels [640:1024) = branch2 3x3/s2 max-pool (pooled in the wrapper)
    All offsets are multiples of 128 -> lane-aligned, unmasked stores.
    Each result is stored as soon as it is ready (short live ranges, no spill
    of a (tm, 384) f32 tile across the second matmul).
    """
    c0 = s0_ref.shape[-1]
    c1 = s1_ref.shape[-1]

    y0 = jnp.dot(p0_ref[...], w0_ref[...], preferred_element_type=jnp.float32)
    y0 = jnp.maximum(y0 * s0_ref[...] + b0_ref[...], 0.0)
    o_ref[:, 0:c0] = y0.astype(o_ref.dtype)

    y1 = jnp.dot(p1_ref[...], w1_ref[...], preferred_element_type=jnp.float32)
    y1 = jnp.maximum(y1 * s1_ref[...] + b1_ref[...], 0.0)
    o_ref[:, c0:c0 + c1] = y1.astype(o_ref.dtype)

    o_ref[:, c0 + c1:] = pool_ref[...].astype(o_ref.dtype)


# ---------------------------------------------------------------------------
# Glue: im2col for stride-2 convs (pure JAX, data movement only)
# ---------------------------------------------------------------------------
def _im2col(x_nhwc, k, stride, padding):
    """Returns (patches (M, k*k*C), (N, OH, OW)); K order = (kh, kw, cin)."""
    if padding:
        x_nhwc = jnp.pad(
            x_nhwc, ((0, 0), (padding, padding), (padding, padding), (0, 0)))
    N, H, W, C = x_nhwc.shape
    OH = (H - k) // stride + 1
    OW = (W - k) // stride + 1
    if k == 1 and stride == 1:
        return x_nhwc.reshape(N * OH * OW, C), (N, OH, OW)
    cols = []
    for dy in range(k):
        for dx in range(k):
            sl = x_nhwc[
                :,
                dy: dy + stride * (OH - 1) + 1: stride,
                dx: dx + stride * (OW - 1) + 1: stride,
                :,
            ]
            cols.append(sl)
    p = jnp.stack(cols, axis=3)                # (N, OH, OW, k*k, C)
    return p.reshape(N * OH * OW, k * k * C), (N, OH, OW)


def _flatten_weight(weight):
    """(Cout, Cin, KH, KW) -> (KH*KW*Cin, Cout) in bf16, matching _im2col order."""
    Cout, Cin, KH, KW = weight.shape
    return jnp.transpose(weight, (2, 3, 1, 0)).reshape(
        KH * KW * Cin, Cout).astype(jnp.bfloat16)


# ---------------------------------------------------------------------------
# Wrappers around pallas_call
# ---------------------------------------------------------------------------
def conv_bn_relu_1x1(x_nhwc, weight, scale, bias, *, out_dtype=jnp.bfloat16):
    """BasicConv2d with a 1x1/s1 kernel: M-tiled matmul + fused BN + ReLU."""
    N, H, W, Cin = x_nhwc.shape
    Cout = weight.shape[0]
    x2 = x_nhwc.astype(jnp.bfloat16).reshape(N * H * W, Cin)
    M, K = x2.shape
    w_flat = _flatten_weight(weight)
    scale2 = scale.reshape(1, Cout).astype(jnp.float32)
    bias2 = bias.reshape(1, Cout).astype(jnp.float32)

    tm = _pick_tile_m(M)
    Mp = _round_up(M, tm)
    if Mp != M:
        x2 = jnp.pad(x2, ((0, Mp - M), (0, 0)))

    out = pl.pallas_call(
        _matmul_bn_relu_kernel,
        out_shape=jax.ShapeDtypeStruct((Mp, Cout), out_dtype),
        grid_spec=pltpu.PrefetchScalarGridSpec(
            num_scalar_prefetch=0,
            grid=(Mp // tm,),
            in_specs=[
                pl.BlockSpec((tm, K), lambda i: (i, 0)),
                _const_spec((K, Cout), lambda i: (0, 0)),
                _const_spec((1, Cout), lambda i: (0, 0)),
                _const_spec((1, Cout), lambda i: (0, 0)),
            ],
            out_specs=pl.BlockSpec((tm, Cout), lambda i: (i, 0)),
        ),
        compiler_params=_compiler_params(),
    )(x2, w_flat, scale2, bias2)
    return out[:M].reshape(N, H, W, Cout)


def conv3x3_s1p1_bn_relu(x_nhwc, weight, scale, bias, *, out_dtype=jnp.bfloat16):
    """BasicConv2d 3x3/s1/p1 via in-kernel shifted reads of a VMEM-resident image."""
    N, H, W, Cin = x_nhwc.shape
    Cout = weight.shape[0]
    Hp, Wp = H + 2, W + 2

    x_pad = jnp.pad(x_nhwc.astype(jnp.bfloat16),
                    ((0, 0), (1, 1), (1, 1), (0, 0)))
    P = x_pad.reshape(N, Hp * Wp, Cin)

    Mo = _round_up(H * Wp, 8)                        # padded-width output rows
    max_shift = 2 * Wp + 2
    Rp = _round_up(max(Hp * Wp, Mo + max_shift), 8)  # rows the taps may read
    if Rp != Hp * Wp:
        P = jnp.pad(P, ((0, 0), (0, Rp - Hp * Wp), (0, 0)))

    # (Cout, Cin, 3, 3) -> (9, Cin, Cout), tap index t = dy*3 + dx
    w_taps = jnp.transpose(weight, (2, 3, 1, 0)).reshape(
        9, Cin, Cout).astype(jnp.bfloat16)
    scale2 = scale.reshape(1, Cout).astype(jnp.float32)
    bias2 = bias.reshape(1, Cout).astype(jnp.float32)

    kernel = functools.partial(_conv3x3s1_kernel, wp=Wp)
    out = pl.pallas_call(
        kernel,
        out_shape=jax.ShapeDtypeStruct((N, Mo, Cout), out_dtype),
        grid_spec=pltpu.PrefetchScalarGridSpec(
            num_scalar_prefetch=0,
            grid=(N,),                               # one step per image
            in_specs=[
                pl.BlockSpec((1, Rp, Cin), lambda n: (n, 0, 0)),
                _const_spec((9, Cin, Cout), lambda n: (0, 0, 0)),
                _const_spec((1, Cout), lambda n: (0, 0)),
                _const_spec((1, Cout), lambda n: (0, 0)),
            ],
            out_specs=pl.BlockSpec((1, Mo, Cout), lambda n: (n, 0, 0)),
        ),
        compiler_params=_compiler_params(),
    )(P, w_taps, scale2, bias2)

    # drop rounding rows and the 2 padded-width garbage columns per row
    out = out[:, :H * Wp, :].reshape(N, H, Wp, Cout)[:, :, :W, :]
    return out


def reduction_a_tail(x_nhwc, y2_nhwc, b0_params, b12_params):
    """Fused tail: branch0 conv + branch1 final conv + max-pool -> concat slab."""
    w_b0, s_b0, bi_b0 = b0_params
    w_b12, s_b12, bi_b12 = b12_params

    p0, (N, OH, OW) = _im2col(x_nhwc.astype(jnp.bfloat16), 3, 2, 0)
    p1, _ = _im2col(y2_nhwc.astype(jnp.bfloat16), 3, 2, 0)

    # branch2: exact f32 max-pool in the wrapper; only the pooled (M, 384)
    # tensor flows through the kernel (no (9, M, C) tap slab in HBM / VMEM).
    pooled = jax.lax.reduce_window(
        x_nhwc.astype(jnp.float32), -jnp.inf, jax.lax.max,
        (1, 3, 3, 1), (1, 2, 2, 1), "VALID")

    M, K0 = p0.shape
    C0 = w_b0.shape[0]
    C1 = w_b12.shape[0]
    C2 = x_nhwc.shape[-1]
    Ctot = C0 + C1 + C2                          # 384 + 256 + 384 = 1024
    pooled = pooled.reshape(M, C2)

    w0 = _flatten_weight(w_b0)                   # K0 = 3456 = 27*128 already
    w1 = _flatten_weight(w_b12)
    K1 = w1.shape[0]
    K1p = _round_up(K1, 128)                     # 2016 -> 2048 (full MXU passes)
    if K1p != K1:
        p1 = jnp.pad(p1, ((0, 0), (0, K1p - K1)))
        w1 = jnp.pad(w1, ((0, K1p - K1), (0, 0)))

    s0 = s_b0.reshape(1, C0).astype(jnp.float32)
    b0 = bi_b0.reshape(1, C0).astype(jnp.float32)
    s1 = s_b12.reshape(1, C1).astype(jnp.float32)
    b1 = bi_b12.reshape(1, C1).astype(jnp.float32)

    tm = _pick_tile_m(M)
    Mp = _round_up(M, tm)
    if Mp != M:
        p0 = jnp.pad(p0, ((0, Mp - M), (0, 0)))
        p1 = jnp.pad(p1, ((0, Mp - M), (0, 0)))
        pooled = jnp.pad(pooled, ((0, Mp - M), (0, 0)))

    out = pl.pallas_call(
        _tail_kernel,
        out_shape=jax.ShapeDtypeStruct((Mp, Ctot), jnp.float32),
        grid_spec=pltpu.PrefetchScalarGridSpec(
            num_scalar_prefetch=0,
            grid=(Mp // tm,),
            in_specs=[
                pl.BlockSpec((tm, K0), lambda i: (i, 0)),
                _const_spec((K0, C0), lambda i: (0, 0)),
                _const_spec((1, C0), lambda i: (0, 0)),
                _const_spec((1, C0), lambda i: (0, 0)),
                pl.BlockSpec((tm, K1p), lambda i: (i, 0)),
                _const_spec((K1p, C1), lambda i: (0, 0)),
                _const_spec((1, C1), lambda i: (0, 0)),
                _const_spec((1, C1), lambda i: (0, 0)),
                pl.BlockSpec((tm, C2), lambda i: (i, 0)),
            ],
            out_specs=pl.BlockSpec((tm, Ctot), lambda i: (i, 0)),
        ),
        compiler_params=_compiler_params(),
    )(p0, w0, s0, b0, p1, w1, s1, b1, pooled)
    return out[:M].reshape(N, OH, OW, Ctot)


# ---------------------------------------------------------------------------
# Parameter construction (deterministic, matches the module's shapes)
# ---------------------------------------------------------------------------
def _fold_bn(gamma, beta, running_mean, running_var, eps=1e-3):
    scale = gamma / jnp.sqrt(running_var + eps)
    bias = beta - running_mean * scale
    return scale, bias


def make_basic_conv_params(key, cin, cout, k):
    kw, kg, kb = jax.random.split(key, 3)
    weight = 0.05 * jax.random.normal(kw, (cout, cin, k, k), jnp.float32)
    gamma = 1.0 + 0.1 * jax.random.normal(kg, (cout,), jnp.float32)
    beta = 0.1 * jax.random.normal(kb, (cout,), jnp.float32)
    running_mean = jnp.zeros((cout,), jnp.float32)
    running_var = jnp.ones((cout,), jnp.float32)
    scale, bias = _fold_bn(gamma, beta, running_mean, running_var)
    return weight, scale, bias


def make_reduction_a_params(key):
    k0, k1, k2, k3 = jax.random.split(key, 4)
    return {
        "b0": make_basic_conv_params(k0, 384, 384, 3),      # 3x3 / s2
        "b1_0": make_basic_conv_params(k1, 384, 192, 1),    # 1x1 / s1
        "b1_1": make_basic_conv_params(k2, 192, 224, 3),    # 3x3 / s1 / p1
        "b1_2": make_basic_conv_params(k3, 224, 256, 3),    # 3x3 / s2
    }


# ---------------------------------------------------------------------------
# Reduction_A forward (NCHW in / NCHW out, like the PyTorch module)
# ---------------------------------------------------------------------------
@jax.jit
def reduction_a_forward(x_nchw, params):
    x = jnp.transpose(x_nchw, (0, 2, 3, 1))  # -> NHWC (channels on lanes)

    # branch1 stem: 1x1/s1 (matmul) then 3x3/s1/p1 (resident-tile tap kernel)
    y = conv_bn_relu_1x1(x, *params["b1_0"])
    y = conv3x3_s1p1_bn_relu(y, *params["b1_1"])

    # fused tail: branch0 conv + branch1 final conv + max-pool, written
    # directly into the concatenated (.., 1024) slab.
    out = reduction_a_tail(x, y, params["b0"], params["b1_2"])
    return jnp.transpose(out, (0, 3, 1, 2))  # -> NCHW


# ---------------------------------------------------------------------------
# Pure-JAX reference (bf16 inputs / f32 accumulation, same as the kernels)
# ---------------------------------------------------------------------------
def _ref_conv_bn_relu(x_nhwc, weight, scale, bias, *, stride, padding):
    w = jnp.transpose(weight, (2, 3, 1, 0)).astype(jnp.bfloat16)  # HWIO
    y = jax.lax.conv_general_dilated(
        x_nhwc.astype(jnp.bfloat16),
        w,
        window_strides=(stride, stride),
        padding=((padding, padding), (padding, padding)),
        dimension_numbers=("NHWC", "HWIO", "NHWC"),
        preferred_element_type=jnp.float32,
    )
    return jnp.maximum(y * scale + bias, 0.0)


def _ref_forward(x_nchw, params):
    x = jnp.transpose(x_nchw, (0, 2, 3, 1))
    x0 = _ref_conv_bn_relu(x, *params["b0"], stride=2, padding=0)
    y = _ref_conv_bn_relu(x, *params["b1_0"], stride=1, padding=0)
    y = _ref_conv_bn_relu(y, *params["b1_1"], stride=1, padding=1)
    x1 = _ref_conv_bn_relu(y, *params["b1_2"], stride=2, padding=0)
    x2 = jax.lax.reduce_window(
        x, -jnp.inf, jax.lax.max, (1, 3, 3, 1), (1, 2, 2, 1), "VALID")
    out = jnp.concatenate([x0, x1, x2], axis=-1)
    return jnp.transpose(out, (0, 3, 1, 2))


# ---------------------------------------------------------------------------
if __name__ == "__main__":
    key = jax.random.PRNGKey(0)
    kp, kx = jax.random.split(key)
    params = make_reduction_a_params(kp)

    # Small spatial size; channel count (384) is fixed by the module.
    N, C, H, W = 2, 384, 9, 9
    x = jax.random.normal(kx, (N, C, H, W), jnp.float32)

    out = reduction_a_forward(x, params)
    out = jax.block_until_ready(out)

    assert out.shape == (N, 384 + 256 + 384, 4, 4), out.shape

    ref = jax.block_until_ready(_ref_forward(x, params))
    import numpy as np

    np.testing.assert_allclose(np.asarray(out), np.asarray(ref),
                               rtol=1e-2, atol=1e-2)

    print("KERNEL_OK")
</pallas_src>

<mosaic_0001>
module attributes {stable_mosaic.version = 11 : i64} {
  func.func @_matmul_bn_relu_kernel(%arg0: i32, %arg1: memref<88x384xbf16, #tpu.memory_space<vmem>>, %arg2: memref<384x192xbf16, #tpu.memory_space<vmem>>, %arg3: memref<1x192xf32, #tpu.memory_space<vmem>>, %arg4: memref<1x192xf32, #tpu.memory_space<vmem>>, %arg5: memref<88x192xbf16, #tpu.memory_space<vmem>>) attributes {dimension_semantics = [#tpu.dimension_semantics<parallel>], iteration_bounds = array<i64: 2>, scalar_prefetch = 0 : i64, scratch_operands = 0 : i64, tpu.core_type = #tpu.core_type<tc>, window_params = [{transform_indices = @transform_0, window_bounds = array<i64: 88, 384>}, {pipeline_mode = #tpu.pipeline_mode<synchronous>, transform_indices = @transform_1, window_bounds = array<i64: 384, 192>}, {pipeline_mode = #tpu.pipeline_mode<synchronous>, transform_indices = @transform_2, window_bounds = array<i64: 1, 192>}, {pipeline_mode = #tpu.pipeline_mode<synchronous>, transform_indices = @transform_3, window_bounds = array<i64: 1, 192>}, {transform_indices = @transform_4, window_bounds = array<i64: 88, 192>}]} {
    %c0 = arith.constant 0 : index
    %c0_0 = arith.constant 0 : index
    %0 = vector.load %arg1[%c0, %c0_0] : memref<88x384xbf16, #tpu.memory_space<vmem>>, vector<88x384xbf16>
    %c0_1 = arith.constant 0 : index
    %c0_2 = arith.constant 0 : index
    %1 = vector.load %arg2[%c0_1, %c0_2] : memref<384x192xbf16, #tpu.memory_space<vmem>>, vector<384x192xbf16>
    %cst = arith.constant dense<0.000000e+00> : vector<88x192xf32>
    %2 = tpu.matmul %0, %1, %cst {dimension_numbers = #tpu.dot_dimension_numbers<[1], [0], [0], [1], [0, 0, 1, 1], [], []>} : vector<88x384xbf16>, vector<384x192xbf16>, vector<88x192xf32> -> vector<88x192xf32>
    %c0_3 = arith.constant 0 : index
    %c0_4 = arith.constant 0 : index
    %3 = vector.load %arg3[%c0_3, %c0_4] : memref<1x192xf32, #tpu.memory_space<vmem>>, vector<1x192xf32>
    %4 = vector.broadcast %3 : vector<1x192xf32> to vector<88x192xf32>
    %5 = arith.mulf %2, %4 : vector<88x192xf32>
    %c0_5 = arith.constant 0 : index
    %c0_6 = arith.constant 0 : index
    %6 = vector.load %arg4[%c0_5, %c0_6] : memref<1x192xf32, #tpu.memory_space<vmem>>, vector<1x192xf32>
    %7 = vector.broadcast %6 : vector<1x192xf32> to vector<88x192xf32>
    %8 = arith.addf %5, %7 : vector<88x192xf32>
    %cst_7 = arith.constant 0.000000e+00 : f32
    %9 = vector.broadcast %cst_7 : f32 to vector<88x192xf32>
    %10 = arith.maximumf %8, %9 : vector<88x192xf32>
    %11 = arith.truncf %10 : vector<88x192xf32> to vector<88x192xbf16>
    %c0_8 = arith.constant 0 : index
    %c0_9 = arith.constant 0 : index
    %12 = vector.load %arg5[%c0_8, %c0_9] : memref<88x192xbf16, #tpu.memory_space<vmem>>, vector<88x192xbf16>
    tpu.vector_store %arg5[%c0_8, %c0_9], %11 {strides = array<i32>} : memref<88x192xbf16, #tpu.memory_space<vmem>>, vector<88x192xbf16>,
    return
  }
  func.func @transform_0(%arg0: i32) -> (i32, i32) {
    %c0_i32 = arith.constant 0 : i32
    %c0_i32_0 = arith.constant 0 : i32
    return %arg0, %c0_i32 : i32, i32
  }
  func.func @transform_1(%arg0: i32) -> (i32, i32) {
    %c0_i32 = arith.constant 0 : i32
    %c0_i32_0 = arith.constant 0 : i32
    %c0_i32_1 = arith.constant 0 : i32
    return %c0_i32, %c0_i32_0 : i32, i32
  }
  func.func @transform_2(%arg0: i32) -> (i32, i32) {
    %c0_i32 = arith.constant 0 : i32
    %c0_i32_0 = arith.constant 0 : i32
    %c0_i32_1 = arith.constant 0 : i32
    return %c0_i32, %c0_i32_0 : i32, i32
  }
  func.func @transform_3(%arg0: i32) -> (i32, i32) {
    %c0_i32 = arith.constant 0 : i32
    %c0_i32_0 = arith.constant 0 : i32
    %c0_i32_1 = arith.constant 0 : i32
    return %c0_i32, %c0_i32_0 : i32, i32
  }
  func.func @transform_4(%arg0: i32) -> (i32, i32) {
    %c0_i32 = arith.constant 0 : i32
    %c0_i32_0 = arith.constant 0 : i32
    return %arg0, %c0_i32 : i32, i32
  }
}

module attributes {stable_mosaic.version = 11 : i64} {
  func.func @_conv3x3s1_kernel(%arg0: i32, %arg1: memref<1x128x192xbf16, #tpu.memory_space<vmem>>, %arg2: memref<9x192x224xbf16, #tpu.memory_space<vmem>>, %arg3: memref<1x224xf32, #tpu.memory_space<vmem>>, %arg4: memref<1x224xf32, #tpu.memory_space<vmem>>, %arg5: memref<1x104x224xbf16, #tpu.memory_space<vmem>>) attributes {dimension_semantics = [#tpu.dimension_semantics<parallel>], iteration_bounds = array<i64: 2>, scalar_prefetch = 0 : i64, scratch_operands = 0 : i64, tpu.core_type = #tpu.core_type<tc>, window_params = [{transform_indices = @transform_0, window_bounds = array<i64: 1, 128, 192>}, {pipeline_mode = #tpu.pipeline_mode<synchronous>, transform_indices = @transform_1, window_bounds = array<i64: 9, 192, 224>}, {pipeline_mode = #tpu.pipeline_mode<synchronous>, transform_indices = @transform_2, window_bounds = array<i64: 1, 224>}, {pipeline_mode = #tpu.pipeline_mode<synchronous>, transform_indices = @transform_3, window_bounds = array<i64: 1, 224>}, {transform_indices = @transform_4, window_bounds = array<i64: 1, 104, 224>}]} {
    %c0 = arith.constant 0 : index
    %c0_0 = arith.constant 0 : index
    %0 = vector.load %arg3[%c0, %c0_0] : memref<1x224xf32, #tpu.memory_space<vmem>>, vector<1x224xf32>
    %c0_1 = arith.constant 0 : index
    %c0_2 = arith.constant 0 : index
    %1 = vector.load %arg4[%c0_1, %c0_2] : memref<1x224xf32, #tpu.memory_space<vmem>>, vector<1x224xf32>
    %c0_3 = arith.constant 0 : index
    %c0_4 = arith.constant 0 : index
    %c0_5 = arith.constant 0 : index
    %2 = vector.load %arg1[%c0_3, %c0_4, %c0_5] : memref<1x128x192xbf16, #tpu.memory_space<vmem>>, vector<1x104x192xbf16>
    %3 = vector.shape_cast %2 : vector<1x104x192xbf16> to vector<104x192xbf16>
    %c0_6 = arith.constant 0 : index
    %c0_7 = arith.constant 0 : index
    %c0_8 = arith.constant 0 : index
    %4 = vector.load %arg2[%c0_6, %c0_7, %c0_8] : memref<9x192x224xbf16, #tpu.memory_space<vmem>>, vector<1x192x224xbf16>
    %5 = vector.shape_cast %4 : vector<1x192x224xbf16> to vector<192x224xbf16>
    %cst = arith.constant dense<0.000000e+00> : vector<104x224xf32>
    %6 = tpu.matmul %3, %5, %cst {dimension_numbers = #tpu.dot_dimension_numbers<[1], [0], [0], [1], [0, 0, 1, 1], [], []>} : vector<104x192xbf16>, vector<192x224xbf16>, vector<104x224xf32> -> vector<104x224xf32>
    %c0_9 = arith.constant 0 : index
    %c1 = arith.constant 1 : index
    %c0_10 = arith.constant 0 : index
    %7 = vector.load %arg1[%c0_9, %c1, %c0_10] : memref<1x128x192xbf16, #tpu.memory_space<vmem>>, vector<1x104x192xbf16>
    %8 = vector.shape_cast %7 : vector<1x104x192xbf16> to vector<104x192xbf16>
    %c1_11 = arith.constant 1 : index
    %c0_12 = arith.constant 0 : index
    %c0_13 = arith.constant 0 : index
    %9 = vector.load %arg2[%c1_11, %c0_12, %c0_13] : memref<9x192x224xbf16, #tpu.memory_space<vmem>>, vector<1x192x224xbf16>
    %10 = vector.shape_cast %9 : vector<1x192x224xbf16> to vector<192x224xbf16>
    %cst_14 = arith.constant dense<0.000000e+00> : vector<104x224xf32>
    %11 = tpu.matmul %8, %10, %cst_14 {dimension_numbers = #tpu.dot_dimension_numbers<[1], [0], [0], [1], [0, 0, 1, 1], [], []>} : vector<104x192xbf16>, vector<192x224xbf16>, vector<104x224xf32> -> vector<104x224xf32>
    %12 = arith.addf %6, %11 : vector<104x224xf32>
    %c0_15 = arith.constant 0 : index
    %c2 = arith.constant 2 : index
    %c0_16 = arith.constant 0 : index
    %13 = vector.load %arg1[%c0_15, %c2, %c0_16] : memref<1x128x192xbf16, #tpu.memory_space<vmem>>, vector<1x104x192xbf16>
    %14 = vector.shape_cast %13 : vector<1x104x192xbf16> to vector<104x192xbf16>
    %c2_17 = arith.constant 2 : index
    %c0_18 = arith.constant 0 : index
    %c0_19 = arith.constant 0 : index
    %15 = vector.load %arg2[%c2_17, %c0_18, %c0_19] : memref<9x192x224xbf16, #tpu.memory_space<vmem>>, vector<1x192x224xbf16>
    %16 = vector.shape_cast %15 : vector<1x192x224xbf16> to vector<192x224xbf16>
    %cst_20 = arith.constant dense<0.000000e+00> : vector<104x224xf32>
    %17 = tpu.matmul %14, %16, %cst_20 {dimension_numbers = #tpu.dot_dimension_numbers<[1], [0], [0], [1], [0, 0, 1, 1], [], []>} : vector<104x192xbf16>, vector<192x224xbf16>, vector<104x224xf32> -> vector<104x224xf32>
    %18 = arith.addf %12, %17 : vector<104x224xf32>
    %c0_21 = arith.constant 0 : index
    %c11 = arith.constant 11 : index
    %c0_22 = arith.constant 0 : index
    %19 = vector.load %arg1[%c0_21, %c11, %c0_22] : memref<1x128x192xbf16, #tpu.memory_space<vmem>>, vector<1x104x192xbf16>
    %20 = vector.shape_cast %19 : vector<1x104x192xbf16> to vector<104x192xbf16>
    %c3 = arith.constant 3 : index
    %c0_23 = arith.constant 0 : index
    %c0_24 = arith.constant 0 : index
    %21 = vector.load %arg2[%c3, %c0_23, %c0_24] : memref<9x192x224xbf16, #tpu.memory_space<vmem>>, vector<1x192x224xbf16>
    %22 = vector.shape_cast %21 : vector<1x192x224xbf16> to vector<192x224xbf16>
    %cst_25 = arith.constant dense<0.000000e+00> : vector<104x224xf32>
    %23 = tpu.matmul %20, %22, %cst_25 {dimension_numbers = #tpu.dot_dimension_numbers<[1], [0], [0], [1], [0, 0, 1, 1], [], []>} : vector<104x192xbf16>, vector<192x224xbf16>, vector<104x224xf32> -> vector<104x224xf32>
    %24 = arith.addf %18, %23 : vector<104x224xf32>
    %c0_26 = arith.constant 0 : index
    %c12 = arith.constant 12 : index
    %c0_27 = arith.constant 0 : index
    %25 = vector.load %arg1[%c0_26, %c12, %c0_27] : memref<1x128x192xbf16, #tpu.memory_space<vmem>>, vector<1x104x192xbf16>
    %26 = vector.shape_cast %25 : vector<1x104x192xbf16> to vector<104x192xbf16>
    %c4 = arith.constant 4 : index
    %c0_28 = arith.constant 0 : index
    %c0_29 = arith.constant 0 : index
    %27 = vector.load %arg2[%c4, %c0_28, %c0_29] : memref<9x192x224xbf16, #tpu.memory_space<vmem>>, vector<1x192x224xbf16>
    %28 = vector.shape_cast %27 : vector<1x192x224xbf16> to vector<192x224xbf16>
    %cst_30 = arith.constant dense<0.000000e+00> : vector<104x224xf32>
    %29 = tpu.matmul %26, %28, %cst_30 {dimension_numbers = #tpu.dot_dimension_numbers<[1], [0], [0], [1], [0, 0, 1, 1], [], []>} : vector<104x192xbf16>, vector<192x224xbf16>, vector<104x224xf32> -> vector<104x224xf32>
    %30 = arith.addf %24, %29 : vector<104x224xf32>
    %c0_31 = arith.constant 0 : index
    %c13 = arith.constant 13 : index
    %c0_32 = arith.constant 0 : index
    %31 = vector.load %arg1[%c0_31, %c13, %c0_32] : memref<1x128x192xbf16, #tpu.memory_space<vmem>>, vector<1x104x192xbf16>
    %32 = vector.shape_cast %31 : vector<1x104x192xbf16> to vector<104x192xbf16>
    %c5 = arith.constant 5 : index
    %c0_33 = arith.constant 0 : index
    %c0_34 = arith.constant 0 : index
    %33 = vector.load %arg2[%c5, %c0_33, %c0_34] : memref<9x192x224xbf16, #tpu.memory_space<vmem>>, vector<1x192x224xbf16>
    %34 = vector.shape_cast %33 : vector<1x192x224xbf16> to vector<192x224xbf16>
    %cst_35 = arith.constant dense<0.000000e+00> : vector<104x224xf32>
    %35 = tpu.matmul %32, %34, %cst_35 {dimension_numbers = #tpu.dot_dimension_numbers<[1], [0], [0], [1], [0, 0, 1, 1], [], []>} : vector<104x192xbf16>, vector<192x224xbf16>, vector<104x224xf32> -> vector<104x224xf32>
    %36 = arith.addf %30, %35 : vector<104x224xf32>
    %c0_36 = arith.constant 0 : index
    %c22 = arith.constant 22 : index
    %c0_37 = arith.constant 0 : index
    %37 = vector.load %arg1[%c0_36, %c22, %c0_37] : memref<1x128x192xbf16, #tpu.memory_space<vmem>>, vector<1x104x192xbf16>
    %38 = vector.shape_cast %37 : vector<1x104x192xbf16> to vector<104x192xbf16>
    %c6 = arith.constant 6 : index
    %c0_38 = arith.constant 0 : index
    %c0_39 = arith.constant 0 : index
    %39 = vector.load %arg2[%c6, %c0_38, %c0_39] : memref<9x192x224xbf16, #tpu.memory_space<vmem>>, vector<1x192x224xbf16>
    %40 = vector.shape_cast %39 : vector<1x192x224xbf16> to vector<192x224xbf16>
    %cst_40 = arith.constant dense<0.000000e+00> : vector<104x224xf32>
    %41 = tpu.matmul %38, %40, %cst_40 {dimension_numbers = #tpu.dot_dimension_numbers<[1], [0], [0], [1], [0, 0, 1, 1], [], []>} : vector<104x192xbf16>, vector<192x224xbf16>, vector<104x224xf32> -> vector<104x224xf32>
    %42 = arith.addf %36, %41 : vector<104x224xf32>
    %c0_41 = arith.constant 0 : index
    %c23 = arith.constant 23 : index
    %c0_42 = arith.constant 0 : index
    %43 = vector.load %arg1[%c0_41, %c23, %c0_42] : memref<1x128x192xbf16, #tpu.memory_space<vmem>>, vector<1x104x192xbf16>
    %44 = vector.shape_cast %43 : vector<1x104x192xbf16> to vector<104x192xbf16>
    %c7 = arith.constant 7 : index
    %c0_43 = arith.constant 0 : index
    %c0_44 = arith.constant 0 : index
    %45 = vector.load %arg2[%c7, %c0_43, %c0_44] : memref<9x192x224xbf16, #tpu.memory_space<vmem>>, vector<1x192x224xbf16>
    %46 = vector.shape_cast %45 : vector<1x192x224xbf16> to vector<192x224xbf16>
    %cst_45 = arith.constant dense<0.000000e+00> : vector<104x224xf32>
    %47 = tpu.matmul %44, %46, %cst_45 {dimension_numbers = #tpu.dot_dimension_numbers<[1], [0], [0], [1], [0, 0, 1, 1], [], []>} : vector<104x192xbf16>, vector<192x224xbf16>, vector<104x224xf32> -> vector<104x224xf32>
    %48 = arith.addf %42, %47 : vector<104x224xf32>
    %c0_46 = arith.constant 0 : index
    %c24 = arith.constant 24 : index
    %c0_47 = arith.constant 0 : index
    %49 = vector.load %arg1[%c0_46, %c24, %c0_47] : memref<1x128x192xbf16, #tpu.memory_space<vmem>>, vector<1x104x192xbf16>
    %50 = vector.shape_cast %49 : vector<1x104x192xbf16> to vector<104x192xbf16>
    %c8 = arith.constant 8 : index
    %c0_48 = arith.constant 0 : index
    %c0_49 = arith.constant 0 : index
    %51 = vector.load %arg2[%c8, %c0_48, %c0_49] : memref<9x192x224xbf16, #tpu.memory_space<vmem>>, vector<1x192x224xbf16>
    %52 = vector.shape_cast %51 : vector<1x192x224xbf16> to vector<192x224xbf16>
    %cst_50 = arith.constant dense<0.000000e+00> : vector<104x224xf32>
    %53 = tpu.matmul %50, %52, %cst_50 {dimension_numbers = #tpu.dot_dimension_numbers<[1], [0], [0], [1], [0, 0, 1, 1], [], []>} : vector<104x192xbf16>, vector<192x224xbf16>, vector<104x224xf32> -> vector<104x224xf32>
    %54 = arith.addf %48, %53 : vector<104x224xf32>
    %55 = vector.broadcast %0 : vector<1x224xf32> to vector<104x224xf32>
    %56 = arith.mulf %54, %55 : vector<104x224xf32>
    %57 = vector.broadcast %1 : vector<1x224xf32> to vector<104x224xf32>
    %58 = arith.addf %56, %57 : vector<104x224xf32>
    %cst_51 = arith.constant 0.000000e+00 : f32
    %59 = vector.broadcast %cst_51 : f32 to vector<104x224xf32>
    %60 = arith.maximumf %58, %59 : vector<104x224xf32>
    %61 = arith.truncf %60 : vector<104x224xf32> to vector<104x224xbf16>
    %c0_52 = arith.constant 0 : index
    %c0_53 = arith.constant 0 : index
    %c0_54 = arith.constant 0 : index
    %62 = vector.load %arg5[%c0_52, %c0_53, %c0_54] : memref<1x104x224xbf16, #tpu.memory_space<vmem>>, vector<1x104x224xbf16>
    %63 = vector.shape_cast %62 : vector<1x104x224xbf16> to vector<104x224xbf16>
    %64 = vector.shape_cast %61 : vector<104x224xbf16> to vector<1x104x224xbf16>
    tpu.vector_store %arg5[%c0_52, %c0_53, %c0_54], %64 {strides = array<i32>} : memref<1x104x224xbf16, #tpu.memory_space<vmem>>, vector<1x104x224xbf16>,
    return
  }
  func.func @transform_0(%arg0: i32) -> (i32, i32, i32) {
    %c0_i32 = arith.constant 0 : i32
    %c0_i32_0 = arith.constant 0 : i32
    %c0_i32_1 = arith.constant 0 : i32
    return %arg0, %c0_i32, %c0_i32_0 : i32, i32, i32
  }
  func.func @transform_1(%arg0: i32) -> (i32, i32, i32) {
    %c0_i32 = arith.constant 0 : i32
    %c0_i32_0 = arith.constant 0 : i32
    %c0_i32_1 = arith.constant 0 : i32
    %c0_i32_2 = arith.constant 0 : i32
    return %c0_i32, %c0_i32_0, %c0_i32_1 : i32, i32, i32
  }
  func.func @transform_2(%arg0: i32) -> (i32, i32) {
    %c0_i32 = arith.constant 0 : i32
    %c0_i32_0 = arith.constant 0 : i32
    %c0_i32_1 = arith.constant 0 : i32
    return %c0_i32, %c0_i32_0 : i32, i32
  }
  func.func @transform_3(%arg0: i32) -> (i32, i32) {
    %c0_i32 = arith.constant 0 : i32
    %c0_i32_0 = arith.constant 0 : i32
    %c0_i32_1 = arith.constant 0 : i32
    return %c0_i32, %c0_i32_0 : i32, i32
  }
  func.func @transform_4(%arg0: i32) -> (i32, i32, i32) {
    %c0_i32 = arith.constant 0 : i32
    %c0_i32_0 = arith.constant 0 : i32
    %c0_i32_1 = arith.constant 0 : i32
    return %arg0, %c0_i32, %c0_i32_0 : i32, i32, i32
  }
}

module attributes {stable_mosaic.version = 11 : i64} {
  func.func @_tail_kernel(%arg0: i32, %arg1: memref<16x3456xbf16, #tpu.memory_space<vmem>>, %arg2: memref<3456x384xbf16, #tpu.memory_space<vmem>>, %arg3: memref<1x384xf32, #tpu.memory_space<vmem>>, %arg4: memref<1x384xf32, #tpu.memory_space<vmem>>, %arg5: memref<16x2048xbf16, #tpu.memory_space<vmem>>, %arg6: memref<2048x256xbf16, #tpu.memory_space<vmem>>, %arg7: memref<1x256xf32, #tpu.memory_space<vmem>>, %arg8: memref<1x256xf32, #tpu.memory_space<vmem>>, %arg9: memref<16x384xf32, #tpu.memory_space<vmem>>, %arg10: memref<16x1024xf32, #tpu.memory_space<vmem>>) attributes {dimension_semantics = [#tpu.dimension_semantics<parallel>], iteration_bounds = array<i64: 2>, scalar_prefetch = 0 : i64, scratch_operands = 0 : i64, tpu.core_type = #tpu.core_type<tc>, window_params = [{transform_indices = @transform_0, window_bounds = array<i64: 16, 3456>}, {pipeline_mode = #tpu.pipeline_mode<synchronous>, transform_indices = @transform_1, window_bounds = array<i64: 3456, 384>}, {pipeline_mode = #tpu.pipeline_mode<synchronous>, transform_indices = @transform_2, window_bounds = array<i64: 1, 384>}, {pipeline_mode = #tpu.pipeline_mode<synchronous>, transform_indices = @transform_3, window_bounds = array<i64: 1, 384>}, {transform_indices = @transform_4, window_bounds = array<i64: 16, 2048>}, {pipeline_mode = #tpu.pipeline_mode<synchronous>, transform_indices = @transform_5, window_bounds = array<i64: 2048, 256>}, {pipeline_mode = #tpu.pipeline_mode<synchronous>, transform_indices = @transform_6, window_bounds = array<i64: 1, 256>}, {pipeline_mode = #tpu.pipeline_mode<synchronous>, transform_indices = @transform_7, window_bounds = array<i64: 1, 256>}, {transform_indices = @transform_8, window_bounds = array<i64: 16, 384>}, {transform_indices = @transform_9, window_bounds = array<i64: 16, 1024>}]} {
    %c0 = arith.constant 0 : index
    %c0_0 = arith.constant 0 : index
    %0 = vector.load %arg1[%c0, %c0_0] : memref<16x3456xbf16, #tpu.memory_space<vmem>>, vector<16x3456xbf16>
    %c0_1 = arith.constant 0 : index
    %c0_2 = arith.constant 0 : index
    %1 = vector.load %arg2[%c0_1, %c0_2] : memref<3456x384xbf16, #tpu.memory_space<vmem>>, vector<3456x384xbf16>
    %cst = arith.constant dense<0.000000e+00> : vector<16x384xf32>
    %2 = tpu.matmul %0, %1, %cst {dimension_numbers = #tpu.dot_dimension_numbers<[1], [0], [0], [1], [0, 0, 1, 1], [], []>} : vector<16x3456xbf16>, vector<3456x384xbf16>, vector<16x384xf32> -> vector<16x384xf32>
    %c0_3 = arith.constant 0 : index
    %c0_4 = arith.constant 0 : index
    %3 = vector.load %arg3[%c0_3, %c0_4] : memref<1x384xf32, #tpu.memory_space<vmem>>, vector<1x384xf32>
    %4 = vector.broadcast %3 : vector<1x384xf32> to vector<16x384xf32>
    %5 = arith.mulf %2, %4 : vector<16x384xf32>
    %c0_5 = arith.constant 0 : index
    %c0_6 = arith.constant 0 : index
    %6 = vector.load %arg4[%c0_5, %c0_6] : memref<1x384xf32, #tpu.memory_space<vmem>>, vector<1x384xf32>
    %7 = vector.broadcast %6 : vector<1x384xf32> to vector<16x384xf32>
    %8 = arith.addf %5, %7 : vector<16x384xf32>
    %cst_7 = arith.constant 0.000000e+00 : f32
    %9 = vector.broadcast %cst_7 : f32 to vector<16x384xf32>
    %10 = arith.maximumf %8, %9 : vector<16x384xf32>
    %c0_8 = arith.constant 0 : index
    %c0_9 = arith.constant 0 : index
    %11 = vector.load %arg10[%c0_8, %c0_9] : memref<16x1024xf32, #tpu.memory_space<vmem>>, vector<16x384xf32>
    tpu.vector_store %arg10[%c0_8, %c0_9], %10 {strides = array<i32>} : memref<16x1024xf32, #tpu.memory_space<vmem>>, vector<16x384xf32>,
    %c0_10 = arith.constant 0 : index
    %c0_11 = arith.constant 0 : index
    %12 = vector.load %arg5[%c0_10, %c0_11] : memref<16x2048xbf16, #tpu.memory_space<vmem>>, vector<16x2048xbf16>
    %c0_12 = arith.constant 0 : index
    %c0_13 = arith.constant 0 : index
    %13 = vector.load %arg6[%c0_12, %c0_13] : memref<2048x256xbf16, #tpu.memory_space<vmem>>, vector<2048x256xbf16>
    %cst_14 = arith.constant dense<0.000000e+00> : vector<16x256xf32>
    %14 = tpu.matmul %12, %13, %cst_14 {dimension_numbers = #tpu.dot_dimension_numbers<[1], [0], [0], [1], [0, 0, 1, 1], [], []>} : vector<16x2048xbf16>, vector<2048x256xbf16>, vector<16x256xf32> -> vector<16x256xf32>
    %c0_15 = arith.constant 0 : index
    %c0_16 = arith.constant 0 : index
    %15 = vector.load %arg7[%c0_15, %c0_16] : memref<1x256xf32, #tpu.memory_space<vmem>>, vector<1x256xf32>
    %16 = vector.broadcast %15 : vector<1x256xf32> to vector<16x256xf32>
    %17 = arith.mulf %14, %16 : vector<16x256xf32>
    %c0_17 = arith.constant 0 : index
    %c0_18 = arith.constant 0 : index
    %18 = vector.load %arg8[%c0_17, %c0_18] : memref<1x256xf32, #tpu.memory_space<vmem>>, vector<1x256xf32>
    %19 = vector.broadcast %18 : vector<1x256xf32> to vector<16x256xf32>
    %20 = arith.addf %17, %19 : vector<16x256xf32>
    %cst_19 = arith.constant 0.000000e+00 : f32
    %21 = vector.broadcast %cst_19 : f32 to vector<16x256xf32>
    %22 = arith.maximumf %20, %21 : vector<16x256xf32>
    %c0_20 = arith.constant 0 : index
    %c384 = arith.constant 384 : index
    %23 = vector.load %arg10[%c0_20, %c384] : memref<16x1024xf32, #tpu.memory_space<vmem>>, vector<16x256xf32>
    tpu.vector_store %arg10[%c0_20, %c384], %22 {strides = array<i32>} : memref<16x1024xf32, #tpu.memory_space<vmem>>, vector<16x256xf32>,
    %c0_21 = arith.constant 0 : index
    %c0_22 = arith.constant 0 : index
    %24 = vector.load %arg9[%c0_21, %c0_22] : memref<16x384xf32, #tpu.memory_space<vmem>>, vector<16x384xf32>
    %c0_23 = arith.constant 0 : index
    %c640 = arith.constant 640 : index
    %25 = vector.load %arg10[%c0_23, %c640] : memref<16x1024xf32, #tpu.memory_space<vmem>>, vector<16x384xf32>
    tpu.vector_store %arg10[%c0_23, %c640], %24 {strides = array<i32>} : memref<16x1024xf32, #tpu.memory_space<vmem>>, vector<16x384xf32>,
    return
  }
  func.func @transform_0(%arg0: i32) -> (i32, i32) {
    %c0_i32 = arith.constant 0 : i32
    %c0_i32_0 = arith.constant 0 : i32
    return %arg0, %c0_i32 : i32, i32
  }
  func.func @transform_1(%arg0: i32) -> (i32, i32) {
    %c0_i32 = arith.constant 0 : i32
    %c0_i32_0 = arith.constant 0 : i32
    %c0_i32_1 = arith.constant 0 : i32
    return %c0_i32, %c0_i32_0 : i32, i32
  }
  func.func @transform_2(%arg0: i32) -> (i32, i32) {
    %c0_i32 = arith.constant 0 : i32
    %c0_i32_0 = arith.constant 0 : i32
    %c0_i32_1 = arith.constant 0 : i32
    return %c0_i32, %c0_i32_0 : i32, i32
  }
  func.func @transform_3(%arg0: i32) -> (i32, i32) {
    %c0_i32 = arith.constant 0 : i32
    %c0_i32_0 = arith.constant 0 : i32
    %c0_i32_1 = arith.constant 0 : i32
    return %c0_i32, %c0_i32_0 : i32, i32
  }
  func.func @transform_4(%arg0: i32) -> (i32, i32) {
    %c0_i32 = arith.constant 0 : i32
    %c0_i32_0 = arith.constant 0 : i32
    return %arg0, %c0_i32 : i32, i32
  }
  func.func @transform_5(%arg0: i32) -> (i32, i32) {
    %c0_i32 = arith.constant 0 : i32
    %c0_i32_0 = arith.constant 0 : i32
    %c0_i32_1 = arith.constant 0 : i32
    return %c0_i32, %c0_i32_0 : i32, i32
  }
  func.func @transform_6(%arg0: i32) -> (i32, i32) {
    %c0_i32 = arith.constant 0 : i32
    %c0_i32_0 = arith.constant 0 : i32
    %c0_i32_1 = arith.constant 0 : i32
    return %c0_i32, %c0_i32_0 : i32, i32
  }
  func.func @transform_7(%arg0: i32) -> (i32, i32) {
    %c0_i32 = arith.constant 0 : i32
    %c0_i32_0 = arith.constant 0 : i32
    %c0_i32_1 = arith.constant 0 : i32
    return %c0_i32, %c0_i32_0 : i32, i32
  }
  func.func @transform_8(%arg0: i32) -> (i32, i32) {
    %c0_i32 = arith.constant 0 : i32
    %c0_i32_0 = arith.constant 0 : i32
    return %arg0, %c0_i32 : i32, i32
  }
  func.func @transform_9(%arg0: i32) -> (i32, i32) {
    %c0_i32 = arith.constant 0 : i32
    %c0_i32_0 = arith.constant 0 : i32
    return %arg0, %c0_i32 : i32, i32
  }
}

</mosaic_0001>

<bundles_post_ra>
// kernel: reduction_a_forward.3
= control target key start
LH: loop header
LB: loop body
LE: loop exit
PB: predicated region body
PF: predicated region fallthrough
CT: control target
= control target key end

     0   :  { %s1280_s15 = smov 0   ;;  %s1611_s0 = inlined_call_operand.vmem [shape: bf16[176,384], index: 0, kind: input, shape index: {}]   ;;  %s1612_s1 = inlined_call_operand.vmem [shape: bf16[384,192], index: 1, kind: input, shape index: {}]   ;;  %s1613_s2 = inlined_call_operand.vmem [shape: f32[1,192], index: 2, kind: input, shape index: {}]   ;;  %s1614_s3 = inlined_call_operand.vmem [shape: f32[1,192], index: 3, kind: input, shape index: {}]   ;;  %s1615_s4 = inlined_call_operand.vmem [shape: bf16[176,192], index: 4, kind: output, shape index: {}]  }
   0x1 LB: > { %s1020_s16 = sadd.s32 4294967295, %s1252_s15   ;;  %p1024_p0 = scmp.ge.s32.totalorder %s1252_s15, 1  ;;  %s1252_s15 = sphi %s1280_s15, %s14_s15  }
   0x2   : > { %p164_p1 = scmp.lt.s32.totalorder %s1252_s15, 3 }
   0x4   : > { %p165_p2 = pnand %p1024_p0, %p164_p1 }
   0x5   : > { %v1151_v0 = vld [vmem:[%s1612_s1 + $0x4] ss:$8 sps:$4 sm:$0xff] (!%p165_p2)   ;;  %v1153_v1 = vld [vmem:[%s1612_s1] ss:$8 sps:$4 sm:$0xff] (!%p165_p2)   ;;  %v1254_v2 = vmov (!%p165_p2), 0   ;;  %s192_s23 = smul.u32 (!%p165_p2), 11, %s1020_s16 }
   0x6   : > { %168 = sbr.rel (%p165_p2) target bundleno = 334 (0x14e), region = 36  ;;  %731 = vmatprep.mubr.bf16.mxu0 (!%p165_p2), %v1254_v2  ;;  %608 = vmatprep.subr.bf16.mxu1 (!%p165_p2), %v1151_v0  ;;  %v1154_v3 = vld [vmem:[%s1612_s1 + $0x14] ss:$8 sps:$4 sm:$0xff] (!%p165_p2)   ;;  %v1156_v4 = vld [vmem:[%s1612_s1 + $0x10] ss:$8 sps:$4 sm:$0xff] (!%p165_p2)   ;;  %vm948_vm0 = vcmask (!%p165_p2), 1043456  }
   0x7   : > { %609 = vmatpush1.bf16.msra.mxu1 (!%p165_p2), %v1153_v1  ;;  %v1157_v5 = vld [vmem:[%s1612_s1 + $0x24] ss:$8 sps:$4 sm:$0xff] (!%p165_p2)   ;;  %v1159_v6 = vld [vmem:[%s1612_s1 + $0x20] ss:$8 sps:$4 sm:$0xff] (!%p165_p2)   ;;  %v1160_v7 = vld [vmem:[%s1612_s1 + $0x34] ss:$8 sps:$4 sm:$0xff] (!%p165_p2)  }
   0x8   : > { %610 = vmatprep.subr.bf16.mxu1 (!%p165_p2), %v1154_v3  ;;  %v1162_v8 = vld [vmem:[%s1612_s1 + $0x30] ss:$8 sps:$4 sm:$0xff] (!%p165_p2)   ;;  %v1175_v9 = vld [vmem:[%s1612_s1 + $0x104] ss:$8 sps:$4 sm:$0xff] (!%p165_p2)   ;;  %v1177_v10 = vld [vmem:[%s1612_s1 + $0x100] ss:$8 sps:$4 sm:$0xff] (!%p165_p2)  }
   0x9   : > { %v1163_v11 = vld [vmem:[%s1612_s1 + $0x44] ss:$8 sps:$4 sm:$0xff] (!%p165_p2)   ;;  %699 = vmatprep.subr.bf16.mxu0 (!%p165_p2), %v1175_v9  ;;  %v1181_v12 = vld [vmem:[%s1612_s1 + $0x114] ss:$8 sps:$4 sm:$0xff] (!%p165_p2)   ;;  %v1183_v13 = vld [vmem:[%s1612_s1 + $0x110] ss:$8 sps:$4 sm:$0xff] (!%p165_p2)  }
   0xa   : > { %700 = vmatpush1.bf16.msra.mxu0 (!%p165_p2), %v1177_v10  ;;  %v1165_v14 = vld [vmem:[%s1612_s1 + $0x40] ss:$8 sps:$4 sm:$0xff] (!%p165_p2)   ;;  %v1166_v15 = vld [vmem:[%s1612_s1 + $0x54] ss:$8 sps:$4 sm:$0xff] (!%p165_p2)   ;;  %v1187_v16 = vld [vmem:[%s1612_s1 + $0x124] ss:$8 sps:$4 sm:$0xff] (!%p165_p2)  }
   0xb   : > { %611 = vmatpush1.bf16.msra.mxu1 (!%p165_p2), %v1156_v4  ;;  %701 = vmatprep.subr.bf16.mxu0 (!%p165_p2), %v1181_v12  ;;  %v1189_v17 = vld [vmem:[%s1612_s1 + $0x120] ss:$8 sps:$4 sm:$0xff] (!%p165_p2)   ;;  %v1168_v18 = vld [vmem:[%s1612_s1 + $0x50] ss:$8 sps:$4 sm:$0xff] (!%p165_p2)   ;;  %v1193_v19 = vld [vmem:[%s1612_s1 + $0x134] ss:$8 sps:$4 sm:$0xff] (!%p165_p2)  }
   0xc   : > { %612 = vmatprep.subr.bf16.mxu1 (!%p165_p2), %v1157_v5  ;;  %p193_p3 = scmp.lt.s32.totalorder (!%p165_p2), %s192_s23, 21  ;;  %v1169_v20 = vld [vmem:[%s1612_s1 + $0x64] ss:$8 sps:$4 sm:$0xff] (!%p165_p2)   ;;  %v1195_v21 = vld [vmem:[%s1612_s1 + $0x130] ss:$8 sps:$4 sm:$0xff] (!%p165_p2)   ;;  %vm949_vm1 = vcmask (!%p165_p2), 523268  }
   0xd   : > { %v1171_v22 = vld [vmem:[%s1612_s1 + $0x60] ss:$8 sps:$4 sm:$0xff]   ;;  %v1199_v23 = vld [vmem:[%s1612_s1 + $0x144] ss:$8 sps:$4 sm:$0xff]   ;;  %v1172_v24 = vld [vmem:[%s1612_s1 + $0x74] ss:$8 sps:$4 sm:$0xff]  }
   0xe   : > { %702 = vmatpush1.bf16.msra.mxu0 %v1183_v13  ;;  %s1619_s23 = smov (!%p193_p3, %s192_s23), 21  ;;  %v1201_v25 = vld [vmem:[%s1612_s1 + $0x140] ss:$8 sps:$4 sm:$0xff]   ;;  %v1174_v26 = vld [vmem:[%s1612_s1 + $0x70] ss:$8 sps:$4 sm:$0xff]   ;;  %vm1509_vm2 = vmor %vm949_vm1, %vm948_vm0 }
   0xf   : > { %613 = vmatpush1.bf16.msra.mxu1 %v1159_v6  ;;  %703 = vmatprep.subr.bf16.mxu0 %v1187_v16  ;;  %v1205_v27 = vld [vmem:[%s1612_s1 + $0x154] ss:$8 sps:$4 sm:$0xff]   ;;  %s1141_s24 = smul.u32 12, %s1619_s23  ;;  %v1178_v28 = vld [vmem:[%s1612_s1 + $0x84] ss:$8 sps:$4 sm:$0xff]   ;;  %s1107_s26 = sshll.u32 %s1619_s23, 3 }
  0x10   : > { %614 = vmatprep.subr.bf16.mxu1 %v1160_v7  ;;  %v1207_v29 = vld [vmem:[%s1612_s1 + $0x150] ss:$8 sps:$4 sm:$0xff]   ;;  %v1180_v30 = vld [vmem:[%s1612_s1 + $0x80] ss:$8 sps:$4 sm:$0xff]   ;;  %v1211_v31 = vld [vmem:[%s1612_s1 + $0x164] ss:$8 sps:$4 sm:$0xff]   ;;  %s1507_s29 = scalar_lea.vmem %s1615_s4, %s1107_s26 }
  0x11   : > { %s1390_s8 = scalar_lea.vmem %s1611_s0, %s1141_s24  ;;  %v1184_v32 = vld [vmem:[%s1612_s1 + $0x94] ss:$8 sps:$4 sm:$0xff]   ;;  %v1186_v33 = vld [vmem:[%s1612_s1 + $0x90] ss:$8 sps:$4 sm:$0xff]   ;;  %v1213_v34 = vld [vmem:[%s1612_s1 + $0x160] ss:$8 sps:$4 sm:$0xff]  }
  0x12   : > { %704 = vmatpush1.bf16.msra.mxu0 %v1189_v17  ;;  %v1226_v35 = vld [vmem:[%s1390_s8 + $0x4] ss:$12 sps:$4 sm:$0xff]   ;;  %v1217_v36 = vld [vmem:[%s1612_s1 + $0x174] ss:$8 sps:$4 sm:$0xff]   ;;  %v1192_v39 = vld [vmem:[%s1612_s1 + $0xa0] ss:$8 sps:$4 sm:$0xff]  }
  0x13   : > { %615 = vmatpush1.bf16.msra.mxu1 %v1162_v8  ;;  %705 = vmatprep.subr.bf16.mxu0 %v1193_v19  ;;  %v1190_v37 = vld [vmem:[%s1612_s1 + $0xa4] ss:$8 sps:$4 sm:$0xff]   ;;  %v1219_v38 = vld [vmem:[%s1612_s1 + $0x170] ss:$8 sps:$4 sm:$0xff]   ;;  %v1196_v40 = vld [vmem:[%s1612_s1 + $0xb4] ss:$8 sps:$4 sm:$0xff]   ;;  %v792_v8 = vlaneseq }
  0x14   : > { %616 = vmatprep.subr.bf16.mxu1 %v1163_v11  ;;  %640 = vmatprep.mubr.bf16.mxu1 %v1226_v35  ;;  %v1223_v41 = vld [vmem:[%s1390_s8 + $0x8] ss:$12 sps:$4 sm:$0xff]   ;;  %v1198_v42 = vld [vmem:[%s1612_s1 + $0xb0] ss:$8 sps:$4 sm:$0xff]   ;;  %v1202_v43 = vld [vmem:[%s1612_s1 + $0xc4] ss:$8 sps:$4 sm:$0xff]  }
  0x15   : > { %v1204_v44 = vld [vmem:[%s1612_s1 + $0xc0] ss:$8 sps:$4 sm:$0xff]   ;;  %v1208_v45 = vld [vmem:[%s1612_s1 + $0xd4] ss:$8 sps:$4 sm:$0xff]   ;;  %v1210_v47 = vld [vmem:[%s1612_s1 + $0xd0] ss:$8 sps:$4 sm:$0xff]  }
  0x16   : > { %706 = vmatpush1.bf16.msra.mxu0 %v1195_v21  ;;  %v1227_v46 = vld [vmem:[%s1390_s8 + $0x20] ss:$12 sps:$4 sm:$0xff]   ;;  %v1220_v50 = vld [vmem:[%s1612_s1 + $0xf4] ss:$8 sps:$4 sm:$0xff]   ;;  %v1231_v51 = vld [vmem:[%s1390_s8 + $0x38] ss:$12 sps:$4 sm:$0xff]  }
  0x17   : > { %617 = vmatpush1.bf16.msra.mxu1 %v1165_v14  ;;  %707 = vmatprep.subr.bf16.mxu0 %v1199_v23  ;;  %v1214_v48 = vld [vmem:[%s1612_s1 + $0xe4] ss:$8 sps:$4 sm:$0xff]   ;;  %v1216_v49 = vld [vmem:[%s1612_s1 + $0xe0] ss:$8 sps:$4 sm:$0xff]   ;;  %v1222_v52 = vld [vmem:[%s1612_s1 + $0xf0] ss:$8 sps:$4 sm:$0xff]  }
  0x18   : > { %618 = vmatprep.subr.bf16.mxu1 %v1166_v15  ;;  %v1224_v53 = vld [vmem:[%s1390_s8] ss:$12 sps:$4 sm:$0xff]   ;;  %v1228_v54 = vld [vmem:[%s1390_s8 + $0x1c] ss:$12 sps:$4 sm:$0xff]   ;;  %v1230_v56 = vld [vmem:[%s1390_s8 + $0x18] ss:$12 sps:$4 sm:$0xff]  }
  0x19   : > { %v1235_v55 = vld [vmem:[%s1390_s8 + $0x50] ss:$12 sps:$4 sm:$0xff]   ;;  %v1232_v57 = vld [vmem:[%s1390_s8 + $0x34] ss:$12 sps:$4 sm:$0xff]   ;;  %v1236_v60 = vld [vmem:[%s1390_s8 + $0x4c] ss:$12 sps:$4 sm:$0xff]  }
  0x1a   : > { %708 = vmatpush1.bf16.msra.mxu0 %v1201_v25  ;;  %v1239_v58 = vld [vmem:[%s1390_s8 + $0x68] ss:$12 sps:$4 sm:$0xff]   ;;  %v1234_v59 = vld [vmem:[%s1390_s8 + $0x30] ss:$12 sps:$4 sm:$0xff]   ;;  %v1243_v61 = vld [vmem:[%s1390_s8 + $0x80] ss:$0 sps:$4 sm:$0xff]  }
  0x1b   : > { %619 = vmatpush1.bf16.msra.mxu1 %v1168_v18  ;;  %709 = vmatprep.subr.bf16.mxu0 %v1205_v27  ;;  %v1238_v62 = vld [vmem:[%s1390_s8 + $0x48] ss:$12 sps:$4 sm:$0xff]   ;;  %v1240_v63 = vld [vmem:[%s1390_s8 + $0x64] ss:$12 sps:$4 sm:$0xff]   ;;  %v227_v0 = vld [vmem:[%s1390_s8 + $0x78] sm:$0xff]  ;;  %v793_v13 = vshrl.u32 %v792_v8, 7 }
  0x1c   : > { %620 = vmatprep.subr.bf16.mxu1 %v1169_v20  ;;  %v1242_v1 = vld [vmem:[%s1390_s8 + $0x60] ss:$12 sps:$4 sm:$0xff]   ;;  %v1044_v3 = vcombine.high %v227_v0, %v227_v0  ;;  %v1043_v4 = vcombine.low %v227_v0, %v227_v0 }
  0x1d   : > { %v794_v14 = vsub.s32 0, %v793_v13  ;;  %v790_v16 = vld [vmem:[%s1613_s2] sm:$0x3]  ;;  %v798_v17 = vsub.s32 1, %v793_v13 }
  0x1e   : > { %710 = vmatpush1.bf16.msra.mxu0 %v1207_v29  ;;  %v824_v20 = vld [vmem:[%s1614_s3] sm:$0x3] }
  0x1f   : > { %621 = vmatpush1.bf16.msra.mxu1 %v1171_v22  ;;  %711 = vmatprep.subr.bf16.mxu0 %v1211_v31  ;;  %v1479_v22 = vrot.slane %v790_v16, %v794_v14  ;;  %v1485_v29 = vrot.slane %v824_v20, %v798_v17 }
  0x20   : > { %622 = vmatprep.subr.bf16.mxu1 %v1172_v24  ;;  %v1481_v24 = vrot.slane %v790_v16, %v798_v17 }
  0x22   : > { %712 = vmatpush1.bf16.msra.mxu0 %v1213_v34 }
  0x23   : > { %623 = vmatpush1.bf16.msra.mxu1 %v1174_v26  ;;  %713 = vmatprep.subr.bf16.mxu0 %v1217_v36  ;;  %v1483_v26 = vrot.slane %v824_v20, %v794_v14 }
  0x24   : > { %624 = vmatprep.subr.bf16.mxu1 %v1178_v28 }
  0x26   : > { %714 = vmatpush1.bf16.msra.mxu0 %v1219_v38 }
  0x27   : > { %625 = vmatpush1.bf16.msra.mxu1 %v1180_v30 }
  0x28   : > { %626 = vmatprep.subr.bf16.mxu1 %v1184_v32 }
  0x29   : > { %732 = vmatmul.mubr.bf16.vlgmr.msra.gmra.mrb[0].mxu0 %v1223_v41 }
  0x2a   : > { %741 = vmatprep.mubr.bf16.mxu0 %v1254_v2 }
  0x2b   : > { %627 = vmatpush1.bf16.msra.mxu1 %v1186_v33 }
  0x2c   : > { %628 = vmatprep.subr.bf16.mxu1 %v1190_v37 }
  0x2f   : > { %629 = vmatpush1.bf16.msra.mxu1 %v1192_v39 }
  0x30   : > { %630 = vmatprep.subr.bf16.mxu1 %v1196_v40 }
  0x31   : > { %742 = vmatmul.mubr.bf16.gmra.mrb[4].mxu0 %v1227_v46 }
  0x32   : > { %751 = vmatprep.mubr.bf16.mxu0 %v1254_v2 }
  0x33   : > { %631 = vmatpush1.bf16.msra.mxu1 %v1198_v42 }
  0x34   : > { %632 = vmatprep.subr.bf16.mxu1 %v1202_v43 }
  0x37   : > { %633 = vmatpush1.bf16.msra.mxu1 %v1204_v44 }
  0x38   : > { %634 = vmatprep.subr.bf16.mxu1 %v1208_v45 }
  0x39   : > { %752 = vmatmul.mubr.bf16.gmra.mrb[8].mxu0 %v1231_v51 }
  0x3a   : > { %761 = vmatprep.mubr.bf16.mxu0 %v1254_v2 }
  0x3b   : > { %635 = vmatpush1.bf16.msra.mxu1 %v1210_v47 }
  0x3c   : > { %636 = vmatprep.subr.bf16.mxu1 %v1214_v48 }
  0x3f   : > { %637 = vmatpush1.bf16.msra.mxu1 %v1216_v49 }
  0x40   : > { %638 = vmatprep.subr.bf16.mxu1 %v1220_v50 }
  0x41   : > { %762 = vmatmul.mubr.bf16.gmra.mrb[12].mxu0 %v1235_v55 }
  0x42   : > { %771 = vmatprep.mubr.bf16.mxu0 %v1254_v2 }
  0x43   : > { %639 = vmatpush1.bf16.msra.mxu1 %v1222_v52 }
  0x46   : > { %641 = vmatmul.mubr.bf16.vlgmr.msra.gmra.mrb[0].mxu1 %v1224_v53 }
  0x47   : > { %650 = vmatprep.mubr.bf16.mxu1 %v1228_v54 }
  0x49   : > { %772 = vmatmul.mubr.bf16.gmra.mrb[16].mxu0 %v1239_v58 }
  0x4a   : > { %781 = vmatprep.mubr.bf16.mxu0 %v1254_v2 }
  0x4e   : > { %651 = vmatmul.mubr.bf16.gmra.mrb[4].mxu1 %v1230_v56 }
  0x4f   : > { %660 = vmatprep.mubr.bf16.mxu1 %v1232_v57 }
  0x51   : > { %782 = vmatmul.mubr.bf16.gmra.mrb[20].mxu0 %v1243_v61 }
  0x56   : > { %661 = vmatmul.mubr.bf16.gmra.mrb[8].mxu1 %v1234_v59 }
  0x57   : > { %670 = vmatprep.mubr.bf16.mxu1 %v1236_v60 }
  0x5e   : > { %671 = vmatmul.mubr.bf16.gmra.mrb[12].mxu1 %v1238_v62 }
  0x5f   : > { %680 = vmatprep.mubr.bf16.mxu1 %v1240_v63 }
  0x66   : > { %681 = vmatmul.mubr.bf16.gmra.mrb[16].mxu1 %v1242_v1 }
  0x67   : > { %690 = vmatprep.mubr.bf16.mxu1 %v1044_v3 }
  0x6e   : > { %691 = vmatmul.mubr.bf16.gmra.mrb[20].mxu1 %v1043_v4 }
  0xfc   : > { %v733_v5 = vpop.f32.mrb[0].mxu0 }
  0xfd   : > { %v735_v6 = vpop.f32.mrb[1].mxu0 }
  0xfe   : > { %v737_v7 = vpop.f32.mrb[2].mxu0 }
  0xff   : > { %v739_v2 = vpop.f32.mrb[3].mxu0 }
 0x104   : > { %v743_v9 = vpop.f32.mrb[4].mxu0 }
 0x105   : > { %v745_v10 = vpop.f32.mrb[5].mxu0 }
 0x106   : > { %v747_v11 = vpop.f32.mrb[6].mxu0 }
 0x107   : > { %v749_v12 = vpop.f32.mrb[7].mxu0 }
 0x10c   : > { %v1465_v15 = vpop.f32.mrb[8].mxu0 }
 0x10d   : > { %v1470_v18 = vpop.f32.mrb[9].mxu0 }
 0x10e   : > { %v1472_v19 = vpop.f32.mrb[10].mxu0 }
 0x10f   : > { %v1477_v21 = vpop.f32.mrb[11].mxu0 }
 0x114   : > { %v1488_v34 = vpop.f32.mrb[12].mxu0 }
 0x115   : > { %v1491_v37 = vpop.f32.mrb[13].mxu0 }
 0x116   : > { %v1495_v40 = vpop.f32.mrb[14].mxu0 }
 0x117   : > { %v1500_v43 = vpop.f32.mrb[15].mxu0 }
 0x119   : > { %v642_v23 = vpop.f32.mrb[0].mxu1 }
 0x11a   : > { %v734_v25 = vadd.f32 %v733_v5, %v642_v23  ;;  %v644_v27 = vpop.f32.mrb[1].mxu1 }
 0x11b   : > { %v736_v28 = vadd.f32 %v735_v6, %v644_v27  ;;  %v646_v30 = vpop.f32.mrb[2].mxu1 }
 0x11c   : > { %v802_v31 = vmul.f32 %v1479_v22, %v734_v25  ;;  %v738_v32 = vadd.f32 %v737_v7, %v646_v30  ;;  %v648_v33 = vpop.f32.mrb[3].mxu1  ;;  %v1514_v60 = vpop.f32.mrb[16].mxu0 }
 0x11d   : > { %v803_v35 = vmul.f32 %v1481_v24, %v736_v28  ;;  %v740_v36 = vadd.f32 %v739_v2, %v648_v33  ;;  %v1520_v0 = vpop.f32.mrb[17].mxu0 }
 0x11e   : > { %v836_v38 = vadd.f32 %v1483_v26, %v802_v31  ;;  %v804_v39 = vmul.f32 %v1479_v22, %v738_v32  ;;  %v1524_v4 = vpop.f32.mrb[18].mxu0 }
 0x11f   : > { %v837_v41 = vadd.f32 %v1485_v29, %v803_v35  ;;  %v805_v42 = vmul.f32 %v1481_v24, %v740_v36  ;;  %v1531_v7 = vpop.f32.mrb[19].mxu0 }
 0x120   : > { %v858_v44 = vmax.f32 %v836_v38, 0.0  ;;  %v838_v45 = vadd.f32 %v1483_v26, %v804_v39 }
 0x121   : > { %v859_v46 = vmax.f32 %v837_v41, 0.0  ;;  %v839_v47 = vadd.f32 %v1485_v29, %v805_v42  ;;  %v652_v48 = vpop.f32.mrb[4].mxu1 }
 0x122   : > { %v860_v50 = vmax.f32 %v838_v45, 0.0  ;;  %v744_v51 = vadd.f32 %v743_v9, %v652_v48  ;;  %v654_v52 = vpop.f32.mrb[5].mxu1 }
 0x123   : > { %v1108_v53 = vpack.c.bf16 %v859_v46, %v858_v44  ;;  %v861_v54 = vmax.f32 %v839_v47, 0.0  ;;  %v746_v55 = vadd.f32 %v745_v10, %v654_v52  ;;  %v656_v56 = vpop.f32.mrb[6].mxu1 }
 0x124   : > { %v806_v57 = vmul.f32 %v1479_v22, %v744_v51  ;;  %v748_v58 = vadd.f32 %v747_v11, %v656_v56  ;;  %v658_v59 = vpop.f32.mrb[7].mxu1  ;;  %v1539_v30 = vpop.f32.mrb[20].mxu0 }
 0x125   : > { %951 = vst.msk [vmem:[%s1507_s29] sm:$0xff] %vm1509_vm2, %v1108_v53  ;;  %v1109_v61 = vpack.c.bf16 %v861_v54, %v860_v50  ;;  %v807_v62 = vmul.f32 %v1481_v24, %v746_v55  ;;  %v750_v63 = vadd.f32 %v749_v12, %v658_v59  ;;  %v1546_v33 = vpop.f32.mrb[21].mxu0 }
 0x126   : > { %v840_v1 = vadd.f32 %v1483_v26, %v806_v57  ;;  %v808_v3 = vmul.f32 %v1479_v22, %v748_v58  ;;  %v787_v36 = vpop.f32.mrb[22].mxu0 }
 0x127   : > { %952 = vst.msk [vmem:[%s1507_s29 + $0x8] sm:$0xff] %vm1509_vm2, %v1109_v61  ;;  %v841_v5 = vadd.f32 %v1485_v29, %v807_v62  ;;  %v809_v6 = vmul.f32 %v1481_v24, %v750_v63  ;;  %v788_v39 = vpop.f32.mrb[23].mxu0 }
 0x128   : > { %v862_v2 = vmax.f32 %v840_v1, 0.0  ;;  %v842_v8 = vadd.f32 %v1483_v26, %v808_v3 }
 0x129   : > { %v863_v9 = vmax.f32 %v841_v5, 0.0  ;;  %v843_v10 = vadd.f32 %v1485_v29, %v809_v6  ;;  %v662_v11 = vpop.f32.mrb[8].mxu1 }
 0x12a   : > { %v864_v12 = vmax.f32 %v842_v8, 0.0  ;;  %v754_v13 = vadd.f32 %v1465_v15, %v662_v11  ;;  %v664_v14 = vpop.f32.mrb[9].mxu1 }
 0x12b   : > { %v1110_v16 = vpack.c.bf16 %v863_v9, %v862_v2  ;;  %v865_v17 = vmax.f32 %v843_v10, 0.0  ;;  %v756_v20 = vadd.f32 %v1470_v18, %v664_v14  ;;  %v666_v23 = vpop.f32.mrb[10].mxu1 }
 0x12c   : > { %v810_v25 = vmul.f32 %v1479_v22, %v754_v13  ;;  %v758_v27 = vadd.f32 %v1472_v19, %v666_v23  ;;  %v668_v28 = vpop.f32.mrb[11].mxu1 }
 0x12d   : > { %953 = vst.msk [vmem:[%s1507_s29 + $0x10] sm:$0xff] %vm1509_vm2, %v1110_v16  ;;  %v1111_v31 = vpack.c.bf16 %v865_v17, %v864_v12  ;;  %v811_v15 = vmul.f32 %v1481_v24, %v756_v20  ;;  %v760_v32 = vadd.f32 %v1477_v21, %v668_v28 }
 0x12e   : > { %v844_v18 = vadd.f32 %v1483_v26, %v810_v25  ;;  %v812_v35 = vmul.f32 %v1479_v22, %v758_v27 }
 0x12f   : > { %954 = vst.msk [vmem:[%s1507_s29 + $0x18] sm:$0xff] %vm1509_vm2, %v1111_v31  ;;  %v845_v19 = vadd.f32 %v1485_v29, %v811_v15  ;;  %v813_v38 = vmul.f32 %v1481_v24, %v760_v32 }
 0x130   : > { %v866_v41 = vmax.f32 %v844_v18, 0.0  ;;  %v846_v42 = vadd.f32 %v1483_v26, %v812_v35 }
 0x131   : > { %v867_v21 = vmax.f32 %v845_v19, 0.0  ;;  %v847_v44 = vadd.f32 %v1485_v29, %v813_v38  ;;  %v672_v45 = vpop.f32.mrb[12].mxu1 }
 0x132   : > { %v868_v46 = vmax.f32 %v846_v42, 0.0  ;;  %v764_v47 = vadd.f32 %v1488_v34, %v672_v45  ;;  %v674_v48 = vpop.f32.mrb[13].mxu1 }
 0x133   : > { %v1112_v50 = vpack.c.bf16 %v867_v21, %v866_v41  ;;  %v869_v51 = vmax.f32 %v847_v44, 0.0  ;;  %v766_v52 = vadd.f32 %v1491_v37, %v674_v48  ;;  %v676_v53 = vpop.f32.mrb[14].mxu1 }
 0x134   : > { %v814_v54 = vmul.f32 %v1479_v22, %v764_v47  ;;  %v768_v55 = vadd.f32 %v1495_v40, %v676_v53  ;;  %v678_v56 = vpop.f32.mrb[15].mxu1 }
 0x135   : > { %955 = vst.msk [vmem:[%s1507_s29 + $0x20] sm:$0xff] %vm1509_vm2, %v1112_v50  ;;  %v1113_v57 = vpack.c.bf16 %v869_v51, %v868_v46  ;;  %v815_v58 = vmul.f32 %v1481_v24, %v766_v52  ;;  %v770_v59 = vadd.f32 %v1500_v43, %v678_v56 }
 0x136   : > { %v848_v34 = vadd.f32 %v1483_v26, %v814_v54  ;;  %v816_v61 = vmul.f32 %v1479_v22, %v768_v55 }
 0x137   : > { %956 = vst.msk [vmem:[%s1507_s29 + $0x28] sm:$0xff] %vm1509_vm2, %v1113_v57  ;;  %v849_v37 = vadd.f32 %v1485_v29, %v815_v58  ;;  %v817_v40 = vmul.f32 %v1481_v24, %v770_v59 }
 0x138   : > { %v870_v62 = vmax.f32 %v848_v34, 0.0  ;;  %v850_v63 = vadd.f32 %v1483_v26, %v816_v61 }
 0x139   : > { %v871_v1 = vmax.f32 %v849_v37, 0.0  ;;  %v851_v3 = vadd.f32 %v1485_v29, %v817_v40  ;;  %v682_v5 = vpop.f32.mrb[16].mxu1 }
 0x13a   : > { %v872_v43 = vmax.f32 %v850_v63, 0.0  ;;  %v774_v6 = vadd.f32 %v1514_v60, %v682_v5  ;;  %v684_v2 = vpop.f32.mrb[17].mxu1 }
 0x13b   : > { %v1114_v8 = vpack.c.bf16 %v871_v1, %v870_v62  ;;  %v873_v9 = vmax.f32 %v851_v3, 0.0  ;;  %v776_v10 = vadd.f32 %v1520_v0, %v684_v2  ;;  %v686_v11 = vpop.f32.mrb[18].mxu1 }
 0x13c   : > { %v818_v12 = vmul.f32 %v1479_v22, %v774_v6  ;;  %v778_v13 = vadd.f32 %v1524_v4, %v686_v11  ;;  %v688_v14 = vpop.f32.mrb[19].mxu1 }
 0x13d   : > { %957 = vst.msk [vmem:[%s1507_s29 + $0x30] sm:$0xff] %vm1509_vm2, %v1114_v8  ;;  %v1115_v16 = vpack.c.bf16 %v873_v9, %v872_v43  ;;  %v819_v17 = vmul.f32 %v1481_v24, %v776_v10  ;;  %v780_v20 = vadd.f32 %v1531_v7, %v688_v14 }
 0x13e   : > { %v852_v60 = vadd.f32 %v1483_v26, %v818_v12  ;;  %v820_v23 = vmul.f32 %v1479_v22, %v778_v13 }
 0x13f   : > { %958 = vst.msk [vmem:[%s1507_s29 + $0x38] sm:$0xff] %vm1509_vm2, %v1115_v16  ;;  %v853_v0 = vadd.f32 %v1485_v29, %v819_v17  ;;  %v821_v4 = vmul.f32 %v1481_v24, %v780_v20 }
 0x140   : > { %v874_v25 = vmax.f32 %v852_v60, 0.0  ;;  %v854_v27 = vadd.f32 %v1483_v26, %v820_v23 }
 0x141   : > { %v875_v28 = vmax.f32 %v853_v0, 0.0  ;;  %v855_v31 = vadd.f32 %v1485_v29, %v821_v4  ;;  %v692_v7 = vpop.f32.mrb[20].mxu1 }
 0x142   : > { %v876_v15 = vmax.f32 %v854_v27, 0.0  ;;  %v784_v32 = vadd.f32 %v1539_v30, %v692_v7  ;;  %v694_v18 = vpop.f32.mrb[21].mxu1 }
 0x143   : > { %v1116_v35 = vpack.c.bf16 %v875_v28, %v874_v25  ;;  %v877_v36 = vmax.f32 %v855_v31, 0.0  ;;  %v786_v19 = vadd.f32 %v1546_v33, %v694_v18  ;;  %v696_v38 = vpop.f32.mrb[22].mxu1 }
 0x144   : > { %v822_v39 = vmul.f32 %v1479_v22, %v784_v32  ;;  %v697_v41 = vpop.f32.mrb[23].mxu1 }
 0x145   : > { %959 = vst.msk [vmem:[%s1507_s29 + $0x40] sm:$0xff] %vm1509_vm2, %v1116_v35  ;;  %v1117_v42 = vpack.c.bf16 %v877_v36, %v876_v15  ;;  %v823_v21 = vmul.f32 %v1481_v24, %v786_v19 }
 0x146   : > { %v856_v44 = vadd.f32 %v1483_v26, %v822_v39 }
 0x147   : > { %960 = vst.msk [vmem:[%s1507_s29 + $0x48] sm:$0xff] %vm1509_vm2, %v1117_v42  ;;  %v857_v30 = vadd.f32 %v1485_v29, %v823_v21 }
 0x148   : > { %v878_v45 = vmax.f32 %v856_v44, 0.0 }
 0x149   : > { %v879_v46 = vmax.f32 %v857_v30, 0.0 }
 0x14b   : > { %v1118_v33 = vpack.c.bf16 %v879_v46, %v878_v45 }
 0x14d   : > { %961 = vst.msk [vmem:[%s1507_s29 + $0x50] sm:$0xff] %vm1509_vm2, %v1118_v33 }
 0x14e PF: > { %s14_s15 = sadd.s32 1, %s1252_s15  }
 0x14f   : > { %p11_p4 = scmp.ge.s32.totalorder %s14_s15, 4  }
 0x151   :  { %13 = sbr.rel (!%p11_p4) target bundleno = 1 (0x1), region = 66 }

// kernel: reduction_a_forward.4
= control target key start
LH: loop header
LB: loop body
LE: loop exit
PB: predicated region body
PF: predicated region fallthrough
CT: control target
= control target key end

     0   :  { %s5115_s15 = smov 0   ;;  %s6652_s0 = inlined_call_operand.vmem [shape: bf16[2,128,192], index: 0, kind: input, shape index: {}]   ;;  %s6653_s1 = inlined_call_operand.vmem [shape: bf16[9,192,224], index: 1, kind: input, shape index: {}]   ;;  %s6654_s2 = inlined_call_operand.vmem [shape: f32[1,224], index: 2, kind: input, shape index: {}]   ;;  %s6655_s3 = inlined_call_operand.vmem [shape: f32[1,224], index: 3, kind: input, shape index: {}]   ;;  %s6656_s4 = inlined_call_operand.vmem [shape: bf16[2,104,224], index: 4, kind: output, shape index: {}]  }
   0x1 LB: > { %s3861_s16 = sadd.s32 4294967295, %s5088_s15   ;;  %p3865_p0 = scmp.ge.s32.totalorder %s5088_s15, 1  ;;  %s5088_s15 = sphi %s5115_s15, %s14_s15  }
   0x2   : > { %p162_p1 = scmp.lt.s32.totalorder %s5088_s15, 3 }
   0x4   : > { %p163_p2 = pnand %p3865_p0, %p162_p1 }
   0x5   : > { %v4688_v0 = vld [vmem:[%s6653_s1 + $0xc4] ss:$8 sps:$4 sm:$0xff] (!%p163_p2)   ;;  %v4692_v2 = vld [vmem:[%s6653_s1 + $0xc0] ss:$8 sps:$4 sm:$0xff] (!%p163_p2)   ;;  %v4694_v4 = vld [vmem:[%s6653_s1 + $0xd4] ss:$8 sps:$4 sm:$0xff] (!%p163_p2)  }
   0x6   : > { %166 = sbr.rel (%p163_p2) target bundleno = 529 (0x211), region = 36  ;;  %v4690_v1 = vld [vmem:[%s6653_s1 + $0x304] ss:$8 sps:$4 sm:$0xff] (!%p163_p2)   ;;  %580 = vmatprep.subr.bf16.mxu1 (!%p163_p2), %v4688_v0  ;;  %v4693_v3 = vld [vmem:[%s6653_s1 + $0x300] ss:$8 sps:$4 sm:$0xff] (!%p163_p2)   ;;  %p188_p3 = scmp.lt.s32.totalorder (!%p163_p2), %s3861_s16, 1 }
   0x7   : > { %1960 = vmatprep.subr.bf16.mxu0 (!%p163_p2), %v4690_v1  ;;  %581 = vmatpush1.bf16.msra.mxu1 (!%p163_p2), %v4692_v2  ;;  %v4696_v5 = vld [vmem:[%s6653_s1 + $0x314] ss:$8 sps:$4 sm:$0xff] (!%p163_p2)   ;;  %v4698_v6 = vld [vmem:[%s6653_s1 + $0xd0] ss:$8 sps:$4 sm:$0xff] (!%p163_p2)   ;;  %v4700_v8 = vld [vmem:[%s6653_s1 + $0xe4] ss:$8 sps:$4 sm:$0xff] (!%p163_p2)  }
   0x8   : > { %1961 = vmatpush1.bf16.msra.mxu0 (!%p163_p2), %v4693_v3  ;;  %582 = vmatprep.subr.bf16.mxu1 (!%p163_p2), %v4694_v4  ;;  %v4699_v7 = vld [vmem:[%s6653_s1 + $0x310] ss:$8 sps:$4 sm:$0xff] (!%p163_p2)   ;;  %v4702_v9 = vld [vmem:[%s6653_s1 + $0x324] ss:$8 sps:$4 sm:$0xff] (!%p163_p2)   ;;  %v4704_v10 = vld [vmem:[%s6653_s1 + $0xe0] ss:$8 sps:$4 sm:$0xff] (!%p163_p2)  }
   0x9   : > { %1962 = vmatprep.subr.bf16.mxu0 (!%p163_p2), %v4696_v5  ;;  %v4705_v11 = vld [vmem:[%s6653_s1 + $0x320] ss:$8 sps:$4 sm:$0xff] (!%p163_p2)   ;;  %v4706_v12 = vld [vmem:[%s6653_s1 + $0xf4] ss:$8 sps:$4 sm:$0xff] (!%p163_p2)   ;;  %v4710_v14 = vld [vmem:[%s6653_s1 + $0xf0] ss:$8 sps:$4 sm:$0xff] (!%p163_p2)  }
   0xa   : > { %v4708_v13 = vld [vmem:[%s6653_s1 + $0x334] ss:$8 sps:$4 sm:$0xff] (!%p163_p2)   ;;  %v4711_v15 = vld [vmem:[%s6653_s1 + $0x330] ss:$8 sps:$4 sm:$0xff] (!%p163_p2)   ;;  %v4712_v16 = vld [vmem:[%s6653_s1 + $0x104] ss:$8 sps:$4 sm:$0xff] (!%p163_p2)  }
   0xb   : > { %583 = vmatpush1.bf16.msra.mxu1 (!%p163_p2), %v4698_v6  ;;  %v4714_v17 = vld [vmem:[%s6653_s1 + $0x344] ss:$8 sps:$4 sm:$0xff] (!%p163_p2)   ;;  %v4716_v18 = vld [vmem:[%s6653_s1 + $0x100] ss:$8 sps:$4 sm:$0xff] (!%p163_p2)   ;;  %v4718_v20 = vld [vmem:[%s6653_s1 + $0x114] ss:$8 sps:$4 sm:$0xff] (!%p163_p2)  }
   0xc   : > { %1963 = vmatpush1.bf16.msra.mxu0 (!%p163_p2), %v4699_v7  ;;  %584 = vmatprep.subr.bf16.mxu1 (!%p163_p2), %v4700_v8  ;;  %v4717_v19 = vld [vmem:[%s6653_s1 + $0x340] ss:$8 sps:$4 sm:$0xff] (!%p163_p2)   ;;  %v4720_v21 = vld [vmem:[%s6653_s1 + $0x354] ss:$8 sps:$4 sm:$0xff] (!%p163_p2)   ;;  %v4722_v22 = vld [vmem:[%s6653_s1 + $0x110] ss:$8 sps:$4 sm:$0xff] (!%p163_p2)  }
   0xd   : > { %1964 = vmatprep.subr.bf16.mxu0 %v4702_v9  ;;  %v4723_v23 = vld [vmem:[%s6653_s1 + $0x350] ss:$8 sps:$4 sm:$0xff]   ;;  %v4724_v24 = vld [vmem:[%s6653_s1 + $0x124] ss:$8 sps:$4 sm:$0xff]   ;;  %s6668_s16 = smov (!%p188_p3, %s3861_s16), 1  ;;  %vm1785_vm1 = vcmask 1045504  }
   0xe   : > { %v4726_v25 = vld [vmem:[%s6653_s1 + $0x364] ss:$8 sps:$4 sm:$0xff]   ;;  %v4728_v26 = vld [vmem:[%s6653_s1 + $0x120] ss:$8 sps:$4 sm:$0xff]   ;;  %v4730_v28 = vld [vmem:[%s6653_s1 + $0x134] ss:$8 sps:$4 sm:$0xff]  }
   0xf   : > { %585 = vmatpush1.bf16.msra.mxu1 %v4704_v10  ;;  %v4729_v27 = vld [vmem:[%s6653_s1 + $0x360] ss:$8 sps:$4 sm:$0xff]   ;;  %v4732_v29 = vld [vmem:[%s6653_s1 + $0x374] ss:$8 sps:$4 sm:$0xff]   ;;  %s4421_s29 = sshll.u32 %s6668_s16, 7  ;;  %vm558_vm2 = vcmask 523264  }
  0x10   : > { %1965 = vmatpush1.bf16.msra.mxu0 %v4705_v11  ;;  %586 = vmatprep.subr.bf16.mxu1 %v4706_v12  ;;  %v4734_v30 = vld [vmem:[%s6653_s1 + $0x130] ss:$8 sps:$4 sm:$0xff]   ;;  %v4736_v32 = vld [vmem:[%s6653_s1 + $0x144] ss:$8 sps:$4 sm:$0xff]   ;;  %s5235_s14 = scalar_lea.vmem %s6652_s0, %s4421_s29  ;;  %v4740_v34 = vld [vmem:[%s6653_s1 + $0x140] ss:$8 sps:$4 sm:$0xff]  }
  0x11   : > { %1966 = vmatprep.subr.bf16.mxu0 %v4708_v13  ;;  %v4735_v31 = vld [vmem:[%s6653_s1 + $0x370] ss:$8 sps:$4 sm:$0xff]   ;;  %v4738_v33 = vld [vmem:[%s6653_s1 + $0x384] ss:$8 sps:$4 sm:$0xff]   ;;  %v4741_v35 = vld [vmem:[%s6653_s1 + $0x380] ss:$8 sps:$4 sm:$0xff]  }
  0x12   : > { %v4742_v36 = vld [vmem:[%s6653_s1 + $0x154] ss:$8 sps:$4 sm:$0xff]   ;;  %v201_v38 = vld [vmem:[%s5235_s14] sm:$0xff]  ;;  %v202_v39 = vld [vmem:[%s5235_s14 + $0x8] sm:$0xff]  ;;  %vm320_vm0 = vsmask.f32 7424 }
  0x13   : > { %587 = vmatpush1.bf16.msra.mxu1 %v4710_v14  ;;  %v4744_v37 = vld [vmem:[%s6653_s1 + $0x394] ss:$8 sps:$4 sm:$0xff]   ;;  %v5253_v42 = vcombine.high %v201_v38, %v202_v39  ;;  %v1262_v43 = vld [vmem:[%s5235_s14 + $0x20] sm:$0xff]  ;;  %v1754_v44 = vld [vmem:[%s5235_s14 + $0x8] sm:$0xcc]  ;;  %v5257_v45 = vcombine.low %v201_v38, %v202_v39  ;;  %vm957_vm5 = vcmask 1046528  }
  0x14   : > { %1967 = vmatpush1.bf16.msra.mxu0 %v4711_v15  ;;  %588 = vmatprep.subr.bf16.mxu1 %v4712_v16  ;;  %v203_v40 = vld [vmem:[%s5235_s14 + $0x10] sm:$0xff]  ;;  %v204_v41 = vld [vmem:[%s5235_s14 + $0x18] sm:$0xff]  ;;  %v4748_v58 = vld [vmem:[%s6653_s1 + $0x164] ss:$8 sps:$4 sm:$0xff]   ;;  %vm2118_vm3 = vsmask.f32 5376 }
  0x15   : > { %1968 = vmatprep.subr.bf16.mxu0 %v4714_v17  ;;  %v4746_v46 = vld [vmem:[%s6653_s1 + $0x150] ss:$8 sps:$4 sm:$0xff]   ;;  %v5262_v47 = vcombine.high %v203_v40, %v204_v41  ;;  %v5264_v48 = vcombine.high %v204_v41, %v1262_v43  ;;  %v5266_v49 = vcombine.high %v1754_v44, %v203_v40  ;;  %v334_v51 = vshrl.u32 %v5253_v42, 16  ;;  %v4750_v59 = vld [vmem:[%s6653_s1 + $0x3a4] ss:$8 sps:$4 sm:$0xff]   ;;  %s4679_s12 = smul.u32 104, %s6668_s16 }
  0x16   : > { %v4747_v50 = vld [vmem:[%s6653_s1 + $0x390] ss:$8 sps:$4 sm:$0xff]   ;;  %v336_v52 = vshll.u32 %v5253_v42, 16  ;;  %v5273_v53 = vcombine.low %v203_v40, %v204_v41  ;;  %v324_v54 = vshll.u32 %v5257_v45, 16  ;;  %v206_v61 = vld [vmem:[%s5235_s14 + $0x28] sm:$0xff]  ;;  %v322_v4 = vshrl.u32 %v5257_v45, 16 }
  0x17   : > { %589 = vmatpush1.bf16.msra.mxu1 %v4716_v18  ;;  %v341_v55 = vshll.u32 %v5262_v47, 16  ;;  %v1789_v56 = vrot.slane %v5266_v49, 2  ;;  %v1790_v57 = vrot.slane %v5264_v48, 2  ;;  %v4752_v62 = vld [vmem:[%s6653_s1 + $0x160] ss:$8 sps:$4 sm:$0xff]   ;;  %v5295_v2 = vcombine.high %v1262_v43, %v206_v61  ;;  %v1264_v7 = vld [vmem:[%s5235_s14 + $0x30] sm:$0xff]  ;;  %s6548_s17 = scalar_lea.vmem %s6656_s4, %s4679_s12 }
  0x18   : > { %1969 = vmatpush1.bf16.msra.mxu0 %v4717_v19  ;;  %590 = vmatprep.subr.bf16.mxu1 %v4718_v20  ;;  %v338_v60 = vrot.slane %v336_v52, 1  ;;  %v4753_v63 = vld [vmem:[%s6653_s1 + $0x3a0] ss:$8 sps:$4 sm:$0xff]   ;;  %v326_v5 = vrot.slane %v324_v54, 1  ;;  %v329_v6 = vshll.u32 %v5273_v53, 16  ;;  %v5304_v9 = vcombine.low %v204_v41, %v1262_v43 }
  0x19   : > { %1970 = vmatprep.subr.bf16.mxu0 %v4720_v21  ;;  %v343_v0 = vrot.slane %v341_v55, 1  ;;  %v1791_v1 = vsel %vm1785_vm1, %v1789_v56, %v1790_v57  ;;  %v4754_v8 = vld [vmem:[%s6653_s1 + $0x174] ss:$8 sps:$4 sm:$0xff]   ;;  %v5306_v10 = vcombine.low %v1754_v44, %v203_v40  ;;  %v353_v13 = vshrl.u32 %v5262_v47, 16  ;;  %v4758_v15 = vld [vmem:[%s6653_s1 + $0x170] ss:$8 sps:$4 sm:$0xff]  }
  0x1a   : > { %v339_v3 = vor.u32 %v338_v60, %v334_v51  ;;  %4147 = vmatprep.mubr.msk.bf16.mxu0 %vm558_vm2, %v1791_v1  ;;  %v4756_v11 = vld [vmem:[%s6653_s1 + $0x3b4] ss:$8 sps:$4 sm:$0xff]   ;;  %v357_v14 = vshll.u32 %v5295_v2, 16  ;;  %v5318_v16 = vcombine.high %v206_v61, %v1264_v7  ;;  %v4759_v17 = vld [vmem:[%s6653_s1 + $0x3b0] ss:$8 sps:$4 sm:$0xff]   ;;  %v327_v18 = vor.u32 %v326_v5, %v322_v4 }
  0x1b   : > { %591 = vmatpush1.bf16.msra.mxu1 %v4722_v22  ;;  %v331_v19 = vrot.slane %v329_v6, 1  ;;  %v1786_v20 = vrot.slane %v5306_v10, 2  ;;  %v1787_v21 = vrot.slane %v5304_v9, 2  ;;  %v4770_v22 = vld [vmem:[%s6653_s1 + $0x3c4] ss:$8 sps:$4 sm:$0xff]   ;;  %v369_v40 = vshrl.u32 %v5295_v2, 16 }
  0x1c   : > { %1971 = vmatpush1.bf16.msra.mxu0 %v4723_v23  ;;  %592 = vmatprep.subr.bf16.mxu1 %v4724_v24  ;;  %v344_v12 = vsel %vm320_vm0, %v339_v3, %v343_v0  ;;  %v5328_v23 = vcombine.low %v1262_v43, %v206_v61  ;;  %v208_v24 = vld [vmem:[%s5235_s14 + $0x38] sm:$0xff]  ;;  %v4777_v39 = vld [vmem:[%s6653_s1] ss:$8 sps:$4 sm:$0xff]   ;;  %vm1354_vm4 = vsmask.f32 6400  ;;  %vm2563_vm6 = vcmask 1044480  }
  0x1d   : > { %1972 = vmatprep.subr.bf16.mxu0 %v4726_v25  ;;  %3931 = vmatprep.mubr.msk.bf16.mxu1 %vm558_vm2, %v344_v12  ;;  %v355_v25 = vor.u32 %v353_v13, %v343_v0  ;;  %v4786_v44 = vld [vmem:[%s6653_s1 + $0x14] ss:$8 sps:$4 sm:$0xff]   ;;  %v4771_v51 = vld [vmem:[%s6653_s1 + $0x3d0] ss:$8 sps:$4 sm:$0xff]   ;;  %v5375_v56 = vcombine.low %v1264_v7, %v208_v24  ;;  %v4781_v4 = vld [vmem:[%s6653_s1 + $0x3e0] ss:$8 sps:$4 sm:$0xff]  }
  0x1e   : > { %v4784_v60 = vld [vmem:[%s6653_s1 + $0x10] ss:$8 sps:$4 sm:$0xff]   ;;  %v361_v5 = vshrl.u32 %v5328_v23, 16  ;;  %vm2896_vm7 = vsmask.f32 4352  ;;  %vm3790_vm8 = vcmask 1043456  }
  0x1f   : > { %593 = vmatpush1.bf16.msra.mxu1 %v4728_v26  ;;  %v359_v26 = vrot.slane %v357_v14, 1  ;;  %v5393_v0 = vld [vmem:[%s5235_s14 + $0x50] sm:$0xff]  ;;  %v365_v6 = vshll.u32 %v5375_v56, 16  ;;  %v4795_v14 = vld [vmem:[%s6653_s1 + $0x24] ss:$8 sps:$4 sm:$0xff]   ;;  %vm3791_vm9 = vcmask 785412  }
  0x20   : > { %1973 = vmatpush1.bf16.msra.mxu0 %v4729_v27  ;;  %594 = vmatprep.subr.bf16.mxu1 %v4730_v28  ;;  %v4779_v27 = vld [vmem:[%s6653_s1 + $0x4] ss:$8 sps:$4 sm:$0xff]   ;;  %v5334_v28 = vcombine.high %v1264_v7, %v208_v24  ;;  %v4787_v12 = vld [vmem:[%s6653_s1 + $0x3f0] ss:$8 sps:$4 sm:$0xff]   ;;  %vm6552_vm10 = vmor %vm3791_vm9, %vm3790_vm8 }
  0x21   : > { %1974 = vmatprep.subr.bf16.mxu0 %v4732_v29  ;;  %v1794_v29 = vrot.slane %v5318_v16, 2  ;;  %v360_v38 = vsel %vm320_vm0, %v355_v25, %v359_v26 }
  0x22   : > { %v373_v41 = vshll.u32 %v5334_v28, 16 }
  0x23   : > { %595 = vmatpush1.bf16.msra.mxu1 %v4734_v30  ;;  %v332_v30 = vsel %vm320_vm0, %v327_v18, %v331_v19  ;;  %v1795_v43 = vsel %vm1785_vm1, %v1790_v57, %v1794_v29  ;;  %v4783_v57 = vld [vmem:[%s6653_s1 + $0x3e4] ss:$8 sps:$4 sm:$0xff]  }
  0x24   : > { %1975 = vmatpush1.bf16.msra.mxu0 %v4735_v31  ;;  %596 = vmatprep.subr.bf16.mxu1 %v4736_v32  ;;  %v5339_v31 = vld [vmem:[%s5235_s14 + $0x40] sm:$0xff]  ;;  %v1788_v32 = vsel %vm1785_vm1, %v1786_v20, %v1787_v21  ;;  %v212_v20 = vld [vmem:[%s5235_s14 + $0x58] sm:$0xff] }
  0x25   : > { %1976 = vmatprep.subr.bf16.mxu0 %v4738_v33  ;;  %v4768_v33 = vld [vmem:[%s6653_s1 + $0x3c0] ss:$8 sps:$4 sm:$0xff]  }
  0x27   : > { %597 = vmatpush1.bf16.msra.mxu1 %v4740_v34  ;;  %v345_v34 = vshrl.u32 %v5273_v53, 16 }
  0x28   : > { %1977 = vmatpush1.bf16.msra.mxu0 %v4741_v35  ;;  %598 = vmatprep.subr.bf16.mxu1 %v4742_v36  ;;  %v349_v35 = vshll.u32 %v5328_v23, 16  ;;  %v5347_v36 = vcombine.low %v206_v61, %v1264_v7  ;;  %v4789_v7 = vld [vmem:[%s6653_s1 + $0x3f4] ss:$8 sps:$4 sm:$0xff]  }
  0x29   : > { %1978 = vmatprep.subr.bf16.mxu0 %v4744_v37  ;;  %v4773_v37 = vld [vmem:[%s6653_s1 + $0x3d4] ss:$8 sps:$4 sm:$0xff]   ;;  %v347_v52 = vor.u32 %v345_v34, %v331_v19  ;;  %v5445_v34 = vld [vmem:[%s5235_s14 + $0x60] sm:$0xff] }
  0x2a   : > { %v351_v54 = vrot.slane %v349_v35, 1  ;;  %v1792_v55 = vrot.slane %v5347_v36, 2 }
  0x2b   : > { %599 = vmatpush1.bf16.msra.mxu1 %v4746_v46  ;;  %v5365_v46 = vcombine.high %v208_v24, %v5339_v31 }
  0x2c   : > { %1979 = vmatpush1.bf16.msra.mxu0 %v4747_v50  ;;  %600 = vmatprep.subr.bf16.mxu1 %v4748_v58  ;;  %v5368_v50 = vld [vmem:[%s5235_s14 + $0x48] sm:$0xff]  ;;  %v371_v58 = vor.u32 %v369_v40, %v359_v26  ;;  %v352_v1 = vsel %vm320_vm0, %v347_v52, %v351_v54  ;;  %v1793_v3 = vsel %vm1785_vm1, %v1787_v21, %v1792_v55 }
  0x2d   : > { %1980 = vmatprep.subr.bf16.mxu0 %v4750_v59  ;;  %v375_v59 = vrot.slane %v373_v41, 1  ;;  %v1798_v61 = vrot.slane %v5365_v46, 2  ;;  %v5420_v18 = vcombine.high %v5368_v50, %v5393_v0  ;;  %v363_v21 = vor.u32 %v361_v5, %v351_v54  ;;  %v4799_v26 = vld [vmem:[%s6653_s1 + $0x404] ss:$8 sps:$4 sm:$0xff]  }
  0x2e   : > { %v5430_v25 = vcombine.low %v5339_v31, %v5368_v50  ;;  %v5455_v40 = vcombine.low %v5368_v50, %v5393_v0  ;;  %v4808_v41 = vld [vmem:[%s6653_s1 + $0x44] ss:$8 sps:$4 sm:$0xff]  }
  0x2f   : > { %601 = vmatpush1.bf16.msra.mxu1 %v4752_v62  ;;  %v5387_v62 = vcombine.high %v5339_v31, %v5368_v50  ;;  %v1799_v13 = vsel %vm1785_vm1, %v1794_v29, %v1798_v61  ;;  %v5468_v50 = vcombine.high %v212_v20, %v5445_v34 }
  0x30   : > { %1981 = vmatpush1.bf16.msra.mxu0 %v4753_v63  ;;  %602 = vmatprep.subr.bf16.mxu1 %v4754_v8  ;;  %v5390_v63 = vcombine.low %v208_v24, %v5339_v31  ;;  %v376_v8 = vsel %vm320_vm0, %v371_v58, %v375_v59  ;;  %v4802_v24 = vld [vmem:[%s6653_s1 + $0x34] ss:$8 sps:$4 sm:$0xff]  }
  0x31   : > { %1982 = vmatprep.subr.bf16.mxu0 %v4756_v11  ;;  %v4793_v11 = vld [vmem:[%s6653_s1 + $0x20] ss:$8 sps:$4 sm:$0xff]  }
  0x32   : > { %v1796_v19 = vrot.slane %v5390_v63, 2 }
  0x33   : > { %603 = vmatpush1.bf16.msra.mxu1 %v4758_v15  ;;  %v385_v15 = vshrl.u32 %v5334_v28, 16 }
  0x34   : > { %1983 = vmatpush1.bf16.msra.mxu0 %v4759_v17  ;;  %825 = vmatprep.subr.bf16.mxu1 %v4779_v27  ;;  %v389_v17 = vshll.u32 %v5387_v62, 16  ;;  %v4797_v27 = vld [vmem:[%s6653_s1 + $0x400] ss:$8 sps:$4 sm:$0xff]   ;;  %v1797_v31 = vsel %vm1785_vm1, %v1792_v55, %v1796_v19 }
  0x35   : > { %2341 = vmatprep.subr.bf16.mxu0 %v4770_v22  ;;  %v367_v22 = vrot.slane %v365_v6, 1  ;;  %v387_v29 = vor.u32 %v385_v15, %v375_v59  ;;  %v238_v55 = vld [vmem:[%s5235_s14 + $0x68] sm:$0x11]  ;;  %v4813_v6 = vld [vmem:[%s6653_s1 + $0x50] ss:$8 sps:$4 sm:$0xff]  }
  0x36   : > { %613 = vmatmul.mubr.bf16.vlgmr.msra.gmra.mrb[0].mxu1 %v332_v30  ;;  %v391_v30 = vrot.slane %v389_v17, 1  ;;  %v5490_v5 = vcombine.high %v5445_v34, %v238_v55  ;;  %v4816_v17 = vld [vmem:[%s6653_s1 + $0x420] ss:$8 sps:$4 sm:$0xff]  }
  0x37   : > { %1993 = vmatmul.mubr.bf16.vlgmr.msra.gmra.mrb[0].mxu0 %v1788_v32  ;;  %3932 = vmatprep.mubr.msk.bf16.mxu1 %vm558_vm2, %v360_v38  ;;  %v1802_v32 = vrot.slane %v5420_v18, 2  ;;  %v368_v35 = vsel %vm320_vm0, %v363_v21, %v367_v22  ;;  %v377_v38 = vshrl.u32 %v5375_v56, 16  ;;  %v393_v21 = vshrl.u32 %v5430_v25, 16 }
  0x38   : > { %2342 = vmatpush1.bf16.msra.mxu0 %v4768_v33  ;;  %4148 = vmatprep.mubr.msk.bf16.mxu0 %vm558_vm2, %v1795_v43  ;;  %v5441_v33 = vcombine.high %v5393_v0, %v212_v20  ;;  %v4812_v43 = vld [vmem:[%s6653_s1 + $0x414] ss:$8 sps:$4 sm:$0xff]  }
  0x39   : > { %2343 = vmatprep.subr.bf16.mxu0 %v4773_v37  ;;  %826 = vmatpush1.bf16.msra.mxu1 %v4777_v39  ;;  %v4800_v37 = vld [vmem:[%s6653_s1 + $0x30] ss:$8 sps:$4 sm:$0xff]   ;;  %v381_v39 = vshll.u32 %v5430_v25, 16  ;;  %v1803_v52 = vsel %vm1785_vm1, %v1798_v61, %v1802_v32  ;;  %v379_v58 = vor.u32 %v377_v38, %v367_v22 }
  0x3a   : > { %827 = vmatprep.subr.bf16.mxu1 %v4786_v44  ;;  %v401_v44 = vshrl.u32 %v5387_v62, 16  ;;  %v405_v54 = vshll.u32 %v5441_v33, 16  ;;  %v4810_v61 = vld [vmem:[%s6653_s1 + $0x410] ss:$8 sps:$4 sm:$0xff]  }
  0x3b   : > { %v383_v59 = vrot.slane %v381_v39, 1  ;;  %v4826_v38 = vld [vmem:[%s6653_s1 + $0x430] ss:$8 sps:$4 sm:$0xff]   ;;  %v5531_v39 = vcombine.low %v5445_v34, %v238_v55 }
  0x3c   : > { %2344 = vmatpush1.bf16.msra.mxu0 %v4771_v51  ;;  %v392_v51 = vsel %vm320_vm0, %v387_v29, %v391_v30  ;;  %v4828_v29 = vld [vmem:[%s6653_s1 + $0x434] ss:$8 sps:$4 sm:$0xff]  }
  0x3d   : > { %2345 = vmatprep.subr.bf16.mxu0 %v4783_v57  ;;  %828 = vmatpush1.bf16.msra.mxu1 %v4784_v60  ;;  %v4806_v57 = vld [vmem:[%s6653_s1 + $0x40] ss:$8 sps:$4 sm:$0xff]   ;;  %v1800_v60 = vrot.slane %v5455_v40, 2 }
  0x3e   : > { %623 = vmatmul.mubr.bf16.gmra.mrb[4].mxu1 %v352_v1  ;;  %829 = vmatprep.subr.bf16.mxu1 %v4795_v14  ;;  %v4815_v1 = vld [vmem:[%s6653_s1 + $0x54] ss:$8 sps:$4 sm:$0xff]   ;;  %v384_v14 = vsel %vm320_vm0, %v379_v58, %v383_v59 }
  0x3f   : > { %2003 = vmatmul.mubr.bf16.gmra.mrb[4].mxu0 %v1793_v3  ;;  %3933 = vmatprep.mubr.msk.bf16.mxu1 %vm558_vm2, %v376_v8  ;;  %v5482_v3 = vcombine.low %v5393_v0, %v212_v20  ;;  %v407_v0 = vrot.slane %v405_v54, 1  ;;  %v1806_v8 = vrot.slane %v5468_v50, 2  ;;  %v1801_v15 = vsel %vm1785_vm1, %v1796_v19, %v1800_v60 }
  0x40   : > { %2346 = vmatpush1.bf16.msra.mxu0 %v4781_v4  ;;  %4149 = vmatprep.mubr.msk.bf16.mxu0 %vm558_vm2, %v1799_v13  ;;  %v4818_v4 = vld [vmem:[%s6653_s1 + $0x424] ss:$8 sps:$4 sm:$0xff]   ;;  %v1272_v13 = vld [vmem:[%s5235_s14 + $0x70] sm:$0x33] }
  0x41   : > { %2347 = vmatprep.subr.bf16.mxu0 %v4789_v7  ;;  %830 = vmatpush1.bf16.msra.mxu1 %v4793_v11  ;;  %v403_v7 = vor.u32 %v401_v44, %v391_v30  ;;  %v5497_v11 = vcombine.low %v212_v20, %v5445_v34  ;;  %v397_v22 = vshll.u32 %v5482_v3, 16  ;;  %v417_v20 = vshrl.u32 %v5441_v33, 16 }
  0x42   : > { %831 = vmatprep.subr.bf16.mxu1 %v4802_v24  ;;  %v421_v24 = vshll.u32 %v5490_v5, 16  ;;  %v1807_v19 = vsel %vm1785_vm1, %v1802_v32, %v1806_v8  ;;  %v4822_v32 = vld [vmem:[%s6653_s1 + $0x60] ss:$8 sps:$4 sm:$0xff]   ;;  %v409_v58 = vshrl.u32 %v5482_v3, 16 }
  0x43   : > { %v419_v44 = vor.u32 %v417_v20, %v407_v0  ;;  %v1384_v20 = vshll.u32 %v5264_v48, 16 }
  0x44   : > { %2348 = vmatpush1.bf16.msra.mxu0 %v4787_v12  ;;  %v5500_v12 = vld [vmem:[%s5235_s14 + $0x68] sm:$0xff] }
  0x45   : > { %2349 = vmatprep.subr.bf16.mxu0 %v4799_v26  ;;  %832 = vmatpush1.bf16.msra.mxu1 %v4800_v37  ;;  %v408_v26 = vsel %vm320_vm0, %v403_v7, %v407_v0  ;;  %v5521_v30 = vcombine.high %v5500_v12, %v1272_v13  ;;  %v399_v37 = vrot.slane %v397_v22, 1  ;;  %v4844_v7 = vld [vmem:[%s6653_s1 + $0x454] ss:$8 sps:$4 sm:$0xff]   ;;  %v1381_v0 = vshrl.u32 %v5264_v48, 16 }
  0x46   : > { %633 = vmatmul.mubr.bf16.gmra.mrb[8].mxu1 %v368_v35  ;;  %833 = vmatprep.subr.bf16.mxu1 %v4808_v41  ;;  %v395_v35 = vor.u32 %v393_v21, %v383_v59  ;;  %v4831_v41 = vld [vmem:[%s6653_s1 + $0x74] ss:$8 sps:$4 sm:$0xff]   ;;  %v413_v59 = vshll.u32 %v5531_v39, 16  ;;  %v4842_v21 = vld [vmem:[%s6653_s1 + $0x450] ss:$8 sps:$4 sm:$0xff]  }
  0x47   : > { %2013 = vmatmul.mubr.bf16.gmra.mrb[8].mxu0 %v1797_v31  ;;  %3934 = vmatprep.mubr.msk.bf16.mxu1 %vm558_vm2, %v392_v51  ;;  %v1804_v31 = vrot.slane %v5497_v11, 2  ;;  %v423_v51 = vrot.slane %v421_v24, 1  ;;  %v4847_v22 = vld [vmem:[%s6653_s1 + $0x94] ss:$8 sps:$4 sm:$0xff]   ;;  %v4850_v24 = vld [vmem:[%s6653_s1 + $0x464] ss:$8 sps:$4 sm:$0xff]  }
  0x48   : > { %2350 = vmatpush1.bf16.msra.mxu0 %v4797_v27  ;;  %4150 = vmatprep.mubr.msk.bf16.mxu0 %vm558_vm2, %v1803_v52  ;;  %v4824_v27 = vld [vmem:[%s6653_s1 + $0x64] ss:$8 sps:$4 sm:$0xff]   ;;  %v1810_v52 = vrot.slane %v5521_v30, 2  ;;  %v400_v55 = vsel %vm320_vm0, %v395_v35, %v399_v37  ;;  %v4845_v35 = vld [vmem:[%s6653_s1 + $0x90] ss:$8 sps:$4 sm:$0xff]  }
  0x49   : > { %2351 = vmatprep.subr.bf16.mxu0 %v4812_v43  ;;  %834 = vmatpush1.bf16.msra.mxu1 %v4806_v57  ;;  %v4834_v43 = vld [vmem:[%s6653_s1 + $0x444] ss:$8 sps:$4 sm:$0xff]   ;;  %v1805_v54 = vsel %vm1785_vm1, %v1800_v60, %v1804_v31  ;;  %v4829_v57 = vld [vmem:[%s6653_s1 + $0x70] ss:$8 sps:$4 sm:$0xff]   ;;  %v4832_v60 = vld [vmem:[%s6653_s1 + $0x440] ss:$8 sps:$4 sm:$0xff]  }
  0x4a   : > { %835 = vmatprep.subr.bf16.mxu1 %v4815_v1  ;;  %v424_v1 = vsel %vm320_vm0, %v419_v44, %v423_v51  ;;  %v425_v44 = vshrl.u32 %v5531_v39, 16  ;;  %v4874_v48 = vld [vmem:[%s6653_s1 + $0x194] ss:$8 sps:$4 sm:$0xff]  }
  0x4c   : > { %2352 = vmatpush1.bf16.msra.mxu0 %v4810_v61  ;;  %v5550_v61 = vcombine.low %v5500_v12, %v1272_v13  ;;  %v411_v13 = vor.u32 %v409_v58, %v399_v37  ;;  %v2120_v58 = vshrl.u32 %v5306_v10, 16 }
  0x4d   : > { %2353 = vmatprep.subr.bf16.mxu0 %v4818_v4  ;;  %836 = vmatpush1.bf16.msra.mxu1 %v4813_v6  ;;  %v4840_v4 = vld [vmem:[%s6653_s1 + $0x84] ss:$8 sps:$4 sm:$0xff]   ;;  %v1811_v6 = vsel %vm1785_vm1, %v1806_v8, %v1810_v52  ;;  %v428_v8 = vshrl.u32 %v5490_v5, 16 }
  0x4e   : > { %643 = vmatmul.mubr.bf16.gmra.mrb[12].mxu1 %v384_v14  ;;  %837 = vmatprep.subr.bf16.mxu1 %v4824_v27  ;;  %v415_v14 = vrot.slane %v413_v59, 1  ;;  %v2123_v59 = vshll.u32 %v5306_v10, 16  ;;  %v4854_v10 = vld [vmem:[%s6653_s1 + $0xb0] ss:$8 sps:$4 sm:$0xff]  }
  0x4f   : > { %2023 = vmatmul.mubr.bf16.gmra.mrb[12].mxu0 %v1801_v15  ;;  %3935 = vmatprep.mubr.msk.bf16.mxu1 %vm558_vm2, %v408_v26  ;;  %v4838_v15 = vld [vmem:[%s6653_s1 + $0x80] ss:$8 sps:$4 sm:$0xff]   ;;  %v2132_v26 = vshrl.u32 %v5266_v49, 16  ;;  %v430_v37 = vor.u32 %v428_v8, %v423_v51 }
  0x50   : > { %2354 = vmatpush1.bf16.msra.mxu0 %v4816_v17  ;;  %4151 = vmatprep.mubr.msk.bf16.mxu0 %vm558_vm2, %v1807_v19  ;;  %v1808_v17 = vrot.slane %v5550_v61, 2  ;;  %v2135_v19 = vshll.u32 %v5266_v49, 16  ;;  %v416_v27 = vsel %vm320_vm0, %v411_v13, %v415_v14  ;;  %v4853_v49 = vld [vmem:[%s6653_s1 + $0xa4] ss:$8 sps:$4 sm:$0xff]   ;;  %v4851_v51 = vld [vmem:[%s6653_s1 + $0xa0] ss:$8 sps:$4 sm:$0xff]  }
  0x51   : > { %2355 = vmatprep.subr.bf16.mxu0 %v4828_v29  ;;  %838 = vmatpush1.bf16.msra.mxu1 %v4822_v32  ;;  %v4848_v32 = vld [vmem:[%s6653_s1 + $0x460] ss:$8 sps:$4 sm:$0xff]   ;;  %v1402_v13 = vshll.u32 %v5318_v16, 16  ;;  %v2125_v8 = vrot.slane %v2123_v59, 3 }
  0x52   : > { %839 = vmatprep.subr.bf16.mxu1 %v4831_v41  ;;  %v1809_v29 = vsel %vm1785_vm1, %v1804_v31, %v1808_v17  ;;  %v2137_v41 = vrot.slane %v2135_v19, 3  ;;  %v2139_v31 = vrot.slane %v1381_v0, 2  ;;  %v4866_v59 = vld [vmem:[%s6653_s1 + $0x180] ss:$8 sps:$4 sm:$0xff]  }
  0x53   : > { %v2148_v19 = vrot.slane %v1402_v13, 3 }
  0x54   : > { %2356 = vmatpush1.bf16.msra.mxu0 %v4826_v38  ;;  %v2134_v38 = vrot.slane %v2132_v26, 2 }
  0x55   : > { %2357 = vmatprep.subr.bf16.mxu0 %v4834_v43  ;;  %840 = vmatpush1.bf16.msra.mxu1 %v4829_v57  ;;  %v2140_v43 = vrot.slane %v1384_v20, 3  ;;  %v1367_v57 = vshll.u32 %v5304_v9, 16 }
  0x56   : > { %653 = vmatmul.mubr.bf16.gmra.mrb[16].mxu1 %v400_v55  ;;  %841 = vmatprep.subr.bf16.mxu1 %v4840_v4  ;;  %v1364_v55 = vshrl.u32 %v5304_v9, 16  ;;  %v2138_v4 = vor.u32 %v2137_v41, %v2134_v38  ;;  %v1417_v38 = vshrl.u32 %v5365_v46, 16  ;;  %v1420_v41 = vshll.u32 %v5365_v46, 16  ;;  %v4869_v9 = vld [vmem:[%s6653_s1 + $0x4a0] ss:$8 sps:$4 sm:$0xff]  }
  0x57   : > { %2033 = vmatmul.mubr.bf16.gmra.mrb[16].mxu0 %v1805_v54  ;;  %3936 = vmatprep.mubr.msk.bf16.mxu1 %vm558_vm2, %v424_v1  ;;  %v4859_v54 = vld [vmem:[%s6653_s1 + $0x474] ss:$8 sps:$4 sm:$0xff]   ;;  %v4857_v1 = vld [vmem:[%s6653_s1 + $0x470] ss:$8 sps:$4 sm:$0xff]  }
  0x58   : > { %4152 = vmatprep.mubr.msk.bf16.mxu0 %vm558_vm2, %v1811_v6  ;;  %2358 = vmatpush1.bf16.msra.mxu0 %v4832_v60  ;;  %v4856_v60 = vld [vmem:[%s6653_s1 + $0xb4] ss:$8 sps:$4 sm:$0xff]   ;;  %v2141_v6 = vor.u32 %v2140_v43, %v2139_v31 }
  0x59   : > { %2359 = vmatprep.subr.bf16.mxu0 %v4844_v7  ;;  %842 = vmatpush1.bf16.msra.mxu1 %v4838_v15  ;;  %v1399_v7 = vshrl.u32 %v5318_v16, 16  ;;  %v427_v15 = vor.u32 %v425_v44, %v415_v14  ;;  %v1383_v44 = vrot.slane %v1381_v0, 1  ;;  %v4918_v46 = vld [vmem:[%s6653_s1 + $0x514] ss:$8 sps:$4 sm:$0xff]  }
  0x5a   : > { %843 = vmatprep.subr.bf16.mxu1 %v4847_v22  ;;  %v2128_v22 = vrot.slane %v1367_v57, 3  ;;  %v2142_v14 = vsel %vm2118_vm3, %v2138_v4, %v2141_v6  ;;  %v4863_v4 = vld [vmem:[%s6653_s1 + $0x490] ss:$8 sps:$4 sm:$0xff]  }
  0x5b   : > { %v2147_v26 = vrot.slane %v1399_v7, 2 }
  0x5c   : > { %2360 = vmatpush1.bf16.msra.mxu0 %v4842_v21  ;;  %v2127_v21 = vrot.slane %v1364_v55, 2 }
  0x5d   : > { %2361 = vmatprep.subr.bf16.mxu0 %v4850_v24  ;;  %844 = vmatpush1.bf16.msra.mxu1 %v4845_v35  ;;  %v4862_v24 = vld [vmem:[%s6653_s1 + $0x484] ss:$8 sps:$4 sm:$0xff]  }
  0x5e   : > { %663 = vmatmul.mubr.bf16.gmra.mrb[20].mxu1 %v416_v27  ;;  %845 = vmatprep.subr.bf16.mxu1 %v4853_v49  ;;  %v4868_v27 = vld [vmem:[%s6653_s1 + $0x184] ss:$8 sps:$4 sm:$0xff]   ;;  %v2129_v35 = vor.u32 %v2128_v22, %v2127_v21  ;;  %v2149_v49 = vor.u32 %v2148_v19, %v2147_v26  ;;  %v1435_v21 = vshrl.u32 %v5420_v18, 16  ;;  %v1438_v22 = vshll.u32 %v5420_v18, 16  ;;  %v4877_v19 = vld [vmem:[%s6653_s1 + $0x4b4] ss:$8 sps:$4 sm:$0xff]  }
  0x5f   : > { %2043 = vmatmul.mubr.bf16.gmra.mrb[20].mxu0 %v1809_v29  ;;  %3937 = vmatprep.mubr.msk.bf16.mxu1 %vm558_vm2, %v430_v37  ;;  %v1390_v37 = vshrl.u32 %v5347_v36, 16 }
  0x60   : > { %4153 = vmatprep.mubr.msk.bf16.mxu0 %vm558_vm2, %v1810_v52  ;;  %2362 = vmatpush1.bf16.msra.mxu0 %v4848_v32  ;;  %v2122_v52 = vrot.slane %v2120_v58, 2  ;;  %v1393_v32 = vshll.u32 %v5347_v36, 16  ;;  %v2150_v58 = vsel %vm2118_vm3, %v2141_v6, %v2149_v49 }
  0x61   : > { %2363 = vmatprep.subr.bf16.mxu0 %v4859_v54  ;;  %846 = vmatpush1.bf16.msra.mxu1 %v4851_v51  ;;  %v2143_v31 = vrot.slane %v1390_v37, 2  ;;  %v4865_v51 = vld [vmem:[%s6653_s1 + $0x494] ss:$8 sps:$4 sm:$0xff]   ;;  %v1386_v54 = vrot.slane %v1384_v20, 2  ;;  %v1366_v20 = vrot.slane %v1364_v55, 1 }
  0x62   : > { %847 = vmatprep.subr.bf16.mxu1 %v4856_v60  ;;  %v2126_v29 = vor.u32 %v2125_v8, %v2122_v52  ;;  %v2144_v43 = vrot.slane %v1393_v32, 3  ;;  %v2155_v60 = vrot.slane %v1417_v38, 2  ;;  %v4871_v55 = vld [vmem:[%s6653_s1 + $0x4a4] ss:$8 sps:$4 sm:$0xff]   ;;  %v4872_v52 = vld [vmem:[%s6653_s1 + $0x190] ss:$8 sps:$4 sm:$0xff]  }
  0x63   : > { %v5669_v0 = vor.u32 %v1386_v54, %v1383_v44  ;;  %v4883_v54 = vld [vmem:[%s6653_s1 + $0x4c4] ss:$8 sps:$4 sm:$0xff]  }
  0x64   : > { %2364 = vmatpush1.bf16.msra.mxu0 %v4857_v1  ;;  %v2156_v1 = vrot.slane %v1420_v41, 3  ;;  %v2145_v6 = vor.u32 %v2144_v43, %v2143_v31  ;;  %v1426_v31 = vshrl.u32 %v5455_v40, 16  ;;  %v4875_v43 = vld [vmem:[%s6653_s1 + $0x4b0] ss:$8 sps:$4 sm:$0xff]  }
  0x65   : > { %848 = vmatpush1.bf16.msra.mxu1 %v4854_v10  ;;  %2738 = vmatprep.subr.bf16.mxu0 %v4862_v24  ;;  %v1369_v10 = vrot.slane %v1367_v57, 2 }
  0x66   : > { %673 = vmatmul.mubr.bf16.gmra.mrb[24].mxu1 %v427_v15  ;;  %1132 = vmatprep.subr.bf16.mxu1 %v4868_v27  ;;  %v1408_v15 = vshrl.u32 %v5390_v63, 16  ;;  %v2157_v8 = vor.u32 %v2156_v1, %v2155_v60  ;;  %v4881_v1 = vld [vmem:[%s6653_s1 + $0x4c0] ss:$8 sps:$4 sm:$0xff]  }
  0x67   : > { %2053 = vmatmul.mubr.bf16.gmra.mrb[24].mxu0 %v1808_v17  ;;  %3964 = vmatprep.mubr.msk.bf16.mxu1 %vm558_vm2, %v5253_v42  ;;  %v4860_v17 = vld [vmem:[%s6653_s1 + $0x480] ss:$8 sps:$4 sm:$0xff]   ;;  %v2130_v42 = vsel %vm2118_vm3, %v2126_v29, %v2129_v35  ;;  %v5689_v24 = vor.u32 %v1369_v10, %v1366_v20  ;;  %v4880_v29 = vld [vmem:[%s6653_s1 + $0x1a4] ss:$8 sps:$4 sm:$0xff]   ;;  %v4884_v10 = vld [vmem:[%s6653_s1 + $0x1b0] ss:$8 sps:$4 sm:$0xff]  }
  0x68   : > { %4204 = vmatprep.mubr.msk.bf16.mxu0 %vm558_vm2, %v2142_v14  ;;  %v2146_v14 = vsel %vm2118_vm3, %v2129_v35, %v2145_v6  ;;  %v2151_v57 = vrot.slane %v1408_v15, 2  ;;  %v2158_v27 = vsel %vm2118_vm3, %v2149_v49, %v2157_v8  ;;  %v2163_v35 = vrot.slane %v1435_v21, 2 }
  0x69   : > { %v1429_v49 = vshll.u32 %v5455_v40, 16  ;;  %v959_v40 = vrot.slane %v5273_v53, 1 }
  0x6b   : > { %v2160_v20 = vrot.slane %v1429_v49, 3 }
  0x6e   : > { %858 = vmatmul.mubr.bf16.vlgmr.msra.gmra.mrb[0].mxu1 %v5257_v45  ;;  %v1411_v45 = vshll.u32 %v5390_v63, 16  ;;  %v1437_v63 = vrot.slane %v1435_v21, 1  ;;  %v5915_v21 = vld [vmem:[%s5235_s14 + $0x30] sm:$0xff] }
  0x6f   : > { %2374 = vmatmul.mubr.bf16.vlgmr.msra.gmra.mrb[0].mxu0 %v2130_v42  ;;  %3965 = vmatprep.mubr.msk.bf16.mxu1 %vm558_vm2, %v5262_v47  ;;  %v4878_v42 = vld [vmem:[%s6653_s1 + $0x1a0] ss:$8 sps:$4 sm:$0xff]  }
  0x70   : > { %2739 = vmatpush1.bf16.msra.mxu0 %v4860_v17  ;;  %4205 = vmatprep.mubr.msk.bf16.mxu0 %vm558_vm2, %v2150_v58  ;;  %v2152_v26 = vrot.slane %v1411_v45, 3  ;;  %v2164_v17 = vrot.slane %v1438_v22, 3  ;;  %v1453_v58 = vshrl.u32 %v5468_v50, 16 }
  0x71   : > { %2740 = vmatprep.subr.bf16.mxu0 %v4865_v51  ;;  %1133 = vmatpush1.bf16.msra.mxu1 %v4866_v59  ;;  %v4886_v51 = vld [vmem:[%s6653_s1 + $0x1b4] ss:$8 sps:$4 sm:$0xff]   ;;  %v1456_v59 = vshll.u32 %v5468_v50, 16  ;;  %v6012_v50 = vld [vmem:[%s5235_s14 + $0x48] sm:$0xff] }
  0x72   : > { %1134 = vmatprep.subr.bf16.mxu1 %v4874_v48  ;;  %v2153_v44 = vor.u32 %v2152_v26, %v2151_v57  ;;  %v2165_v60 = vor.u32 %v2164_v17, %v2163_v35  ;;  %v2159_v48 = vrot.slane %v1426_v31, 2  ;;  %v4889_v57 = vld [vmem:[%s6653_s1 + $0x1c4] ss:$8 sps:$4 sm:$0xff]   ;;  %v1447_v35 = vshll.u32 %v5497_v11, 16  ;;  %v4895_v17 = vld [vmem:[%s6653_s1 + $0x1d4] ss:$8 sps:$4 sm:$0xff]  }
  0x74   : > { %2741 = vmatpush1.bf16.msra.mxu0 %v4863_v4  ;;  %v2087_v4 = vld [vmem:[%s5235_s14 + $0x70] sm:$0x77] }
  0x75   : > { %2742 = vmatprep.subr.bf16.mxu0 %v4871_v55  ;;  %1135 = vmatpush1.bf16.msra.mxu1 %v4872_v52  ;;  %v2154_v55 = vsel %vm2118_vm3, %v2145_v6, %v2153_v44  ;;  %v2171_v52 = vrot.slane %v1453_v58, 2  ;;  %v4892_v6 = vld [vmem:[%s6653_s1 + $0x4d4] ss:$8 sps:$4 sm:$0xff]   ;;  %v4179_v26 = vcombine.high %v5500_v12, %v2087_v4  ;;  %v4178_v16 = vcombine.low %v5500_v12, %v2087_v4  ;;  %v4899_v12 = vld [vmem:[%s6653_s1 + $0x1e0] ss:$8 sps:$4 sm:$0xff]  }
  0x76   : > { %868 = vmatmul.mubr.bf16.gmra.mrb[4].mxu1 %v5273_v53  ;;  %1136 = vmatprep.subr.bf16.mxu1 %v4880_v29  ;;  %v1444_v29 = vshrl.u32 %v5497_v11, 16  ;;  %v1395_v4 = vrot.slane %v1393_v32, 2  ;;  %v4995_v53 = vld [vmem:[%s6653_s1 + $0x2b0] ss:$8 sps:$4 sm:$0xff]  }
  0x77   : > { %2384 = vmatmul.mubr.bf16.gmra.mrb[4].mxu0 %v2146_v14  ;;  %3966 = vmatprep.mubr.msk.bf16.mxu1 %vm558_vm2, %v5295_v2  ;;  %v2172_v14 = vrot.slane %v1456_v59, 3 }
  0x78   : > { %2743 = vmatpush1.bf16.msra.mxu0 %v4869_v9  ;;  %4206 = vmatprep.mubr.msk.bf16.mxu0 %vm558_vm2, %v2158_v27  ;;  %v2166_v9 = vsel %vm2118_vm3, %v2157_v8, %v2165_v60  ;;  %v2161_v27 = vor.u32 %v2160_v20, %v2159_v48  ;;  %v4890_v8 = vld [vmem:[%s6653_s1 + $0x4d0] ss:$8 sps:$4 sm:$0xff]   ;;  %v2188_v48 = vshll.u32 %v4179_v26, 16  ;;  %v1404_v20 = vrot.slane %v1402_v13, 2 }
  0x79   : > { %2744 = vmatprep.subr.bf16.mxu0 %v4877_v19  ;;  %1137 = vmatpush1.bf16.msra.mxu1 %v4878_v42  ;;  %v4887_v19 = vld [vmem:[%s6653_s1 + $0x1c0] ss:$8 sps:$4 sm:$0xff]   ;;  %v4898_v42 = vld [vmem:[%s6653_s1 + $0x4e4] ss:$8 sps:$4 sm:$0xff]  }
  0x7a   : > { %1138 = vmatprep.subr.bf16.mxu1 %v4886_v51  ;;  %v1401_v51 = vrot.slane %v1399_v7, 1  ;;  %v4901_v7 = vld [vmem:[%s6653_s1 + $0x1e4] ss:$8 sps:$4 sm:$0xff]  }
  0x7c   : > { %2745 = vmatpush1.bf16.msra.mxu0 %v4875_v43  ;;  %v2173_v43 = vor.u32 %v2172_v14, %v2171_v52  ;;  %v2167_v52 = vrot.slane %v1444_v29, 2  ;;  %v2168_v14 = vrot.slane %v1447_v35, 3  ;;  %v1405_v13 = vor.u32 %v1404_v20, %v1401_v51  ;;  %v4910_v51 = vld [vmem:[%s6653_s1 + $0x504] ss:$8 sps:$4 sm:$0xff]  }
  0x7d   : > { %2746 = vmatprep.subr.bf16.mxu0 %v4883_v54  ;;  %1139 = vmatpush1.bf16.msra.mxu1 %v4884_v10  ;;  %v4893_v54 = vld [vmem:[%s6653_s1 + $0x1d0] ss:$8 sps:$4 sm:$0xff]   ;;  %v4896_v10 = vld [vmem:[%s6653_s1 + $0x4e0] ss:$8 sps:$4 sm:$0xff]  }
  0x7e   : > { %878 = vmatmul.mubr.bf16.gmra.mrb[8].mxu1 %v5328_v23  ;;  %1140 = vmatprep.subr.bf16.mxu1 %v4889_v57 }
  0x7f   : > { %2394 = vmatmul.mubr.bf16.gmra.mrb[8].mxu0 %v2154_v55  ;;  %3967 = vmatprep.mubr.msk.bf16.mxu1 %vm558_vm2, %v5334_v28  ;;  %v2162_v55 = vsel %vm2118_vm3, %v2153_v44, %v2161_v27  ;;  %v2174_v44 = vsel %vm2118_vm3, %v2165_v60, %v2173_v43  ;;  %v4902_v60 = vld [vmem:[%s6653_s1 + $0x4f0] ss:$8 sps:$4 sm:$0xff]  }
  0x80   : > { %2747 = vmatpush1.bf16.msra.mxu0 %v4881_v1  ;;  %4207 = vmatprep.mubr.msk.bf16.mxu0 %vm558_vm2, %v2166_v9  ;;  %v2185_v1 = vshrl.u32 %v4179_v26, 16  ;;  %v4904_v9 = vld [vmem:[%s6653_s1 + $0x4f4] ss:$8 sps:$4 sm:$0xff]   ;;  %v5797_v26 = vsel %vm1354_vm4, %v5669_v0, %v1405_v13 }
  0x81   : > { %2748 = vmatprep.subr.bf16.mxu0 %v4892_v6  ;;  %1141 = vmatpush1.bf16.msra.mxu1 %v4887_v19  ;;  %v2190_v6 = vrot.slane %v2188_v48, 3  ;;  %v1392_v19 = vrot.slane %v1390_v37, 1  ;;  %v4907_v37 = vld [vmem:[%s6653_s1 + $0x1f4] ss:$8 sps:$4 sm:$0xff]   ;;  %v1419_v48 = vrot.slane %v1417_v38, 1 }
  0x82   : > { %1142 = vmatprep.subr.bf16.mxu1 %v4895_v17  ;;  %v2187_v57 = vrot.slane %v2185_v1, 2  ;;  %v2176_v17 = vshrl.u32 %v4178_v16, 16 }
  0x83   : > { %v1396_v36 = vor.u32 %v1395_v4, %v1392_v19  ;;  %v4925_v19 = vld [vmem:[%s6653_s1 + $0x524] ss:$8 sps:$4 sm:$0xff]   ;;  %v2468_v4 = vld [vmem:[%s5235_s14 + $0x10] sm:$0x88] }
  0x84   : > { %2749 = vmatpush1.bf16.msra.mxu0 %v4890_v8  ;;  %v2169_v8 = vor.u32 %v2168_v14, %v2167_v52  ;;  %v5819_v32 = vor.u32 %v2190_v6, %v2187_v57  ;;  %v4908_v52 = vld [vmem:[%s6653_s1 + $0x500] ss:$8 sps:$4 sm:$0xff]   ;;  %v4914_v14 = vld [vmem:[%s6653_s1 + $0x204] ss:$8 sps:$4 sm:$0xff]   ;;  %v4921_v6 = vld [vmem:[%s6653_s1 + $0x214] ss:$8 sps:$4 sm:$0xff]  }
  0x85   : > { %2750 = vmatprep.subr.bf16.mxu0 %v4898_v42  ;;  %1143 = vmatpush1.bf16.msra.mxu1 %v4893_v54  ;;  %v2179_v42 = vshll.u32 %v4178_v16, 16  ;;  %v4905_v54 = vld [vmem:[%s6653_s1 + $0x1f0] ss:$8 sps:$4 sm:$0xff]   ;;  %v5826_v1 = vsel %vm1354_vm4, %v5689_v24, %v1396_v36 }
  0x86   : > { %888 = vmatmul.mubr.bf16.gmra.mrb[12].mxu1 %v5375_v56  ;;  %1144 = vmatprep.subr.bf16.mxu1 %v4901_v7  ;;  %v2170_v20 = vsel %vm2118_vm3, %v2161_v27, %v2169_v8  ;;  %v1422_v7 = vrot.slane %v1420_v41, 2  ;;  %v2192_v38 = vsel %vm2118_vm3, %v2173_v43, %v5819_v32  ;;  %v4912_v27 = vld [vmem:[%s6653_s1 + $0x200] ss:$8 sps:$4 sm:$0xff]   ;;  %v4916_v43 = vld [vmem:[%s6653_s1 + $0x510] ss:$8 sps:$4 sm:$0xff]  }
  0x87   : > { %2404 = vmatmul.mubr.bf16.gmra.mrb[12].mxu0 %v2162_v55  ;;  %3968 = vmatprep.mubr.msk.bf16.mxu1 %vm558_vm2, %v5387_v62  ;;  %v2178_v55 = vrot.slane %v2176_v17, 2  ;;  %v5852_v16 = vld [vmem:[%s5235_s14 + $0x18] sm:$0xff] }
  0x88   : > { %2751 = vmatpush1.bf16.msra.mxu0 %v4896_v10  ;;  %4208 = vmatprep.mubr.msk.bf16.mxu0 %vm558_vm2, %v2174_v44  ;;  %v2181_v10 = vrot.slane %v2179_v42, 3  ;;  %v1423_v41 = vor.u32 %v1422_v7, %v1419_v48  ;;  %v3939_v42 = vcombine.high %v5445_v34, %v5445_v34  ;;  %v5908_v7 = vcombine.high %v2468_v4, %v5852_v16 }
  0x89   : > { %2752 = vmatprep.subr.bf16.mxu0 %v4904_v9  ;;  %1145 = vmatpush1.bf16.msra.mxu1 %v4899_v12  ;;  %v5859_v9 = vld [vmem:[%s5235_s14 + $0x20] sm:$0xff]  ;;  %v1410_v12 = vrot.slane %v1408_v15, 1 }
  0x8a   : > { %1146 = vmatprep.subr.bf16.mxu1 %v4907_v37  ;;  %v5856_v44 = vor.u32 %v2181_v10, %v2178_v55  ;;  %v5862_v57 = vsel %vm1354_vm4, %v1405_v13, %v1423_v41  ;;  %v5876_v13 = vld [vmem:[%s5235_s14] sm:$0xee]  ;;  %v1413_v37 = vrot.slane %v1411_v45, 2  ;;  %v1440_v45 = vrot.slane %v1438_v22, 2  ;;  %v5078_v55 = vld [vmem:[%s5235_s14 + $0x8] sm:$0xff] }
  0x8b   : > { %v3996_v10 = vcombine.high %v5876_v13, %v5078_v55 }
  0x8c   : > { %2753 = vmatpush1.bf16.msra.mxu0 %v4902_v60  ;;  %v2183_v15 = vsel %vm2118_vm3, %v2169_v8, %v5856_v44  ;;  %v5893_v48 = vor.u32 %v1413_v37, %v1410_v12  ;;  %v4929_v8 = vld [vmem:[%s6653_s1 + $0x224] ss:$8 sps:$4 sm:$0xff]   ;;  %v3938_v37 = vcombine.low %v5445_v34, %v5445_v34 }
  0x8d   : > { %2754 = vmatprep.subr.bf16.mxu0 %v4910_v51  ;;  %1147 = vmatpush1.bf16.msra.mxu1 %v4905_v54  ;;  %v5886_v51 = vld [vmem:[%s5235_s14 + $0x28] sm:$0xff]  ;;  %v4919_v54 = vld [vmem:[%s6653_s1 + $0x210] ss:$8 sps:$4 sm:$0xff]  }
  0x8e   : > { %898 = vmatmul.mubr.bf16.gmra.mrb[16].mxu1 %v5430_v25  ;;  %1148 = vmatprep.subr.bf16.mxu1 %v4914_v14  ;;  %v5912_v18 = vcombine.high %v5859_v9, %v5886_v51  ;;  %v5919_v22 = vsel %vm1354_vm4, %v1396_v36, %v5893_v48  ;;  %v4927_v36 = vld [vmem:[%s6653_s1 + $0x220] ss:$8 sps:$4 sm:$0xff]   ;;  %v4932_v14 = vld [vmem:[%s6653_s1 + $0x234] ss:$8 sps:$4 sm:$0xff]   ;;  %v5964_v34 = vcombine.low %v5859_v9, %v5886_v51 }
  0x8f   : > { %2414 = vmatmul.mubr.bf16.gmra.mrb[16].mxu0 %v2170_v20  ;;  %3969 = vmatprep.mubr.msk.bf16.mxu1 %vm558_vm2, %v5441_v33  ;;  %v4923_v20 = vld [vmem:[%s6653_s1 + $0x520] ss:$8 sps:$4 sm:$0xff]  }
  0x90   : > { %4209 = vmatprep.mubr.msk.bf16.mxu0 %vm558_vm2, %v2192_v38  ;;  %2755 = vmatpush1.bf16.msra.mxu0 %v4908_v52  ;;  %v4935_v52 = vld [vmem:[%s6653_s1 + $0x534] ss:$8 sps:$4 sm:$0xff]   ;;  %v5925_v38 = vor.u32 %v1440_v45, %v1437_v63  ;;  %v2568_v12 = vrot.slane %v5912_v18, 3  ;;  %v4951_v45 = vld [vmem:[%s6653_s1 + $0x244] ss:$8 sps:$4 sm:$0xff]  }
  0x91   : > { %2756 = vmatprep.subr.bf16.mxu0 %v4918_v46  ;;  %1149 = vmatpush1.bf16.msra.mxu1 %v4912_v27  ;;  %v961_v46 = vrot.slane %v3996_v10, 1 }
  0x92   : > { %1150 = vmatprep.subr.bf16.mxu1 %v4921_v6  ;;  %v5941_v6 = vsel %vm1354_vm4, %v1423_v41, %v5925_v38  ;;  %v5952_v41 = vcombine.low %v2468_v4, %v5852_v16 }
  0x94   : > { %2757 = vmatpush1.bf16.msra.mxu0 %v4916_v43  ;;  %v962_v43 = vrot.slane %v5262_v47, 1  ;;  %v3995_v47 = vcombine.low %v5876_v13, %v5078_v55  ;;  %v1431_v13 = vrot.slane %v1429_v49, 2 }
  0x95   : > { %2758 = vmatprep.subr.bf16.mxu0 %v4925_v19  ;;  %1151 = vmatpush1.bf16.msra.mxu1 %v4919_v54  ;;  %v4933_v19 = vld [vmem:[%s6653_s1 + $0x530] ss:$8 sps:$4 sm:$0xff]  }
  0x96   : > { %908 = vmatmul.mubr.bf16.gmra.mrb[20].mxu1 %v5482_v3  ;;  %1152 = vmatprep.subr.bf16.mxu1 %v4929_v8  ;;  %v4930_v54 = vld [vmem:[%s6653_s1 + $0x230] ss:$8 sps:$4 sm:$0xff]   ;;  %v963_v63 = vsel %vm957_vm5, %v961_v46, %v962_v43  ;;  %v5984_v8 = vld [vmem:[%s5235_s14 + $0x40] sm:$0xff]  ;;  %v958_v10 = vrot.slane %v3995_v47, 1 }
  0x97   : > { %2424 = vmatmul.mubr.bf16.gmra.mrb[20].mxu0 %v2183_v15  ;;  %3970 = vmatprep.mubr.msk.bf16.mxu1 %vm558_vm2, %v3939_v42  ;;  %v5955_v42 = vld [vmem:[%s5235_s14 + $0x38] sm:$0xff]  ;;  %v1428_v15 = vrot.slane %v1426_v31, 1  ;;  %v4944_v31 = vld [vmem:[%s6653_s1 + $0x544] ss:$8 sps:$4 sm:$0xff]  }
  0x98   : > { %4210 = vmatprep.mubr.msk.bf16.mxu0 %vm558_vm2, %v5819_v32  ;;  %2759 = vmatpush1.bf16.msra.mxu0 %v4923_v20  ;;  %v2567_v32 = vrot.slane %v5908_v7, 3  ;;  %v5981_v49 = vcombine.high %v5915_v21, %v5955_v42  ;;  %v6023_v11 = vcombine.low %v5915_v21, %v5955_v42 }
  0x99   : > { %2760 = vmatprep.subr.bf16.mxu0 %v4935_v52  ;;  %1153 = vmatpush1.bf16.msra.mxu1 %v4927_v36  ;;  %v1432_v55 = vor.u32 %v1431_v13, %v1428_v15  ;;  %v2564_v52 = vrot.slane %v5952_v41, 3  ;;  %v1455_v36 = vrot.slane %v1453_v58, 1  ;;  %v966_v58 = vrot.slane %v5295_v2, 1  ;;  %v4942_v2 = vld [vmem:[%s6653_s1 + $0x540] ss:$8 sps:$4 sm:$0xff]  }
  0x9a   : > { %1154 = vmatprep.subr.bf16.mxu1 %v4932_v14  ;;  %v2569_v20 = vsel %vm2563_vm6, %v2567_v32, %v2568_v12  ;;  %v2565_v14 = vrot.slane %v5964_v34, 3  ;;  %v1446_v32 = vrot.slane %v1444_v29, 1  ;;  %v960_v15 = vsel %vm957_vm5, %v958_v10, %v959_v40 }
  0x9b   : > { %v5996_v46 = vsel %vm1354_vm4, %v5893_v48, %v1432_v55  ;;  %v2572_v48 = vrot.slane %v5981_v49, 3  ;;  %v967_v13 = vsel %vm957_vm5, %v962_v43, %v966_v58  ;;  %v4958_v43 = vld [vmem:[%s6653_s1 + $0x254] ss:$8 sps:$4 sm:$0xff]   ;;  %v970_v10 = vrot.slane %v5334_v28, 1  ;;  %v4953_v28 = vld [vmem:[%s6653_s1 + $0x560] ss:$8 sps:$4 sm:$0xff]  }
  0x9c   : > { %2761 = vmatpush1.bf16.msra.mxu0 %v4933_v19  ;;  %v4981_v19 = vld [vmem:[%s6653_s1 + $0x290] ss:$8 sps:$4 sm:$0xff]  }
  0x9d   : > { %1155 = vmatpush1.bf16.msra.mxu1 %v4930_v54  ;;  %3169 = vmatprep.subr.bf16.mxu0 %v4944_v31  ;;  %v2566_v54 = vsel %vm2563_vm6, %v2564_v52, %v2565_v14  ;;  %v2573_v31 = vsel %vm2563_vm6, %v2568_v12, %v2572_v48  ;;  %v4945_v12 = vld [vmem:[%s6653_s1 + $0x550] ss:$8 sps:$4 sm:$0xff]  }
  0x9e   : > { %918 = vmatmul.mubr.bf16.gmra.mrb[24].mxu1 %v3938_v37  ;;  %v1449_v37 = vrot.slane %v1447_v35, 2  ;;  %1627 = vmatprep.subr.bf16.mxu1 %v4951_v45  ;;  %v4947_v35 = vld [vmem:[%s6653_s1 + $0x554] ss:$8 sps:$4 sm:$0xff]   ;;  %v4949_v45 = vld [vmem:[%s6653_s1 + $0x240] ss:$8 sps:$4 sm:$0xff]  }
  0x9f   : > { %2434 = vmatmul.mubr.bf16.gmra.mrb[24].mxu0 %v5856_v44  ;;  %4021 = vmatprep.mubr.msk.bf16.mxu1 %vm558_vm2, %v963_v63  ;;  %v1458_v44 = vrot.slane %v1456_v59, 2  ;;  %v4956_v52 = vld [vmem:[%s6653_s1 + $0x250] ss:$8 sps:$4 sm:$0xff]  }
  0xa0   : > { %4273 = vmatprep.mubr.msk.bf16.mxu0 %vm558_vm2, %v2569_v20  ;;  %v6014_v59 = vor.u32 %v1449_v37, %v1446_v32  ;;  %v964_v20 = vrot.slane %v5328_v23, 1  ;;  %v4955_v23 = vld [vmem:[%s6653_s1 + $0x564] ss:$8 sps:$4 sm:$0xff]   ;;  %v6066_v32 = vld [vmem:[%s5235_s14 + $0x50] sm:$0xff] }
  0xa1   : > { %v6009_v47 = vor.u32 %v1458_v44, %v1455_v36 }
  0xa2   : > { %v6036_v63 = vsel %vm1354_vm4, %v1432_v55, %v6014_v59  ;;  %v2570_v55 = vrot.slane %v6023_v11, 3  ;;  %v965_v44 = vsel %vm957_vm5, %v959_v40, %v964_v20  ;;  %v4978_v40 = vld [vmem:[%s6653_s1 + $0x590] ss:$8 sps:$4 sm:$0xff]  }
  0xa3   : > { %v6028_v29 = vsel %vm1354_vm4, %v5925_v38, %v6009_v47  ;;  %v6044_v38 = vcombine.high %v5984_v8, %v6012_v50 }
  0xa4   : > { %v2571_v37 = vsel %vm2563_vm6, %v2565_v14, %v2570_v55  ;;  %v971_v14 = vsel %vm957_vm5, %v966_v58, %v970_v10  ;;  %v4963_v58 = vld [vmem:[%s6653_s1 + $0x260] ss:$8 sps:$4 sm:$0xff]  }
  0xa5   : > { %v2576_v36 = vrot.slane %v6044_v38, 3 }
  0xa6   : > { %1165 = vmatmul.mubr.bf16.vlgmr.msra.gmra.mrb[0].mxu1 %v960_v15  ;;  %v6074_v15 = vcombine.low %v5984_v8, %v6012_v50 }
  0xa7   : > { %2771 = vmatmul.mubr.bf16.vlgmr.msra.gmra.mrb[0].mxu0 %v2566_v54  ;;  %4022 = vmatprep.mubr.msk.bf16.mxu1 %vm558_vm2, %v967_v13  ;;  %v4965_v13 = vld [vmem:[%s6653_s1 + $0x264] ss:$8 sps:$4 sm:$0xff]   ;;  %v2481_v54 = vld [vmem:[%s5235_s14 + $0x78] sm:$0x77] }
  0xa8   : > { %3170 = vmatpush1.bf16.msra.mxu0 %v4942_v2  ;;  %4274 = vmatprep.mubr.msk.bf16.mxu0 %vm558_vm2, %v2573_v31  ;;  %v4961_v2 = vld [vmem:[%s6653_s1 + $0x574] ss:$8 sps:$4 sm:$0xff]  }
  0xa9   : > { %3171 = vmatprep.subr.bf16.mxu0 %v4947_v35  ;;  %1628 = vmatpush1.bf16.msra.mxu1 %v4949_v45  ;;  %v2577_v35 = vsel %vm2563_vm6, %v2572_v48, %v2576_v36  ;;  %v6089_v31 = vld [vmem:[%s5235_s14 + $0x58] sm:$0xff] }
  0xaa   : > { %1629 = vmatprep.subr.bf16.mxu1 %v4958_v43  ;;  %v6093_v45 = vcombine.high %v6066_v32, %v6089_v31  ;;  %v4959_v48 = vld [vmem:[%s6653_s1 + $0x570] ss:$8 sps:$4 sm:$0xff]   ;;  %v968_v43 = vrot.slane %v5375_v56, 1  ;;  %v6114_v56 = vld [vmem:[%s5235_s14 + $0x60] sm:$0xff] }
  0xac   : > { %3172 = vmatpush1.bf16.msra.mxu0 %v4945_v12  ;;  %v2574_v12 = vrot.slane %v6074_v15, 3 }
  0xad   : > { %3173 = vmatprep.subr.bf16.mxu0 %v4955_v23  ;;  %1630 = vmatpush1.bf16.msra.mxu1 %v4956_v52  ;;  %v4972_v23 = vld [vmem:[%s6653_s1 + $0x274] ss:$8 sps:$4 sm:$0xff]   ;;  %v4969_v52 = vld [vmem:[%s6653_s1 + $0x584] ss:$8 sps:$4 sm:$0xff]  }
  0xae   : > { %1175 = vmatmul.mubr.bf16.gmra.mrb[4].mxu1 %v965_v44  ;;  %1631 = vmatprep.subr.bf16.mxu1 %v4965_v13  ;;  %v974_v44 = vrot.slane %v5387_v62, 1  ;;  %v6126_v62 = vcombine.low %v6066_v32, %v6089_v31 }
  0xaf   : > { %2781 = vmatmul.mubr.bf16.gmra.mrb[4].mxu0 %v2571_v37  ;;  %4023 = vmatprep.mubr.msk.bf16.mxu1 %vm558_vm2, %v971_v14  ;;  %v2580_v37 = vrot.slane %v6093_v45, 3  ;;  %v4967_v14 = vld [vmem:[%s6653_s1 + $0x580] ss:$8 sps:$4 sm:$0xff]  }
  0xb0   : > { %3174 = vmatpush1.bf16.msra.mxu0 %v4953_v28  ;;  %4275 = vmatprep.mubr.msk.bf16.mxu0 %vm558_vm2, %v2577_v35  ;;  %v969_v28 = vsel %vm957_vm5, %v964_v20, %v968_v43  ;;  %v4970_v35 = vld [vmem:[%s6653_s1 + $0x270] ss:$8 sps:$4 sm:$0xff]   ;;  %v975_v13 = vsel %vm957_vm5, %v970_v10, %v974_v44  ;;  %v972_v10 = vrot.slane %v5430_v25, 1  ;;  %v4986_v25 = vld [vmem:[%s6653_s1 + $0x5a4] ss:$8 sps:$4 sm:$0xff]  }
  0xb1   : > { %3175 = vmatprep.subr.bf16.mxu0 %v4961_v2  ;;  %1632 = vmatpush1.bf16.msra.mxu1 %v4963_v58  ;;  %v2575_v2 = vsel %vm2563_vm6, %v2570_v55, %v2574_v12  ;;  %v2581_v20 = vsel %vm2563_vm6, %v2576_v36, %v2580_v37  ;;  %v4976_v55 = vld [vmem:[%s6653_s1 + $0x284] ss:$8 sps:$4 sm:$0xff]   ;;  %v4980_v58 = vld [vmem:[%s6653_s1 + $0x594] ss:$8 sps:$4 sm:$0xff]   ;;  %v4974_v36 = vld [vmem:[%s6653_s1 + $0x280] ss:$8 sps:$4 sm:$0xff]  }
  0xb2   : > { %1633 = vmatprep.subr.bf16.mxu1 %v4972_v23 }
  0xb4   : > { %3176 = vmatpush1.bf16.msra.mxu0 %v4959_v48  ;;  %v6137_v48 = vld [vmem:[%s5235_s14 + $0x68] sm:$0xff] }
  0xb5   : > { %3177 = vmatprep.subr.bf16.mxu0 %v4969_v52  ;;  %v6141_v23 = vcombine.high %v6114_v56, %v6137_v48  ;;  %1634 = vmatpush1.bf16.msra.mxu1 %v4970_v35  ;;  %v2578_v52 = vrot.slane %v6126_v62, 3  ;;  %v6162_v35 = vld [vmem:[%s5235_s14 + $0x70] sm:$0xff] }
  0xb6   : > { %1185 = vmatmul.mubr.bf16.gmra.mrb[8].mxu1 %v969_v28  ;;  %v4983_v28 = vld [vmem:[%s6653_s1 + $0x294] ss:$8 sps:$4 sm:$0xff]   ;;  %1635 = vmatprep.subr.bf16.mxu1 %v4976_v55  ;;  %v4984_v55 = vld [vmem:[%s6653_s1 + $0x5a0] ss:$8 sps:$4 sm:$0xff]   ;;  %v4247_v4 = vcombine.low %v6162_v35, %v2481_v54 }
  0xb7   : > { %2791 = vmatmul.mubr.bf16.gmra.mrb[8].mxu0 %v2575_v2  ;;  %4024 = vmatprep.mubr.msk.bf16.mxu1 %vm558_vm2, %v975_v13  ;;  %v978_v2 = vrot.slane %v5441_v33, 1  ;;  %v973_v13 = vsel %vm957_vm5, %v968_v43, %v972_v10  ;;  %v6175_v33 = vcombine.low %v6114_v56, %v6137_v48 }
  0xb8   : > { %3178 = vmatpush1.bf16.msra.mxu0 %v4967_v14  ;;  %4276 = vmatprep.mubr.msk.bf16.mxu0 %vm558_vm2, %v2581_v20  ;;  %v2584_v14 = vrot.slane %v6141_v23, 3  ;;  %v2579_v20 = vsel %vm2563_vm6, %v2574_v12, %v2578_v52 }
  0xb9   : > { %3179 = vmatprep.subr.bf16.mxu0 %v4980_v58  ;;  %1636 = vmatpush1.bf16.msra.mxu1 %v4974_v36  ;;  %v979_v43 = vsel %vm957_vm5, %v974_v44, %v978_v2  ;;  %v4994_v58 = vld [vmem:[%s6653_s1 + $0x5b4] ss:$8 sps:$4 sm:$0xff]   ;;  %v4248_v36 = vcombine.high %v6162_v35, %v2481_v54  ;;  %v4988_v44 = vld [vmem:[%s6653_s1 + $0x2a0] ss:$8 sps:$4 sm:$0xff]  }
  0xba   : > { %1637 = vmatprep.subr.bf16.mxu1 %v4983_v28  ;;  %v2585_v12 = vsel %vm2563_vm6, %v2580_v37, %v2584_v14  ;;  %v976_v28 = vrot.slane %v5482_v3, 1  ;;  %v2582_v37 = vrot.slane %v6175_v33, 3  ;;  %v5000_v3 = vld [vmem:[%s6653_s1 + $0x5c4] ss:$8 sps:$4 sm:$0xff]   ;;  %v5008_v54 = vld [vmem:[%s6653_s1 + $0x5d4] ss:$8 sps:$4 sm:$0xff]  }
  0xbc   : > { %3180 = vmatpush1.bf16.msra.mxu0 %v4978_v40  ;;  %v4990_v40 = vld [vmem:[%s6653_s1 + $0x2a4] ss:$8 sps:$4 sm:$0xff]  }
  0xbd   : > { %3181 = vmatprep.subr.bf16.mxu0 %v4986_v25  ;;  %1638 = vmatpush1.bf16.msra.mxu1 %v4981_v19  ;;  %v4992_v25 = vld [vmem:[%s6653_s1 + $0x5b0] ss:$8 sps:$4 sm:$0xff]   ;;  %v4997_v19 = vld [vmem:[%s6653_s1 + $0x2b4] ss:$8 sps:$4 sm:$0xff]  }
  0xbe   : > { %1195 = vmatmul.mubr.bf16.gmra.mrb[12].mxu1 %v973_v13  ;;  %v982_v13 = vrot.slane %v5490_v5, 1  ;;  %1639 = vmatprep.subr.bf16.mxu1 %v4990_v40  ;;  %v4998_v5 = vld [vmem:[%s6653_s1 + $0x5c0] ss:$8 sps:$4 sm:$0xff]  }
  0xbf   : > { %2801 = vmatmul.mubr.bf16.gmra.mrb[12].mxu0 %v2579_v20  ;;  %4025 = vmatprep.mubr.msk.bf16.mxu1 %vm558_vm2, %v979_v43  ;;  %v6203_v20 = vrot.slane %v4248_v36, 3  ;;  %v977_v43 = vsel %vm957_vm5, %v972_v10, %v976_v28  ;;  %v5004_v36 = vld [vmem:[%s6653_s1 + $0x2c4] ss:$8 sps:$4 sm:$0xff]  }
  0xc0   : > { %3182 = vmatpush1.bf16.msra.mxu0 %v4984_v55  ;;  %4277 = vmatprep.mubr.msk.bf16.mxu0 %vm558_vm2, %v2585_v12  ;;  %v1259_v55 = vld [vmem:[%s5235_s14 + $0x8] sm:$0xee]  ;;  %v2583_v12 = vsel %vm2563_vm6, %v2578_v52, %v2582_v37  ;;  %v983_v40 = vsel %vm957_vm5, %v978_v2, %v982_v13  ;;  %v980_v2 = vrot.slane %v5531_v39, 1  ;;  %v2959_v39 = vshrl.u32 %v6044_v38, 16 }
  0xc1   : > { %3183 = vmatprep.subr.bf16.mxu0 %v4994_v58  ;;  %1640 = vmatpush1.bf16.msra.mxu1 %v4988_v44  ;;  %v5081_v58 = vld [vmem:[%s5235_s14 + $0x10] sm:$0xff]  ;;  %v2589_v52 = vsel %vm2563_vm6, %v2584_v14, %v6203_v20  ;;  %v5002_v44 = vld [vmem:[%s6653_s1 + $0x2c0] ss:$8 sps:$4 sm:$0xff]   ;;  %v6230_v14 = vrot.slane %v4247_v4, 3  ;;  %v5014_v4 = vld [vmem:[%s6653_s1 + $0x5e4] ss:$8 sps:$4 sm:$0xff]  }
  0xc2   : > { %1641 = vmatprep.subr.bf16.mxu1 %v4997_v19  ;;  %v4053_v10 = vcombine.high %v1259_v55, %v5081_v58 }
  0xc4   : > { %3184 = vmatpush1.bf16.msra.mxu0 %v4992_v25  ;;  %v5006_v25 = vld [vmem:[%s6653_s1 + $0x5d0] ss:$8 sps:$4 sm:$0xff]   ;;  %v1373_v19 = vshrl.u32 %v4053_v10, 16 }
  0xc5   : > { %3185 = vmatprep.subr.bf16.mxu0 %v5000_v3  ;;  %1642 = vmatpush1.bf16.msra.mxu1 %v4995_v53  ;;  %v5011_v53 = vld [vmem:[%s6653_s1 + $0x2d4] ss:$8 sps:$4 sm:$0xff]   ;;  %v1376_v3 = vshll.u32 %v4053_v10, 16  ;;  %v2587_v10 = vsel %vm2563_vm6, %v2582_v37, %v6230_v14 }
  0xc6   : > { %1205 = vmatmul.mubr.bf16.gmra.mrb[16].mxu1 %v977_v43  ;;  %1643 = vmatprep.subr.bf16.mxu1 %v5004_v36  ;;  %v2915_v43 = vshrl.u32 %v5908_v7, 16  ;;  %v5009_v36 = vld [vmem:[%s6653_s1 + $0x2d0] ss:$8 sps:$4 sm:$0xff]  }
  0xc7   : > { %2811 = vmatmul.mubr.bf16.gmra.mrb[16].mxu0 %v2583_v12  ;;  %4026 = vmatprep.mubr.msk.bf16.mxu1 %vm558_vm2, %v983_v40  ;;  %v2918_v12 = vshll.u32 %v5908_v7, 16  ;;  %v2926_v40 = vshll.u32 %v5912_v18, 16  ;;  %v5017_v7 = vld [vmem:[%s6653_s1 + $0x2e4] ss:$8 sps:$4 sm:$0xff]   ;;  %v1378_v27 = vrot.slane %v1376_v3, 2 }
  0xc8   : > { %4278 = vmatprep.mubr.msk.bf16.mxu0 %vm558_vm2, %v2589_v52  ;;  %3186 = vmatpush1.bf16.msra.mxu0 %v4998_v5  ;;  %v2923_v5 = vshrl.u32 %v5912_v18, 16  ;;  %v981_v52 = vsel %vm957_vm5, %v976_v28, %v980_v2  ;;  %v1375_v18 = vrot.slane %v1373_v19, 1  ;;  %v5012_v28 = vld [vmem:[%s6653_s1 + $0x5e0] ss:$8 sps:$4 sm:$0xff]   ;;  %v2917_v37 = vrot.slane %v2915_v43, 3 }
  0xc9   : > { %3187 = vmatprep.subr.bf16.mxu0 %v5008_v54  ;;  %1644 = vmatpush1.bf16.msra.mxu1 %v5002_v44  ;;  %v4052_v54 = vcombine.low %v1259_v55, %v5081_v58  ;;  %v2920_v44 = vrot.slane %v2918_v12, 4  ;;  %v2928_v60 = vrot.slane %v2926_v40, 4  ;;  %v5023_v55 = vld [vmem:[%s6653_s1 + $0x5f4] ss:$8 sps:$4 sm:$0xff]   ;;  %v2898_v58 = vshrl.u32 %v5952_v41, 16 }
  0xca   : > { %1645 = vmatprep.subr.bf16.mxu1 %v5011_v53  ;;  %v2925_v17 = vrot.slane %v2923_v5, 3  ;;  %v5015_v53 = vld [vmem:[%s6653_s1 + $0x2e0] ss:$8 sps:$4 sm:$0xff]   ;;  %v2909_v43 = vshll.u32 %v5964_v34, 16  ;;  %v1379_v12 = vor.u32 %v1378_v27, %v1375_v18  ;;  %v5018_v27 = vld [vmem:[%s6653_s1 + $0x2f0] ss:$8 sps:$4 sm:$0xff]  }
  0xcb   : > { %v1356_v19 = vshrl.u32 %v4052_v54, 16  ;;  %v1359_v3 = vshll.u32 %v4052_v54, 16  ;;  %v2921_v5 = vor.u32 %v2920_v44, %v2917_v37 }
  0xcc   : > { %3188 = vmatpush1.bf16.msra.mxu0 %v5006_v25  ;;  %v2901_v25 = vshll.u32 %v5952_v41, 16  ;;  %v5020_v41 = vld [vmem:[%s6653_s1 + $0x2f4] ss:$8 sps:$4 sm:$0xff]   ;;  %v2929_v40 = vor.u32 %v2928_v60, %v2925_v17  ;;  %v2911_v18 = vrot.slane %v2909_v43, 4  ;;  %v1388_v60 = vsel %vm1354_vm4, %v1379_v12, %v5669_v0  ;;  %v5028_v17 = vld [vmem:[%s6653_s1 + $0x604] ss:$8 sps:$4 sm:$0xff]  }
  0xcd   : > { %3189 = vmatprep.subr.bf16.mxu0 %v5014_v4  ;;  %1646 = vmatpush1.bf16.msra.mxu1 %v5009_v36  ;;  %v2906_v4 = vshrl.u32 %v5964_v34, 16  ;;  %v2944_v34 = vshll.u32 %v5981_v49, 16  ;;  %v1358_v36 = vrot.slane %v1356_v19, 1  ;;  %v1361_v54 = vrot.slane %v1359_v3, 2  ;;  %v5026_v3 = vld [vmem:[%s6653_s1 + $0x600] ss:$8 sps:$4 sm:$0xff]  }
  0xce   : > { %1215 = vmatmul.mubr.bf16.gmra.mrb[20].mxu1 %v981_v52  ;;  %1647 = vmatprep.subr.bf16.mxu1 %v5017_v7  ;;  %v2941_v52 = vshrl.u32 %v5981_v49, 16  ;;  %v2930_v49 = vsel %vm2896_vm7, %v2921_v5, %v2929_v40  ;;  %v5031_v43 = vld [vmem:[%s6653_s1 + $0x614] ss:$8 sps:$4 sm:$0xff]   ;;  %v2961_v12 = vrot.slane %v2959_v39, 3  ;;  %v2950_v5 = vshrl.u32 %v6074_v15, 16 }
  0xcf   : > { %2821 = vmatmul.mubr.bf16.gmra.mrb[20].mxu0 %v2587_v10  ;;  %4027 = vmatprep.mubr.msk.bf16.mxu1 %vm558_vm2, %v982_v13  ;;  %v5021_v13 = vld [vmem:[%s6653_s1 + $0x5f0] ss:$8 sps:$4 sm:$0xff]   ;;  %v2903_v10 = vrot.slane %v2901_v25, 4  ;;  %v2908_v7 = vrot.slane %v2906_v4, 3  ;;  %v2946_v37 = vrot.slane %v2944_v34, 4  ;;  %v2935_v25 = vshll.u32 %v6023_v11, 16 }
  0xd0   : > { %4279 = vmatprep.mubr.msk.bf16.mxu0 %vm558_vm2, %v6203_v20  ;;  %3190 = vmatpush1.bf16.msra.mxu0 %v5012_v28  ;;  %v2900_v20 = vrot.slane %v2898_v58, 3  ;;  %v2943_v28 = vrot.slane %v2941_v52, 3  ;;  %v2932_v58 = vshrl.u32 %v6023_v11, 16  ;;  %v2953_v52 = vshll.u32 %v6074_v15, 16  ;;  %v5032_v15 = vld [vmem:[%s6653_s1 + $0x620] ss:$8 sps:$4 sm:$0xff]  }
  0xd1   : > { %3191 = vmatprep.subr.bf16.mxu0 %v5023_v55  ;;  %1648 = vmatpush1.bf16.msra.mxu1 %v5015_v53  ;;  %v1362_v55 = vor.u32 %v1361_v54, %v1358_v36  ;;  %v2912_v0 = vor.u32 %v2911_v18, %v2908_v7  ;;  %v2937_v11 = vrot.slane %v2935_v25, 4  ;;  %v5037_v54 = vld [vmem:[%s6653_s1 + $0x634] ss:$8 sps:$4 sm:$0xff]  }
  0xd2   : > { %1649 = vmatprep.subr.bf16.mxu1 %v5020_v41  ;;  %v2904_v44 = vor.u32 %v2903_v10, %v2900_v20  ;;  %v2947_v53 = vor.u32 %v2946_v37, %v2943_v28  ;;  %v2934_v4 = vrot.slane %v2932_v58, 3  ;;  %v2977_v20 = vshrl.u32 %v6093_v45, 16 }
  0xd3   : > { %v2980_v10 = vshll.u32 %v6093_v45, 16  ;;  %v2955_v36 = vrot.slane %v2953_v52, 4  ;;  %v2971_v28 = vshll.u32 %v6126_v62, 16 }
  0xd4   : > { %3192 = vmatpush1.bf16.msra.mxu0 %v5021_v13  ;;  %v2913_v19 = vsel %vm2896_vm7, %v2904_v44, %v2912_v0  ;;  %v2948_v41 = vsel %vm2896_vm7, %v2929_v40, %v2947_v53  ;;  %v5034_v40 = vld [vmem:[%s6653_s1 + $0x624] ss:$8 sps:$4 sm:$0xff]   ;;  %v2979_v18 = vrot.slane %v2977_v20, 3  ;;  %v2995_v44 = vshrl.u32 %v6141_v23, 16  ;;  %v5049_v20 = vld [vmem:[%s6653_s1 + $0x674] ss:$8 sps:$4 sm:$0xff]  }
  0xd5   : > { %1650 = vmatpush1.bf16.msra.mxu1 %v5018_v27  ;;  %3483 = vmatprep.subr.bf16.mxu0 %v5028_v17  ;;  %v2952_v27 = vrot.slane %v2950_v5, 3  ;;  %v2982_v45 = vrot.slane %v2980_v10, 4  ;;  %v2973_v25 = vrot.slane %v2971_v28, 4 }
  0xd6   : > { %1225 = vmatmul.mubr.bf16.gmra.mrb[24].mxu1 %v980_v2  ;;  %4435 = vmatprep.subr.bf16.mxu1 %v5028_v17  ;;  %v2962_v2 = vshll.u32 %v6044_v38, 16  ;;  %v2938_v38 = vor.u32 %v2937_v11, %v2934_v4  ;;  %v2997_v39 = vrot.slane %v2995_v44, 3  ;;  %v5041_v11 = vld [vmem:[%s6653_s1 + $0x650] ss:$8 sps:$4 sm:$0xff]  }
  0xd7   : > { %2831 = vmatmul.mubr.bf16.gmra.mrb[24].mxu0 %v6230_v14  ;;  %4090 = vmatprep.mubr.msk.bf16.mxu1 %vm558_vm2, %v1388_v60  ;;  %v1371_v14 = vsel %vm1354_vm4, %v1362_v55, %v5689_v24  ;;  %v5029_v24 = vld [vmem:[%s6653_s1 + $0x610] ss:$8 sps:$4 sm:$0xff]   ;;  %v2956_v17 = vor.u32 %v2955_v36, %v2952_v27  ;;  %v2983_v37 = vor.u32 %v2982_v45, %v2979_v18  ;;  %v2998_v55 = vshll.u32 %v6141_v23, 16  ;;  %v5043_v23 = vld [vmem:[%s6653_s1 + $0x654] ss:$8 sps:$4 sm:$0xff]  }
  0xd8   : > { %4330 = vmatprep.mubr.msk.bf16.mxu0 %vm558_vm2, %v2930_v49  ;;  %v2964_v13 = vrot.slane %v2962_v2, 4  ;;  %v5035_v60 = vld [vmem:[%s6653_s1 + $0x630] ss:$8 sps:$4 sm:$0xff]   ;;  %v2968_v49 = vshrl.u32 %v6126_v62, 16  ;;  %v5038_v62 = vld [vmem:[%s6653_s1 + $0x640] ss:$8 sps:$4 sm:$0xff]  }
  0xd9   : > { %v3000_v2 = vrot.slane %v2998_v55, 4  ;;  %v5047_v27 = vld [vmem:[%s6653_s1 + $0x670] ss:$8 sps:$4 sm:$0xff]   ;;  %v1462_v36 = vshrl.u32 %v5550_v61, 16  ;;  %v5057_v55 = vld [vmem:[%s6653_s1 + $0x694] ss:$8 sps:$4 sm:$0xff]  }
  0xda   : > { %v2965_v34 = vor.u32 %v2964_v13, %v2961_v12  ;;  %v2970_v58 = vrot.slane %v2968_v49, 3 }
  0xdc   : > { %v2966_v7 = vsel %vm2896_vm7, %v2947_v53, %v2965_v34  ;;  %v2984_v53 = vsel %vm2896_vm7, %v2965_v34, %v2983_v37  ;;  %v2974_v4 = vor.u32 %v2973_v25, %v2970_v58  ;;  %v5060_v58 = vld [vmem:[%s6653_s1 + $0x6a4] ss:$8 sps:$4 sm:$0xff]  }
  0xde   : > { %1660 = vmatmul.mubr.bf16.vlgmr.msra.gmra.mrb[0].mxu1 %v1371_v14  ;;  %v2975_v5 = vsel %vm2896_vm7, %v2956_v17, %v2974_v4 }
  0xdf   : > { %3202 = vmatmul.mubr.bf16.vlgmr.msra.gmra.mrb[0].mxu0 %v2913_v19  ;;  %4091 = vmatprep.mubr.msk.bf16.mxu1 %vm558_vm2, %v5797_v26  ;;  %v2939_v26 = vsel %vm2896_vm7, %v2912_v0, %v2938_v38  ;;  %v2957_v0 = vsel %vm2896_vm7, %v2938_v38, %v2956_v17  ;;  %v2986_v19 = vshrl.u32 %v6175_v33, 16 }
  0xe0   : > { %3484 = vmatpush1.bf16.msra.mxu0 %v5026_v3  ;;  %4331 = vmatprep.mubr.msk.bf16.mxu0 %vm558_vm2, %v2948_v41  ;;  %v3001_v41 = vor.u32 %v3000_v2, %v2997_v39  ;;  %v4370_v39 = vcombine.high %v6089_v31, %v6114_v56  ;;  %v6657_v2 = vcombine.high %v5852_v16, %v5859_v9 }
  0xe1   : > { %3485 = vmatprep.subr.bf16.mxu0 %v5031_v43  ;;  %4447 = vmatpush1.bf16.msra.mxu1 %v5026_v3  ;;  %v2989_v3 = vshll.u32 %v6175_v33, 16  ;;  %v1474_v33 = vshll.u32 %v5521_v30, 16 }
  0xe2   : > { %4436 = vmatprep.subr.bf16.mxu1 %v5031_v43  ;;  %v1471_v43 = vshrl.u32 %v5521_v30, 16  ;;  %v3002_v34 = vsel %vm2896_vm7, %v2983_v37, %v3001_v41 }
  0xe3   : > { %v2991_v38 = vrot.slane %v2989_v3, 4  ;;  %v6658_v3 = vcombine.low %v5852_v16, %v5859_v9  ;;  %v6661_v16 = vcombine.high %v5955_v42, %v5984_v8 }
  0xe4   : > { %3486 = vmatpush1.bf16.msra.mxu0 %v5029_v24  ;;  %v1473_v30 = vrot.slane %v1471_v43, 1 }
  0xe5   : > { %3487 = vmatprep.subr.bf16.mxu0 %v5034_v40  ;;  %4448 = vmatpush1.bf16.msra.mxu1 %v5029_v24  ;;  %v2988_v24 = vrot.slane %v2986_v19, 3  ;;  %v4372_v19 = vcombine.high %v6137_v48, %v6162_v35 }
  0xe6   : > { %1670 = vmatmul.mubr.bf16.gmra.mrb[4].mxu1 %v5826_v1  ;;  %v5040_v1 = vld [vmem:[%s6653_s1 + $0x644] ss:$8 sps:$4 sm:$0xff]   ;;  %4437 = vmatprep.subr.bf16.mxu1 %v5034_v40  ;;  %v1476_v40 = vrot.slane %v1474_v33, 2 }
  0xe7   : > { %3212 = vmatmul.mubr.bf16.gmra.mrb[4].mxu0 %v2939_v26  ;;  %4092 = vmatprep.mubr.msk.bf16.mxu1 %vm558_vm2, %v5862_v57  ;;  %v6345_v57 = vld [vmem:[%s5235_s14 + $0x78] sm:$0xff] }
  0xe8   : > { %3488 = vmatpush1.bf16.msra.mxu0 %v5032_v15  ;;  %4332 = vmatprep.mubr.msk.bf16.mxu0 %vm558_vm2, %v2966_v7  ;;  %v4305_v14 = vcombine.high %v6162_v35, %v6345_v57  ;;  %v4304_v52 = vcombine.low %v6162_v35, %v6345_v57  ;;  %v1477_v45 = vor.u32 %v1476_v40, %v1473_v30 }
  0xe9   : > { %3489 = vmatprep.subr.bf16.mxu0 %v5037_v54  ;;  %4449 = vmatpush1.bf16.msra.mxu1 %v5032_v15  ;;  %v2992_v15 = vor.u32 %v2991_v38, %v2988_v24  ;;  %v4373_v9 = vcombine.low %v6345_v57, %v6345_v57 }
  0xea   : > { %4438 = vmatprep.subr.bf16.mxu1 %v5037_v54  ;;  %v3013_v12 = vshrl.u32 %v4305_v14, 16  ;;  %v3016_v13 = vshll.u32 %v4305_v14, 16  ;;  %v1465_v54 = vshll.u32 %v5550_v61, 16  ;;  %v3004_v7 = vshrl.u32 %v4304_v52, 16 }
  0xeb   : > { %v3007_v18 = vshll.u32 %v4304_v52, 16  ;;  %v2993_v17 = vsel %vm2896_vm7, %v2974_v4, %v2992_v15  ;;  %v1464_v61 = vrot.slane %v1462_v36, 1  ;;  %v1478_v37 = vsel %vm1354_vm4, %v6009_v47, %v1477_v45  ;;  %v5055_v47 = vld [vmem:[%s6653_s1 + $0x690] ss:$8 sps:$4 sm:$0xff]  }
  0xec   : > { %3490 = vmatpush1.bf16.msra.mxu0 %v5035_v60  ;;  %v3015_v10 = vrot.slane %v3013_v12, 3  ;;  %v3018_v26 = vrot.slane %v3016_v13, 4  ;;  %v1467_v49 = vrot.slane %v1465_v54, 2  ;;  %v3006_v28 = vrot.slane %v3004_v7, 3 }
  0xed   : > { %3491 = vmatprep.subr.bf16.mxu0 %v5040_v1  ;;  %4450 = vmatpush1.bf16.msra.mxu1 %v5035_v60  ;;  %v4369_v14 = vcombine.low %v6089_v31, %v6114_v56  ;;  %v6659_v4 = vcombine.high %v5886_v51, %v5915_v21  ;;  %v4374_v31 = vcombine.high %v6345_v57, %v6345_v57 }
  0xee   : > { %1680 = vmatmul.mubr.bf16.gmra.mrb[8].mxu1 %v5919_v22  ;;  %v5046_v22 = vld [vmem:[%s6653_s1 + $0x664] ss:$8 sps:$4 sm:$0xff]   ;;  %4439 = vmatprep.subr.bf16.mxu1 %v5040_v1  ;;  %v3019_v60 = vor.u32 %v3018_v26, %v3015_v10  ;;  %v3009_v1 = vrot.slane %v3007_v18, 4  ;;  %v6660_v56 = vcombine.low %v5886_v51, %v5915_v21  ;;  %v6663_v51 = vcombine.high %v6012_v50, %v6066_v32 }
  0xef   : > { %3222 = vmatmul.mubr.bf16.gmra.mrb[8].mxu0 %v2957_v0  ;;  %4093 = vmatprep.mubr.msk.bf16.mxu1 %vm558_vm2, %v5941_v6  ;;  %v5044_v6 = vld [vmem:[%s6653_s1 + $0x660] ss:$8 sps:$4 sm:$0xff]   ;;  %v1468_v0 = vor.u32 %v1467_v49, %v1464_v61  ;;  %v6664_v21 = vcombine.low %v6012_v50, %v6066_v32 }
  0xf0   : > { %3492 = vmatpush1.bf16.msra.mxu0 %v5038_v62  ;;  %4333 = vmatprep.mubr.msk.bf16.mxu0 %vm558_vm2, %v2984_v53  ;;  %v3020_v44 = vsel %vm2896_vm7, %v3001_v41, %v3019_v60  ;;  %v5058_v53 = vld [vmem:[%s6653_s1 + $0x6a0] ss:$8 sps:$4 sm:$0xff]  }
  0xf1   : > { %3493 = vmatprep.subr.bf16.mxu0 %v5043_v23  ;;  %4451 = vmatpush1.bf16.msra.mxu1 %v5038_v62  ;;  %v3010_v62 = vor.u32 %v3009_v1, %v3006_v28 }
  0xf2   : > { %4440 = vmatprep.subr.bf16.mxu1 %v5043_v23  ;;  %v5063_v23 = vld [vmem:[%s6653_s1 + $0x6b4] ss:$8 sps:$4 sm:$0xff]  }
  0xf3   : > { %v3011_v25 = vsel %vm2896_vm7, %v2992_v15, %v3010_v62 }
  0xf4   : > { %3494 = vmatpush1.bf16.msra.mxu0 %v5041_v11 }
  0xf5   : > { %3495 = vmatprep.subr.bf16.mxu0 %v5046_v22  ;;  %4452 = vmatpush1.bf16.msra.mxu1 %v5041_v11  ;;  %v4371_v11 = vcombine.low %v6137_v48, %v6162_v35  ;;  %v6662_v48 = vcombine.low %v5955_v42, %v5984_v8 }
  0xf6   : > { %1690 = vmatmul.mubr.bf16.gmra.mrb[12].mxu1 %v5996_v46  ;;  %v5052_v46 = vld [vmem:[%s6653_s1 + $0x684] ss:$8 sps:$4 sm:$0xff]   ;;  %4441 = vmatprep.subr.bf16.mxu1 %v5046_v22 }
  0xf7   : > { %3232 = vmatmul.mubr.bf16.gmra.mrb[12].mxu0 %v2975_v5  ;;  %4094 = vmatprep.mubr.msk.bf16.mxu1 %vm558_vm2, %v6028_v29  ;;  %v5050_v29 = vld [vmem:[%s6653_s1 + $0x680] ss:$8 sps:$4 sm:$0xff]  }
  0xf8   : > { %3496 = vmatpush1.bf16.msra.mxu0 %v5044_v6  ;;  %4334 = vmatprep.mubr.msk.bf16.mxu0 %vm558_vm2, %v3002_v34 }
  0xf9   : > { %3497 = vmatprep.subr.bf16.mxu0 %v5049_v20  ;;  %4453 = vmatpush1.bf16.msra.mxu1 %v5044_v6 }
  0xfa   : > { %4442 = vmatprep.subr.bf16.mxu1 %v5049_v20 }
  0xfc   : > { %3498 = vmatpush1.bf16.msra.mxu0 %v5047_v27 }
  0xfd   : > { %3499 = vmatprep.subr.bf16.mxu0 %v5052_v46  ;;  %4454 = vmatpush1.bf16.msra.mxu1 %v5047_v27 }
  0xfe   : > { %1700 = vmatmul.mubr.bf16.gmra.mrb[16].mxu1 %v6036_v63  ;;  %4443 = vmatprep.subr.bf16.mxu1 %v5052_v46  ;;  %v1469_v63 = vsel %vm1354_vm4, %v6014_v59, %v1468_v0  ;;  %v5061_v59 = vld [vmem:[%s6653_s1 + $0x6b0] ss:$8 sps:$4 sm:$0xff]  }
  0xff   : > { %3242 = vmatmul.mubr.bf16.gmra.mrb[16].mxu0 %v2993_v17  ;;  %4095 = vmatprep.mubr.msk.bf16.mxu1 %vm558_vm2, %v1478_v37 }
 0x100   : > { %4335 = vmatprep.mubr.msk.bf16.mxu0 %vm558_vm2, %v3020_v44  ;;  %3500 = vmatpush1.bf16.msra.mxu0 %v5050_v29  ;;  %v3611_v44 = vlaneseq }
 0x101   : > { %3501 = vmatprep.subr.bf16.mxu0 %v5057_v55  ;;  %4455 = vmatpush1.bf16.msra.mxu1 %v5050_v29 }
 0x102   : > { %4444 = vmatprep.subr.bf16.mxu1 %v5057_v55 }
 0x104   : > { %3502 = vmatpush1.bf16.msra.mxu0 %v5055_v47 }
 0x105   : > { %3503 = vmatprep.subr.bf16.mxu0 %v5060_v58  ;;  %4456 = vmatpush1.bf16.msra.mxu1 %v5055_v47 }
 0x106   : > { %1710 = vmatmul.mubr.bf16.gmra.mrb[20].mxu1 %v1469_v63  ;;  %4445 = vmatprep.subr.bf16.mxu1 %v5060_v58 }
 0x107   : > { %3252 = vmatmul.mubr.bf16.gmra.mrb[20].mxu0 %v3011_v25  ;;  %4096 = vmatprep.mubr.msk.bf16.mxu1 %vm558_vm2, %v1477_v45 }
 0x108   : > { %4336 = vmatprep.mubr.msk.bf16.mxu0 %vm558_vm2, %v3019_v60  ;;  %3504 = vmatpush1.bf16.msra.mxu0 %v5058_v53 }
 0x109   : > { %3505 = vmatprep.subr.bf16.mxu0 %v5063_v23  ;;  %4457 = vmatpush1.bf16.msra.mxu1 %v5058_v53 }
 0x10a   : > { %4446 = vmatprep.subr.bf16.mxu1 %v5063_v23 }
 0x10c   : > { %3506 = vmatpush1.bf16.msra.mxu0 %v5061_v59 }
 0x10d   : > { %4458 = vmatpush1.bf16.msra.mxu1 %v5061_v59 }
 0x10e   : > { %1720 = vmatmul.mubr.bf16.gmra.mrb[24].mxu1 %v1468_v0  ;;  %v3612_v0 = vshrl.u32 %v3611_v44, 7 }
 0x10f   : > { %3262 = vmatmul.mubr.bf16.gmra.mrb[24].mxu0 %v3010_v62  ;;  %4403 = vmatprep.mubr.msk.bf16.mxu1 %vm558_vm2, %v4370_v39 }
 0x110   : > { %4399 = vmatprep.mubr.msk.bf16.mxu0 %vm558_vm2, %v6657_v2 }
 0x116   : > { %3556 = vmatmul.mubr.bf16.vlgmr.msra.gmra.mrb[28].mxu1 %v4369_v14  ;;  %v3613_v14 = vsub.s32 0, %v3612_v0 }
 0x117   : > { %3516 = vmatmul.mubr.bf16.vlgmr.msra.gmra.mrb[0].mxu0 %v6658_v3  ;;  %4404 = vmatprep.mubr.msk.bf16.mxu1 %vm558_vm2, %v4372_v19  ;;  %v199_v19 = vld [vmem:[%s6654_s2] sm:$0x3]  ;;  %v3617_v3 = vsub.s32 1, %v3612_v0 }
 0x118   : > { %4400 = vmatprep.mubr.msk.bf16.mxu0 %vm558_vm2, %v6659_v4  ;;  %v200_v4 = vld [vmem:[%s6655_s3] sm:$0x3] }
 0x11e   : > { %3566 = vmatmul.mubr.bf16.gmra.mrb[32].mxu1 %v4371_v11  ;;  %v6517_v11 = vrot.slane %v199_v19, %v3613_v14 }
 0x11f   : > { %3526 = vmatmul.mubr.bf16.gmra.mrb[4].mxu0 %v6660_v56  ;;  %4405 = vmatprep.mubr.msk.bf16.mxu1 %vm558_vm2, %v4374_v31 }
 0x120   : > { %4401 = vmatprep.mubr.msk.bf16.mxu0 %vm558_vm2, %v6661_v16  ;;  %v6519_v16 = vrot.slane %v199_v19, %v3617_v3 }
 0x126   : > { %3576 = vmatmul.mubr.bf16.gmra.mrb[36].mxu1 %v4373_v9 }
 0x127   : > { %3536 = vmatmul.mubr.bf16.gmra.mrb[8].mxu0 %v6662_v48  ;;  %v6521_v48 = vrot.slane %v200_v4, %v3613_v14 }
 0x128   : > { %4402 = vmatprep.mubr.msk.bf16.mxu0 %vm558_vm2, %v6663_v51 }
 0x12f   : > { %3546 = vmatmul.mubr.bf16.gmra.mrb[12].mxu0 %v6664_v21 }
 0x1b1   : > { %v1661_v35 = vpop.f32.mrb[0].mxu1 }
 0x1b2   : > { %v6469_v22 = vpop.f32.mrb[1].mxu1 }
 0x1b3   : > { %v6471_v43 = vpop.f32.mrb[2].mxu1 }
 0x1b4   : > { %v6473_v57 = vpop.f32.mrb[3].mxu1 }
 0x1b9   : > { %v6475_v33 = vpop.f32.mrb[4].mxu1 }
 0x1ba   : > { %v6477_v42 = vpop.f32.mrb[5].mxu1 }
 0x1bb   : > { %v6479_v8 = vpop.f32.mrb[6].mxu1 }
 0x1bc   : > { %v6481_v41 = vpop.f32.mrb[7].mxu1 }
 0x1c1   : > { %v6483_v12 = vpop.f32.mrb[8].mxu1 }
 0x1c2   : > { %v6485_v13 = vpop.f32.mrb[9].mxu1 }
 0x1c3   : > { %v6487_v50 = vpop.f32.mrb[10].mxu1 }
 0x1c4   : > { %v6489_v32 = vpop.f32.mrb[11].mxu1 }
 0x1c9   : > { %v6491_v24 = vpop.f32.mrb[12].mxu1 }
 0x1ca   : > { %v6493_v38 = vpop.f32.mrb[13].mxu1 }
 0x1cb   : > { %v6495_v5 = vpop.f32.mrb[14].mxu1 }
 0x1cc   : > { %v6497_v6 = vpop.f32.mrb[15].mxu1 }
 0x1d1   : > { %v1701_v52 = vpop.f32.mrb[16].mxu1 }
 0x1d2   : > { %v3243_v30 = vpop.f32.mrb[16].mxu0  ;;  %v1703_v34 = vpop.f32.mrb[17].mxu1 }
 0x1d3   : > { %v4475_v40 = vadd.f32 %v3243_v30, %v1701_v52  ;;  %v3245_v20 = vpop.f32.mrb[17].mxu0  ;;  %v1705_v26 = vpop.f32.mrb[18].mxu1  ;;  %v6523_v52 = vrot.slane %v200_v4, %v3617_v3 }
 0x1d4   : > { %v4477_v10 = vadd.f32 %v3245_v20, %v1703_v34  ;;  %v3247_v15 = vpop.f32.mrb[18].mxu0  ;;  %v1707_v36 = vpop.f32.mrb[19].mxu1 }
 0x1d5   : > { %v4479_v27 = vadd.f32 %v3247_v15, %v1705_v26  ;;  %v3249_v54 = vpop.f32.mrb[19].mxu0 }
 0x1d6   : > { %v4481_v7 = vadd.f32 %v3249_v54, %v1707_v36 }
 0x1d9   : > { %v1711_v18 = vpop.f32.mrb[20].mxu1 }
 0x1da   : > { %v3253_v46 = vpop.f32.mrb[20].mxu0  ;;  %v1713_v60 = vpop.f32.mrb[21].mxu1 }
 0x1db   : > { %v6499_v45 = vadd.f32 %v3253_v46, %v1711_v18  ;;  %v3255_v17 = vpop.f32.mrb[21].mxu0  ;;  %v1715_v49 = vpop.f32.mrb[22].mxu1 }
 0x1dc   : > { %v6501_v61 = vadd.f32 %v3255_v17, %v1713_v60  ;;  %v3257_v28 = vpop.f32.mrb[22].mxu0  ;;  %v1717_v29 = vpop.f32.mrb[23].mxu1 }
 0x1dd   : > { %v6503_v1 = vadd.f32 %v3257_v28, %v1715_v49  ;;  %v3259_v37 = vpop.f32.mrb[23].mxu0 }
 0x1de   : > { %v6505_v55 = vadd.f32 %v3259_v37, %v1717_v29 }
 0x1e1   : > { %v1721_v62 = vpop.f32.mrb[24].mxu1 }
 0x1e2   : > { %v3263_v47 = vpop.f32.mrb[24].mxu0  ;;  %v1723_v63 = vpop.f32.mrb[25].mxu1 }
 0x1e3   : > { %v6507_v58 = vadd.f32 %v3263_v47, %v1721_v62  ;;  %v3265_v25 = vpop.f32.mrb[25].mxu0  ;;  %v1725_v23 = vpop.f32.mrb[26].mxu1 }
 0x1e4   : > { %v6509_v53 = vadd.f32 %v3265_v25, %v1723_v63  ;;  %v3267_v59 = vpop.f32.mrb[26].mxu0  ;;  %v1726_v39 = vpop.f32.mrb[27].mxu1 }
 0x1e5   : > { %v3268_v2 = vpop.f32.mrb[27].mxu0 }
 0x1e9   : > { %v3557_v56 = vpop.f32.mrb[28].mxu1 }
 0x1ea   : > { %v3517_v31 = vpop.f32.mrb[0].mxu0  ;;  %v4476_v51 = vadd.f32 %v4475_v40, %v3557_v56  ;;  %v3559_v30 = vpop.f32.mrb[29].mxu1 }
 0x1eb   : > { %v4459_v9 = vadd.f32 %v3517_v31, %v1661_v35  ;;  %v3519_v21 = vpop.f32.mrb[1].mxu0  ;;  %v4478_v20 = vadd.f32 %v4477_v10, %v3559_v30  ;;  %v3561_v15 = vpop.f32.mrb[30].mxu1 }
 0x1ec   : > { %v4460_v34 = vadd.f32 %v3519_v21, %v6469_v22  ;;  %v3521_v26 = vpop.f32.mrb[2].mxu0  ;;  %v3637_v54 = vmul.f32 %v4476_v51, %v6517_v11  ;;  %v4480_v18 = vadd.f32 %v4479_v27, %v3561_v15  ;;  %v3563_v46 = vpop.f32.mrb[31].mxu1 }
 0x1ed   : > { %v3621_v36 = vmul.f32 %v4459_v9, %v6517_v11  ;;  %v4461_v35 = vadd.f32 %v3521_v26, %v6471_v43  ;;  %v3523_v40 = vpop.f32.mrb[3].mxu0  ;;  %v3638_v17 = vmul.f32 %v4478_v20, %v6519_v16  ;;  %v4482_v49 = vadd.f32 %v4481_v7, %v3563_v46 }
 0x1ee   : > { %v3622_v60 = vmul.f32 %v4460_v34, %v6519_v16  ;;  %v4462_v22 = vadd.f32 %v3523_v40, %v6473_v57  ;;  %v3674_v28 = vadd.f32 %v6521_v48, %v3637_v54  ;;  %v3639_v37 = vmul.f32 %v4480_v18, %v6517_v11 }
 0x1ef   : > { %v3658_v10 = vadd.f32 %v6521_v48, %v3621_v36  ;;  %v3623_v29 = vmul.f32 %v4461_v35, %v6517_v11  ;;  %v3675_v27 = vadd.f32 %v6523_v52, %v3638_v17  ;;  %v3640_v0 = vmul.f32 %v4482_v49, %v6519_v16 }
 0x1f0   : > { %v3659_v43 = vadd.f32 %v6523_v52, %v3622_v60  ;;  %v3624_v44 = vmul.f32 %v4462_v22, %v6519_v16  ;;  %v3700_v57 = vmax.f32 %v3674_v28, 0.0  ;;  %v3676_v47 = vadd.f32 %v6521_v48, %v3639_v37 }
 0x1f1   : > { %v3684_v62 = vmax.f32 %v3658_v10, 0.0  ;;  %v3660_v7 = vadd.f32 %v6521_v48, %v3623_v29  ;;  %v3701_v25 = vmax.f32 %v3675_v27, 0.0  ;;  %v3677_v59 = vadd.f32 %v6523_v52, %v3640_v0  ;;  %v3567_v2 = vpop.f32.mrb[32].mxu1 }
 0x1f2   : > { %v3685_v63 = vmax.f32 %v3659_v43, 0.0  ;;  %v3661_v23 = vadd.f32 %v6523_v52, %v3624_v44  ;;  %v3527_v39 = vpop.f32.mrb[4].mxu0  ;;  %v3702_v3 = vmax.f32 %v3676_v47, 0.0  ;;  %v4484_v31 = vadd.f32 %v6499_v45, %v3567_v2  ;;  %v3569_v9 = vpop.f32.mrb[33].mxu1 }
 0x1f3   : > { %v3686_v19 = vmax.f32 %v3660_v7, 0.0  ;;  %v4463_v4 = vadd.f32 %v3527_v39, %v6475_v33  ;;  %v3529_v56 = vpop.f32.mrb[5].mxu0  ;;  %v4430_v21 = vpack.c.bf16 %v3701_v25, %v3700_v57  ;;  %v3703_v34 = vmax.f32 %v3677_v59, 0.0  ;;  %v3571_v26 = vpop.f32.mrb[34].mxu1 }
 0x1f4   : > { %v4422_v51 = vpack.c.bf16 %v3685_v63, %v3684_v62  ;;  %v3687_v30 = vmax.f32 %v3661_v23, 0.0  ;;  %v3531_v20 = vpop.f32.mrb[6].mxu0  ;;  %v3641_v36 = vmul.f32 %v4484_v31, %v6517_v11  ;;  %v4464_v33 = vadd.f32 %v3529_v56, %v6477_v42  ;;  %v3573_v35 = vpop.f32.mrb[35].mxu1 }
 0x1f5   : > { %v3625_v15 = vmul.f32 %v4463_v4, %v6517_v11  ;;  %v4486_v54 = vadd.f32 %v6501_v61, %v3569_v9  ;;  %v3533_v45 = vpop.f32.mrb[7].mxu0  ;;  %3801 = vst.msk [vmem:[%s6548_s17 + $0x40] sm:$0xff] %vm6552_vm10, %v4430_v21  ;;  %v4431_v40 = vpack.c.bf16 %v3703_v34, %v3702_v3  ;;  %v4465_v46 = vadd.f32 %v3531_v20, %v6479_v8 }
 0x1f6   : > { %3793 = vst.msk [vmem:[%s6548_s17] sm:$0xff] %vm6552_vm10, %v4422_v51  ;;  %v4423_v18 = vpack.c.bf16 %v3687_v30, %v3686_v19  ;;  %v4488_v60 = vadd.f32 %v6503_v1, %v3571_v26  ;;  %v3678_v42 = vadd.f32 %v6521_v48, %v3641_v36  ;;  %v3626_v61 = vmul.f32 %v4464_v33, %v6519_v16 }
 0x1f7   : > { %v3662_v17 = vadd.f32 %v6521_v48, %v3625_v15  ;;  %v3642_v22 = vmul.f32 %v4486_v54, %v6519_v16  ;;  %3802 = vst.msk [vmem:[%s6548_s17 + $0x48] sm:$0xff] %vm6552_vm10, %v4431_v40  ;;  %v3627_v49 = vmul.f32 %v4465_v46, %v6517_v11  ;;  %v4466_v1 = vadd.f32 %v3533_v45, %v6481_v41 }
 0x1f8   : > { %3794 = vst.msk [vmem:[%s6548_s17 + $0x8] sm:$0xff] %vm6552_vm10, %v4423_v18  ;;  %v3643_v8 = vmul.f32 %v4488_v60, %v6517_v11  ;;  %v4490_v10 = vadd.f32 %v6505_v55, %v3573_v35  ;;  %v3704_v29 = vmax.f32 %v3678_v42, 0.0  ;;  %v3663_v37 = vadd.f32 %v6523_v52, %v3626_v61 }
 0x1f9   : > { %v3688_v28 = vmax.f32 %v3662_v17, 0.0  ;;  %v3679_v43 = vadd.f32 %v6523_v52, %v3642_v22  ;;  %v3664_v27 = vadd.f32 %v6521_v48, %v3627_v49  ;;  %v3628_v0 = vmul.f32 %v4466_v1, %v6519_v16  ;;  %v3577_v7 = vpop.f32.mrb[36].mxu1 }
 0x1fa   : > { %v3680_v44 = vadd.f32 %v6521_v48, %v3643_v8  ;;  %v3644_v62 = vmul.f32 %v4490_v10, %v6519_v16  ;;  %v3537_v57 = vpop.f32.mrb[8].mxu0  ;;  %v3689_v47 = vmax.f32 %v3663_v37, 0.0  ;;  %v4492_v63 = vadd.f32 %v6507_v58, %v3577_v7  ;;  %v3579_v23 = vpop.f32.mrb[37].mxu1 }
 0x1fb   : > { %v3705_v41 = vmax.f32 %v3679_v43, 0.0  ;;  %v4467_v55 = vadd.f32 %v3537_v57, %v6483_v12  ;;  %v3539_v25 = vpop.f32.mrb[9].mxu0  ;;  %v3690_v59 = vmax.f32 %v3664_v27, 0.0  ;;  %v3665_v2 = vadd.f32 %v6523_v52, %v3628_v0  ;;  %v3581_v4 = vpop.f32.mrb[38].mxu1 }
 0x1fc   : > { %v3706_v39 = vmax.f32 %v3680_v44, 0.0  ;;  %v3681_v19 = vadd.f32 %v6523_v52, %v3644_v62  ;;  %v3541_v3 = vpop.f32.mrb[10].mxu0  ;;  %v4424_v31 = vpack.c.bf16 %v3689_v47, %v3688_v28  ;;  %v3645_v12 = vmul.f32 %v4492_v63, %v6517_v11  ;;  %v3582_v58 = vpop.f32.mrb[39].mxu1 }
 0x1fd   : > { %v4432_v56 = vpack.c.bf16 %v3705_v41, %v3704_v29  ;;  %v3629_v9 = vmul.f32 %v4467_v55, %v6517_v11  ;;  %v3543_v51 = vpop.f32.mrb[11].mxu0  ;;  %v3691_v21 = vmax.f32 %v3665_v2, 0.0  ;;  %v4468_v34 = vadd.f32 %v3539_v25, %v6485_v13 }
 0x1fe   : > { %v3707_v30 = vmax.f32 %v3681_v19, 0.0  ;;  %v4494_v20 = vadd.f32 %v6509_v53, %v3579_v23  ;;  %3795 = vst.msk [vmem:[%s6548_s17 + $0x10] sm:$0xff] %vm6552_vm10, %v4424_v31  ;;  %v3682_v15 = vadd.f32 %v6521_v48, %v3645_v12  ;;  %v4469_v36 = vadd.f32 %v3541_v3, %v6487_v50 }
 0x1ff   : > { %3803 = vst.msk [vmem:[%s6548_s17 + $0x50] sm:$0xff] %vm6552_vm10, %v4432_v56  ;;  %v3666_v26 = vadd.f32 %v6521_v48, %v3629_v9  ;;  %v4470_v33 = vadd.f32 %v3543_v51, %v6489_v32  ;;  %v4425_v54 = vpack.c.bf16 %v3691_v21, %v3690_v59  ;;  %v3630_v13 = vmul.f32 %v4468_v34, %v6519_v16 }
 0x200   : > { %v4433_v45 = vpack.c.bf16 %v3707_v30, %v3706_v39  ;;  %v3646_v53 = vmul.f32 %v4494_v20, %v6519_v16  ;;  %v3631_v35 = vmul.f32 %v4469_v36, %v6517_v11  ;;  %v3708_v50 = vmax.f32 %v3682_v15, 0.0 }
 0x201   : > { %v3632_v18 = vmul.f32 %v4470_v33, %v6519_v16  ;;  %3796 = vst.msk [vmem:[%s6548_s17 + $0x18] sm:$0xff] %vm6552_vm10, %v4425_v54  ;;  %v3692_v40 = vmax.f32 %v3666_v26, 0.0  ;;  %v3667_v32 = vadd.f32 %v6523_v52, %v3630_v13 }
 0x202   : > { %3804 = vst.msk [vmem:[%s6548_s17 + $0x58] sm:$0xff] %vm6552_vm10, %v4433_v45  ;;  %v3683_v46 = vadd.f32 %v6523_v52, %v3646_v53  ;;  %v3547_v60 = vpop.f32.mrb[12].mxu0  ;;  %v3668_v17 = vadd.f32 %v6521_v48, %v3631_v35 }
 0x203   : > { %v3669_v42 = vadd.f32 %v6523_v52, %v3632_v18  ;;  %v4471_v61 = vadd.f32 %v3547_v60, %v6491_v24  ;;  %v3549_v22 = vpop.f32.mrb[13].mxu0  ;;  %v3693_v49 = vmax.f32 %v3667_v32, 0.0 }
 0x204   : > { %v3709_v8 = vmax.f32 %v3683_v46, 0.0  ;;  %v4472_v1 = vadd.f32 %v3549_v22, %v6493_v38  ;;  %v3551_v10 = vpop.f32.mrb[14].mxu0  ;;  %v3694_v28 = vmax.f32 %v3668_v17, 0.0 }
 0x205   : > { %v3695_v29 = vmax.f32 %v3669_v42, 0.0  ;;  %v3633_v37 = vmul.f32 %v4471_v61, %v6517_v11  ;;  %v4473_v43 = vadd.f32 %v3551_v10, %v6495_v5  ;;  %v3553_v27 = vpop.f32.mrb[15].mxu0  ;;  %v4426_v44 = vpack.c.bf16 %v3693_v49, %v3692_v40 }
 0x206   : > { %v4434_v0 = vpack.c.bf16 %v3709_v8, %v3708_v50  ;;  %v3634_v24 = vmul.f32 %v4472_v1, %v6519_v16  ;;  %v4474_v62 = vadd.f32 %v3553_v27, %v6497_v6 }
 0x207   : > { %v4427_v57 = vpack.c.bf16 %v3695_v29, %v3694_v28  ;;  %v3670_v7 = vadd.f32 %v6521_v48, %v3633_v37  ;;  %v3635_v38 = vmul.f32 %v4473_v43, %v6517_v11  ;;  %3797 = vst.msk [vmem:[%s6548_s17 + $0x20] sm:$0xff] %vm6552_vm10, %v4426_v44 }
 0x208   : > { %3805 = vst.msk [vmem:[%s6548_s17 + $0x60] sm:$0xff] %vm6552_vm10, %v4434_v0  ;;  %v3671_v5 = vadd.f32 %v6523_v52, %v3634_v24  ;;  %v3636_v47 = vmul.f32 %v4474_v62, %v6519_v16 }
 0x209   : > { %3798 = vst.msk [vmem:[%s6548_s17 + $0x28] sm:$0xff] %vm6552_vm10, %v4427_v57  ;;  %v3696_v6 = vmax.f32 %v3670_v7, 0.0  ;;  %v3672_v41 = vadd.f32 %v6521_v48, %v3635_v38 }
 0x20a   : > { %v3697_v55 = vmax.f32 %v3671_v5, 0.0  ;;  %v3673_v63 = vadd.f32 %v6523_v52, %v3636_v47 }
 0x20b   : > { %v3698_v11 = vmax.f32 %v3672_v41, 0.0 }
 0x20c   : > { %v4428_v25 = vpack.c.bf16 %v3697_v55, %v3696_v6  ;;  %v3699_v23 = vmax.f32 %v3673_v63, 0.0 }
 0x20e   : > { %3799 = vst.msk [vmem:[%s6548_s17 + $0x30] sm:$0xff] %vm6552_vm10, %v4428_v25  ;;  %v4429_v59 = vpack.c.bf16 %v3699_v23, %v3698_v11 }
 0x210   : > { %3800 = vst.msk [vmem:[%s6548_s17 + $0x38] sm:$0xff] %vm6552_vm10, %v4429_v59 }
 0x211 PF: > { %s14_s15 = sadd.s32 1, %s5088_s15  }
 0x212   : > { %p11_p4 = scmp.ge.s32.totalorder %s14_s15, 4  }
 0x214   :  { %13 = sbr.rel (!%p11_p4) target bundleno = 1 (0x1), region = 74 }

// kernel: reduction_a_forward.5
= control target key start
LH: loop header
LB: loop body
LE: loop exit
PB: predicated region body
PF: predicated region fallthrough
CT: control target
= control target key end

     0   :  { %s10966_s30 = smov 0   ;;  %s13989_s0 = inlined_call_operand.vmem [shape: bf16[32,3456], index: 0, kind: input, shape index: {}]   ;;  %s13990_s1 = inlined_call_operand.vmem [shape: bf16[3456,384], index: 1, kind: input, shape index: {}]   ;;  %s13991_s2 = inlined_call_operand.vmem [shape: f32[1,384], index: 2, kind: input, shape index: {}]   ;;  %s13992_s3 = inlined_call_operand.vmem [shape: f32[1,384], index: 3, kind: input, shape index: {}]   ;;  %s13993_s4 = inlined_call_operand.vmem [shape: bf16[32,2048], index: 4, kind: input, shape index: {}]   ;;  %s13994_s5 = inlined_call_operand.vmem [shape: bf16[2048,256], index: 5, kind: input, shape index: {}]   ;;  %s13995_s6 = inlined_call_operand.vmem [shape: f32[1,256], index: 6, kind: input, shape index: {}]   ;;  %s13996_s7 = inlined_call_operand.vmem [shape: f32[1,256], index: 7, kind: input, shape index: {}]   ;;  %s13997_s8 = inlined_call_operand.vmem [shape: f32[32,384], index: 8, kind: input, shape index: {}]   ;;  %s13998_s9 = inlined_call_operand.vmem [shape: f32[32,1024], index: 9, kind: output, shape index: {}]  }
   0x1 LB: > { %s8220_s10 = sadd.s32 4294967295, %s10911_s30   ;;  %p8224_p0 = scmp.ge.s32.totalorder %s10911_s30, 1  ;;  %s10911_s30 = sphi %s10966_s30, %s19_s30  }
   0x2   : > { %p313_p1 = scmp.lt.s32.totalorder %s10911_s30, 3 }
   0x4   : > { %p314_p2 = pnand %p8224_p0, %p313_p1 }
   0x5   : > { %v9594_v0 = vld [vmem:[%s13990_s1 + $0x4] ss:$12 sps:$4 sm:$0xff] (!%p314_p2)   ;;  %v9596_v1 = vld [vmem:[%s13990_s1 + $0x248] ss:$12 sps:$4 sm:$0xff] (!%p314_p2)   ;;  %v9597_v2 = vld [vmem:[%s13990_s1] ss:$12 sps:$4 sm:$0xff] (!%p314_p2)  }
   0x6   : > { %317 = sbr.rel (%p314_p2) target bundleno = 1157 (0x485), region = 56  ;;  %4876 = vmatprep.subr.bf16.mxu0 (!%p314_p2), %v9594_v0  ;;  %9208 = vmatprep.subr.bf16.mxu1 (!%p314_p2), %v9596_v1  ;;  %v9598_v3 = vld [vmem:[%s13990_s1 + $0x188] ss:$12 sps:$4 sm:$0xff] (!%p314_p2)   ;;  %v9601_v5 = vld [vmem:[%s13990_s1 + $0x260] ss:$12 sps:$4 sm:$0xff] (!%p314_p2)   ;;  %s8225_s29 = sshll.u32 (!%p314_p2), %s8220_s10, 1 }
   0x7   : > { %4877 = vmatpush1.bf16.msra.mxu0 (!%p314_p2), %v9597_v2  ;;  %v9599_v4 = vld [vmem:[%s13990_s1 + $0x1c] ss:$12 sps:$4 sm:$0xff] (!%p314_p2)   ;;  %9209 = vmatpush3.bf16.msra.mxu1 (!%p314_p2), %v9598_v3  ;;  %v9602_v6 = vld [vmem:[%s13990_s1 + $0x18] ss:$12 sps:$4 sm:$0xff] (!%p314_p2)   ;;  %v9603_v7 = vld [vmem:[%s13990_s1 + $0x1a0] ss:$12 sps:$4 sm:$0xff] (!%p314_p2)  }
   0x8   : > { %4878 = vmatprep.subr.bf16.mxu0 (!%p314_p2), %v9599_v4  ;;  %9210 = vmatprep.subr.bf16.mxu1 (!%p314_p2), %v9601_v5  ;;  %v9604_v8 = vld [vmem:[%s13990_s1 + $0x34] ss:$12 sps:$4 sm:$0xff] (!%p314_p2)   ;;  %v9606_v9 = vld [vmem:[%s13990_s1 + $0x278] ss:$12 sps:$4 sm:$0xff] (!%p314_p2)   ;;  %v9607_v10 = vld [vmem:[%s13990_s1 + $0x30] ss:$12 sps:$4 sm:$0xff] (!%p314_p2)  }
   0x9   : > { %v9608_v11 = vld [vmem:[%s13990_s1 + $0x1b8] ss:$12 sps:$4 sm:$0xff] (!%p314_p2)   ;;  %p364_p3 = scmp.lt.s32.totalorder (!%p314_p2), %s8225_s29, 3  ;;  %v9611_v13 = vld [vmem:[%s13990_s1 + $0x290] ss:$12 sps:$4 sm:$0xff] (!%p314_p2)   ;;  %vm10914_vm0 = vmmov (!%p314_p2), 0  }
   0xa   : > { %v9609_v12 = vld [vmem:[%s13990_s1 + $0x4c] ss:$12 sps:$4 sm:$0xff] (!%p314_p2)   ;;  %v9612_v14 = vld [vmem:[%s13990_s1 + $0x48] ss:$12 sps:$4 sm:$0xff] (!%p314_p2)   ;;  %v9613_v15 = vld [vmem:[%s13990_s1 + $0x1d0] ss:$12 sps:$4 sm:$0xff] (!%p314_p2)  }
   0xb   : > { %4879 = vmatpush1.bf16.msra.mxu0 (!%p314_p2), %v9602_v6  ;;  %9211 = vmatpush3.bf16.msra.mxu1 (!%p314_p2), %v9603_v7  ;;  %v9614_v16 = vld [vmem:[%s13990_s1 + $0x64] ss:$12 sps:$4 sm:$0xff] (!%p314_p2)   ;;  %v9616_v17 = vld [vmem:[%s13990_s1 + $0x2a8] ss:$12 sps:$4 sm:$0xff] (!%p314_p2)   ;;  %v9617_v18 = vld [vmem:[%s13990_s1 + $0x60] ss:$12 sps:$4 sm:$0xff] (!%p314_p2)  }
   0xc   : > { %4880 = vmatprep.subr.bf16.mxu0 (!%p314_p2), %v9604_v8  ;;  %9212 = vmatprep.subr.bf16.mxu1 (!%p314_p2), %v9606_v9  ;;  %v9618_v19 = vld [vmem:[%s13990_s1 + $0x1e8] ss:$12 sps:$4 sm:$0xff] (!%p314_p2)   ;;  %v9621_v21 = vld [vmem:[%s13990_s1 + $0x2c0] ss:$12 sps:$4 sm:$0xff] (!%p314_p2)   ;;  %v9622_v22 = vld [vmem:[%s13990_s1 + $0x78] ss:$12 sps:$4 sm:$0xff] (!%p314_p2)  }
   0xd   : > { %s14000_s29 = smov (!%p364_p3, %s8225_s29), 3  ;;  %v9619_v20 = vld [vmem:[%s13990_s1 + $0x7c] ss:$12 sps:$4 sm:$0xff]   ;;  %v9623_v23 = vld [vmem:[%s13990_s1 + $0x200] ss:$12 sps:$4 sm:$0xff]  }
   0xe   : > { %s9581_s21 = smul.u32 108, %s14000_s29  ;;  %v9624_v24 = vld [vmem:[%s13990_s1 + $0x94] ss:$12 sps:$4 sm:$0xff]   ;;  %v9626_v25 = vld [vmem:[%s13990_s1 + $0x2d8] ss:$12 sps:$4 sm:$0xff]   ;;  %s9184_s28 = sshll.u32 %s14000_s29, 6 }
   0xf   : > { %4881 = vmatpush1.bf16.msra.mxu0 %v9607_v10  ;;  %9213 = vmatpush3.bf16.msra.mxu1 %v9608_v11  ;;  %v9627_v26 = vld [vmem:[%s13990_s1 + $0x90] ss:$12 sps:$4 sm:$0xff]   ;;  %v9628_v27 = vld [vmem:[%s13990_s1 + $0x218] ss:$12 sps:$4 sm:$0xff]   ;;  %v9632_v30 = vld [vmem:[%s13990_s1 + $0xa8] ss:$12 sps:$4 sm:$0xff]   ;;  %s12287_s18 = scalar_lea.vmem %s13993_s4, %s9184_s28  ;;  %s13918_s20 = scalar_lea.vmem %s13998_s9, %s9184_s28 }
  0x10   : > { %4882 = vmatprep.subr.bf16.mxu0 %v9609_v12  ;;  %9214 = vmatprep.subr.bf16.mxu1 %v9611_v13  ;;  %s11061_s12 = scalar_lea.vmem %s13989_s0, %s9581_s21  ;;  %v9629_v28 = vld [vmem:[%s13990_s1 + $0xac] ss:$12 sps:$4 sm:$0xff]   ;;  %v9631_v29 = vld [vmem:[%s13990_s1 + $0x2f0] ss:$12 sps:$4 sm:$0xff]   ;;  %v9639_v34 = vld [vmem:[%s13990_s1 + $0x3c8] ss:$12 sps:$4 sm:$0xff]  }
  0x11   : > { %v11076_v31 = vld [vmem:[%s11061_s12 + $0xc] ss:$108 sps:$4 sm:$0xff]   ;;  %v9633_v32 = vld [vmem:[%s13990_s1 + $0x230] ss:$12 sps:$4 sm:$0xff]   ;;  %v11089_v35 = vld [vmem:[%s11061_s12 + $0x8] ss:$108 sps:$4 sm:$0xff]  }
  0x12   : > { %v9637_v33 = vld [vmem:[%s13990_s1 + $0xc4] ss:$12 sps:$4 sm:$0xff]   ;;  %5551 = vmatprep.mubr.bf16.mxu1 %v11076_v31  ;;  %v9640_v36 = vld [vmem:[%s13990_s1 + $0xc0] ss:$12 sps:$4 sm:$0xff]   ;;  %v9641_v37 = vld [vmem:[%s13990_s1 + $0x308] ss:$12 sps:$4 sm:$0xff]  }
  0x13   : > { %4883 = vmatpush1.bf16.msra.mxu0 %v9612_v14  ;;  %9215 = vmatpush3.bf16.msra.mxu1 %v9613_v15  ;;  %v9642_v38 = vld [vmem:[%s13990_s1 + $0xdc] ss:$12 sps:$4 sm:$0xff]   ;;  %v9644_v39 = vld [vmem:[%s13990_s1 + $0x3e0] ss:$12 sps:$4 sm:$0xff]   ;;  %v9645_v40 = vld [vmem:[%s13990_s1 + $0xd8] ss:$12 sps:$4 sm:$0xff]  }
  0x14   : > { %4884 = vmatprep.subr.bf16.mxu0 %v9614_v16  ;;  %9216 = vmatprep.subr.bf16.mxu1 %v9616_v17  ;;  %v9646_v41 = vld [vmem:[%s13990_s1 + $0x320] ss:$12 sps:$4 sm:$0xff]   ;;  %v9649_v43 = vld [vmem:[%s13990_s1 + $0x3f8] ss:$12 sps:$4 sm:$0xff]   ;;  %v9650_v44 = vld [vmem:[%s13990_s1 + $0xf0] ss:$12 sps:$4 sm:$0xff]  }
  0x15   : > { %v9647_v42 = vld [vmem:[%s13990_s1 + $0xf4] ss:$12 sps:$4 sm:$0xff]   ;;  %v9651_v45 = vld [vmem:[%s13990_s1 + $0x338] ss:$12 sps:$4 sm:$0xff]   ;;  %v9654_v47 = vld [vmem:[%s13990_s1 + $0x410] ss:$12 sps:$4 sm:$0xff]  }
  0x16   : > { %v9652_v46 = vld [vmem:[%s13990_s1 + $0x10c] ss:$12 sps:$4 sm:$0xff]   ;;  %v9655_v48 = vld [vmem:[%s13990_s1 + $0x108] ss:$12 sps:$4 sm:$0xff]   ;;  %v9656_v49 = vld [vmem:[%s13990_s1 + $0x350] ss:$12 sps:$4 sm:$0xff]  }
  0x17   : > { %4885 = vmatpush1.bf16.msra.mxu0 %v9617_v18  ;;  %9217 = vmatpush3.bf16.msra.mxu1 %v9618_v19  ;;  %v9657_v50 = vld [vmem:[%s13990_s1 + $0x124] ss:$12 sps:$4 sm:$0xff]   ;;  %v9659_v51 = vld [vmem:[%s13990_s1 + $0x428] ss:$12 sps:$4 sm:$0xff]   ;;  %v9660_v52 = vld [vmem:[%s13990_s1 + $0x120] ss:$12 sps:$4 sm:$0xff]  }
  0x18   : > { %4886 = vmatprep.subr.bf16.mxu0 %v9619_v20  ;;  %9218 = vmatprep.subr.bf16.mxu1 %v9621_v21  ;;  %v9661_v53 = vld [vmem:[%s13990_s1 + $0x368] ss:$12 sps:$4 sm:$0xff]   ;;  %v9664_v55 = vld [vmem:[%s13990_s1 + $0x440] ss:$12 sps:$4 sm:$0xff]   ;;  %v9665_v56 = vld [vmem:[%s13990_s1 + $0x138] ss:$12 sps:$4 sm:$0xff]  }
  0x19   : > { %v9662_v54 = vld [vmem:[%s13990_s1 + $0x13c] ss:$12 sps:$4 sm:$0xff]   ;;  %v9666_v57 = vld [vmem:[%s13990_s1 + $0x380] ss:$12 sps:$4 sm:$0xff]   ;;  %v9669_v59 = vld [vmem:[%s13990_s1 + $0x458] ss:$12 sps:$4 sm:$0xff]  }
  0x1a   : > { %v9667_v58 = vld [vmem:[%s13990_s1 + $0x154] ss:$12 sps:$4 sm:$0xff]   ;;  %v9670_v60 = vld [vmem:[%s13990_s1 + $0x150] ss:$12 sps:$4 sm:$0xff]   ;;  %v9671_v61 = vld [vmem:[%s13990_s1 + $0x398] ss:$12 sps:$4 sm:$0xff]  }
  0x1b   : > { %4887 = vmatpush1.bf16.msra.mxu0 %v9622_v22  ;;  %9219 = vmatpush3.bf16.msra.mxu1 %v9623_v23  ;;  %v11171_v62 = vld [vmem:[%s11061_s12 + $0x14] ss:$108 sps:$4 sm:$0xff]   ;;  %v9672_v63 = vld [vmem:[%s13990_s1 + $0x16c] ss:$12 sps:$4 sm:$0xff]   ;;  %v9682_v0 = vld [vmem:[%s11061_s12 + $0x4] ss:$108 sps:$4 sm:$0xff]  }
  0x1c   : > { %4888 = vmatprep.subr.bf16.mxu0 %v9624_v24  ;;  %9220 = vmatprep.subr.bf16.mxu1 %v9626_v25  ;;  %v9674_v1 = vld [vmem:[%s13990_s1 + $0x470] ss:$12 sps:$4 sm:$0xff]   ;;  %v9675_v2 = vld [vmem:[%s13990_s1 + $0x168] ss:$12 sps:$4 sm:$0xff]   ;;  %v9680_v4 = vld [vmem:[%s11061_s12] ss:$108 sps:$4 sm:$0xff]  }
  0x1d   : > { %4908 = vmatprep.mubr.bf16.mxu0 %v9682_v0  ;;  %v9676_v3 = vld [vmem:[%s13990_s1 + $0x3b0] ss:$12 sps:$4 sm:$0xff]   ;;  %v9686_v7 = vld [vmem:[%s13990_s1 + $0x548] ss:$12 sps:$4 sm:$0xff]   ;;  %v9683_v8 = vld [vmem:[%s13990_s1 + $0x180] ss:$12 sps:$4 sm:$0xff]  }
  0x1e   : > { %v9685_v5 = vld [vmem:[%s13990_s1 + $0x184] ss:$12 sps:$4 sm:$0xff]   ;;  %v9687_v9 = vld [vmem:[%s13990_s1 + $0x488] ss:$12 sps:$4 sm:$0xff]   ;;  %v9691_v11 = vld [vmem:[%s13990_s1 + $0x560] ss:$12 sps:$4 sm:$0xff]  }
  0x1f   : > { %4889 = vmatpush1.bf16.msra.mxu0 %v9627_v26  ;;  %9221 = vmatpush3.bf16.msra.mxu1 %v9628_v27  ;;  %v9677_v6 = vld [vmem:[%s11061_s12 + $0x10] ss:$108 sps:$4 sm:$0xff]   ;;  %v9688_v12 = vld [vmem:[%s13990_s1 + $0x198] ss:$12 sps:$4 sm:$0xff]   ;;  %v9692_v13 = vld [vmem:[%s13990_s1 + $0x4a0] ss:$12 sps:$4 sm:$0xff]  }
  0x20   : > { %4890 = vmatprep.subr.bf16.mxu0 %v9629_v28  ;;  %9222 = vmatprep.subr.bf16.mxu1 %v9631_v29  ;;  %v9690_v10 = vld [vmem:[%s13990_s1 + $0x19c] ss:$12 sps:$4 sm:$0xff]   ;;  %v9695_v14 = vld [vmem:[%s13990_s1 + $0x1b4] ss:$12 sps:$4 sm:$0xff]   ;;  %v9696_v15 = vld [vmem:[%s13990_s1 + $0x578] ss:$12 sps:$4 sm:$0xff]  }
  0x21   : > { %v9693_v16 = vld [vmem:[%s13990_s1 + $0x1b0] ss:$12 sps:$4 sm:$0xff]   ;;  %v9697_v17 = vld [vmem:[%s13990_s1 + $0x4b8] ss:$12 sps:$4 sm:$0xff]   ;;  %v9698_v20 = vld [vmem:[%s13990_s1 + $0x1c8] ss:$12 sps:$4 sm:$0xff]  }
  0x22   : > { %v9700_v18 = vld [vmem:[%s13990_s1 + $0x1cc] ss:$12 sps:$4 sm:$0xff]   ;;  %v9701_v19 = vld [vmem:[%s13990_s1 + $0x590] ss:$12 sps:$4 sm:$0xff]   ;;  %v9706_v23 = vld [vmem:[%s13990_s1 + $0x5a8] ss:$12 sps:$4 sm:$0xff]  }
  0x23   : > { %4891 = vmatpush1.bf16.msra.mxu0 %v9632_v30  ;;  %9223 = vmatpush3.bf16.msra.mxu1 %v9633_v32  ;;  %v9702_v21 = vld [vmem:[%s13990_s1 + $0x4d0] ss:$12 sps:$4 sm:$0xff]   ;;  %v9703_v24 = vld [vmem:[%s13990_s1 + $0x1e0] ss:$12 sps:$4 sm:$0xff]   ;;  %v9707_v25 = vld [vmem:[%s13990_s1 + $0x4e8] ss:$12 sps:$4 sm:$0xff]  }
  0x24   : > { %4892 = vmatprep.subr.bf16.mxu0 %v9637_v33  ;;  %9230 = vmatprep.subr.bf16.mxu1 %v9639_v34  ;;  %v9705_v22 = vld [vmem:[%s13990_s1 + $0x1e4] ss:$12 sps:$4 sm:$0xff]   ;;  %v9710_v26 = vld [vmem:[%s13990_s1 + $0x1fc] ss:$12 sps:$4 sm:$0xff]   ;;  %v9711_v28 = vld [vmem:[%s13990_s1 + $0x5c0] ss:$12 sps:$4 sm:$0xff]  }
  0x25   : > { %v9708_v27 = vld [vmem:[%s13990_s1 + $0x1f8] ss:$12 sps:$4 sm:$0xff]   ;;  %v9712_v29 = vld [vmem:[%s13990_s1 + $0x500] ss:$12 sps:$4 sm:$0xff]   ;;  %v9713_v33 = vld [vmem:[%s13990_s1 + $0x210] ss:$12 sps:$4 sm:$0xff]  }
  0x26   : > { %5552 = vmatmul.mubr.bf16.vlgmr.msra.gmra.mrb[0].mxu1 %v11089_v35  ;;  %v9715_v30 = vld [vmem:[%s13990_s1 + $0x214] ss:$12 sps:$4 sm:$0xff]   ;;  %v9716_v32 = vld [vmem:[%s13990_s1 + $0x5d8] ss:$12 sps:$4 sm:$0xff]  }
  0x27   : > { %4893 = vmatpush1.bf16.msra.mxu0 %v9640_v36  ;;  %9231 = vmatpush3.bf16.msra.mxu1 %v9641_v37  ;;  %v9717_v34 = vld [vmem:[%s13990_s1 + $0x518] ss:$12 sps:$4 sm:$0xff]   ;;  %v9721_v37 = vld [vmem:[%s13990_s1 + $0x5f0] ss:$12 sps:$4 sm:$0xff]   ;;  %v9754_v0 = vld [vmem:[%s13990_s1 + $0x740] ss:$12 sps:$4 sm:$0xff]  }
  0x28   : > { %4894 = vmatprep.subr.bf16.mxu0 %v9642_v38  ;;  %9232 = vmatprep.subr.bf16.mxu1 %v9644_v39  ;;  %v9720_v36 = vld [vmem:[%s13990_s1 + $0x22c] ss:$12 sps:$4 sm:$0xff]   ;;  %v9718_v38 = vld [vmem:[%s13990_s1 + $0x228] ss:$12 sps:$4 sm:$0xff]   ;;  %v9722_v39 = vld [vmem:[%s13990_s1 + $0x530] ss:$12 sps:$4 sm:$0xff]  }
  0x29   : > { %5592 = vmatprep.mubr.bf16.mxu1 %v11171_v62 }
  0x2b   : > { %4895 = vmatpush1.bf16.msra.mxu0 %v9645_v40  ;;  %9233 = vmatpush3.bf16.msra.mxu1 %v9646_v41  ;;  %v9728_v40 = vld [vmem:[%s13990_s1 + $0x244] ss:$12 sps:$4 sm:$0xff]   ;;  %v9729_v41 = vld [vmem:[%s13990_s1 + $0x6c8] ss:$12 sps:$4 sm:$0xff]  }
  0x2c   : > { %4896 = vmatprep.subr.bf16.mxu0 %v9647_v42  ;;  %9234 = vmatprep.subr.bf16.mxu1 %v9649_v43  ;;  %v9723_v42 = vld [vmem:[%s11061_s12 + $0x18] ss:$108 sps:$4 sm:$0xff]   ;;  %v9726_v43 = vld [vmem:[%s13990_s1 + $0x240] ss:$12 sps:$4 sm:$0xff]  }
  0x2f   : > { %4897 = vmatpush1.bf16.msra.mxu0 %v9650_v44  ;;  %9235 = vmatpush3.bf16.msra.mxu1 %v9651_v45  ;;  %v9730_v44 = vld [vmem:[%s13990_s1 + $0x608] ss:$12 sps:$4 sm:$0xff]  }
  0x30   : > { %4898 = vmatprep.subr.bf16.mxu0 %v9652_v46  ;;  %9236 = vmatprep.subr.bf16.mxu1 %v9654_v47  ;;  %v9733_v45 = vld [vmem:[%s13990_s1 + $0x25c] ss:$12 sps:$4 sm:$0xff]   ;;  %v9734_v46 = vld [vmem:[%s13990_s1 + $0x6e0] ss:$12 sps:$4 sm:$0xff]   ;;  %v9731_v47 = vld [vmem:[%s13990_s1 + $0x258] ss:$12 sps:$4 sm:$0xff]  }
  0x33   : > { %4899 = vmatpush1.bf16.msra.mxu0 %v9655_v48  ;;  %9237 = vmatpush3.bf16.msra.mxu1 %v9656_v49  ;;  %v9735_v48 = vld [vmem:[%s13990_s1 + $0x620] ss:$12 sps:$4 sm:$0xff]  }
  0x34   : > { %4900 = vmatprep.subr.bf16.mxu0 %v9657_v50  ;;  %9238 = vmatprep.subr.bf16.mxu1 %v9659_v51  ;;  %v9738_v49 = vld [vmem:[%s13990_s1 + $0x274] ss:$12 sps:$4 sm:$0xff]   ;;  %v9739_v50 = vld [vmem:[%s13990_s1 + $0x6f8] ss:$12 sps:$4 sm:$0xff]   ;;  %v9736_v51 = vld [vmem:[%s13990_s1 + $0x270] ss:$12 sps:$4 sm:$0xff]  }
  0x37   : > { %4901 = vmatpush1.bf16.msra.mxu0 %v9660_v52  ;;  %9239 = vmatpush3.bf16.msra.mxu1 %v9661_v53  ;;  %v9740_v52 = vld [vmem:[%s13990_s1 + $0x638] ss:$12 sps:$4 sm:$0xff]  }
  0x38   : > { %4902 = vmatprep.subr.bf16.mxu0 %v9662_v54  ;;  %9240 = vmatprep.subr.bf16.mxu1 %v9664_v55  ;;  %v9743_v53 = vld [vmem:[%s13990_s1 + $0x28c] ss:$12 sps:$4 sm:$0xff]   ;;  %v9744_v54 = vld [vmem:[%s13990_s1 + $0x710] ss:$12 sps:$4 sm:$0xff]   ;;  %v9741_v55 = vld [vmem:[%s13990_s1 + $0x288] ss:$12 sps:$4 sm:$0xff]  }
  0x3b   : > { %4903 = vmatpush1.bf16.msra.mxu0 %v9665_v56  ;;  %9241 = vmatpush3.bf16.msra.mxu1 %v9666_v57  ;;  %v9745_v56 = vld [vmem:[%s13990_s1 + $0x650] ss:$12 sps:$4 sm:$0xff]  }
  0x3c   : > { %4904 = vmatprep.subr.bf16.mxu0 %v9667_v58  ;;  %9242 = vmatprep.subr.bf16.mxu1 %v9669_v59  ;;  %v9748_v57 = vld [vmem:[%s13990_s1 + $0x2a4] ss:$12 sps:$4 sm:$0xff]   ;;  %v9746_v58 = vld [vmem:[%s13990_s1 + $0x2a0] ss:$12 sps:$4 sm:$0xff]   ;;  %v9749_v59 = vld [vmem:[%s13990_s1 + $0x728] ss:$12 sps:$4 sm:$0xff]  }
  0x3f   : > { %4905 = vmatpush1.bf16.msra.mxu0 %v9670_v60  ;;  %9243 = vmatpush3.bf16.msra.mxu1 %v9671_v61  ;;  %v9750_v60 = vld [vmem:[%s13990_s1 + $0x668] ss:$12 sps:$4 sm:$0xff]  }
  0x40   : > { %4906 = vmatprep.subr.bf16.mxu0 %v9672_v63  ;;  %9244 = vmatprep.subr.bf16.mxu1 %v9674_v1  ;;  %v9753_v61 = vld [vmem:[%s13990_s1 + $0x2bc] ss:$12 sps:$4 sm:$0xff]   ;;  %v9768_v63 = vld [vmem:[%s11061_s12 + $0x24] ss:$108 sps:$4 sm:$0xff]  }
  0x41   : > { %v9751_v1 = vld [vmem:[%s13990_s1 + $0x2b8] ss:$12 sps:$4 sm:$0xff]  }
  0x43   : > { %4907 = vmatpush1.bf16.msra.mxu0 %v9675_v2  ;;  %9245 = vmatpush3.bf16.msra.mxu1 %v9676_v3  ;;  %v9755_v2 = vld [vmem:[%s13990_s1 + $0x680] ss:$12 sps:$4 sm:$0xff]  }
  0x44   : > { %4919 = vmatprep.subr.bf16.mxu0 %v9685_v5  ;;  %9252 = vmatprep.subr.bf16.mxu1 %v9686_v7  ;;  %v9758_v3 = vld [vmem:[%s13990_s1 + $0x2d4] ss:$12 sps:$4 sm:$0xff]   ;;  %v9756_v5 = vld [vmem:[%s13990_s1 + $0x2d0] ss:$12 sps:$4 sm:$0xff]   ;;  %v9763_v7 = vld [vmem:[%s13990_s1 + $0x2ec] ss:$12 sps:$4 sm:$0xff]  }
  0x46   : > { %4909 = vmatmul.mubr.bf16.vlgmr.msra.gmra.mrb[0].mxu0 %v9680_v4  ;;  %5593 = vmatmul.mubr.bf16.vlgmr.msra.gmra.mrb[4].mxu1 %v9677_v6  ;;  %v9759_v4 = vld [vmem:[%s13990_s1 + $0x758] ss:$12 sps:$4 sm:$0xff]  }
  0x47   : > { %4920 = vmatpush1.bf16.msra.mxu0 %v9683_v8  ;;  %9253 = vmatpush3.bf16.msra.mxu1 %v9687_v9  ;;  %v9760_v6 = vld [vmem:[%s13990_s1 + $0x698] ss:$12 sps:$4 sm:$0xff]   ;;  %v9764_v8 = vld [vmem:[%s13990_s1 + $0x770] ss:$12 sps:$4 sm:$0xff]   ;;  %v9761_v9 = vld [vmem:[%s13990_s1 + $0x2e8] ss:$12 sps:$4 sm:$0xff]  }
  0x48   : > { %4921 = vmatprep.subr.bf16.mxu0 %v9690_v10  ;;  %9254 = vmatprep.subr.bf16.mxu1 %v9691_v11  ;;  %v9765_v10 = vld [vmem:[%s13990_s1 + $0x6b0] ss:$12 sps:$4 sm:$0xff]  }
  0x49   : > { %4951 = vmatprep.mubr.bf16.mxu0 %v11076_v31  ;;  %v11266_v31 = vld [vmem:[%s11061_s12 + $0x1c] ss:$108 sps:$4 sm:$0xff]   ;;  %v9771_v11 = vld [vmem:[%s13990_s1 + $0x304] ss:$12 sps:$4 sm:$0xff]  }
  0x4a   : > { %5633 = vmatprep.mubr.bf16.mxu1 %v11266_v31 }
  0x4b   : > { %4922 = vmatpush1.bf16.msra.mxu0 %v9688_v12  ;;  %9255 = vmatpush3.bf16.msra.mxu1 %v9692_v13  ;;  %v9772_v12 = vld [vmem:[%s13990_s1 + $0x848] ss:$12 sps:$4 sm:$0xff]   ;;  %v9766_v13 = vld [vmem:[%s11061_s12 + $0x20] ss:$108 sps:$4 sm:$0xff]  }
  0x4c   : > { %4923 = vmatprep.subr.bf16.mxu0 %v9695_v14  ;;  %9256 = vmatprep.subr.bf16.mxu1 %v9696_v15  ;;  %v9769_v14 = vld [vmem:[%s13990_s1 + $0x300] ss:$12 sps:$4 sm:$0xff]   ;;  %v9773_v15 = vld [vmem:[%s13990_s1 + $0x788] ss:$12 sps:$4 sm:$0xff]  }
  0x4f   : > { %4924 = vmatpush1.bf16.msra.mxu0 %v9693_v16  ;;  %9257 = vmatpush3.bf16.msra.mxu1 %v9697_v17  ;;  %v9776_v16 = vld [vmem:[%s13990_s1 + $0x31c] ss:$12 sps:$4 sm:$0xff]   ;;  %v9777_v17 = vld [vmem:[%s13990_s1 + $0x860] ss:$12 sps:$4 sm:$0xff]  }
  0x50   : > { %4925 = vmatprep.subr.bf16.mxu0 %v9700_v18  ;;  %9258 = vmatprep.subr.bf16.mxu1 %v9701_v19  ;;  %v9774_v18 = vld [vmem:[%s13990_s1 + $0x318] ss:$12 sps:$4 sm:$0xff]   ;;  %v9778_v19 = vld [vmem:[%s13990_s1 + $0x7a0] ss:$12 sps:$4 sm:$0xff]  }
  0x53   : > { %4926 = vmatpush1.bf16.msra.mxu0 %v9698_v20  ;;  %9259 = vmatpush3.bf16.msra.mxu1 %v9702_v21  ;;  %v9781_v20 = vld [vmem:[%s13990_s1 + $0x334] ss:$12 sps:$4 sm:$0xff]   ;;  %v9779_v21 = vld [vmem:[%s13990_s1 + $0x330] ss:$12 sps:$4 sm:$0xff]  }
  0x54   : > { %4927 = vmatprep.subr.bf16.mxu0 %v9705_v22  ;;  %9260 = vmatprep.subr.bf16.mxu1 %v9706_v23  ;;  %v9783_v22 = vld [vmem:[%s13990_s1 + $0x7b8] ss:$12 sps:$4 sm:$0xff]  }
  0x55   : > { %v9786_v23 = vld [vmem:[%s13990_s1 + $0x34c] ss:$12 sps:$4 sm:$0xff]  }
  0x57   : > { %4928 = vmatpush1.bf16.msra.mxu0 %v9703_v24  ;;  %9261 = vmatpush3.bf16.msra.mxu1 %v9707_v25  ;;  %v9787_v24 = vld [vmem:[%s13990_s1 + $0x890] ss:$12 sps:$4 sm:$0xff]  }
  0x58   : > { %4929 = vmatprep.subr.bf16.mxu0 %v9710_v26  ;;  %9262 = vmatprep.subr.bf16.mxu1 %v9711_v28  ;;  %v9788_v25 = vld [vmem:[%s13990_s1 + $0x7d0] ss:$12 sps:$4 sm:$0xff]   ;;  %v9792_v28 = vld [vmem:[%s13990_s1 + $0x8a8] ss:$12 sps:$4 sm:$0xff]  }
  0x59   : > { %v9791_v26 = vld [vmem:[%s13990_s1 + $0x364] ss:$12 sps:$4 sm:$0xff]  }
  0x5b   : > { %4930 = vmatpush1.bf16.msra.mxu0 %v9708_v27  ;;  %9263 = vmatpush3.bf16.msra.mxu1 %v9712_v29  ;;  %v9811_v27 = vld [vmem:[%s11061_s12 + $0x2c] ss:$108 sps:$4 sm:$0xff]  }
  0x5c   : > { %4931 = vmatprep.subr.bf16.mxu0 %v9715_v30  ;;  %9264 = vmatprep.subr.bf16.mxu1 %v9716_v32  ;;  %v9789_v29 = vld [vmem:[%s13990_s1 + $0x360] ss:$12 sps:$4 sm:$0xff]   ;;  %v9793_v30 = vld [vmem:[%s13990_s1 + $0x7e8] ss:$12 sps:$4 sm:$0xff]  }
  0x5d   : > { %v9796_v32 = vld [vmem:[%s13990_s1 + $0x37c] ss:$12 sps:$4 sm:$0xff]  }
  0x5f   : > { %4932 = vmatpush1.bf16.msra.mxu0 %v9713_v33  ;;  %9265 = vmatpush3.bf16.msra.mxu1 %v9717_v34  ;;  %v9797_v33 = vld [vmem:[%s13990_s1 + $0x8c0] ss:$12 sps:$4 sm:$0xff]   ;;  %v9794_v34 = vld [vmem:[%s13990_s1 + $0x378] ss:$12 sps:$4 sm:$0xff]  }
  0x60   : > { %4933 = vmatprep.subr.bf16.mxu0 %v9720_v36  ;;  %9266 = vmatprep.subr.bf16.mxu1 %v9721_v37  ;;  %v9798_v36 = vld [vmem:[%s13990_s1 + $0x800] ss:$12 sps:$4 sm:$0xff]  }
  0x61   : > { %v9801_v37 = vld [vmem:[%s13990_s1 + $0x394] ss:$12 sps:$4 sm:$0xff]  }
  0x63   : > { %4934 = vmatpush1.bf16.msra.mxu0 %v9718_v38  ;;  %9267 = vmatpush3.bf16.msra.mxu1 %v9722_v39  ;;  %v9802_v38 = vld [vmem:[%s13990_s1 + $0x8d8] ss:$12 sps:$4 sm:$0xff]   ;;  %v9799_v39 = vld [vmem:[%s13990_s1 + $0x390] ss:$12 sps:$4 sm:$0xff]  }
  0x64   : > { %4935 = vmatprep.subr.bf16.mxu0 %v9728_v40  ;;  %9274 = vmatprep.subr.bf16.mxu1 %v9729_v41  ;;  %v9803_v40 = vld [vmem:[%s13990_s1 + $0x818] ss:$12 sps:$4 sm:$0xff]  }
  0x65   : > { %v9806_v41 = vld [vmem:[%s13990_s1 + $0x3ac] ss:$12 sps:$4 sm:$0xff]  }
  0x66   : > { %5634 = vmatmul.mubr.bf16.vlgmr.msra.gmra.mrb[8].mxu1 %v9723_v42  ;;  %v9807_v42 = vld [vmem:[%s13990_s1 + $0x8f0] ss:$12 sps:$4 sm:$0xff]  }
  0x67   : > { %4936 = vmatpush1.bf16.msra.mxu0 %v9726_v43  ;;  %9275 = vmatpush3.bf16.msra.mxu1 %v9730_v44  ;;  %v9804_v43 = vld [vmem:[%s13990_s1 + $0x3a8] ss:$12 sps:$4 sm:$0xff]   ;;  %v9808_v44 = vld [vmem:[%s13990_s1 + $0x830] ss:$12 sps:$4 sm:$0xff]  }
  0x68   : > { %4937 = vmatprep.subr.bf16.mxu0 %v9733_v45  ;;  %9276 = vmatprep.subr.bf16.mxu1 %v9734_v46  ;;  %v9814_v45 = vld [vmem:[%s13990_s1 + $0x3c4] ss:$12 sps:$4 sm:$0xff]   ;;  %v9809_v46 = vld [vmem:[%s11061_s12 + $0x28] ss:$108 sps:$4 sm:$0xff]  }
  0x69   : > { %5674 = vmatprep.mubr.bf16.mxu1 %v9768_v63  ;;  %v9831_v63 = vld [vmem:[%s13990_s1 + $0x950] ss:$12 sps:$4 sm:$0xff]  }
  0x6b   : > { %4938 = vmatpush1.bf16.msra.mxu0 %v9731_v47  ;;  %9277 = vmatpush3.bf16.msra.mxu1 %v9735_v48  ;;  %v9815_v47 = vld [vmem:[%s13990_s1 + $0x9c8] ss:$12 sps:$4 sm:$0xff]   ;;  %v9812_v48 = vld [vmem:[%s13990_s1 + $0x3c0] ss:$12 sps:$4 sm:$0xff]  }
  0x6c   : > { %4939 = vmatprep.subr.bf16.mxu0 %v9738_v49  ;;  %9278 = vmatprep.subr.bf16.mxu1 %v9739_v50  ;;  %v9816_v49 = vld [vmem:[%s13990_s1 + $0x908] ss:$12 sps:$4 sm:$0xff]  }
  0x6d   : > { %v9819_v50 = vld [vmem:[%s13990_s1 + $0x3dc] ss:$12 sps:$4 sm:$0xff]  }
  0x6f   : > { %4940 = vmatpush1.bf16.msra.mxu0 %v9736_v51  ;;  %9279 = vmatpush3.bf16.msra.mxu1 %v9740_v52  ;;  %v9820_v51 = vld [vmem:[%s13990_s1 + $0x9e0] ss:$12 sps:$4 sm:$0xff]   ;;  %v9817_v52 = vld [vmem:[%s13990_s1 + $0x3d8] ss:$12 sps:$4 sm:$0xff]  }
  0x70   : > { %4941 = vmatprep.subr.bf16.mxu0 %v9743_v53  ;;  %9280 = vmatprep.subr.bf16.mxu1 %v9744_v54  ;;  %v9821_v53 = vld [vmem:[%s13990_s1 + $0x920] ss:$12 sps:$4 sm:$0xff]  }
  0x71   : > { %v9824_v54 = vld [vmem:[%s13990_s1 + $0x3f4] ss:$12 sps:$4 sm:$0xff]  }
  0x73   : > { %4942 = vmatpush1.bf16.msra.mxu0 %v9741_v55  ;;  %9281 = vmatpush3.bf16.msra.mxu1 %v9745_v56  ;;  %v9822_v55 = vld [vmem:[%s13990_s1 + $0x3f0] ss:$12 sps:$4 sm:$0xff]   ;;  %v9825_v56 = vld [vmem:[%s13990_s1 + $0x9f8] ss:$12 sps:$4 sm:$0xff]  }
  0x74   : > { %4943 = vmatprep.subr.bf16.mxu0 %v9748_v57  ;;  %9282 = vmatprep.subr.bf16.mxu1 %v9749_v59  ;;  %v9826_v57 = vld [vmem:[%s13990_s1 + $0x938] ss:$12 sps:$4 sm:$0xff]   ;;  %v9854_v59 = vld [vmem:[%s11061_s12 + $0x34] ss:$108 sps:$4 sm:$0xff]  }
  0x77   : > { %4944 = vmatpush1.bf16.msra.mxu0 %v9746_v58  ;;  %9283 = vmatpush3.bf16.msra.mxu1 %v9750_v60  ;;  %v9829_v58 = vld [vmem:[%s13990_s1 + $0x40c] ss:$12 sps:$4 sm:$0xff]   ;;  %v9830_v60 = vld [vmem:[%s13990_s1 + $0xa10] ss:$12 sps:$4 sm:$0xff]  }
  0x78   : > { %4945 = vmatprep.subr.bf16.mxu0 %v9753_v61  ;;  %9284 = vmatprep.subr.bf16.mxu1 %v9754_v0  ;;  %v9827_v61 = vld [vmem:[%s13990_s1 + $0x408] ss:$12 sps:$4 sm:$0xff]   ;;  %v9834_v0 = vld [vmem:[%s13990_s1 + $0x424] ss:$12 sps:$4 sm:$0xff]  }
  0x7b   : > { %4946 = vmatpush1.bf16.msra.mxu0 %v9751_v1  ;;  %9285 = vmatpush3.bf16.msra.mxu1 %v9755_v2  ;;  %v9835_v1 = vld [vmem:[%s13990_s1 + $0xa28] ss:$12 sps:$4 sm:$0xff]   ;;  %v9832_v2 = vld [vmem:[%s13990_s1 + $0x420] ss:$12 sps:$4 sm:$0xff]  }
  0x7c   : > { %4947 = vmatprep.subr.bf16.mxu0 %v9758_v3  ;;  %9286 = vmatprep.subr.bf16.mxu1 %v9759_v4  ;;  %v9836_v3 = vld [vmem:[%s13990_s1 + $0x968] ss:$12 sps:$4 sm:$0xff]  }
  0x7d   : > { %v9839_v4 = vld [vmem:[%s13990_s1 + $0x43c] ss:$12 sps:$4 sm:$0xff]  }
  0x7f   : > { %4948 = vmatpush1.bf16.msra.mxu0 %v9756_v5  ;;  %9287 = vmatpush3.bf16.msra.mxu1 %v9760_v6  ;;  %v9840_v5 = vld [vmem:[%s13990_s1 + $0xa40] ss:$12 sps:$4 sm:$0xff]   ;;  %v9837_v6 = vld [vmem:[%s13990_s1 + $0x438] ss:$12 sps:$4 sm:$0xff]  }
  0x80   : > { %4949 = vmatprep.subr.bf16.mxu0 %v9763_v7  ;;  %9288 = vmatprep.subr.bf16.mxu1 %v9764_v8  ;;  %v9841_v7 = vld [vmem:[%s13990_s1 + $0x980] ss:$12 sps:$4 sm:$0xff]  }
  0x81   : > { %v9844_v8 = vld [vmem:[%s13990_s1 + $0x454] ss:$12 sps:$4 sm:$0xff]  }
  0x83   : > { %4950 = vmatpush1.bf16.msra.mxu0 %v9761_v9  ;;  %9289 = vmatpush3.bf16.msra.mxu1 %v9765_v10  ;;  %v9845_v9 = vld [vmem:[%s13990_s1 + $0xa58] ss:$12 sps:$4 sm:$0xff]   ;;  %v9842_v10 = vld [vmem:[%s13990_s1 + $0x450] ss:$12 sps:$4 sm:$0xff]  }
  0x84   : > { %4962 = vmatprep.subr.bf16.mxu0 %v9771_v11  ;;  %9296 = vmatprep.subr.bf16.mxu1 %v9772_v12  ;;  %v9846_v11 = vld [vmem:[%s13990_s1 + $0x998] ss:$12 sps:$4 sm:$0xff]  }
  0x85   : > { %v9849_v12 = vld [vmem:[%s13990_s1 + $0x46c] ss:$12 sps:$4 sm:$0xff]  }
  0x86   : > { %4952 = vmatmul.mubr.bf16.vlgmr.msra.gmra.mrb[0].mxu0 %v11089_v35  ;;  %5675 = vmatmul.mubr.bf16.vlgmr.msra.gmra.mrb[12].mxu1 %v9766_v13  ;;  %v9782_v35 = vld [vmem:[%s13990_s1 + $0x878] ss:$12 sps:$4 sm:$0xff]   ;;  %v9850_v13 = vld [vmem:[%s13990_s1 + $0xa70] ss:$12 sps:$4 sm:$0xff]  }
  0x87   : > { %4963 = vmatpush1.bf16.msra.mxu0 %v9769_v14  ;;  %9297 = vmatpush3.bf16.msra.mxu1 %v9773_v15  ;;  %v9847_v14 = vld [vmem:[%s13990_s1 + $0x468] ss:$12 sps:$4 sm:$0xff]   ;;  %v9851_v15 = vld [vmem:[%s13990_s1 + $0x9b0] ss:$12 sps:$4 sm:$0xff]  }
  0x88   : > { %4964 = vmatprep.subr.bf16.mxu0 %v9776_v16  ;;  %9298 = vmatprep.subr.bf16.mxu1 %v9777_v17  ;;  %v9857_v16 = vld [vmem:[%s13990_s1 + $0x484] ss:$12 sps:$4 sm:$0xff]   ;;  %v9858_v17 = vld [vmem:[%s13990_s1 + $0xb48] ss:$12 sps:$4 sm:$0xff]  }
  0x89   : > { %4994 = vmatprep.mubr.bf16.mxu0 %v11171_v62  ;;  %v9784_v62 = vld [vmem:[%s13990_s1 + $0x348] ss:$12 sps:$4 sm:$0xff]   ;;  %5715 = vmatprep.mubr.bf16.mxu1 %v9811_v27  ;;  %v9865_v27 = vld [vmem:[%s13990_s1 + $0x4b0] ss:$12 sps:$4 sm:$0xff]  }
  0x8b   : > { %4965 = vmatpush1.bf16.msra.mxu0 %v9774_v18  ;;  %9299 = vmatpush3.bf16.msra.mxu1 %v9778_v19  ;;  %v9852_v18 = vld [vmem:[%s11061_s12 + $0x30] ss:$108 sps:$4 sm:$0xff]   ;;  %v9855_v19 = vld [vmem:[%s13990_s1 + $0x480] ss:$12 sps:$4 sm:$0xff]  }
  0x8c   : > { %4966 = vmatprep.subr.bf16.mxu0 %v9781_v20  ;;  %9300 = vmatprep.subr.bf16.mxu1 %v9782_v35  ;;  %v9859_v20 = vld [vmem:[%s13990_s1 + $0xa88] ss:$12 sps:$4 sm:$0xff]  }
  0x8d   : > { %v9862_v35 = vld [vmem:[%s13990_s1 + $0x49c] ss:$12 sps:$4 sm:$0xff]  }
  0x8f   : > { %4967 = vmatpush1.bf16.msra.mxu0 %v9779_v21  ;;  %9301 = vmatpush3.bf16.msra.mxu1 %v9783_v22  ;;  %v9860_v21 = vld [vmem:[%s13990_s1 + $0x498] ss:$12 sps:$4 sm:$0xff]   ;;  %v9863_v22 = vld [vmem:[%s13990_s1 + $0xb60] ss:$12 sps:$4 sm:$0xff]  }
  0x90   : > { %4968 = vmatprep.subr.bf16.mxu0 %v9786_v23  ;;  %9302 = vmatprep.subr.bf16.mxu1 %v9787_v24  ;;  %v10882_v23 = vld [vmem:[%s11061_s12 + $0x10] ss:$108 sps:$4 sm:$0xff]   ;;  %v9867_v24 = vld [vmem:[%s13990_s1 + $0x4b4] ss:$12 sps:$4 sm:$0xff]  }
  0x93   : > { %4969 = vmatpush1.bf16.msra.mxu0 %v9784_v62  ;;  %9303 = vmatpush3.bf16.msra.mxu1 %v9788_v25  ;;  %v9864_v62 = vld [vmem:[%s13990_s1 + $0xaa0] ss:$12 sps:$4 sm:$0xff]   ;;  %v9897_v25 = vld [vmem:[%s11061_s12 + $0x3c] ss:$108 sps:$4 sm:$0xff]  }
  0x94   : > { %4970 = vmatprep.subr.bf16.mxu0 %v9791_v26  ;;  %9304 = vmatprep.subr.bf16.mxu1 %v9792_v28  ;;  %v9868_v26 = vld [vmem:[%s13990_s1 + $0xb78] ss:$12 sps:$4 sm:$0xff]  }
  0x95   : > { %v9869_v28 = vld [vmem:[%s13990_s1 + $0xab8] ss:$12 sps:$4 sm:$0xff]  }
  0x97   : > { %4971 = vmatpush1.bf16.msra.mxu0 %v9789_v29  ;;  %9305 = vmatpush3.bf16.msra.mxu1 %v9793_v30  ;;  %v9872_v29 = vld [vmem:[%s13990_s1 + $0x4cc] ss:$12 sps:$4 sm:$0xff]   ;;  %v9870_v30 = vld [vmem:[%s13990_s1 + $0x4c8] ss:$12 sps:$4 sm:$0xff]  }
  0x98   : > { %4972 = vmatprep.subr.bf16.mxu0 %v9796_v32  ;;  %9306 = vmatprep.subr.bf16.mxu1 %v9797_v33  ;;  %v9874_v32 = vld [vmem:[%s13990_s1 + $0xad0] ss:$12 sps:$4 sm:$0xff]  }
  0x99   : > { %v9877_v33 = vld [vmem:[%s13990_s1 + $0x4e4] ss:$12 sps:$4 sm:$0xff]  }
  0x9b   : > { %4973 = vmatpush1.bf16.msra.mxu0 %v9794_v34  ;;  %9307 = vmatpush3.bf16.msra.mxu1 %v9798_v36  ;;  %v9878_v34 = vld [vmem:[%s13990_s1 + $0xba8] ss:$12 sps:$4 sm:$0xff]   ;;  %v9875_v36 = vld [vmem:[%s13990_s1 + $0x4e0] ss:$12 sps:$4 sm:$0xff]  }
  0x9c   : > { %4974 = vmatprep.subr.bf16.mxu0 %v9801_v37  ;;  %9308 = vmatprep.subr.bf16.mxu1 %v9802_v38  ;;  %v9879_v37 = vld [vmem:[%s13990_s1 + $0xae8] ss:$12 sps:$4 sm:$0xff]  }
  0x9d   : > { %v9882_v38 = vld [vmem:[%s13990_s1 + $0x4fc] ss:$12 sps:$4 sm:$0xff]  }
  0x9f   : > { %4975 = vmatpush1.bf16.msra.mxu0 %v9799_v39  ;;  %9309 = vmatpush3.bf16.msra.mxu1 %v9803_v40  ;;  %v9883_v39 = vld [vmem:[%s13990_s1 + $0xbc0] ss:$12 sps:$4 sm:$0xff]   ;;  %v9880_v40 = vld [vmem:[%s13990_s1 + $0x4f8] ss:$12 sps:$4 sm:$0xff]  }
  0xa0   : > { %4976 = vmatprep.subr.bf16.mxu0 %v9806_v41  ;;  %9310 = vmatprep.subr.bf16.mxu1 %v9807_v42  ;;  %v9884_v41 = vld [vmem:[%s13990_s1 + $0xb00] ss:$12 sps:$4 sm:$0xff]  }
  0xa1   : > { %v9887_v42 = vld [vmem:[%s13990_s1 + $0x514] ss:$12 sps:$4 sm:$0xff]  }
  0xa3   : > { %4977 = vmatpush1.bf16.msra.mxu0 %v9804_v43  ;;  %9311 = vmatpush3.bf16.msra.mxu1 %v9808_v44  ;;  %v9888_v43 = vld [vmem:[%s13990_s1 + $0xbd8] ss:$12 sps:$4 sm:$0xff]   ;;  %v9885_v44 = vld [vmem:[%s13990_s1 + $0x510] ss:$12 sps:$4 sm:$0xff]  }
  0xa4   : > { %4978 = vmatprep.subr.bf16.mxu0 %v9814_v45  ;;  %9318 = vmatprep.subr.bf16.mxu1 %v9815_v47  ;;  %v9889_v45 = vld [vmem:[%s13990_s1 + $0xb18] ss:$12 sps:$4 sm:$0xff]   ;;  %v9893_v47 = vld [vmem:[%s13990_s1 + $0xbf0] ss:$12 sps:$4 sm:$0xff]  }
  0xa6   : > { %5716 = vmatmul.mubr.bf16.vlgmr.msra.gmra.mrb[16].mxu1 %v9809_v46  ;;  %v9892_v46 = vld [vmem:[%s13990_s1 + $0x52c] ss:$12 sps:$4 sm:$0xff]  }
  0xa7   : > { %4979 = vmatpush1.bf16.msra.mxu0 %v9812_v48  ;;  %9319 = vmatpush3.bf16.msra.mxu1 %v9816_v49  ;;  %v9890_v48 = vld [vmem:[%s13990_s1 + $0x528] ss:$12 sps:$4 sm:$0xff]   ;;  %v9894_v49 = vld [vmem:[%s13990_s1 + $0xb30] ss:$12 sps:$4 sm:$0xff]  }
  0xa8   : > { %4980 = vmatprep.subr.bf16.mxu0 %v9819_v50  ;;  %9320 = vmatprep.subr.bf16.mxu1 %v9820_v51  ;;  %v9900_v50 = vld [vmem:[%s13990_s1 + $0x544] ss:$12 sps:$4 sm:$0xff]  }
  0xa9   : > { %5756 = vmatprep.mubr.bf16.mxu1 %v9854_v59  ;;  %v9895_v51 = vld [vmem:[%s11061_s12 + $0x38] ss:$108 sps:$4 sm:$0xff]   ;;  %v9907_v59 = vld [vmem:[%s13990_s1 + $0xc20] ss:$12 sps:$4 sm:$0xff]  }
  0xab   : > { %4981 = vmatpush1.bf16.msra.mxu0 %v9817_v52  ;;  %9321 = vmatpush3.bf16.msra.mxu1 %v9821_v53  ;;  %v9901_v52 = vld [vmem:[%s13990_s1 + $0xcc8] ss:$12 sps:$4 sm:$0xff]   ;;  %v9898_v53 = vld [vmem:[%s13990_s1 + $0x540] ss:$12 sps:$4 sm:$0xff]  }
  0xac   : > { %4982 = vmatprep.subr.bf16.mxu0 %v9824_v54  ;;  %9322 = vmatprep.subr.bf16.mxu1 %v9825_v56  ;;  %v9902_v54 = vld [vmem:[%s13990_s1 + $0xc08] ss:$12 sps:$4 sm:$0xff]   ;;  %v9906_v56 = vld [vmem:[%s13990_s1 + $0xce0] ss:$12 sps:$4 sm:$0xff]  }
  0xaf   : > { %4983 = vmatpush1.bf16.msra.mxu0 %v9822_v55  ;;  %9323 = vmatpush3.bf16.msra.mxu1 %v9826_v57  ;;  %v9905_v55 = vld [vmem:[%s13990_s1 + $0x55c] ss:$12 sps:$4 sm:$0xff]   ;;  %v9940_v57 = vld [vmem:[%s11061_s12 + $0x44] ss:$108 sps:$4 sm:$0xff]  }
  0xb0   : > { %4984 = vmatprep.subr.bf16.mxu0 %v9829_v58  ;;  %9324 = vmatprep.subr.bf16.mxu1 %v9830_v60  ;;  %v9903_v58 = vld [vmem:[%s13990_s1 + $0x558] ss:$12 sps:$4 sm:$0xff]   ;;  %v9910_v60 = vld [vmem:[%s13990_s1 + $0x574] ss:$12 sps:$4 sm:$0xff]  }
  0xb3   : > { %4985 = vmatpush1.bf16.msra.mxu0 %v9827_v61  ;;  %9325 = vmatpush3.bf16.msra.mxu1 %v9831_v63  ;;  %v9911_v61 = vld [vmem:[%s13990_s1 + $0xcf8] ss:$12 sps:$4 sm:$0xff]   ;;  %v9908_v63 = vld [vmem:[%s13990_s1 + $0x570] ss:$12 sps:$4 sm:$0xff]  }
  0xb4   : > { %4986 = vmatprep.subr.bf16.mxu0 %v9834_v0  ;;  %9326 = vmatprep.subr.bf16.mxu1 %v9835_v1  ;;  %v9912_v0 = vld [vmem:[%s13990_s1 + $0xc38] ss:$12 sps:$4 sm:$0xff]  }
  0xb5   : > { %v9915_v1 = vld [vmem:[%s13990_s1 + $0x58c] ss:$12 sps:$4 sm:$0xff]  }
  0xb7   : > { %4987 = vmatpush1.bf16.msra.mxu0 %v9832_v2  ;;  %9327 = vmatpush3.bf16.msra.mxu1 %v9836_v3  ;;  %v9916_v2 = vld [vmem:[%s13990_s1 + $0xd10] ss:$12 sps:$4 sm:$0xff]   ;;  %v9913_v3 = vld [vmem:[%s13990_s1 + $0x588] ss:$12 sps:$4 sm:$0xff]  }
  0xb8   : > { %4988 = vmatprep.subr.bf16.mxu0 %v9839_v4  ;;  %9328 = vmatprep.subr.bf16.mxu1 %v9840_v5  ;;  %v9917_v4 = vld [vmem:[%s13990_s1 + $0xc50] ss:$12 sps:$4 sm:$0xff]  }
  0xb9   : > { %v9920_v5 = vld [vmem:[%s13990_s1 + $0x5a4] ss:$12 sps:$4 sm:$0xff]  }
  0xbb   : > { %4989 = vmatpush1.bf16.msra.mxu0 %v9837_v6  ;;  %9329 = vmatpush3.bf16.msra.mxu1 %v9841_v7  ;;  %v9921_v6 = vld [vmem:[%s13990_s1 + $0xd28] ss:$12 sps:$4 sm:$0xff]   ;;  %v9918_v7 = vld [vmem:[%s13990_s1 + $0x5a0] ss:$12 sps:$4 sm:$0xff]  }
  0xbc   : > { %4990 = vmatprep.subr.bf16.mxu0 %v9844_v8  ;;  %9330 = vmatprep.subr.bf16.mxu1 %v9845_v9  ;;  %v9922_v8 = vld [vmem:[%s13990_s1 + $0xc68] ss:$12 sps:$4 sm:$0xff]  }
  0xbd   : > { %v9925_v9 = vld [vmem:[%s13990_s1 + $0x5bc] ss:$12 sps:$4 sm:$0xff]  }
  0xbf   : > { %4991 = vmatpush1.bf16.msra.mxu0 %v9842_v10  ;;  %9331 = vmatpush3.bf16.msra.mxu1 %v9846_v11  ;;  %v9926_v10 = vld [vmem:[%s13990_s1 + $0xd40] ss:$12 sps:$4 sm:$0xff]   ;;  %v9923_v11 = vld [vmem:[%s13990_s1 + $0x5b8] ss:$12 sps:$4 sm:$0xff]  }
  0xc0   : > { %4992 = vmatprep.subr.bf16.mxu0 %v9849_v12  ;;  %9332 = vmatprep.subr.bf16.mxu1 %v9850_v13  ;;  %v9927_v12 = vld [vmem:[%s13990_s1 + $0xc80] ss:$12 sps:$4 sm:$0xff]  }
  0xc1   : > { %v9930_v13 = vld [vmem:[%s13990_s1 + $0x5d4] ss:$12 sps:$4 sm:$0xff]  }
  0xc3   : > { %4993 = vmatpush1.bf16.msra.mxu0 %v9847_v14  ;;  %9333 = vmatpush3.bf16.msra.mxu1 %v9851_v15  ;;  %v9931_v14 = vld [vmem:[%s13990_s1 + $0xd58] ss:$12 sps:$4 sm:$0xff]  }
  0xc4   : > { %5005 = vmatprep.subr.bf16.mxu0 %v9857_v16  ;;  %9340 = vmatprep.subr.bf16.mxu1 %v9858_v17  ;;  %v9928_v16 = vld [vmem:[%s13990_s1 + $0x5d0] ss:$12 sps:$4 sm:$0xff]  }
  0xc6   : > { %4995 = vmatmul.mubr.bf16.vlgmr.msra.gmra.mrb[0].mxu0 %v10882_v23  ;;  %5757 = vmatmul.mubr.bf16.vlgmr.msra.gmra.mrb[20].mxu1 %v9852_v18 }
  0xc7   : > { %5006 = vmatpush1.bf16.msra.mxu0 %v9855_v19  ;;  %9341 = vmatpush3.bf16.msra.mxu1 %v9859_v20  ;;  %v9932_v20 = vld [vmem:[%s13990_s1 + $0xc98] ss:$12 sps:$4 sm:$0xff]  }
  0xc8   : > { %5007 = vmatprep.subr.bf16.mxu0 %v9862_v35  ;;  %9342 = vmatprep.subr.bf16.mxu1 %v9863_v22  ;;  %v9935_v35 = vld [vmem:[%s13990_s1 + $0x5ec] ss:$12 sps:$4 sm:$0xff]   ;;  %v9936_v22 = vld [vmem:[%s13990_s1 + $0xd70] ss:$12 sps:$4 sm:$0xff]  }
  0xc9   : > { %5037 = vmatprep.mubr.bf16.mxu0 %v11266_v31  ;;  %5797 = vmatprep.mubr.bf16.mxu1 %v9897_v25  ;;  %v9873_v31 = vld [vmem:[%s13990_s1 + $0xb90] ss:$12 sps:$4 sm:$0xff]  }
  0xca   : > { %v9943_v25 = vld [vmem:[%s13990_s1 + $0x604] ss:$12 sps:$4 sm:$0xff]  }
  0xcb   : > { %5008 = vmatpush1.bf16.msra.mxu0 %v9860_v21  ;;  %9343 = vmatpush3.bf16.msra.mxu1 %v9864_v62  ;;  %v9933_v62 = vld [vmem:[%s13990_s1 + $0x5e8] ss:$12 sps:$4 sm:$0xff]  }
  0xcc   : > { %5009 = vmatprep.subr.bf16.mxu0 %v9867_v24  ;;  %9344 = vmatprep.subr.bf16.mxu1 %v9868_v26  ;;  %v9937_v24 = vld [vmem:[%s13990_s1 + $0xcb0] ss:$12 sps:$4 sm:$0xff]   ;;  %v9938_v26 = vld [vmem:[%s11061_s12 + $0x40] ss:$108 sps:$4 sm:$0xff]  }
  0xcf   : > { %5010 = vmatpush1.bf16.msra.mxu0 %v9865_v27  ;;  %9345 = vmatpush3.bf16.msra.mxu1 %v9869_v28  ;;  %v9944_v27 = vld [vmem:[%s13990_s1 + $0xe48] ss:$12 sps:$4 sm:$0xff]   ;;  %v9941_v28 = vld [vmem:[%s13990_s1 + $0x600] ss:$12 sps:$4 sm:$0xff]  }
  0xd0   : > { %5011 = vmatprep.subr.bf16.mxu0 %v9872_v29  ;;  %9346 = vmatprep.subr.bf16.mxu1 %v9873_v31  ;;  %v9945_v29 = vld [vmem:[%s13990_s1 + $0xd88] ss:$12 sps:$4 sm:$0xff]  }
  0xd1   : > { %v9948_v31 = vld [vmem:[%s13990_s1 + $0x61c] ss:$12 sps:$4 sm:$0xff]  }
  0xd3   : > { %5012 = vmatpush1.bf16.msra.mxu0 %v9870_v30  ;;  %9347 = vmatpush3.bf16.msra.mxu1 %v9874_v32  ;;  %v9949_v30 = vld [vmem:[%s13990_s1 + $0xe60] ss:$12 sps:$4 sm:$0xff]  }
  0xd4   : > { %5013 = vmatprep.subr.bf16.mxu0 %v9877_v33  ;;  %9348 = vmatprep.subr.bf16.mxu1 %v9878_v34  ;;  %v9983_v32 = vld [vmem:[%s11061_s12 + $0x4c] ss:$108 sps:$4 sm:$0xff]  }
  0xd5   : > { %v10883_v33 = vld [vmem:[%s11061_s12 + $0x18] ss:$108 sps:$4 sm:$0xff]  }
  0xd6   : > { %v9946_v34 = vld [vmem:[%s13990_s1 + $0x618] ss:$12 sps:$4 sm:$0xff]  }
  0xd7   : > { %5014 = vmatpush1.bf16.msra.mxu0 %v9875_v36  ;;  %9349 = vmatpush3.bf16.msra.mxu1 %v9879_v37  ;;  %v9950_v36 = vld [vmem:[%s13990_s1 + $0xda0] ss:$12 sps:$4 sm:$0xff]  }
  0xd8   : > { %5015 = vmatprep.subr.bf16.mxu0 %v9882_v38  ;;  %9350 = vmatprep.subr.bf16.mxu1 %v9883_v39  ;;  %v9953_v37 = vld [vmem:[%s13990_s1 + $0x634] ss:$12 sps:$4 sm:$0xff]   ;;  %v9954_v38 = vld [vmem:[%s13990_s1 + $0xe78] ss:$12 sps:$4 sm:$0xff]  }
  0xd9   : > { %v10884_v39 = vld [vmem:[%s11061_s12 + $0x24] ss:$108 sps:$4 sm:$0xff]  }
  0xdb   : > { %5016 = vmatpush1.bf16.msra.mxu0 %v9880_v40  ;;  %9351 = vmatpush3.bf16.msra.mxu1 %v9884_v41  ;;  %v9951_v40 = vld [vmem:[%s13990_s1 + $0x630] ss:$12 sps:$4 sm:$0xff]   ;;  %v9955_v41 = vld [vmem:[%s13990_s1 + $0xdb8] ss:$12 sps:$4 sm:$0xff]  }
  0xdc   : > { %5017 = vmatprep.subr.bf16.mxu0 %v9887_v42  ;;  %9352 = vmatprep.subr.bf16.mxu1 %v9888_v43  ;;  %v9958_v42 = vld [vmem:[%s13990_s1 + $0x64c] ss:$12 sps:$4 sm:$0xff]   ;;  %v9959_v43 = vld [vmem:[%s13990_s1 + $0xe90] ss:$12 sps:$4 sm:$0xff]  }
  0xdf   : > { %5018 = vmatpush1.bf16.msra.mxu0 %v9885_v44  ;;  %9353 = vmatpush3.bf16.msra.mxu1 %v9889_v45  ;;  %v9956_v44 = vld [vmem:[%s13990_s1 + $0x648] ss:$12 sps:$4 sm:$0xff]   ;;  %v9960_v45 = vld [vmem:[%s13990_s1 + $0xdd0] ss:$12 sps:$4 sm:$0xff]  }
  0xe0   : > { %5019 = vmatprep.subr.bf16.mxu0 %v9892_v46  ;;  %9354 = vmatprep.subr.bf16.mxu1 %v9893_v47  ;;  %v9963_v46 = vld [vmem:[%s13990_s1 + $0x664] ss:$12 sps:$4 sm:$0xff]   ;;  %v9964_v47 = vld [vmem:[%s13990_s1 + $0xea8] ss:$12 sps:$4 sm:$0xff]  }
  0xe3   : > { %5020 = vmatpush1.bf16.msra.mxu0 %v9890_v48  ;;  %9355 = vmatpush3.bf16.msra.mxu1 %v9894_v49  ;;  %v9961_v48 = vld [vmem:[%s13990_s1 + $0x660] ss:$12 sps:$4 sm:$0xff]   ;;  %v9965_v49 = vld [vmem:[%s13990_s1 + $0xde8] ss:$12 sps:$4 sm:$0xff]  }
  0xe4   : > { %5021 = vmatprep.subr.bf16.mxu0 %v9900_v50  ;;  %9362 = vmatprep.subr.bf16.mxu1 %v9901_v52  ;;  %v9968_v50 = vld [vmem:[%s13990_s1 + $0x67c] ss:$12 sps:$4 sm:$0xff]   ;;  %v9966_v52 = vld [vmem:[%s13990_s1 + $0x678] ss:$12 sps:$4 sm:$0xff]  }
  0xe6   : > { %5798 = vmatmul.mubr.bf16.vlgmr.msra.gmra.mrb[24].mxu1 %v9895_v51  ;;  %v9969_v51 = vld [vmem:[%s13990_s1 + $0xec0] ss:$12 sps:$4 sm:$0xff]  }
  0xe7   : > { %5022 = vmatpush1.bf16.msra.mxu0 %v9898_v53  ;;  %9363 = vmatpush3.bf16.msra.mxu1 %v9902_v54  ;;  %v9970_v53 = vld [vmem:[%s13990_s1 + $0xe00] ss:$12 sps:$4 sm:$0xff]  }
  0xe8   : > { %5023 = vmatprep.subr.bf16.mxu0 %v9905_v55  ;;  %9364 = vmatprep.subr.bf16.mxu1 %v9906_v56  ;;  %v9973_v54 = vld [vmem:[%s13990_s1 + $0x694] ss:$12 sps:$4 sm:$0xff]   ;;  %v9974_v55 = vld [vmem:[%s13990_s1 + $0xed8] ss:$12 sps:$4 sm:$0xff]  }
  0xe9   : > { %5838 = vmatprep.mubr.bf16.mxu1 %v9940_v57 }
  0xeb   : > { %5024 = vmatpush1.bf16.msra.mxu0 %v9903_v58  ;;  %9365 = vmatpush3.bf16.msra.mxu1 %v9907_v59  ;;  %v9971_v58 = vld [vmem:[%s13990_s1 + $0x690] ss:$12 sps:$4 sm:$0xff]   ;;  %v9975_v59 = vld [vmem:[%s13990_s1 + $0xe18] ss:$12 sps:$4 sm:$0xff]  }
  0xec   : > { %5025 = vmatprep.subr.bf16.mxu0 %v9910_v60  ;;  %9366 = vmatprep.subr.bf16.mxu1 %v9911_v61 }
  0xef   : > { %5026 = vmatpush1.bf16.msra.mxu0 %v9908_v63  ;;  %9367 = vmatpush3.bf16.msra.mxu1 %v9912_v0  ;;  %v9978_v63 = vld [vmem:[%s13990_s1 + $0x6ac] ss:$12 sps:$4 sm:$0xff]  }
  0xf0   : > { %5027 = vmatprep.subr.bf16.mxu0 %v9915_v1  ;;  %9368 = vmatprep.subr.bf16.mxu1 %v9916_v2  ;;  %v9979_v1 = vld [vmem:[%s13990_s1 + $0xef0] ss:$12 sps:$4 sm:$0xff]  }
  0xf3   : > { %5028 = vmatpush1.bf16.msra.mxu0 %v9913_v3  ;;  %9369 = vmatpush3.bf16.msra.mxu1 %v9917_v4  ;;  %v9976_v3 = vld [vmem:[%s13990_s1 + $0x6a8] ss:$12 sps:$4 sm:$0xff]   ;;  %v9980_v4 = vld [vmem:[%s13990_s1 + $0xe30] ss:$12 sps:$4 sm:$0xff]  }
  0xf4   : > { %5029 = vmatprep.subr.bf16.mxu0 %v9920_v5  ;;  %9370 = vmatprep.subr.bf16.mxu1 %v9921_v6  ;;  %v9986_v5 = vld [vmem:[%s13990_s1 + $0x6c4] ss:$12 sps:$4 sm:$0xff]   ;;  %v9981_v6 = vld [vmem:[%s11061_s12 + $0x48] ss:$108 sps:$4 sm:$0xff]  }
  0xf7   : > { %5030 = vmatpush1.bf16.msra.mxu0 %v9918_v7  ;;  %9371 = vmatpush3.bf16.msra.mxu1 %v9922_v8  ;;  %v9984_v7 = vld [vmem:[%s13990_s1 + $0x6c0] ss:$12 sps:$4 sm:$0xff]   ;;  %v9987_v8 = vld [vmem:[%s13990_s1 + $0xfc8] ss:$12 sps:$4 sm:$0xff]  }
  0xf8   : > { %5031 = vmatprep.subr.bf16.mxu0 %v9925_v9  ;;  %9372 = vmatprep.subr.bf16.mxu1 %v9926_v10  ;;  %v9988_v9 = vld [vmem:[%s13990_s1 + $0xf08] ss:$12 sps:$4 sm:$0xff]  }
  0xf9   : > { %v9224_v15 = vpop.f32.mrb[0].mxu1  ;;  %v9991_v10 = vld [vmem:[%s13990_s1 + $0x6dc] ss:$12 sps:$4 sm:$0xff]  }
  0xfa   : > { %v9225_v17 = vpop.f32.mrb[1].mxu1 }
  0xfb   : > { %5032 = vmatpush1.bf16.msra.mxu0 %v9923_v11  ;;  %v11769_v18 = vadd.f32 %v9225_v17, %v9224_v15  ;;  %v9227_v19 = vpop.f32.mrb[2].mxu1  ;;  %9373 = vmatpush3.bf16.msra.mxu1 %v9927_v12  ;;  %v9992_v11 = vld [vmem:[%s13990_s1 + $0xfe0] ss:$12 sps:$4 sm:$0xff]   ;;  %v9994_v17 = vld [vmem:[%s13990_s1 + $0x6f0] ss:$12 sps:$4 sm:$0xff]  }
  0xfc   : > { %5033 = vmatprep.subr.bf16.mxu0 %v9930_v13  ;;  %v9228_v21 = vpop.f32.mrb[3].mxu1  ;;  %9374 = vmatprep.subr.bf16.mxu1 %v9931_v14  ;;  %v10026_v12 = vld [vmem:[%s11061_s12 + $0x54] ss:$108 sps:$4 sm:$0xff]   ;;  %v9989_v13 = vld [vmem:[%s13990_s1 + $0x6d8] ss:$12 sps:$4 sm:$0xff]  }
  0xfd   : > { %v11780_v23 = vadd.f32 %v9228_v21, %v9227_v19  ;;  %v9993_v14 = vld [vmem:[%s13990_s1 + $0xf20] ss:$12 sps:$4 sm:$0xff]   ;;  %v9998_v19 = vld [vmem:[%s13990_s1 + $0xf38] ss:$12 sps:$4 sm:$0xff]   ;;  %v9999_v21 = vld [vmem:[%s13990_s1 + $0x708] ss:$12 sps:$4 sm:$0xff]  }
  0xfe   : > { %v9996_v15 = vld [vmem:[%s13990_s1 + $0x6f4] ss:$12 sps:$4 sm:$0xff]  }
  0xff   : > { %5034 = vmatpush1.bf16.msra.mxu0 %v9928_v16  ;;  %9375 = vmatpush3.bf16.msra.mxu1 %v9932_v20  ;;  %v9997_v16 = vld [vmem:[%s13990_s1 + $0xff8] ss:$12 sps:$4 sm:$0xff]  }
 0x100   : > { %5035 = vmatprep.subr.bf16.mxu0 %v9935_v35  ;;  %9376 = vmatprep.subr.bf16.mxu1 %v9936_v22  ;;  %v10001_v20 = vld [vmem:[%s13990_s1 + $0x70c] ss:$12 sps:$4 sm:$0xff]   ;;  %v10002_v35 = vld [vmem:[%s13990_s1 + $0x1010] ss:$12 sps:$4 sm:$0xff]  }
 0x101   : > { %v10003_v22 = vld [vmem:[%s13990_s1 + $0xf50] ss:$12 sps:$4 sm:$0xff]  }
 0x103   : > { %5036 = vmatpush1.bf16.msra.mxu0 %v9933_v62  ;;  %9377 = vmatpush3.bf16.msra.mxu1 %v9937_v24  ;;  %v10006_v62 = vld [vmem:[%s13990_s1 + $0x724] ss:$12 sps:$4 sm:$0xff]   ;;  %v10007_v24 = vld [vmem:[%s13990_s1 + $0x1028] ss:$12 sps:$4 sm:$0xff]  }
 0x104   : > { %5048 = vmatprep.subr.bf16.mxu0 %v9943_v25  ;;  %9384 = vmatprep.subr.bf16.mxu1 %v9944_v27  ;;  %v10004_v25 = vld [vmem:[%s13990_s1 + $0x720] ss:$12 sps:$4 sm:$0xff]   ;;  %v10011_v27 = vld [vmem:[%s13990_s1 + $0x73c] ss:$12 sps:$4 sm:$0xff]  }
 0x106   : > { %5038 = vmatmul.mubr.bf16.vlgmr.msra.gmra.mrb[0].mxu0 %v10883_v33  ;;  %5839 = vmatmul.mubr.bf16.vlgmr.msra.gmra.mrb[28].mxu1 %v9938_v26  ;;  %v10008_v26 = vld [vmem:[%s13990_s1 + $0xf68] ss:$12 sps:$4 sm:$0xff]  }
 0x107   : > { %5049 = vmatpush1.bf16.msra.mxu0 %v9941_v28  ;;  %9385 = vmatpush3.bf16.msra.mxu1 %v9945_v29  ;;  %v10012_v28 = vld [vmem:[%s13990_s1 + $0x1040] ss:$12 sps:$4 sm:$0xff]   ;;  %v10009_v29 = vld [vmem:[%s13990_s1 + $0x738] ss:$12 sps:$4 sm:$0xff]  }
 0x108   : > { %5050 = vmatprep.subr.bf16.mxu0 %v9948_v31  ;;  %9386 = vmatprep.subr.bf16.mxu1 %v9949_v30  ;;  %v10013_v31 = vld [vmem:[%s13990_s1 + $0xf80] ss:$12 sps:$4 sm:$0xff]  }
 0x109   : > { %5879 = vmatprep.mubr.bf16.mxu1 %v9983_v32  ;;  %5080 = vmatprep.mubr.bf16.mxu0 %v10884_v39  ;;  %v10016_v30 = vld [vmem:[%s13990_s1 + $0x754] ss:$12 sps:$4 sm:$0xff]   ;;  %v10017_v32 = vld [vmem:[%s13990_s1 + $0x1058] ss:$12 sps:$4 sm:$0xff]  }
 0x10a   : > { %v10018_v39 = vld [vmem:[%s13990_s1 + $0xf98] ss:$12 sps:$4 sm:$0xff]  }
 0x10b   : > { %5051 = vmatpush1.bf16.msra.mxu0 %v9946_v34  ;;  %9387 = vmatpush3.bf16.msra.mxu1 %v9950_v36  ;;  %v10014_v34 = vld [vmem:[%s13990_s1 + $0x750] ss:$12 sps:$4 sm:$0xff]  }
 0x10c   : > { %5052 = vmatprep.subr.bf16.mxu0 %v9953_v37  ;;  %9388 = vmatprep.subr.bf16.mxu1 %v9954_v38 }
 0x10f   : > { %5053 = vmatpush1.bf16.msra.mxu0 %v9951_v40  ;;  %9389 = vmatpush3.bf16.msra.mxu1 %v9955_v41  ;;  %v10021_v40 = vld [vmem:[%s13990_s1 + $0x76c] ss:$12 sps:$4 sm:$0xff]  }
 0x110   : > { %5054 = vmatprep.subr.bf16.mxu0 %v9958_v42  ;;  %9390 = vmatprep.subr.bf16.mxu1 %v9959_v43  ;;  %v10022_v42 = vld [vmem:[%s13990_s1 + $0x1070] ss:$12 sps:$4 sm:$0xff]  }
 0x113   : > { %5055 = vmatpush1.bf16.msra.mxu0 %v9956_v44  ;;  %9391 = vmatpush3.bf16.msra.mxu1 %v9960_v45  ;;  %v10019_v44 = vld [vmem:[%s13990_s1 + $0x768] ss:$12 sps:$4 sm:$0xff]   ;;  %v10023_v45 = vld [vmem:[%s13990_s1 + $0xfb0] ss:$12 sps:$4 sm:$0xff]  }
 0x114   : > { %5056 = vmatprep.subr.bf16.mxu0 %v9963_v46  ;;  %9392 = vmatprep.subr.bf16.mxu1 %v9964_v47  ;;  %v10029_v46 = vld [vmem:[%s13990_s1 + $0x784] ss:$12 sps:$4 sm:$0xff]  }
 0x115   : > { %v10024_v47 = vld [vmem:[%s11061_s12 + $0x50] ss:$108 sps:$4 sm:$0xff]  }
 0x117   : > { %5057 = vmatpush1.bf16.msra.mxu0 %v9961_v48  ;;  %9393 = vmatpush3.bf16.msra.mxu1 %v9965_v49  ;;  %v10030_v48 = vld [vmem:[%s13990_s1 + $0x1148] ss:$12 sps:$4 sm:$0xff]   ;;  %v10027_v49 = vld [vmem:[%s13990_s1 + $0x780] ss:$12 sps:$4 sm:$0xff]  }
 0x118   : > { %5058 = vmatprep.subr.bf16.mxu0 %v9968_v50  ;;  %9394 = vmatprep.subr.bf16.mxu1 %v9969_v51  ;;  %v10031_v50 = vld [vmem:[%s13990_s1 + $0x1088] ss:$12 sps:$4 sm:$0xff]  }
 0x119   : > { %v9246_v56 = vpop.f32.mrb[4].mxu1  ;;  %v10034_v51 = vld [vmem:[%s13990_s1 + $0x79c] ss:$12 sps:$4 sm:$0xff]  }
 0x11a   : > { %v9247_v57 = vpop.f32.mrb[5].mxu1 }
 0x11b   : > { %5059 = vmatpush1.bf16.msra.mxu0 %v9966_v52  ;;  %v11876_v60 = vadd.f32 %v9247_v57, %v9246_v56  ;;  %v9249_v61 = vpop.f32.mrb[6].mxu1  ;;  %9395 = vmatpush3.bf16.msra.mxu1 %v9970_v53  ;;  %v10035_v52 = vld [vmem:[%s13990_s1 + $0x1160] ss:$12 sps:$4 sm:$0xff]   ;;  %v10069_v53 = vld [vmem:[%s11061_s12 + $0x5c] ss:$108 sps:$4 sm:$0xff]  }
 0x11c   : > { %5060 = vmatprep.subr.bf16.mxu0 %v9973_v54  ;;  %v9250_v0 = vpop.f32.mrb[7].mxu1  ;;  %9396 = vmatprep.subr.bf16.mxu1 %v9974_v55  ;;  %v10885_v54 = vld [vmem:[%s11061_s12 + $0x20] ss:$108 sps:$4 sm:$0xff]   ;;  %v10032_v55 = vld [vmem:[%s13990_s1 + $0x798] ss:$12 sps:$4 sm:$0xff]  }
 0x11d   : > { %v11884_v2 = vadd.f32 %v9250_v0, %v9249_v61  ;;  %v10036_v56 = vld [vmem:[%s13990_s1 + $0x10a0] ss:$12 sps:$4 sm:$0xff]  }
 0x11e   : > { %v10039_v57 = vld [vmem:[%s13990_s1 + $0x7b4] ss:$12 sps:$4 sm:$0xff]   ;;  %v10886_v61 = vld [vmem:[%s11061_s12 + $0x2c] ss:$108 sps:$4 sm:$0xff]  }
 0x11f   : > { %5061 = vmatpush1.bf16.msra.mxu0 %v9971_v58  ;;  %9397 = vmatpush3.bf16.msra.mxu1 %v9975_v59  ;;  %v10040_v58 = vld [vmem:[%s13990_s1 + $0x1178] ss:$12 sps:$4 sm:$0xff]   ;;  %v10037_v59 = vld [vmem:[%s13990_s1 + $0x7b0] ss:$12 sps:$4 sm:$0xff]  }
 0x120   : > { %5062 = vmatprep.subr.bf16.mxu0 %v9978_v63  ;;  %9398 = vmatprep.subr.bf16.mxu1 %v9979_v1  ;;  %v10041_v63 = vld [vmem:[%s13990_s1 + $0x10b8] ss:$12 sps:$4 sm:$0xff]   ;;  %v10045_v1 = vld [vmem:[%s13990_s1 + $0x1190] ss:$12 sps:$4 sm:$0xff]  }
 0x121   : > { %v10044_v0 = vld [vmem:[%s13990_s1 + $0x7cc] ss:$12 sps:$4 sm:$0xff]  }
 0x123   : > { %5063 = vmatpush1.bf16.msra.mxu0 %v9976_v3  ;;  %9399 = vmatpush3.bf16.msra.mxu1 %v9980_v4  ;;  %v10042_v3 = vld [vmem:[%s13990_s1 + $0x7c8] ss:$12 sps:$4 sm:$0xff]   ;;  %v10046_v4 = vld [vmem:[%s13990_s1 + $0x10d0] ss:$12 sps:$4 sm:$0xff]  }
 0x124   : > { %5064 = vmatprep.subr.bf16.mxu0 %v9986_v5  ;;  %9406 = vmatprep.subr.bf16.mxu1 %v9987_v8  ;;  %v10049_v5 = vld [vmem:[%s13990_s1 + $0x7e4] ss:$12 sps:$4 sm:$0xff]   ;;  %v10051_v8 = vld [vmem:[%s13990_s1 + $0x10e8] ss:$12 sps:$4 sm:$0xff]  }
 0x126   : > { %5880 = vmatmul.mubr.bf16.vlgmr.msra.gmra.mrb[32].mxu1 %v9981_v6  ;;  %v10050_v6 = vld [vmem:[%s13990_s1 + $0x11a8] ss:$12 sps:$4 sm:$0xff]  }
 0x127   : > { %5065 = vmatpush1.bf16.msra.mxu0 %v9984_v7  ;;  %9407 = vmatpush3.bf16.msra.mxu1 %v9988_v9  ;;  %v10047_v7 = vld [vmem:[%s13990_s1 + $0x7e0] ss:$12 sps:$4 sm:$0xff]   ;;  %v10054_v9 = vld [vmem:[%s13990_s1 + $0x7fc] ss:$12 sps:$4 sm:$0xff]  }
 0x128   : > { %5066 = vmatprep.subr.bf16.mxu0 %v9991_v10  ;;  %9408 = vmatprep.subr.bf16.mxu1 %v9992_v11  ;;  %v10055_v10 = vld [vmem:[%s13990_s1 + $0x11c0] ss:$12 sps:$4 sm:$0xff]   ;;  %v10052_v11 = vld [vmem:[%s13990_s1 + $0x7f8] ss:$12 sps:$4 sm:$0xff]  }
 0x129   : > { %5920 = vmatprep.mubr.bf16.mxu1 %v10026_v12  ;;  %v10056_v12 = vld [vmem:[%s13990_s1 + $0x1100] ss:$12 sps:$4 sm:$0xff]  }
 0x12b   : > { %5067 = vmatpush1.bf16.msra.mxu0 %v9989_v13  ;;  %9409 = vmatpush3.bf16.msra.mxu1 %v9993_v14  ;;  %v10059_v13 = vld [vmem:[%s13990_s1 + $0x814] ss:$12 sps:$4 sm:$0xff]   ;;  %v10060_v14 = vld [vmem:[%s13990_s1 + $0x11d8] ss:$12 sps:$4 sm:$0xff]  }
 0x12c   : > { %5068 = vmatprep.subr.bf16.mxu0 %v9996_v15  ;;  %9410 = vmatprep.subr.bf16.mxu1 %v9997_v16  ;;  %v10057_v16 = vld [vmem:[%s13990_s1 + $0x810] ss:$12 sps:$4 sm:$0xff]  }
 0x12f   : > { %5069 = vmatpush1.bf16.msra.mxu0 %v9994_v17  ;;  %9411 = vmatpush3.bf16.msra.mxu1 %v9998_v19  ;;  %v10061_v19 = vld [vmem:[%s13990_s1 + $0x1118] ss:$12 sps:$4 sm:$0xff]  }
 0x130   : > { %5070 = vmatprep.subr.bf16.mxu0 %v10001_v20  ;;  %9412 = vmatprep.subr.bf16.mxu1 %v10002_v35 }
 0x133   : > { %5071 = vmatpush1.bf16.msra.mxu0 %v9999_v21  ;;  %9413 = vmatpush3.bf16.msra.mxu1 %v10003_v22  ;;  %v10064_v21 = vld [vmem:[%s13990_s1 + $0x82c] ss:$12 sps:$4 sm:$0xff]   ;;  %v10065_v22 = vld [vmem:[%s13990_s1 + $0x11f0] ss:$12 sps:$4 sm:$0xff]  }
 0x134   : > { %5072 = vmatprep.subr.bf16.mxu0 %v10006_v62  ;;  %9414 = vmatprep.subr.bf16.mxu1 %v10007_v24 }
 0x137   : > { %5073 = vmatpush1.bf16.msra.mxu0 %v10004_v25  ;;  %9415 = vmatpush3.bf16.msra.mxu1 %v10008_v26  ;;  %v10062_v25 = vld [vmem:[%s13990_s1 + $0x828] ss:$12 sps:$4 sm:$0xff]   ;;  %v10066_v26 = vld [vmem:[%s13990_s1 + $0x1130] ss:$12 sps:$4 sm:$0xff]  }
 0x138   : > { %5074 = vmatprep.subr.bf16.mxu0 %v10011_v27  ;;  %9416 = vmatprep.subr.bf16.mxu1 %v10012_v28  ;;  %v10072_v27 = vld [vmem:[%s13990_s1 + $0x844] ss:$12 sps:$4 sm:$0xff]   ;;  %v10073_v28 = vld [vmem:[%s13990_s1 + $0x12c8] ss:$12 sps:$4 sm:$0xff]  }
 0x139   : > { %v9268_v33 = vpop.f32.mrb[8].mxu1 }
 0x13a   : > { %v9269_v36 = vpop.f32.mrb[9].mxu1 }
 0x13b   : > { %5075 = vmatpush1.bf16.msra.mxu0 %v10009_v29  ;;  %v11975_v37 = vadd.f32 %v9269_v36, %v9268_v33  ;;  %v9271_v38 = vpop.f32.mrb[10].mxu1  ;;  %9417 = vmatpush3.bf16.msra.mxu1 %v10013_v31  ;;  %v10067_v29 = vld [vmem:[%s11061_s12 + $0x58] ss:$108 sps:$4 sm:$0xff]   ;;  %v10070_v31 = vld [vmem:[%s13990_s1 + $0x840] ss:$12 sps:$4 sm:$0xff]  }
 0x13c   : > { %5076 = vmatprep.subr.bf16.mxu0 %v10016_v30  ;;  %v9272_v41 = vpop.f32.mrb[11].mxu1  ;;  %9418 = vmatprep.subr.bf16.mxu1 %v10017_v32  ;;  %v10074_v30 = vld [vmem:[%s13990_s1 + $0x1208] ss:$12 sps:$4 sm:$0xff]   ;;  %v10078_v33 = vld [vmem:[%s13990_s1 + $0x12e0] ss:$12 sps:$4 sm:$0xff]  }
 0x13d   : > { %v11986_v43 = vadd.f32 %v9272_v41, %v9271_v38  ;;  %v10077_v32 = vld [vmem:[%s13990_s1 + $0x85c] ss:$12 sps:$4 sm:$0xff]   ;;  %v10075_v36 = vld [vmem:[%s13990_s1 + $0x858] ss:$12 sps:$4 sm:$0xff]   ;;  %v10079_v38 = vld [vmem:[%s13990_s1 + $0x1220] ss:$12 sps:$4 sm:$0xff]  }
 0x13e   : > { %v10080_v41 = vld [vmem:[%s13990_s1 + $0x870] ss:$12 sps:$4 sm:$0xff]  }
 0x13f   : > { %5077 = vmatpush1.bf16.msra.mxu0 %v10014_v34  ;;  %9419 = vmatpush3.bf16.msra.mxu1 %v10018_v39  ;;  %v10112_v34 = vld [vmem:[%s11061_s12 + $0x64] ss:$108 sps:$4 sm:$0xff]   ;;  %v10082_v39 = vld [vmem:[%s13990_s1 + $0x874] ss:$12 sps:$4 sm:$0xff]  }
 0x140   : > { %5078 = vmatprep.subr.bf16.mxu0 %v10021_v40  ;;  %9420 = vmatprep.subr.bf16.mxu1 %v10022_v42  ;;  %v10083_v40 = vld [vmem:[%s13990_s1 + $0x12f8] ss:$12 sps:$4 sm:$0xff]  }
 0x141   : > { %v10084_v42 = vld [vmem:[%s13990_s1 + $0x1238] ss:$12 sps:$4 sm:$0xff]  }
 0x143   : > { %5079 = vmatpush1.bf16.msra.mxu0 %v10019_v44  ;;  %9421 = vmatpush3.bf16.msra.mxu1 %v10023_v45  ;;  %v10087_v44 = vld [vmem:[%s13990_s1 + $0x88c] ss:$12 sps:$4 sm:$0xff]   ;;  %v10088_v45 = vld [vmem:[%s13990_s1 + $0x1310] ss:$12 sps:$4 sm:$0xff]  }
 0x144   : > { %5091 = vmatprep.subr.bf16.mxu0 %v10029_v46  ;;  %9428 = vmatprep.subr.bf16.mxu1 %v10030_v48  ;;  %v10085_v46 = vld [vmem:[%s13990_s1 + $0x888] ss:$12 sps:$4 sm:$0xff]   ;;  %v10092_v48 = vld [vmem:[%s13990_s1 + $0x8a4] ss:$12 sps:$4 sm:$0xff]  }
 0x146   : > { %5081 = vmatmul.mubr.bf16.vlgmr.msra.gmra.mrb[0].mxu0 %v10885_v54  ;;  %5921 = vmatmul.mubr.bf16.vlgmr.msra.gmra.mrb[36].mxu1 %v10024_v47  ;;  %v10089_v47 = vld [vmem:[%s13990_s1 + $0x1250] ss:$12 sps:$4 sm:$0xff]   ;;  %v10095_v54 = vld [vmem:[%s13990_s1 + $0x8b8] ss:$12 sps:$4 sm:$0xff]  }
 0x147   : > { %5092 = vmatpush1.bf16.msra.mxu0 %v10027_v49  ;;  %9429 = vmatpush3.bf16.msra.mxu1 %v10031_v50  ;;  %v10093_v49 = vld [vmem:[%s13990_s1 + $0x1328] ss:$12 sps:$4 sm:$0xff]   ;;  %v10090_v50 = vld [vmem:[%s13990_s1 + $0x8a0] ss:$12 sps:$4 sm:$0xff]  }
 0x148   : > { %5093 = vmatprep.subr.bf16.mxu0 %v10034_v51  ;;  %9430 = vmatprep.subr.bf16.mxu1 %v10035_v52  ;;  %v10094_v51 = vld [vmem:[%s13990_s1 + $0x1268] ss:$12 sps:$4 sm:$0xff]  }
 0x149   : > { %5961 = vmatprep.mubr.bf16.mxu1 %v10069_v53  ;;  %5123 = vmatprep.mubr.bf16.mxu0 %v10886_v61  ;;  %v10097_v52 = vld [vmem:[%s13990_s1 + $0x8bc] ss:$12 sps:$4 sm:$0xff]   ;;  %v10098_v53 = vld [vmem:[%s13990_s1 + $0x1340] ss:$12 sps:$4 sm:$0xff]  }
 0x14a   : > { %v10100_v61 = vld [vmem:[%s13990_s1 + $0x8d0] ss:$12 sps:$4 sm:$0xff]  }
 0x14b   : > { %5094 = vmatpush1.bf16.msra.mxu0 %v10032_v55  ;;  %9431 = vmatpush3.bf16.msra.mxu1 %v10036_v56  ;;  %v10099_v55 = vld [vmem:[%s13990_s1 + $0x1280] ss:$12 sps:$4 sm:$0xff]  }
 0x14c   : > { %5095 = vmatprep.subr.bf16.mxu0 %v10039_v57  ;;  %9432 = vmatprep.subr.bf16.mxu1 %v10040_v58  ;;  %v10102_v56 = vld [vmem:[%s13990_s1 + $0x8d4] ss:$12 sps:$4 sm:$0xff]   ;;  %v10103_v57 = vld [vmem:[%s13990_s1 + $0x1358] ss:$12 sps:$4 sm:$0xff]  }
 0x14f   : > { %5096 = vmatpush1.bf16.msra.mxu0 %v10037_v59  ;;  %9433 = vmatpush3.bf16.msra.mxu1 %v10041_v63  ;;  %v10104_v63 = vld [vmem:[%s13990_s1 + $0x1298] ss:$12 sps:$4 sm:$0xff]  }
 0x150   : > { %5097 = vmatprep.subr.bf16.mxu0 %v10044_v0  ;;  %9434 = vmatprep.subr.bf16.mxu1 %v10045_v1 }
 0x153   : > { %5098 = vmatpush1.bf16.msra.mxu0 %v10042_v3  ;;  %9435 = vmatpush3.bf16.msra.mxu1 %v10046_v4  ;;  %v10107_v3 = vld [vmem:[%s13990_s1 + $0x8ec] ss:$12 sps:$4 sm:$0xff]  }
 0x154   : > { %5099 = vmatprep.subr.bf16.mxu0 %v10049_v5  ;;  %9436 = vmatprep.subr.bf16.mxu1 %v10050_v6  ;;  %v10108_v5 = vld [vmem:[%s13990_s1 + $0x1370] ss:$12 sps:$4 sm:$0xff]  }
 0x157   : > { %5100 = vmatpush1.bf16.msra.mxu0 %v10047_v7  ;;  %9437 = vmatpush3.bf16.msra.mxu1 %v10051_v8  ;;  %v10105_v7 = vld [vmem:[%s13990_s1 + $0x8e8] ss:$12 sps:$4 sm:$0xff]   ;;  %v10109_v8 = vld [vmem:[%s13990_s1 + $0x12b0] ss:$12 sps:$4 sm:$0xff]  }
 0x158   : > { %5101 = vmatprep.subr.bf16.mxu0 %v10054_v9  ;;  %9438 = vmatprep.subr.bf16.mxu1 %v10055_v10  ;;  %v10115_v9 = vld [vmem:[%s13990_s1 + $0x904] ss:$12 sps:$4 sm:$0xff]   ;;  %v10110_v10 = vld [vmem:[%s11061_s12 + $0x60] ss:$108 sps:$4 sm:$0xff]  }
 0x159   : > { %v9290_v15 = vpop.f32.mrb[12].mxu1 }
 0x15a   : > { %v9291_v17 = vpop.f32.mrb[13].mxu1 }
 0x15b   : > { %5102 = vmatpush1.bf16.msra.mxu0 %v10052_v11  ;;  %v12082_v20 = vadd.f32 %v9291_v17, %v9290_v15  ;;  %v9293_v35 = vpop.f32.mrb[14].mxu1  ;;  %9439 = vmatpush3.bf16.msra.mxu1 %v10056_v12  ;;  %v10113_v11 = vld [vmem:[%s13990_s1 + $0x900] ss:$12 sps:$4 sm:$0xff]   ;;  %v10116_v12 = vld [vmem:[%s13990_s1 + $0x1388] ss:$12 sps:$4 sm:$0xff]  }
 0x15c   : > { %5103 = vmatprep.subr.bf16.mxu0 %v10059_v13  ;;  %v9294_v62 = vpop.f32.mrb[15].mxu1  ;;  %9440 = vmatprep.subr.bf16.mxu1 %v10060_v14  ;;  %v10119_v13 = vld [vmem:[%s13990_s1 + $0x91c] ss:$12 sps:$4 sm:$0xff]   ;;  %v10913_v14 = vmov 0.0   ;;  %v10120_v17 = vld [vmem:[%s13990_s1 + $0x13a0] ss:$12 sps:$4 sm:$0xff]  }
 0x15d   : > { %v12090_v24 = vadd.f32 %v9294_v62, %v9293_v35  ;;  %v10887_v15 = vld [vmem:[%s11061_s12 + $0x28] ss:$108 sps:$4 sm:$0xff]   ;;  %v10127_v62 = vld [vmem:[%s13990_s1 + $0x94c] ss:$12 sps:$4 sm:$0xff]  }
 0x15e   : > { %v10888_v35 = vld [vmem:[%s11061_s12 + $0x34] ss:$108 sps:$4 sm:$0xff]  }
 0x15f   : > { %5104 = vmatpush1.bf16.msra.mxu0 %v10057_v16  ;;  %9441 = vmatpush3.bf16.msra.mxu1 %v10061_v19  ;;  %v10117_v16 = vld [vmem:[%s13990_s1 + $0x918] ss:$12 sps:$4 sm:$0xff]   ;;  %v10123_v19 = vld [vmem:[%s13990_s1 + $0x934] ss:$12 sps:$4 sm:$0xff]  }
 0x160   : > { %5105 = vmatprep.subr.bf16.mxu0 %v10064_v21  ;;  %9442 = vmatprep.subr.bf16.mxu1 %v10065_v22  ;;  %v10121_v21 = vld [vmem:[%s13990_s1 + $0x930] ss:$12 sps:$4 sm:$0xff]   ;;  %v10124_v22 = vld [vmem:[%s13990_s1 + $0x13b8] ss:$12 sps:$4 sm:$0xff]  }
 0x163   : > { %5106 = vmatpush1.bf16.msra.mxu0 %v10062_v25  ;;  %9443 = vmatpush3.bf16.msra.mxu1 %v10066_v26  ;;  %v10125_v25 = vld [vmem:[%s13990_s1 + $0x948] ss:$12 sps:$4 sm:$0xff]   ;;  %v10128_v26 = vld [vmem:[%s13990_s1 + $0x13d0] ss:$12 sps:$4 sm:$0xff]  }
 0x164   : > { %5107 = vmatprep.subr.bf16.mxu0 %v10072_v27  ;;  %9450 = vmatprep.subr.bf16.mxu1 %v10073_v28  ;;  %v10131_v27 = vld [vmem:[%s13990_s1 + $0x964] ss:$12 sps:$4 sm:$0xff]   ;;  %v10129_v28 = vld [vmem:[%s13990_s1 + $0x960] ss:$12 sps:$4 sm:$0xff]  }
 0x166   : > { %5962 = vmatmul.mubr.bf16.vlgmr.msra.gmra.mrb[40].mxu1 %v10067_v29  ;;  %v10132_v29 = vld [vmem:[%s13990_s1 + $0x13e8] ss:$12 sps:$4 sm:$0xff]  }
 0x167   : > { %5108 = vmatpush1.bf16.msra.mxu0 %v10070_v31  ;;  %9451 = vmatpush3.bf16.msra.mxu1 %v10074_v30  ;;  %v10135_v31 = vld [vmem:[%s13990_s1 + $0x97c] ss:$12 sps:$4 sm:$0xff]   ;;  %v10133_v30 = vld [vmem:[%s13990_s1 + $0x978] ss:$12 sps:$4 sm:$0xff]  }
 0x168   : > { %5109 = vmatprep.subr.bf16.mxu0 %v10077_v32  ;;  %9452 = vmatprep.subr.bf16.mxu1 %v10078_v33  ;;  %v10136_v32 = vld [vmem:[%s13990_s1 + $0x1400] ss:$12 sps:$4 sm:$0xff]  }
 0x169   : > { %6002 = vmatprep.mubr.bf16.mxu1 %v10112_v34  ;;  %v10139_v33 = vld [vmem:[%s13990_s1 + $0x994] ss:$12 sps:$4 sm:$0xff]  }
 0x16b   : > { %5110 = vmatpush1.bf16.msra.mxu0 %v10075_v36  ;;  %9453 = vmatpush3.bf16.msra.mxu1 %v10079_v38  ;;  %v10137_v38 = vld [vmem:[%s13990_s1 + $0x990] ss:$12 sps:$4 sm:$0xff]  }
 0x16c   : > { %5111 = vmatprep.subr.bf16.mxu0 %v10082_v39  ;;  %9454 = vmatprep.subr.bf16.mxu1 %v10083_v40 }
 0x16f   : > { %5112 = vmatpush1.bf16.msra.mxu0 %v10080_v41  ;;  %9455 = vmatpush3.bf16.msra.mxu1 %v10084_v42  ;;  %v10140_v41 = vld [vmem:[%s13990_s1 + $0x1418] ss:$12 sps:$4 sm:$0xff]  }
 0x170   : > { %5113 = vmatprep.subr.bf16.mxu0 %v10087_v44  ;;  %9456 = vmatprep.subr.bf16.mxu1 %v10088_v45  ;;  %v10143_v42 = vld [vmem:[%s13990_s1 + $0x9ac] ss:$12 sps:$4 sm:$0xff]  }
 0x173   : > { %5114 = vmatpush1.bf16.msra.mxu0 %v10085_v46  ;;  %9457 = vmatpush3.bf16.msra.mxu1 %v10089_v47  ;;  %v10141_v46 = vld [vmem:[%s13990_s1 + $0x9a8] ss:$12 sps:$4 sm:$0xff]   ;;  %v10144_v47 = vld [vmem:[%s13990_s1 + $0x1430] ss:$12 sps:$4 sm:$0xff]  }
 0x174   : > { %5115 = vmatprep.subr.bf16.mxu0 %v10092_v48  ;;  %9458 = vmatprep.subr.bf16.mxu1 %v10093_v49  ;;  %v10147_v48 = vld [vmem:[%s13990_s1 + $0x9c4] ss:$12 sps:$4 sm:$0xff]   ;;  %v10145_v49 = vld [vmem:[%s13990_s1 + $0x9c0] ss:$12 sps:$4 sm:$0xff]  }
 0x177   : > { %5116 = vmatpush1.bf16.msra.mxu0 %v10090_v50  ;;  %9459 = vmatpush3.bf16.msra.mxu1 %v10094_v51  ;;  %v10151_v50 = vld [vmem:[%s13994_s5 + $0x4] ss:$8 sps:$4 sm:$0xff]  }
 0x178   : > { %5117 = vmatprep.subr.bf16.mxu0 %v10097_v52  ;;  %9460 = vmatprep.subr.bf16.mxu1 %v10098_v53  ;;  %v12306_v51 = vld [vmem:[%s12287_s18] sm:$0xff]  ;;  %v10148_v53 = vld [vmem:[%s11061_s12 + $0x68] ss:$108 sps:$4 sm:$0xff]  }
 0x179   : > { %v9312_v58 = vpop.f32.mrb[16].mxu1  ;;  %v12309_v52 = vld [vmem:[%s12287_s18 + $0x40] sm:$0xff] }
 0x17a   : > { %v9313_v59 = vpop.f32.mrb[17].mxu1 }
 0x17b   : > { %5118 = vmatpush1.bf16.msra.mxu0 %v10095_v54  ;;  %v12184_v0 = vadd.f32 %v9313_v59, %v9312_v58  ;;  %v9315_v1 = vpop.f32.mrb[18].mxu1  ;;  %9461 = vmatpush3.bf16.msra.mxu1 %v10099_v55  ;;  %v10149_v54 = vld [vmem:[%s13994_s5] ss:$8 sps:$4 sm:$0xff]   ;;  %v10152_v58 = vld [vmem:[%s13990_s1 + $0x9d8] ss:$12 sps:$4 sm:$0xff]  }
 0x17c   : > { %5119 = vmatprep.subr.bf16.mxu0 %v10102_v56  ;;  %v9316_v4 = vpop.f32.mrb[19].mxu1  ;;  %9462 = vmatprep.subr.bf16.mxu1 %v10103_v57  ;;  %v10154_v55 = vld [vmem:[%s13990_s1 + $0x9dc] ss:$12 sps:$4 sm:$0xff]   ;;  %v8911_v57 = vcombine.high %v12306_v51, %v12309_v52  ;;  %v10155_v59 = vld [vmem:[%s13994_s5 + $0x10] ss:$8 sps:$4 sm:$0xff]  }
 0x17d   : > { %v12192_v6 = vadd.f32 %v9316_v4, %v9315_v1  ;;  %v10157_v56 = vld [vmem:[%s13994_s5 + $0x14] ss:$8 sps:$4 sm:$0xff]   ;;  %v10166_v4 = vld [vmem:[%s13990_s1 + $0xa0c] ss:$12 sps:$4 sm:$0xff]  }
 0x17e   : > { %v10158_v1 = vld [vmem:[%s13990_s1 + $0x9f0] ss:$12 sps:$4 sm:$0xff]  }
 0x17f   : > { %5120 = vmatpush1.bf16.msra.mxu0 %v10100_v61  ;;  %9463 = vmatpush3.bf16.msra.mxu1 %v10104_v63  ;;  %v10160_v61 = vld [vmem:[%s13990_s1 + $0x9f4] ss:$12 sps:$4 sm:$0xff]   ;;  %v10163_v63 = vld [vmem:[%s13994_s5 + $0x24] ss:$8 sps:$4 sm:$0xff]  }
 0x180   : > { %5121 = vmatprep.subr.bf16.mxu0 %v10107_v3  ;;  %9464 = vmatprep.subr.bf16.mxu1 %v10108_v5  ;;  %v10161_v3 = vld [vmem:[%s13994_s5 + $0x20] ss:$8 sps:$4 sm:$0xff]   ;;  %v10169_v5 = vld [vmem:[%s13994_s5 + $0x34] ss:$8 sps:$4 sm:$0xff]  }
 0x183   : > { %5122 = vmatpush1.bf16.msra.mxu0 %v10105_v7  ;;  %9465 = vmatpush3.bf16.msra.mxu1 %v10109_v8  ;;  %v10164_v7 = vld [vmem:[%s13990_s1 + $0xa08] ss:$12 sps:$4 sm:$0xff]   ;;  %v10167_v8 = vld [vmem:[%s13994_s5 + $0x30] ss:$8 sps:$4 sm:$0xff]  }
 0x184   : > { %5134 = vmatprep.subr.bf16.mxu0 %v10115_v9  ;;  %9481 = vmatprep.subr.bf16.mxu1 %v10913_v14  ;;  %v10172_v9 = vld [vmem:[%s13990_s1 + $0xa24] ss:$12 sps:$4 sm:$0xff]  }
 0x186   : > { %5124 = vmatmul.mubr.bf16.vlgmr.msra.gmra.mrb[0].mxu0 %v10887_v15  ;;  %6003 = vmatmul.mubr.bf16.vlgmr.msra.gmra.mrb[44].mxu1 %v10110_v10  ;;  %v10175_v10 = vld [vmem:[%s13994_s5 + $0x44] ss:$8 sps:$4 sm:$0xff]  }
 0x187   : > { %5135 = vmatpush1.bf16.msra.mxu0 %v10113_v11  ;;  %9482 = vmatpush3.bf16.msra.mxu1 %v10116_v12  ;;  %v10170_v11 = vld [vmem:[%s13990_s1 + $0xa20] ss:$12 sps:$4 sm:$0xff]   ;;  %v10176_v15 = vld [vmem:[%s13990_s1 + $0xa38] ss:$12 sps:$4 sm:$0xff]  }
 0x188   : > { %5136 = vmatprep.subr.bf16.mxu0 %v10119_v13  ;;  %9483 = vmatprep.subr.bf16.mxu1 %v10913_v14  ;;  %v10173_v12 = vld [vmem:[%s13994_s5 + $0x40] ss:$8 sps:$4 sm:$0xff]  }
 0x189   : > { %9497 = vmatprep.mubr.msk.bf16.mxu1 %vm10914_vm0, %v10913_v14  ;;  %5166 = vmatprep.mubr.bf16.mxu0 %v10888_v35  ;;  %v10178_v13 = vld [vmem:[%s13990_s1 + $0xa3c] ss:$12 sps:$4 sm:$0xff]  }
 0x18b   : > { %5137 = vmatpush1.bf16.msra.mxu0 %v10117_v16  ;;  %9484 = vmatpush3.bf16.msra.mxu1 %v10120_v17  ;;  %v10179_v16 = vld [vmem:[%s13994_s5 + $0x50] ss:$8 sps:$4 sm:$0xff]   ;;  %v10184_v17 = vld [vmem:[%s13990_s1 + $0xa54] ss:$12 sps:$4 sm:$0xff]  }
 0x18c   : > { %5138 = vmatprep.subr.bf16.mxu0 %v10123_v19  ;;  %9485 = vmatprep.subr.bf16.mxu1 %v10913_v14  ;;  %v10187_v19 = vld [vmem:[%s13994_s5 + $0x64] ss:$8 sps:$4 sm:$0xff]  }
 0x18f   : > { %5139 = vmatpush1.bf16.msra.mxu0 %v10121_v21  ;;  %9486 = vmatpush3.bf16.msra.mxu1 %v10124_v22  ;;  %v10182_v22 = vld [vmem:[%s13990_s1 + $0xa50] ss:$12 sps:$4 sm:$0xff]  }
 0x190   : > { %5140 = vmatprep.subr.bf16.mxu0 %v10127_v62  ;;  %9487 = vmatprep.subr.bf16.mxu1 %v10913_v14 }
 0x193   : > { %5141 = vmatpush1.bf16.msra.mxu0 %v10125_v25  ;;  %9488 = vmatpush3.bf16.msra.mxu1 %v10128_v26  ;;  %v10185_v26 = vld [vmem:[%s13994_s5 + $0x60] ss:$8 sps:$4 sm:$0xff]  }
 0x194   : > { %5142 = vmatprep.subr.bf16.mxu0 %v10131_v27  ;;  %9489 = vmatprep.subr.bf16.mxu1 %v10913_v14  ;;  %v10190_v27 = vld [vmem:[%s13990_s1 + $0xa6c] ss:$12 sps:$4 sm:$0xff]  }
 0x197   : > { %5143 = vmatpush1.bf16.msra.mxu0 %v10129_v28  ;;  %9490 = vmatpush3.bf16.msra.mxu1 %v10132_v29  ;;  %v10193_v29 = vld [vmem:[%s13994_s5 + $0x74] ss:$8 sps:$4 sm:$0xff]  }
 0x198   : > { %5144 = vmatprep.subr.bf16.mxu0 %v10135_v31  ;;  %9491 = vmatprep.subr.bf16.mxu1 %v10913_v14 }
 0x199   : > { %v9334_v34 = vpop.f32.mrb[20].mxu1 }
 0x19a   : > { %v9335_v36 = vpop.f32.mrb[21].mxu1 }
 0x19b   : > { %5145 = vmatpush1.bf16.msra.mxu0 %v10133_v30  ;;  %v12271_v39 = vadd.f32 %v9335_v36, %v9334_v34  ;;  %v9337_v40 = vpop.f32.mrb[22].mxu1  ;;  %9492 = vmatpush3.bf16.msra.mxu1 %v10136_v32  ;;  %v10188_v30 = vld [vmem:[%s13990_s1 + $0xa68] ss:$12 sps:$4 sm:$0xff]   ;;  %v10191_v32 = vld [vmem:[%s13994_s5 + $0x70] ss:$8 sps:$4 sm:$0xff]  }
 0x19c   : > { %5146 = vmatprep.subr.bf16.mxu0 %v10139_v33  ;;  %v9338_v44 = vpop.f32.mrb[23].mxu1  ;;  %9493 = vmatprep.subr.bf16.mxu1 %v10913_v14  ;;  %v10196_v33 = vld [vmem:[%s13990_s1 + $0xa84] ss:$12 sps:$4 sm:$0xff]   ;;  %v10194_v36 = vld [vmem:[%s13990_s1 + $0xa80] ss:$12 sps:$4 sm:$0xff]  }
 0x19d   : > { %v12280_v45 = vadd.f32 %v9338_v44, %v9337_v40  ;;  %v10199_v34 = vld [vmem:[%s13994_s5 + $0x84] ss:$8 sps:$4 sm:$0xff]   ;;  %v10202_v40 = vld [vmem:[%s13990_s1 + $0xa9c] ss:$12 sps:$4 sm:$0xff]  }
 0x19e   : > { %v10200_v44 = vld [vmem:[%s13990_s1 + $0xa98] ss:$12 sps:$4 sm:$0xff]  }
 0x19f   : > { %5147 = vmatpush1.bf16.msra.mxu0 %v10137_v38  ;;  %9494 = vmatpush3.bf16.msra.mxu1 %v10140_v41  ;;  %v10197_v38 = vld [vmem:[%s13994_s5 + $0x80] ss:$8 sps:$4 sm:$0xff]   ;;  %v10205_v41 = vld [vmem:[%s13994_s5 + $0x94] ss:$8 sps:$4 sm:$0xff]  }
 0x1a0   : > { %5148 = vmatprep.subr.bf16.mxu0 %v10143_v42  ;;  %9495 = vmatprep.subr.bf16.mxu1 %v10913_v14  ;;  %v10181_v14 = vld [vmem:[%s13994_s5 + $0x54] ss:$8 sps:$4 sm:$0xff]  }
 0x1a1   : > { %v10889_v42 = vld [vmem:[%s11061_s12 + $0x30] ss:$108 sps:$4 sm:$0xff]  }
 0x1a3   : > { %5149 = vmatpush1.bf16.msra.mxu0 %v10141_v46  ;;  %9496 = vmatpush3.bf16.msra.mxu1 %v10144_v47  ;;  %v10203_v46 = vld [vmem:[%s13994_s5 + $0x90] ss:$8 sps:$4 sm:$0xff]   ;;  %v10890_v47 = vld [vmem:[%s11061_s12 + $0x3c] ss:$108 sps:$4 sm:$0xff]  }
 0x1a4   : > { %5150 = vmatprep.subr.bf16.mxu0 %v10147_v48  ;;  %7742 = vmatprep.subr.bf16.mxu1 %v10151_v50  ;;  %v10208_v48 = vld [vmem:[%s13990_s1 + $0xab4] ss:$12 sps:$4 sm:$0xff]   ;;  %v10206_v50 = vld [vmem:[%s13990_s1 + $0xab0] ss:$12 sps:$4 sm:$0xff]  }
 0x1a6   : > { %9498 = vmatmul.mubr.bf16.vlgmr.msra.gmra.mrb[48].mxu1 %v10148_v53  ;;  %v10209_v53 = vld [vmem:[%s13994_s5 + $0xa0] ss:$8 sps:$4 sm:$0xff]  }
 0x1a7   : > { %5151 = vmatpush1.bf16.msra.mxu0 %v10145_v49  ;;  %7743 = vmatpush1.bf16.msra.mxu1 %v10149_v54  ;;  %v10211_v49 = vld [vmem:[%s13994_s5 + $0xa4] ss:$8 sps:$4 sm:$0xff]  }
 0x1a8   : > { %5152 = vmatprep.subr.bf16.mxu0 %v10154_v55  ;;  %7744 = vmatprep.subr.bf16.mxu1 %v10157_v56  ;;  %v10214_v54 = vld [vmem:[%s13990_s1 + $0xacc] ss:$12 sps:$4 sm:$0xff]   ;;  %v10217_v55 = vld [vmem:[%s13994_s5 + $0xb4] ss:$8 sps:$4 sm:$0xff]  }
 0x1a9   : > { %7774 = vmatprep.mubr.bf16.mxu1 %v8911_v57  ;;  %v10212_v56 = vld [vmem:[%s13990_s1 + $0xac8] ss:$12 sps:$4 sm:$0xff]   ;;  %v10215_v57 = vld [vmem:[%s13994_s5 + $0xb0] ss:$8 sps:$4 sm:$0xff]  }
 0x1ab   : > { %5153 = vmatpush1.bf16.msra.mxu0 %v10152_v58  ;;  %7745 = vmatpush1.bf16.msra.mxu1 %v10155_v59  ;;  %v10220_v58 = vld [vmem:[%s13990_s1 + $0xae4] ss:$12 sps:$4 sm:$0xff]  }
 0x1ac   : > { %5154 = vmatprep.subr.bf16.mxu0 %v10160_v61  ;;  %7746 = vmatprep.subr.bf16.mxu1 %v10163_v63  ;;  %v10223_v59 = vld [vmem:[%s13994_s5 + $0xc4] ss:$8 sps:$4 sm:$0xff]   ;;  %v10221_v63 = vld [vmem:[%s13994_s5 + $0xc0] ss:$8 sps:$4 sm:$0xff]  }
 0x1ad   : > { %v10218_v61 = vld [vmem:[%s13990_s1 + $0xae0] ss:$12 sps:$4 sm:$0xff]  }
 0x1af   : > { %5155 = vmatpush1.bf16.msra.mxu0 %v10158_v1  ;;  %7747 = vmatpush1.bf16.msra.mxu1 %v10161_v3  ;;  %v10226_v1 = vld [vmem:[%s13990_s1 + $0xafc] ss:$12 sps:$4 sm:$0xff]  }
 0x1b0   : > { %5156 = vmatprep.subr.bf16.mxu0 %v10166_v4  ;;  %7748 = vmatprep.subr.bf16.mxu1 %v10169_v5  ;;  %v10229_v3 = vld [vmem:[%s13994_s5 + $0xd4] ss:$8 sps:$4 sm:$0xff]   ;;  %v10224_v4 = vld [vmem:[%s13990_s1 + $0xaf8] ss:$12 sps:$4 sm:$0xff]  }
 0x1b1   : > { %v10227_v5 = vld [vmem:[%s13994_s5 + $0xd0] ss:$8 sps:$4 sm:$0xff]  }
 0x1b3   : > { %5157 = vmatpush1.bf16.msra.mxu0 %v10164_v7  ;;  %7749 = vmatpush1.bf16.msra.mxu1 %v10167_v8  ;;  %v10232_v7 = vld [vmem:[%s13990_s1 + $0xb14] ss:$12 sps:$4 sm:$0xff]   ;;  %v10235_v8 = vld [vmem:[%s13994_s5 + $0xe4] ss:$8 sps:$4 sm:$0xff]  }
 0x1b4   : > { %5158 = vmatprep.subr.bf16.mxu0 %v10172_v9  ;;  %7750 = vmatprep.subr.bf16.mxu1 %v10175_v10 }
 0x1b7   : > { %5159 = vmatpush1.bf16.msra.mxu0 %v10170_v11  ;;  %7751 = vmatpush1.bf16.msra.mxu1 %v10173_v12  ;;  %v10230_v11 = vld [vmem:[%s13990_s1 + $0xb10] ss:$12 sps:$4 sm:$0xff]   ;;  %v10233_v12 = vld [vmem:[%s13994_s5 + $0xe0] ss:$8 sps:$4 sm:$0xff]  }
 0x1b8   : > { %5160 = vmatprep.subr.bf16.mxu0 %v10178_v13  ;;  %7752 = vmatprep.subr.bf16.mxu1 %v10181_v14 }
 0x1b9   : > { %v9356_v35 = vpop.f32.mrb[24].mxu1 }
 0x1ba   : > { %v9357_v21 = vpop.f32.mrb[25].mxu1 }
 0x1bb   : > { %5161 = vmatpush1.bf16.msra.mxu0 %v10176_v15  ;;  %v12386_v62 = vadd.f32 %v9357_v21, %v9356_v35  ;;  %v9359_v25 = vpop.f32.mrb[26].mxu1  ;;  %7753 = vmatpush1.bf16.msra.mxu1 %v10179_v16  ;;  %v10238_v15 = vld [vmem:[%s13990_s1 + $0xb2c] ss:$12 sps:$4 sm:$0xff]   ;;  %v10236_v35 = vld [vmem:[%s13990_s1 + $0xb28] ss:$12 sps:$4 sm:$0xff]  }
 0x1bc   : > { %5162 = vmatprep.subr.bf16.mxu0 %v10184_v17  ;;  %v9360_v28 = vpop.f32.mrb[27].mxu1  ;;  %7754 = vmatprep.subr.bf16.mxu1 %v10187_v19  ;;  %v10241_v17 = vld [vmem:[%s13994_s5 + $0xf4] ss:$8 sps:$4 sm:$0xff]   ;;  %v10239_v21 = vld [vmem:[%s13994_s5 + $0xf0] ss:$8 sps:$4 sm:$0xff]  }
 0x1bd   : > { %v12397_v31 = vadd.f32 %v9360_v28, %v9359_v25  ;;  %v10247_v25 = vld [vmem:[%s13994_s5 + $0x104] ss:$8 sps:$4 sm:$0xff]  }
 0x1be   : > { %v10242_v28 = vld [vmem:[%s13990_s1 + $0xb40] ss:$12 sps:$4 sm:$0xff]  }
 0x1bf   : > { %5163 = vmatpush1.bf16.msra.mxu0 %v10182_v22  ;;  %7755 = vmatpush1.bf16.msra.mxu1 %v10185_v26  ;;  %v10244_v22 = vld [vmem:[%s13990_s1 + $0xb44] ss:$12 sps:$4 sm:$0xff]   ;;  %v12514_v26 = vld [vmem:[%s12287_s18 + $0x8] sm:$0xff] }
 0x1c0   : > { %5164 = vmatprep.subr.bf16.mxu0 %v10190_v27  ;;  %7756 = vmatprep.subr.bf16.mxu1 %v10193_v29  ;;  %v12517_v27 = vld [vmem:[%s12287_s18 + $0x48] sm:$0xff]  ;;  %v8910_v29 = vcombine.low %v12306_v51, %v12309_v52  ;;  %v10248_v51 = vld [vmem:[%s13990_s1 + $0xb58] ss:$12 sps:$4 sm:$0xff]  }
 0x1c1   : > { %v10251_v52 = vld [vmem:[%s13994_s5 + $0x110] ss:$8 sps:$4 sm:$0xff]  }
 0x1c3   : > { %5165 = vmatpush1.bf16.msra.mxu0 %v10188_v30  ;;  %7757 = vmatpush1.bf16.msra.mxu1 %v10191_v32  ;;  %v10245_v30 = vld [vmem:[%s13994_s5 + $0x100] ss:$8 sps:$4 sm:$0xff]  }
 0x1c4   : > { %5177 = vmatprep.subr.bf16.mxu0 %v10196_v33  ;;  %7758 = vmatprep.subr.bf16.mxu1 %v10199_v34  ;;  %v10250_v32 = vld [vmem:[%s13990_s1 + $0xb5c] ss:$12 sps:$4 sm:$0xff]   ;;  %v8913_v34 = vcombine.high %v12514_v26, %v12517_v27 }
 0x1c5   : > { %v10253_v33 = vld [vmem:[%s13994_s5 + $0x114] ss:$8 sps:$4 sm:$0xff]  }
 0x1c6   : > { %5167 = vmatmul.mubr.bf16.vlgmr.msra.gmra.mrb[0].mxu0 %v10889_v42  ;;  %v10262_v42 = vld [vmem:[%s13990_s1 + $0xb8c] ss:$12 sps:$4 sm:$0xff]  }
 0x1c7   : > { %5178 = vmatpush1.bf16.msra.mxu0 %v10194_v36  ;;  %5209 = vmatprep.mubr.bf16.mxu0 %v10890_v47  ;;  %v10256_v36 = vld [vmem:[%s13990_s1 + $0xb74] ss:$12 sps:$4 sm:$0xff]   ;;  %v10263_v47 = vld [vmem:[%s13994_s5 + $0x130] ss:$8 sps:$4 sm:$0xff]  }
 0x1c8   : > { %7759 = vmatpush1.bf16.msra.mxu1 %v10197_v38  ;;  %5179 = vmatprep.subr.bf16.mxu0 %v10202_v40  ;;  %v10259_v38 = vld [vmem:[%s13994_s5 + $0x124] ss:$8 sps:$4 sm:$0xff]   ;;  %v10254_v40 = vld [vmem:[%s13990_s1 + $0xb70] ss:$12 sps:$4 sm:$0xff]  }
 0x1c9   : > { %7760 = vmatprep.subr.bf16.mxu1 %v10205_v41  ;;  %v10257_v41 = vld [vmem:[%s13994_s5 + $0x120] ss:$8 sps:$4 sm:$0xff]  }
 0x1cb   : > { %5180 = vmatpush1.bf16.msra.mxu0 %v10200_v44  ;;  %v10265_v44 = vld [vmem:[%s13994_s5 + $0x134] ss:$8 sps:$4 sm:$0xff]  }
 0x1cc   : > { %7761 = vmatpush1.bf16.msra.mxu1 %v10203_v46  ;;  %5181 = vmatprep.subr.bf16.mxu0 %v10208_v48  ;;  %v10260_v46 = vld [vmem:[%s13990_s1 + $0xb88] ss:$12 sps:$4 sm:$0xff]   ;;  %v10268_v48 = vld [vmem:[%s13990_s1 + $0xba4] ss:$12 sps:$4 sm:$0xff]  }
 0x1cd   : > { %7762 = vmatprep.subr.bf16.mxu1 %v10211_v49  ;;  %v10271_v49 = vld [vmem:[%s13994_s5 + $0x144] ss:$8 sps:$4 sm:$0xff]  }
 0x1cf   : > { %5182 = vmatpush1.bf16.msra.mxu0 %v10206_v50  ;;  %v10266_v50 = vld [vmem:[%s13990_s1 + $0xba0] ss:$12 sps:$4 sm:$0xff]  }
 0x1d0   : > { %7763 = vmatpush1.bf16.msra.mxu1 %v10209_v53  ;;  %5183 = vmatprep.subr.bf16.mxu0 %v10214_v54  ;;  %v10269_v53 = vld [vmem:[%s13994_s5 + $0x140] ss:$8 sps:$4 sm:$0xff]  }
 0x1d1   : > { %7764 = vmatprep.subr.bf16.mxu1 %v10217_v55  ;;  %v10274_v54 = vld [vmem:[%s13990_s1 + $0xbbc] ss:$12 sps:$4 sm:$0xff]   ;;  %v10272_v55 = vld [vmem:[%s13990_s1 + $0xbb8] ss:$12 sps:$4 sm:$0xff]  }
 0x1d3   : > { %5184 = vmatpush1.bf16.msra.mxu0 %v10212_v56  ;;  %v10277_v56 = vld [vmem:[%s13994_s5 + $0x154] ss:$8 sps:$4 sm:$0xff]  }
 0x1d4   : > { %7765 = vmatpush1.bf16.msra.mxu1 %v10215_v57  ;;  %5185 = vmatprep.subr.bf16.mxu0 %v10220_v58  ;;  %v10275_v57 = vld [vmem:[%s13994_s5 + $0x150] ss:$8 sps:$4 sm:$0xff]   ;;  %v10280_v58 = vld [vmem:[%s13990_s1 + $0xbd4] ss:$12 sps:$4 sm:$0xff]  }
 0x1d5   : > { %7766 = vmatprep.subr.bf16.mxu1 %v10223_v59  ;;  %v10278_v59 = vld [vmem:[%s13990_s1 + $0xbd0] ss:$12 sps:$4 sm:$0xff]  }
 0x1d7   : > { %5186 = vmatpush1.bf16.msra.mxu0 %v10218_v61  ;;  %v10283_v61 = vld [vmem:[%s13994_s5 + $0x164] ss:$8 sps:$4 sm:$0xff]  }
 0x1d8   : > { %7767 = vmatpush1.bf16.msra.mxu1 %v10221_v63  ;;  %5187 = vmatprep.subr.bf16.mxu0 %v10226_v1  ;;  %v10281_v1 = vld [vmem:[%s13994_s5 + $0x160] ss:$8 sps:$4 sm:$0xff]  }
 0x1d9   : > { %7768 = vmatprep.subr.bf16.mxu1 %v10229_v3  ;;  %v9378_v9 = vpop.f32.mrb[28].mxu1  ;;  %v10286_v3 = vld [vmem:[%s13990_s1 + $0xbec] ss:$12 sps:$4 sm:$0xff]  }
 0x1da   : > { %v9379_v10 = vpop.f32.mrb[29].mxu1 }
 0x1db   : > { %5188 = vmatpush1.bf16.msra.mxu0 %v10224_v4  ;;  %v12491_v13 = vadd.f32 %v9379_v10, %v9378_v9  ;;  %v9381_v14 = vpop.f32.mrb[30].mxu1  ;;  %v10289_v9 = vld [vmem:[%s13994_s5 + $0x174] ss:$8 sps:$4 sm:$0xff]  }
 0x1dc   : > { %7769 = vmatpush1.bf16.msra.mxu1 %v10227_v5  ;;  %5189 = vmatprep.subr.bf16.mxu0 %v10232_v7  ;;  %v9382_v16 = vpop.f32.mrb[31].mxu1 }
 0x1dd   : > { %7770 = vmatprep.subr.bf16.mxu1 %v10235_v8  ;;  %v12499_v19 = vadd.f32 %v9382_v16, %v9381_v14  ;;  %v10292_v14 = vld [vmem:[%s13990_s1 + $0xc04] ss:$12 sps:$4 sm:$0xff]  }
 0x1de   : > { %v10295_v16 = vld [vmem:[%s13994_s5 + $0x184] ss:$8 sps:$4 sm:$0xff]  }
 0x1df   : > { %5190 = vmatpush1.bf16.msra.mxu0 %v10230_v11  ;;  %v10284_v11 = vld [vmem:[%s13990_s1 + $0xbe8] ss:$12 sps:$4 sm:$0xff]  }
 0x1e0   : > { %7771 = vmatpush1.bf16.msra.mxu1 %v10233_v12  ;;  %5191 = vmatprep.subr.bf16.mxu0 %v10238_v15  ;;  %v10287_v12 = vld [vmem:[%s13994_s5 + $0x170] ss:$8 sps:$4 sm:$0xff]   ;;  %v10290_v15 = vld [vmem:[%s13990_s1 + $0xc00] ss:$12 sps:$4 sm:$0xff]  }
 0x1e1   : > { %7772 = vmatprep.subr.bf16.mxu1 %v10241_v17  ;;  %v10293_v17 = vld [vmem:[%s13994_s5 + $0x180] ss:$8 sps:$4 sm:$0xff]  }
 0x1e3   : > { %5192 = vmatpush1.bf16.msra.mxu0 %v10236_v35  ;;  %v10298_v35 = vld [vmem:[%s13990_s1 + $0xc1c] ss:$12 sps:$4 sm:$0xff]  }
 0x1e4   : > { %7773 = vmatpush1.bf16.msra.mxu1 %v10239_v21  ;;  %5193 = vmatprep.subr.bf16.mxu0 %v10244_v22  ;;  %v10296_v21 = vld [vmem:[%s13990_s1 + $0xc18] ss:$12 sps:$4 sm:$0xff]   ;;  %v10301_v22 = vld [vmem:[%s13994_s5 + $0x194] ss:$8 sps:$4 sm:$0xff]  }
 0x1e5   : > { %7785 = vmatprep.subr.bf16.mxu1 %v10247_v25  ;;  %v10891_v25 = vld [vmem:[%s11061_s12 + $0x38] ss:$108 sps:$4 sm:$0xff]  }
 0x1e7   : > { %5194 = vmatpush1.bf16.msra.mxu0 %v10242_v28  ;;  %7775 = vmatmul.mubr.bf16.vlgmr.msra.gmra.mrb[52].mxu1 %v8910_v29  ;;  %v10892_v28 = vld [vmem:[%s11061_s12 + $0x44] ss:$108 sps:$4 sm:$0xff]  }
 0x1e8   : > { %7786 = vmatpush1.bf16.msra.mxu1 %v10245_v30  ;;  %5195 = vmatprep.subr.bf16.mxu0 %v10250_v32  ;;  %v10299_v29 = vld [vmem:[%s13994_s5 + $0x190] ss:$8 sps:$4 sm:$0xff]   ;;  %v10304_v30 = vld [vmem:[%s13990_s1 + $0xc34] ss:$12 sps:$4 sm:$0xff]  }
 0x1e9   : > { %7787 = vmatprep.subr.bf16.mxu1 %v10253_v33  ;;  %7817 = vmatprep.mubr.bf16.mxu1 %v8913_v34  ;;  %v10302_v32 = vld [vmem:[%s13990_s1 + $0xc30] ss:$12 sps:$4 sm:$0xff]   ;;  %v10307_v33 = vld [vmem:[%s13994_s5 + $0x1a4] ss:$8 sps:$4 sm:$0xff]   ;;  %v10305_v34 = vld [vmem:[%s13994_s5 + $0x1a0] ss:$8 sps:$4 sm:$0xff]  }
 0x1eb   : > { %5196 = vmatpush1.bf16.msra.mxu0 %v10248_v51  ;;  %v10310_v51 = vld [vmem:[%s13990_s1 + $0xc4c] ss:$12 sps:$4 sm:$0xff]  }
 0x1ec   : > { %7788 = vmatpush1.bf16.msra.mxu1 %v10251_v52  ;;  %5197 = vmatprep.subr.bf16.mxu0 %v10256_v36  ;;  %v10308_v52 = vld [vmem:[%s13990_s1 + $0xc48] ss:$12 sps:$4 sm:$0xff]  }
 0x1ed   : > { %7789 = vmatprep.subr.bf16.mxu1 %v10259_v38  ;;  %v10313_v36 = vld [vmem:[%s13994_s5 + $0x1b4] ss:$8 sps:$4 sm:$0xff]   ;;  %v10311_v38 = vld [vmem:[%s13994_s5 + $0x1b0] ss:$8 sps:$4 sm:$0xff]  }
 0x1ef   : > { %5198 = vmatpush1.bf16.msra.mxu0 %v10254_v40  ;;  %v10316_v40 = vld [vmem:[%s13990_s1 + $0xc64] ss:$12 sps:$4 sm:$0xff]  }
 0x1f0   : > { %7790 = vmatpush1.bf16.msra.mxu1 %v10257_v41  ;;  %5199 = vmatprep.subr.bf16.mxu0 %v10262_v42  ;;  %v10314_v41 = vld [vmem:[%s13990_s1 + $0xc60] ss:$12 sps:$4 sm:$0xff]  }
 0x1f1   : > { %7791 = vmatprep.subr.bf16.mxu1 %v10265_v44  ;;  %v10319_v42 = vld [vmem:[%s13994_s5 + $0x1c4] ss:$8 sps:$4 sm:$0xff]   ;;  %v10317_v44 = vld [vmem:[%s13994_s5 + $0x1c0] ss:$8 sps:$4 sm:$0xff]  }
 0x1f3   : > { %5200 = vmatpush1.bf16.msra.mxu0 %v10260_v46  ;;  %v10322_v46 = vld [vmem:[%s13990_s1 + $0xc7c] ss:$12 sps:$4 sm:$0xff]  }
 0x1f4   : > { %7792 = vmatpush1.bf16.msra.mxu1 %v10263_v47  ;;  %5201 = vmatprep.subr.bf16.mxu0 %v10268_v48  ;;  %v10320_v47 = vld [vmem:[%s13990_s1 + $0xc78] ss:$12 sps:$4 sm:$0xff]   ;;  %v10325_v48 = vld [vmem:[%s13994_s5 + $0x1d4] ss:$8 sps:$4 sm:$0xff]  }
 0x1f5   : > { %7793 = vmatprep.subr.bf16.mxu1 %v10271_v49  ;;  %v10323_v49 = vld [vmem:[%s13994_s5 + $0x1d0] ss:$8 sps:$4 sm:$0xff]  }
 0x1f7   : > { %5202 = vmatpush1.bf16.msra.mxu0 %v10266_v50  ;;  %v10328_v50 = vld [vmem:[%s13990_s1 + $0xc94] ss:$12 sps:$4 sm:$0xff]  }
 0x1f8   : > { %7794 = vmatpush1.bf16.msra.mxu1 %v10269_v53  ;;  %5203 = vmatprep.subr.bf16.mxu0 %v10274_v54  ;;  %v10326_v53 = vld [vmem:[%s13990_s1 + $0xc90] ss:$12 sps:$4 sm:$0xff]   ;;  %v10331_v54 = vld [vmem:[%s13994_s5 + $0x1e4] ss:$8 sps:$4 sm:$0xff]  }
 0x1f9   : > { %7795 = vmatprep.subr.bf16.mxu1 %v10277_v56  ;;  %v9400_v63 = vpop.f32.mrb[32].mxu1 }
 0x1fa   : > { %v9401_v4 = vpop.f32.mrb[33].mxu1 }
 0x1fb   : > { %5204 = vmatpush1.bf16.msra.mxu0 %v10272_v55  ;;  %v12604_v5 = vadd.f32 %v9401_v4, %v9400_v63  ;;  %v9403_v7 = vpop.f32.mrb[34].mxu1 }
 0x1fc   : > { %7796 = vmatpush1.bf16.msra.mxu1 %v10275_v57  ;;  %5205 = vmatprep.subr.bf16.mxu0 %v10280_v58  ;;  %v9404_v8 = vpop.f32.mrb[35].mxu1 }
 0x1fd   : > { %7797 = vmatprep.subr.bf16.mxu1 %v10283_v61  ;;  %v12609_v10 = vadd.f32 %v9404_v8, %v9403_v7  ;;  %v10334_v61 = vld [vmem:[%s13990_s1 + $0xcac] ss:$12 sps:$4 sm:$0xff]   ;;  %v10340_v8 = vld [vmem:[%s13990_s1 + $0xcc4] ss:$12 sps:$4 sm:$0xff]  }
 0x1fe   : > { %v10335_v7 = vld [vmem:[%s13994_s5 + $0x1f0] ss:$8 sps:$4 sm:$0xff]  }
 0x1ff   : > { %5206 = vmatpush1.bf16.msra.mxu0 %v10278_v59  ;;  %v10329_v59 = vld [vmem:[%s13994_s5 + $0x1e0] ss:$8 sps:$4 sm:$0xff]  }
 0x200   : > { %7798 = vmatpush1.bf16.msra.mxu1 %v10281_v1  ;;  %5207 = vmatprep.subr.bf16.mxu0 %v10286_v3  ;;  %v10332_v1 = vld [vmem:[%s13990_s1 + $0xca8] ss:$12 sps:$4 sm:$0xff]  }
 0x201   : > { %7799 = vmatprep.subr.bf16.mxu1 %v10289_v9  ;;  %v10337_v3 = vld [vmem:[%s13994_s5 + $0x1f4] ss:$8 sps:$4 sm:$0xff]   ;;  %v10343_v9 = vld [vmem:[%s13994_s5 + $0x204] ss:$8 sps:$4 sm:$0xff]  }
 0x203   : > { %5208 = vmatpush1.bf16.msra.mxu0 %v10284_v11  ;;  %v12726_v11 = vld [vmem:[%s12287_s18 + $0x10] sm:$0xff] }
 0x204   : > { %7800 = vmatpush1.bf16.msra.mxu1 %v10287_v12  ;;  %5220 = vmatprep.subr.bf16.mxu0 %v10292_v14  ;;  %v10338_v12 = vld [vmem:[%s13990_s1 + $0xcc0] ss:$12 sps:$4 sm:$0xff]   ;;  %v12732_v14 = vld [vmem:[%s12287_s18 + $0x50] sm:$0xff] }
 0x205   : > { %7801 = vmatprep.subr.bf16.mxu1 %v10295_v16  ;;  %v10341_v16 = vld [vmem:[%s13994_s5 + $0x200] ss:$8 sps:$4 sm:$0xff]  }
 0x206   : > { %5210 = vmatmul.mubr.bf16.vlgmr.msra.gmra.mrb[0].mxu0 %v10891_v25  ;;  %v10350_v25 = vld [vmem:[%s13990_s1 + $0xcf0] ss:$12 sps:$4 sm:$0xff]  }
 0x207   : > { %5221 = vmatpush1.bf16.msra.mxu0 %v10290_v15  ;;  %5252 = vmatprep.mubr.bf16.mxu0 %v10892_v28  ;;  %v8912_v15 = vcombine.low %v12514_v26, %v12517_v27  ;;  %v8915_v26 = vcombine.high %v12726_v11, %v12732_v14  ;;  %v10347_v27 = vld [vmem:[%s13994_s5 + $0x210] ss:$8 sps:$4 sm:$0xff]   ;;  %v10355_v28 = vld [vmem:[%s13994_s5 + $0x224] ss:$8 sps:$4 sm:$0xff]  }
 0x208   : > { %7802 = vmatpush1.bf16.msra.mxu1 %v10293_v17  ;;  %5222 = vmatprep.subr.bf16.mxu0 %v10298_v35  ;;  %v10346_v17 = vld [vmem:[%s13990_s1 + $0xcdc] ss:$12 sps:$4 sm:$0xff]   ;;  %v10344_v35 = vld [vmem:[%s13990_s1 + $0xcd8] ss:$12 sps:$4 sm:$0xff]  }
 0x209   : > { %7803 = vmatprep.subr.bf16.mxu1 %v10301_v22  ;;  %v10352_v22 = vld [vmem:[%s13990_s1 + $0xcf4] ss:$12 sps:$4 sm:$0xff]  }
 0x20b   : > { %5223 = vmatpush1.bf16.msra.mxu0 %v10296_v21  ;;  %v10349_v21 = vld [vmem:[%s13994_s5 + $0x214] ss:$8 sps:$4 sm:$0xff]  }
 0x20c   : > { %7804 = vmatpush1.bf16.msra.mxu1 %v10299_v29  ;;  %5224 = vmatprep.subr.bf16.mxu0 %v10304_v30  ;;  %v10353_v29 = vld [vmem:[%s13994_s5 + $0x220] ss:$8 sps:$4 sm:$0xff]   ;;  %v10358_v30 = vld [vmem:[%s13990_s1 + $0xd0c] ss:$12 sps:$4 sm:$0xff]  }
 0x20d   : > { %7805 = vmatprep.subr.bf16.mxu1 %v10307_v33  ;;  %v10361_v33 = vld [vmem:[%s13994_s5 + $0x234] ss:$8 sps:$4 sm:$0xff]  }
 0x20f   : > { %5225 = vmatpush1.bf16.msra.mxu0 %v10302_v32  ;;  %v10356_v32 = vld [vmem:[%s13990_s1 + $0xd08] ss:$12 sps:$4 sm:$0xff]  }
 0x210   : > { %7806 = vmatpush1.bf16.msra.mxu1 %v10305_v34  ;;  %5226 = vmatprep.subr.bf16.mxu0 %v10310_v51  ;;  %v10359_v34 = vld [vmem:[%s13994_s5 + $0x230] ss:$8 sps:$4 sm:$0xff]  }
 0x211   : > { %7807 = vmatprep.subr.bf16.mxu1 %v10313_v36  ;;  %v10364_v51 = vld [vmem:[%s13990_s1 + $0xd24] ss:$12 sps:$4 sm:$0xff]  }
 0x212   : > { %v10367_v36 = vld [vmem:[%s13994_s5 + $0x244] ss:$8 sps:$4 sm:$0xff]  }
 0x213   : > { %5227 = vmatpush1.bf16.msra.mxu0 %v10308_v52  ;;  %v10362_v52 = vld [vmem:[%s13990_s1 + $0xd20] ss:$12 sps:$4 sm:$0xff]  }
 0x214   : > { %7808 = vmatpush1.bf16.msra.mxu1 %v10311_v38  ;;  %5228 = vmatprep.subr.bf16.mxu0 %v10316_v40  ;;  %v10365_v38 = vld [vmem:[%s13994_s5 + $0x240] ss:$8 sps:$4 sm:$0xff]  }
 0x215   : > { %7809 = vmatprep.subr.bf16.mxu1 %v10319_v42  ;;  %v10370_v40 = vld [vmem:[%s13990_s1 + $0xd3c] ss:$12 sps:$4 sm:$0xff]  }
 0x216   : > { %v10373_v42 = vld [vmem:[%s13994_s5 + $0x254] ss:$8 sps:$4 sm:$0xff]  }
 0x217   : > { %5229 = vmatpush1.bf16.msra.mxu0 %v10314_v41  ;;  %v10368_v41 = vld [vmem:[%s13990_s1 + $0xd38] ss:$12 sps:$4 sm:$0xff]  }
 0x218   : > { %7810 = vmatpush1.bf16.msra.mxu1 %v10317_v44  ;;  %5230 = vmatprep.subr.bf16.mxu0 %v10322_v46  ;;  %v10371_v44 = vld [vmem:[%s13994_s5 + $0x250] ss:$8 sps:$4 sm:$0xff]   ;;  %v10376_v46 = vld [vmem:[%s13990_s1 + $0xd54] ss:$12 sps:$4 sm:$0xff]  }
 0x219   : > { %7811 = vmatprep.subr.bf16.mxu1 %v10325_v48  ;;  %v9422_v55 = vpop.f32.mrb[36].mxu1  ;;  %v10379_v48 = vld [vmem:[%s13994_s5 + $0x264] ss:$8 sps:$4 sm:$0xff]  }
 0x21a   : > { %v9423_v56 = vpop.f32.mrb[37].mxu1 }
 0x21b   : > { %5231 = vmatpush1.bf16.msra.mxu0 %v10320_v47  ;;  %v12700_v57 = vadd.f32 %v9423_v56, %v9422_v55  ;;  %v9425_v58 = vpop.f32.mrb[38].mxu1  ;;  %v10374_v47 = vld [vmem:[%s13990_s1 + $0xd50] ss:$12 sps:$4 sm:$0xff]   ;;  %v10377_v55 = vld [vmem:[%s13994_s5 + $0x260] ss:$8 sps:$4 sm:$0xff]  }
 0x21c   : > { %7812 = vmatpush1.bf16.msra.mxu1 %v10323_v49  ;;  %5232 = vmatprep.subr.bf16.mxu0 %v10328_v50  ;;  %v9426_v63 = vpop.f32.mrb[39].mxu1  ;;  %v10382_v56 = vld [vmem:[%s13990_s1 + $0xd6c] ss:$12 sps:$4 sm:$0xff]  }
 0x21d   : > { %7813 = vmatprep.subr.bf16.mxu1 %v10331_v54  ;;  %v12714_v4 = vadd.f32 %v9426_v63, %v9425_v58 }
 0x21f   : > { %5233 = vmatpush1.bf16.msra.mxu0 %v10326_v53 }
 0x220   : > { %7814 = vmatpush1.bf16.msra.mxu1 %v10329_v59  ;;  %5234 = vmatprep.subr.bf16.mxu0 %v10334_v61  ;;  %v10380_v59 = vld [vmem:[%s13990_s1 + $0xd68] ss:$12 sps:$4 sm:$0xff]  }
 0x221   : > { %7815 = vmatprep.subr.bf16.mxu1 %v10337_v3  ;;  %v10385_v61 = vld [vmem:[%s13994_s5 + $0x274] ss:$8 sps:$4 sm:$0xff]   ;;  %v10388_v3 = vld [vmem:[%s13990_s1 + $0xd84] ss:$12 sps:$4 sm:$0xff]  }
 0x223   : > { %5235 = vmatpush1.bf16.msra.mxu0 %v10332_v1  ;;  %v10383_v1 = vld [vmem:[%s13994_s5 + $0x270] ss:$8 sps:$4 sm:$0xff]  }
 0x224   : > { %7816 = vmatpush1.bf16.msra.mxu1 %v10335_v7  ;;  %5236 = vmatprep.subr.bf16.mxu0 %v10340_v8  ;;  %v10386_v7 = vld [vmem:[%s13990_s1 + $0xd80] ss:$12 sps:$4 sm:$0xff]  }
 0x225   : > { %7828 = vmatprep.subr.bf16.mxu1 %v10343_v9  ;;  %v10391_v8 = vld [vmem:[%s13994_s5 + $0x284] ss:$8 sps:$4 sm:$0xff]   ;;  %v10389_v9 = vld [vmem:[%s13994_s5 + $0x280] ss:$8 sps:$4 sm:$0xff]  }
 0x227   : > { %5237 = vmatpush1.bf16.msra.mxu0 %v10338_v12  ;;  %7818 = vmatmul.mubr.bf16.vlgmr.msra.gmra.mrb[52].mxu1 %v8912_v15  ;;  %v10394_v12 = vld [vmem:[%s13990_s1 + $0xd9c] ss:$12 sps:$4 sm:$0xff]   ;;  %v10392_v15 = vld [vmem:[%s13990_s1 + $0xd98] ss:$12 sps:$4 sm:$0xff]  }
 0x228   : > { %7829 = vmatpush1.bf16.msra.mxu1 %v10341_v16  ;;  %5238 = vmatprep.subr.bf16.mxu0 %v10346_v17  ;;  %v10397_v16 = vld [vmem:[%s13994_s5 + $0x294] ss:$8 sps:$4 sm:$0xff]   ;;  %v10893_v17 = vld [vmem:[%s11061_s12 + $0x40] ss:$108 sps:$4 sm:$0xff]  }
 0x229   : > { %7830 = vmatprep.subr.bf16.mxu1 %v10349_v21  ;;  %7860 = vmatprep.mubr.bf16.mxu1 %v8915_v26  ;;  %v10395_v21 = vld [vmem:[%s13994_s5 + $0x290] ss:$8 sps:$4 sm:$0xff]   ;;  %v10400_v26 = vld [vmem:[%s13990_s1 + $0xdb4] ss:$12 sps:$4 sm:$0xff]  }
 0x22b   : > { %5239 = vmatpush1.bf16.msra.mxu0 %v10344_v35  ;;  %v10894_v35 = vld [vmem:[%s11061_s12 + $0x4c] ss:$108 sps:$4 sm:$0xff]  }
 0x22c   : > { %7831 = vmatpush1.bf16.msra.mxu1 %v10347_v27  ;;  %5240 = vmatprep.subr.bf16.mxu0 %v10352_v22  ;;  %v10398_v27 = vld [vmem:[%s13990_s1 + $0xdb0] ss:$12 sps:$4 sm:$0xff]   ;;  %v10403_v22 = vld [vmem:[%s13994_s5 + $0x2a4] ss:$8 sps:$4 sm:$0xff]  }
 0x22d   : > { %7832 = vmatprep.subr.bf16.mxu1 %v10355_v28  ;;  %v10406_v28 = vld [vmem:[%s13990_s1 + $0xdcc] ss:$12 sps:$4 sm:$0xff]  }
 0x22f   : > { %5241 = vmatpush1.bf16.msra.mxu0 %v10350_v25  ;;  %v10401_v25 = vld [vmem:[%s13994_s5 + $0x2a0] ss:$8 sps:$4 sm:$0xff]  }
 0x230   : > { %7833 = vmatpush1.bf16.msra.mxu1 %v10353_v29  ;;  %5242 = vmatprep.subr.bf16.mxu0 %v10358_v30  ;;  %v10404_v29 = vld [vmem:[%s13990_s1 + $0xdc8] ss:$12 sps:$4 sm:$0xff]  }
 0x231   : > { %7834 = vmatprep.subr.bf16.mxu1 %v10361_v33  ;;  %v10409_v30 = vld [vmem:[%s13994_s5 + $0x2b4] ss:$8 sps:$4 sm:$0xff]   ;;  %v10412_v33 = vld [vmem:[%s13990_s1 + $0xde4] ss:$12 sps:$4 sm:$0xff]  }
 0x233   : > { %5243 = vmatpush1.bf16.msra.mxu0 %v10356_v32  ;;  %v10407_v32 = vld [vmem:[%s13994_s5 + $0x2b0] ss:$8 sps:$4 sm:$0xff]  }
 0x234   : > { %7835 = vmatpush1.bf16.msra.mxu1 %v10359_v34  ;;  %5244 = vmatprep.subr.bf16.mxu0 %v10364_v51  ;;  %v10410_v34 = vld [vmem:[%s13990_s1 + $0xde0] ss:$12 sps:$4 sm:$0xff]  }
 0x235   : > { %7836 = vmatprep.subr.bf16.mxu1 %v10367_v36  ;;  %v10415_v51 = vld [vmem:[%s13994_s5 + $0x2c4] ss:$8 sps:$4 sm:$0xff]   ;;  %v10418_v36 = vld [vmem:[%s13990_s1 + $0xdfc] ss:$12 sps:$4 sm:$0xff]  }
 0x237   : > { %5245 = vmatpush1.bf16.msra.mxu0 %v10362_v52  ;;  %v10413_v52 = vld [vmem:[%s13994_s5 + $0x2c0] ss:$8 sps:$4 sm:$0xff]  }
 0x238   : > { %7837 = vmatpush1.bf16.msra.mxu1 %v10365_v38  ;;  %5246 = vmatprep.subr.bf16.mxu0 %v10370_v40  ;;  %v10416_v38 = vld [vmem:[%s13990_s1 + $0xdf8] ss:$12 sps:$4 sm:$0xff]   ;;  %v10421_v40 = vld [vmem:[%s13994_s5 + $0x2d4] ss:$8 sps:$4 sm:$0xff]  }
 0x239   : > { %7838 = vmatprep.subr.bf16.mxu1 %v10373_v42  ;;  %v9444_v49 = vpop.f32.mrb[40].mxu1  ;;  %v10424_v42 = vld [vmem:[%s13990_s1 + $0xe14] ss:$12 sps:$4 sm:$0xff]  }
 0x23a   : > { %v9445_v50 = vpop.f32.mrb[41].mxu1 }
 0x23b   : > { %5247 = vmatpush1.bf16.msra.mxu0 %v10368_v41  ;;  %v12810_v53 = vadd.f32 %v9445_v50, %v9444_v49  ;;  %v9447_v54 = vpop.f32.mrb[42].mxu1  ;;  %v10419_v41 = vld [vmem:[%s13994_s5 + $0x2d0] ss:$8 sps:$4 sm:$0xff]  }
 0x23c   : > { %7839 = vmatpush1.bf16.msra.mxu1 %v10371_v44  ;;  %5248 = vmatprep.subr.bf16.mxu0 %v10376_v46  ;;  %v9448_v58 = vpop.f32.mrb[43].mxu1  ;;  %v10422_v44 = vld [vmem:[%s13990_s1 + $0xe10] ss:$12 sps:$4 sm:$0xff]   ;;  %v10427_v46 = vld [vmem:[%s13994_s5 + $0x2e4] ss:$8 sps:$4 sm:$0xff]  }
 0x23d   : > { %7840 = vmatprep.subr.bf16.mxu1 %v10379_v48  ;;  %v12824_v63 = vadd.f32 %v9448_v58, %v9447_v54  ;;  %v10425_v54 = vld [vmem:[%s13994_s5 + $0x2e0] ss:$8 sps:$4 sm:$0xff]  }
 0x23e   : > { %v10428_v58 = vld [vmem:[%s13990_s1 + $0xe28] ss:$12 sps:$4 sm:$0xff]  }
 0x23f   : > { %5249 = vmatpush1.bf16.msra.mxu0 %v10374_v47 }
 0x240   : > { %7841 = vmatpush1.bf16.msra.mxu1 %v10377_v55  ;;  %5250 = vmatprep.subr.bf16.mxu0 %v10382_v56  ;;  %v10430_v55 = vld [vmem:[%s13990_s1 + $0xe2c] ss:$12 sps:$4 sm:$0xff]  }
 0x241   : > { %7842 = vmatprep.subr.bf16.mxu1 %v10385_v61 }
 0x243   : > { %5251 = vmatpush1.bf16.msra.mxu0 %v10380_v59  ;;  %v10433_v59 = vld [vmem:[%s13994_s5 + $0x2f4] ss:$8 sps:$4 sm:$0xff]  }
 0x244   : > { %7843 = vmatpush1.bf16.msra.mxu1 %v10383_v1  ;;  %5263 = vmatprep.subr.bf16.mxu0 %v10388_v3  ;;  %v10431_v1 = vld [vmem:[%s13994_s5 + $0x2f0] ss:$8 sps:$4 sm:$0xff]  }
 0x245   : > { %7844 = vmatprep.subr.bf16.mxu1 %v10391_v8  ;;  %v10436_v3 = vld [vmem:[%s13990_s1 + $0xe44] ss:$12 sps:$4 sm:$0xff]   ;;  %v12938_v8 = vld [vmem:[%s12287_s18 + $0x18] sm:$0xff] }
 0x246   : > { %5253 = vmatmul.mubr.bf16.vlgmr.msra.gmra.mrb[0].mxu0 %v10893_v17  ;;  %v10442_v17 = vld [vmem:[%s13990_s1 + $0xe5c] ss:$12 sps:$4 sm:$0xff]  }
 0x247   : > { %5264 = vmatpush1.bf16.msra.mxu0 %v10386_v7  ;;  %5295 = vmatprep.mubr.bf16.mxu0 %v10894_v35  ;;  %v10439_v7 = vld [vmem:[%s13994_s5 + $0x304] ss:$8 sps:$4 sm:$0xff]  }
 0x248   : > { %7845 = vmatpush1.bf16.msra.mxu1 %v10389_v9  ;;  %5265 = vmatprep.subr.bf16.mxu0 %v10394_v12  ;;  %v10434_v9 = vld [vmem:[%s13990_s1 + $0xe40] ss:$12 sps:$4 sm:$0xff]   ;;  %v12944_v12 = vld [vmem:[%s12287_s18 + $0x58] sm:$0xff] }
 0x249   : > { %7846 = vmatprep.subr.bf16.mxu1 %v10397_v16  ;;  %v10437_v16 = vld [vmem:[%s13994_s5 + $0x300] ss:$8 sps:$4 sm:$0xff]   ;;  %v10440_v35 = vld [vmem:[%s13990_s1 + $0xe58] ss:$12 sps:$4 sm:$0xff]  }
 0x24b   : > { %5266 = vmatpush1.bf16.msra.mxu0 %v10392_v15  ;;  %v8914_v15 = vcombine.low %v12726_v11, %v12732_v14  ;;  %v8917_v11 = vcombine.high %v12938_v8, %v12944_v12  ;;  %v10443_v14 = vld [vmem:[%s13994_s5 + $0x310] ss:$8 sps:$4 sm:$0xff]  }
 0x24c   : > { %7847 = vmatpush1.bf16.msra.mxu1 %v10395_v21  ;;  %5267 = vmatprep.subr.bf16.mxu0 %v10400_v26  ;;  %v10445_v21 = vld [vmem:[%s13994_s5 + $0x314] ss:$8 sps:$4 sm:$0xff]  }
 0x24d   : > { %7848 = vmatprep.subr.bf16.mxu1 %v10403_v22  ;;  %v10448_v26 = vld [vmem:[%s13990_s1 + $0xe74] ss:$12 sps:$4 sm:$0xff]   ;;  %v10451_v22 = vld [vmem:[%s13994_s5 + $0x324] ss:$8 sps:$4 sm:$0xff]  }
 0x24f   : > { %5268 = vmatpush1.bf16.msra.mxu0 %v10398_v27  ;;  %v10446_v27 = vld [vmem:[%s13990_s1 + $0xe70] ss:$12 sps:$4 sm:$0xff]  }
 0x250   : > { %7849 = vmatpush1.bf16.msra.mxu1 %v10401_v25  ;;  %5269 = vmatprep.subr.bf16.mxu0 %v10406_v28  ;;  %v10449_v25 = vld [vmem:[%s13994_s5 + $0x320] ss:$8 sps:$4 sm:$0xff]   ;;  %v10454_v28 = vld [vmem:[%s13990_s1 + $0xe8c] ss:$12 sps:$4 sm:$0xff]  }
 0x251   : > { %7850 = vmatprep.subr.bf16.mxu1 %v10409_v30  ;;  %v10457_v30 = vld [vmem:[%s13994_s5 + $0x334] ss:$8 sps:$4 sm:$0xff]  }
 0x253   : > { %5270 = vmatpush1.bf16.msra.mxu0 %v10404_v29  ;;  %v10452_v29 = vld [vmem:[%s13990_s1 + $0xe88] ss:$12 sps:$4 sm:$0xff]  }
 0x254   : > { %7851 = vmatpush1.bf16.msra.mxu1 %v10407_v32  ;;  %5271 = vmatprep.subr.bf16.mxu0 %v10412_v33  ;;  %v10455_v32 = vld [vmem:[%s13994_s5 + $0x330] ss:$8 sps:$4 sm:$0xff]  }
 0x255   : > { %7852 = vmatprep.subr.bf16.mxu1 %v10415_v51  ;;  %v10460_v33 = vld [vmem:[%s13990_s1 + $0xea4] ss:$12 sps:$4 sm:$0xff]  }
 0x256   : > { %v10463_v51 = vld [vmem:[%s13994_s5 + $0x344] ss:$8 sps:$4 sm:$0xff]  }
 0x257   : > { %5272 = vmatpush1.bf16.msra.mxu0 %v10410_v34  ;;  %v10458_v34 = vld [vmem:[%s13990_s1 + $0xea0] ss:$12 sps:$4 sm:$0xff]  }
 0x258   : > { %7853 = vmatpush1.bf16.msra.mxu1 %v10413_v52  ;;  %5273 = vmatprep.subr.bf16.mxu0 %v10418_v36  ;;  %v10461_v52 = vld [vmem:[%s13994_s5 + $0x340] ss:$8 sps:$4 sm:$0xff]  }
 0x259   : > { %7854 = vmatprep.subr.bf16.mxu1 %v10421_v40  ;;  %v9466_v47 = vpop.f32.mrb[44].mxu1  ;;  %v10466_v36 = vld [vmem:[%s13990_s1 + $0xebc] ss:$12 sps:$4 sm:$0xff]   ;;  %v10464_v40 = vld [vmem:[%s13990_s1 + $0xeb8] ss:$12 sps:$4 sm:$0xff]  }
 0x25a   : > { %v9467_v48 = vpop.f32.mrb[45].mxu1 }
 0x25b   : > { %5274 = vmatpush1.bf16.msra.mxu0 %v10416_v38  ;;  %v12912_v49 = vadd.f32 %v9467_v48, %v9466_v47  ;;  %v9469_v50 = vpop.f32.mrb[46].mxu1  ;;  %v10469_v38 = vld [vmem:[%s13994_s5 + $0x354] ss:$8 sps:$4 sm:$0xff]  }
 0x25c   : > { %7855 = vmatpush1.bf16.msra.mxu1 %v10419_v41  ;;  %5275 = vmatprep.subr.bf16.mxu0 %v10424_v42  ;;  %v9470_v56 = vpop.f32.mrb[47].mxu1  ;;  %v10467_v41 = vld [vmem:[%s13994_s5 + $0x350] ss:$8 sps:$4 sm:$0xff]   ;;  %v10472_v42 = vld [vmem:[%s13990_s1 + $0xed4] ss:$12 sps:$4 sm:$0xff]  }
 0x25d   : > { %7856 = vmatprep.subr.bf16.mxu1 %v10427_v46  ;;  %v12926_v61 = vadd.f32 %v9470_v56, %v9469_v50  ;;  %v10475_v46 = vld [vmem:[%s13994_s5 + $0x364] ss:$8 sps:$4 sm:$0xff]  }
 0x25f   : > { %5276 = vmatpush1.bf16.msra.mxu0 %v10422_v44  ;;  %v10470_v44 = vld [vmem:[%s13990_s1 + $0xed0] ss:$12 sps:$4 sm:$0xff]  }
 0x260   : > { %7857 = vmatpush1.bf16.msra.mxu1 %v10425_v54  ;;  %5277 = vmatprep.subr.bf16.mxu0 %v10430_v55  ;;  %v10473_v54 = vld [vmem:[%s13994_s5 + $0x360] ss:$8 sps:$4 sm:$0xff]   ;;  %v10478_v55 = vld [vmem:[%s13990_s1 + $0xeec] ss:$12 sps:$4 sm:$0xff]  }
 0x261   : > { %7858 = vmatprep.subr.bf16.mxu1 %v10433_v59  ;;  %v10481_v59 = vld [vmem:[%s13994_s5 + $0x374] ss:$8 sps:$4 sm:$0xff]  }
 0x263   : > { %5278 = vmatpush1.bf16.msra.mxu0 %v10428_v58  ;;  %v10476_v58 = vld [vmem:[%s13990_s1 + $0xee8] ss:$12 sps:$4 sm:$0xff]  }
 0x264   : > { %7859 = vmatpush1.bf16.msra.mxu1 %v10431_v1  ;;  %5279 = vmatprep.subr.bf16.mxu0 %v10436_v3  ;;  %v10479_v1 = vld [vmem:[%s13994_s5 + $0x370] ss:$8 sps:$4 sm:$0xff]  }
 0x265   : > { %7871 = vmatprep.subr.bf16.mxu1 %v10439_v7  ;;  %v10484_v3 = vld [vmem:[%s13990_s1 + $0xf04] ss:$12 sps:$4 sm:$0xff]   ;;  %v10482_v7 = vld [vmem:[%s13990_s1 + $0xf00] ss:$12 sps:$4 sm:$0xff]  }
 0x267   : > { %5280 = vmatpush1.bf16.msra.mxu0 %v10434_v9  ;;  %7861 = vmatmul.mubr.bf16.vlgmr.msra.gmra.mrb[52].mxu1 %v8914_v15  ;;  %v10487_v9 = vld [vmem:[%s13994_s5 + $0x384] ss:$8 sps:$4 sm:$0xff]   ;;  %v10485_v15 = vld [vmem:[%s13994_s5 + $0x380] ss:$8 sps:$4 sm:$0xff]  }
 0x268   : > { %7872 = vmatpush1.bf16.msra.mxu1 %v10437_v16  ;;  %5281 = vmatprep.subr.bf16.mxu0 %v10442_v17  ;;  %v10490_v16 = vld [vmem:[%s13990_s1 + $0xf1c] ss:$12 sps:$4 sm:$0xff]   ;;  %v10488_v17 = vld [vmem:[%s13990_s1 + $0xf18] ss:$12 sps:$4 sm:$0xff]  }
 0x269   : > { %7873 = vmatprep.subr.bf16.mxu1 %v10445_v21  ;;  %7903 = vmatprep.mubr.bf16.mxu1 %v8917_v11  ;;  %v10895_v21 = vld [vmem:[%s11061_s12 + $0x48] ss:$108 sps:$4 sm:$0xff]  }
 0x26a   : > { %v10896_v11 = vld [vmem:[%s11061_s12 + $0x54] ss:$108 sps:$4 sm:$0xff]  }
 0x26b   : > { %5282 = vmatpush1.bf16.msra.mxu0 %v10440_v35  ;;  %v10493_v35 = vld [vmem:[%s13994_s5 + $0x394] ss:$8 sps:$4 sm:$0xff]  }
 0x26c   : > { %7874 = vmatpush1.bf16.msra.mxu1 %v10443_v14  ;;  %5283 = vmatprep.subr.bf16.mxu0 %v10448_v26  ;;  %v10491_v14 = vld [vmem:[%s13994_s5 + $0x390] ss:$8 sps:$4 sm:$0xff]   ;;  %v10496_v26 = vld [vmem:[%s13990_s1 + $0xf34] ss:$12 sps:$4 sm:$0xff]  }
 0x26d   : > { %7875 = vmatprep.subr.bf16.mxu1 %v10451_v22  ;;  %v10499_v22 = vld [vmem:[%s13994_s5 + $0x3a4] ss:$8 sps:$4 sm:$0xff]  }
 0x26f   : > { %5284 = vmatpush1.bf16.msra.mxu0 %v10446_v27  ;;  %v10494_v27 = vld [vmem:[%s13990_s1 + $0xf30] ss:$12 sps:$4 sm:$0xff]  }
 0x270   : > { %7876 = vmatpush1.bf16.msra.mxu1 %v10449_v25  ;;  %5285 = vmatprep.subr.bf16.mxu0 %v10454_v28  ;;  %v10497_v25 = vld [vmem:[%s13994_s5 + $0x3a0] ss:$8 sps:$4 sm:$0xff]   ;;  %v10502_v28 = vld [vmem:[%s13990_s1 + $0xf4c] ss:$12 sps:$4 sm:$0xff]  }
 0x271   : > { %7877 = vmatprep.subr.bf16.mxu1 %v10457_v30  ;;  %v10500_v30 = vld [vmem:[%s13990_s1 + $0xf48] ss:$12 sps:$4 sm:$0xff]  }
 0x273   : > { %5286 = vmatpush1.bf16.msra.mxu0 %v10452_v29  ;;  %v10505_v29 = vld [vmem:[%s13994_s5 + $0x3b4] ss:$8 sps:$4 sm:$0xff]  }
 0x274   : > { %7878 = vmatpush1.bf16.msra.mxu1 %v10455_v32  ;;  %5287 = vmatprep.subr.bf16.mxu0 %v10460_v33  ;;  %v10503_v32 = vld [vmem:[%s13994_s5 + $0x3b0] ss:$8 sps:$4 sm:$0xff]  }
 0x275   : > { %7879 = vmatprep.subr.bf16.mxu1 %v10463_v51  ;;  %v10508_v33 = vld [vmem:[%s13990_s1 + $0xf64] ss:$12 sps:$4 sm:$0xff]   ;;  %v10506_v51 = vld [vmem:[%s13990_s1 + $0xf60] ss:$12 sps:$4 sm:$0xff]  }
 0x277   : > { %5288 = vmatpush1.bf16.msra.mxu0 %v10458_v34  ;;  %v10511_v34 = vld [vmem:[%s13994_s5 + $0x3c4] ss:$8 sps:$4 sm:$0xff]  }
 0x278   : > { %7880 = vmatpush1.bf16.msra.mxu1 %v10461_v52  ;;  %5289 = vmatprep.subr.bf16.mxu0 %v10466_v36  ;;  %v10509_v52 = vld [vmem:[%s13994_s5 + $0x3c0] ss:$8 sps:$4 sm:$0xff]  }
 0x279   : > { %7881 = vmatprep.subr.bf16.mxu1 %v10469_v38  ;;  %v13022_v47 = vpop.f32.mrb[48].mxu1  ;;  %v10514_v36 = vld [vmem:[%s13990_s1 + $0xf7c] ss:$12 sps:$4 sm:$0xff]  }
 0x27a   : > { %v9499_v48 = vpop.f32.mrb[49].mxu1  ;;  %v10517_v38 = vld [vmem:[%s13994_s5 + $0x3d4] ss:$8 sps:$4 sm:$0xff]  }
 0x27b   : > { %5290 = vmatpush1.bf16.msra.mxu0 %v10464_v40  ;;  %v13024_v50 = vpop.f32.mrb[50].mxu1  ;;  %v10512_v40 = vld [vmem:[%s13990_s1 + $0xf78] ss:$12 sps:$4 sm:$0xff]   ;;  %v10521_v48 = vld [vmem:[%s13994_s5 + $0x3e0] ss:$8 sps:$4 sm:$0xff]  }
 0x27c   : > { %7882 = vmatpush1.bf16.msra.mxu1 %v10467_v41  ;;  %5291 = vmatprep.subr.bf16.mxu0 %v10472_v42  ;;  %v9500_v56 = vpop.f32.mrb[51].mxu1  ;;  %v10515_v41 = vld [vmem:[%s13994_s5 + $0x3d0] ss:$8 sps:$4 sm:$0xff]   ;;  %v10520_v42 = vld [vmem:[%s13990_s1 + $0xf94] ss:$12 sps:$4 sm:$0xff]  }
 0x27d   : > { %7883 = vmatprep.subr.bf16.mxu1 %v10475_v46  ;;  %v10518_v46 = vld [vmem:[%s13990_s1 + $0xf90] ss:$12 sps:$4 sm:$0xff]   ;;  %v10524_v56 = vld [vmem:[%s13990_s1 + $0xfa8] ss:$12 sps:$4 sm:$0xff]  }
 0x27f   : > { %5292 = vmatpush1.bf16.msra.mxu0 %v10470_v44  ;;  %v10523_v44 = vld [vmem:[%s13994_s5 + $0x3e4] ss:$8 sps:$4 sm:$0xff]  }
 0x280   : > { %7884 = vmatpush1.bf16.msra.mxu1 %v10473_v54  ;;  %5293 = vmatprep.subr.bf16.mxu0 %v10478_v55  ;;  %v10526_v54 = vld [vmem:[%s13990_s1 + $0xfac] ss:$12 sps:$4 sm:$0xff]   ;;  %v10529_v55 = vld [vmem:[%s13994_s5 + $0x3f4] ss:$8 sps:$4 sm:$0xff]  }
 0x281   : > { %7885 = vmatprep.subr.bf16.mxu1 %v10481_v59  ;;  %v10532_v59 = vld [vmem:[%s13990_s1 + $0xfc4] ss:$12 sps:$4 sm:$0xff]  }
 0x283   : > { %5294 = vmatpush1.bf16.msra.mxu0 %v10476_v58  ;;  %v10527_v58 = vld [vmem:[%s13994_s5 + $0x3f0] ss:$8 sps:$4 sm:$0xff]  }
 0x284   : > { %7886 = vmatpush1.bf16.msra.mxu1 %v10479_v1  ;;  %5306 = vmatprep.subr.bf16.mxu0 %v10484_v3  ;;  %v10535_v1 = vld [vmem:[%s13994_s5 + $0x404] ss:$8 sps:$4 sm:$0xff]  }
 0x285   : > { %7887 = vmatprep.subr.bf16.mxu1 %v10487_v9  ;;  %v13146_v3 = vld [vmem:[%s12287_s18 + $0x20] sm:$0xff] }
 0x286   : > { %5296 = vmatmul.mubr.bf16.vlgmr.msra.gmra.mrb[0].mxu0 %v10895_v21  ;;  %v10530_v9 = vld [vmem:[%s13990_s1 + $0xfc0] ss:$12 sps:$4 sm:$0xff]  }
 0x287   : > { %5307 = vmatpush1.bf16.msra.mxu0 %v10482_v7  ;;  %5338 = vmatprep.mubr.bf16.mxu0 %v10896_v11  ;;  %v13149_v7 = vld [vmem:[%s12287_s18 + $0x60] sm:$0xff] }
 0x288   : > { %7888 = vmatpush1.bf16.msra.mxu1 %v10485_v15  ;;  %5308 = vmatprep.subr.bf16.mxu0 %v10490_v16  ;;  %v8916_v15 = vcombine.low %v12938_v8, %v12944_v12  ;;  %v10533_v16 = vld [vmem:[%s13994_s5 + $0x400] ss:$8 sps:$4 sm:$0xff]   ;;  %v8919_v21 = vcombine.high %v13146_v3, %v13149_v7  ;;  %v10536_v8 = vld [vmem:[%s13990_s1 + $0xfd8] ss:$12 sps:$4 sm:$0xff]  }
 0x289   : > { %7889 = vmatprep.subr.bf16.mxu1 %v10493_v35  ;;  %v10541_v35 = vld [vmem:[%s13994_s5 + $0x414] ss:$8 sps:$4 sm:$0xff]   ;;  %v10539_v12 = vld [vmem:[%s13994_s5 + $0x410] ss:$8 sps:$4 sm:$0xff]  }
 0x28a   : > { %v10544_v11 = vld [vmem:[%s13990_s1 + $0xff4] ss:$12 sps:$4 sm:$0xff]  }
 0x28b   : > { %5309 = vmatpush1.bf16.msra.mxu0 %v10488_v17  ;;  %v10538_v17 = vld [vmem:[%s13990_s1 + $0xfdc] ss:$12 sps:$4 sm:$0xff]  }
 0x28c   : > { %7890 = vmatpush1.bf16.msra.mxu1 %v10491_v14  ;;  %5310 = vmatprep.subr.bf16.mxu0 %v10496_v26  ;;  %v10547_v14 = vld [vmem:[%s13994_s5 + $0x424] ss:$8 sps:$4 sm:$0xff]   ;;  %v10542_v26 = vld [vmem:[%s13990_s1 + $0xff0] ss:$12 sps:$4 sm:$0xff]  }
 0x28d   : > { %7891 = vmatprep.subr.bf16.mxu1 %v10499_v22  ;;  %v10550_v22 = vld [vmem:[%s13990_s1 + $0x100c] ss:$12 sps:$4 sm:$0xff]  }
 0x28f   : > { %5311 = vmatpush1.bf16.msra.mxu0 %v10494_v27  ;;  %v10545_v27 = vld [vmem:[%s13994_s5 + $0x420] ss:$8 sps:$4 sm:$0xff]  }
 0x290   : > { %7892 = vmatpush1.bf16.msra.mxu1 %v10497_v25  ;;  %5312 = vmatprep.subr.bf16.mxu0 %v10502_v28  ;;  %v10553_v25 = vld [vmem:[%s13994_s5 + $0x434] ss:$8 sps:$4 sm:$0xff]  }
 0x291   : > { %7893 = vmatprep.subr.bf16.mxu1 %v10505_v29  ;;  %v10548_v28 = vld [vmem:[%s13990_s1 + $0x1008] ss:$12 sps:$4 sm:$0xff]   ;;  %v10551_v29 = vld [vmem:[%s13994_s5 + $0x430] ss:$8 sps:$4 sm:$0xff]  }
 0x293   : > { %5313 = vmatpush1.bf16.msra.mxu0 %v10500_v30  ;;  %v10556_v30 = vld [vmem:[%s13990_s1 + $0x1024] ss:$12 sps:$4 sm:$0xff]  }
 0x294   : > { %7894 = vmatpush1.bf16.msra.mxu1 %v10503_v32  ;;  %5314 = vmatprep.subr.bf16.mxu0 %v10508_v33  ;;  %v10559_v32 = vld [vmem:[%s13994_s5 + $0x444] ss:$8 sps:$4 sm:$0xff]  }
 0x295   : > { %7895 = vmatprep.subr.bf16.mxu1 %v10511_v34  ;;  %v10554_v33 = vld [vmem:[%s13990_s1 + $0x1020] ss:$12 sps:$4 sm:$0xff]  }
 0x296   : > { %v10557_v34 = vld [vmem:[%s13994_s5 + $0x440] ss:$8 sps:$4 sm:$0xff]  }
 0x297   : > { %5315 = vmatpush1.bf16.msra.mxu0 %v10506_v51  ;;  %v10562_v51 = vld [vmem:[%s13990_s1 + $0x103c] ss:$12 sps:$4 sm:$0xff]  }
 0x298   : > { %7896 = vmatpush1.bf16.msra.mxu1 %v10509_v52  ;;  %5316 = vmatprep.subr.bf16.mxu0 %v10514_v36  ;;  %v10565_v52 = vld [vmem:[%s13994_s5 + $0x454] ss:$8 sps:$4 sm:$0xff]   ;;  %v10560_v36 = vld [vmem:[%s13990_s1 + $0x1038] ss:$12 sps:$4 sm:$0xff]  }
 0x299   : > { %7897 = vmatprep.subr.bf16.mxu1 %v10517_v38  ;;  %v10563_v38 = vld [vmem:[%s13994_s5 + $0x450] ss:$8 sps:$4 sm:$0xff]  }
 0x29b   : > { %5317 = vmatpush1.bf16.msra.mxu0 %v10512_v40  ;;  %v10568_v40 = vld [vmem:[%s13990_s1 + $0x1054] ss:$12 sps:$4 sm:$0xff]  }
 0x29c   : > { %7898 = vmatpush1.bf16.msra.mxu1 %v10515_v41  ;;  %5318 = vmatprep.subr.bf16.mxu0 %v10520_v42  ;;  %v10571_v41 = vld [vmem:[%s13994_s5 + $0x464] ss:$8 sps:$4 sm:$0xff]   ;;  %v10566_v42 = vld [vmem:[%s13990_s1 + $0x1050] ss:$12 sps:$4 sm:$0xff]  }
 0x29d   : > { %7899 = vmatprep.subr.bf16.mxu1 %v10523_v44  ;;  %v10569_v44 = vld [vmem:[%s13994_s5 + $0x460] ss:$8 sps:$4 sm:$0xff]  }
 0x29f   : > { %5319 = vmatpush1.bf16.msra.mxu0 %v10518_v46  ;;  %v10574_v46 = vld [vmem:[%s13990_s1 + $0x106c] ss:$12 sps:$4 sm:$0xff]  }
 0x2a0   : > { %7900 = vmatpush1.bf16.msra.mxu1 %v10521_v48  ;;  %5320 = vmatprep.subr.bf16.mxu0 %v10526_v54  ;;  %v10577_v48 = vld [vmem:[%s13994_s5 + $0x474] ss:$8 sps:$4 sm:$0xff]  }
 0x2a1   : > { %7901 = vmatprep.subr.bf16.mxu1 %v10529_v55  ;;  %v10572_v54 = vld [vmem:[%s13990_s1 + $0x1068] ss:$12 sps:$4 sm:$0xff]   ;;  %v10575_v55 = vld [vmem:[%s13994_s5 + $0x470] ss:$8 sps:$4 sm:$0xff]  }
 0x2a3   : > { %5321 = vmatpush1.bf16.msra.mxu0 %v10524_v56  ;;  %v10580_v56 = vld [vmem:[%s13990_s1 + $0x1084] ss:$12 sps:$4 sm:$0xff]  }
 0x2a4   : > { %7902 = vmatpush1.bf16.msra.mxu1 %v10527_v58  ;;  %5322 = vmatprep.subr.bf16.mxu0 %v10532_v59  ;;  %v10583_v58 = vld [vmem:[%s13994_s5 + $0x484] ss:$8 sps:$4 sm:$0xff]  }
 0x2a5   : > { %7914 = vmatprep.subr.bf16.mxu1 %v10535_v1  ;;  %v10578_v59 = vld [vmem:[%s13990_s1 + $0x1080] ss:$12 sps:$4 sm:$0xff]  }
 0x2a6   : > { %v10581_v1 = vld [vmem:[%s13994_s5 + $0x480] ss:$8 sps:$4 sm:$0xff]  }
 0x2a7   : > { %5323 = vmatpush1.bf16.msra.mxu0 %v10530_v9  ;;  %7904 = vmatmul.mubr.bf16.vlgmr.msra.gmra.mrb[52].mxu1 %v8916_v15  ;;  %v10586_v9 = vld [vmem:[%s13990_s1 + $0x109c] ss:$12 sps:$4 sm:$0xff]  }
 0x2a8   : > { %7915 = vmatpush1.bf16.msra.mxu1 %v10533_v16  ;;  %5324 = vmatprep.subr.bf16.mxu0 %v10538_v17  ;;  %v10589_v15 = vld [vmem:[%s13994_s5 + $0x494] ss:$8 sps:$4 sm:$0xff]   ;;  %v10584_v17 = vld [vmem:[%s13990_s1 + $0x1098] ss:$12 sps:$4 sm:$0xff]  }
 0x2a9   : > { %7916 = vmatprep.subr.bf16.mxu1 %v10541_v35  ;;  %7946 = vmatprep.mubr.bf16.mxu1 %v8919_v21  ;;  %v10897_v16 = vld [vmem:[%s11061_s12 + $0x50] ss:$108 sps:$4 sm:$0xff]  }
 0x2aa   : > { %v10898_v35 = vld [vmem:[%s11061_s12 + $0x5c] ss:$108 sps:$4 sm:$0xff]   ;;  %v10587_v21 = vld [vmem:[%s13994_s5 + $0x490] ss:$8 sps:$4 sm:$0xff]  }
 0x2ab   : > { %5325 = vmatpush1.bf16.msra.mxu0 %v10536_v8  ;;  %v10592_v8 = vld [vmem:[%s13990_s1 + $0x10b4] ss:$12 sps:$4 sm:$0xff]  }
 0x2ac   : > { %7917 = vmatpush1.bf16.msra.mxu1 %v10539_v12  ;;  %5326 = vmatprep.subr.bf16.mxu0 %v10544_v11  ;;  %v10595_v12 = vld [vmem:[%s13994_s5 + $0x4a4] ss:$8 sps:$4 sm:$0xff]   ;;  %v10590_v11 = vld [vmem:[%s13990_s1 + $0x10b0] ss:$12 sps:$4 sm:$0xff]  }
 0x2ad   : > { %7918 = vmatprep.subr.bf16.mxu1 %v10547_v14  ;;  %v10593_v14 = vld [vmem:[%s13994_s5 + $0x4a0] ss:$8 sps:$4 sm:$0xff]  }
 0x2af   : > { %5327 = vmatpush1.bf16.msra.mxu0 %v10542_v26  ;;  %v10598_v26 = vld [vmem:[%s13990_s1 + $0x10cc] ss:$12 sps:$4 sm:$0xff]  }
 0x2b0   : > { %7919 = vmatpush1.bf16.msra.mxu1 %v10545_v27  ;;  %5328 = vmatprep.subr.bf16.mxu0 %v10550_v22  ;;  %v10601_v27 = vld [vmem:[%s13994_s5 + $0x4b4] ss:$8 sps:$4 sm:$0xff]  }
 0x2b1   : > { %7920 = vmatprep.subr.bf16.mxu1 %v10553_v25  ;;  %v10596_v22 = vld [vmem:[%s13990_s1 + $0x10c8] ss:$12 sps:$4 sm:$0xff]   ;;  %v10599_v25 = vld [vmem:[%s13994_s5 + $0x4b0] ss:$8 sps:$4 sm:$0xff]  }
 0x2b3   : > { %5329 = vmatpush1.bf16.msra.mxu0 %v10548_v28  ;;  %v10604_v28 = vld [vmem:[%s13990_s1 + $0x10e4] ss:$12 sps:$4 sm:$0xff]  }
 0x2b4   : > { %7921 = vmatpush1.bf16.msra.mxu1 %v10551_v29  ;;  %5330 = vmatprep.subr.bf16.mxu0 %v10556_v30  ;;  %v10607_v29 = vld [vmem:[%s13994_s5 + $0x4c4] ss:$8 sps:$4 sm:$0xff]  }
 0x2b5   : > { %7922 = vmatprep.subr.bf16.mxu1 %v10559_v32  ;;  %v10602_v30 = vld [vmem:[%s13990_s1 + $0x10e0] ss:$12 sps:$4 sm:$0xff]  }
 0x2b6   : > { %v10605_v32 = vld [vmem:[%s13994_s5 + $0x4c0] ss:$8 sps:$4 sm:$0xff]  }
 0x2b7   : > { %5331 = vmatpush1.bf16.msra.mxu0 %v10554_v33  ;;  %v10610_v33 = vld [vmem:[%s13990_s1 + $0x10fc] ss:$12 sps:$4 sm:$0xff]  }
 0x2b8   : > { %7923 = vmatpush1.bf16.msra.mxu1 %v10557_v34  ;;  %5332 = vmatprep.subr.bf16.mxu0 %v10562_v51  ;;  %v10613_v34 = vld [vmem:[%s13994_s5 + $0x4d4] ss:$8 sps:$4 sm:$0xff]   ;;  %v10608_v51 = vld [vmem:[%s13990_s1 + $0x10f8] ss:$12 sps:$4 sm:$0xff]  }
 0x2b9   : > { %7924 = vmatprep.subr.bf16.mxu1 %v10565_v52  ;;  %v10611_v52 = vld [vmem:[%s13994_s5 + $0x4d0] ss:$8 sps:$4 sm:$0xff]  }
 0x2bb   : > { %5333 = vmatpush1.bf16.msra.mxu0 %v10560_v36  ;;  %v10616_v36 = vld [vmem:[%s13990_s1 + $0x1114] ss:$12 sps:$4 sm:$0xff]  }
 0x2bc   : > { %7925 = vmatpush1.bf16.msra.mxu1 %v10563_v38  ;;  %5334 = vmatprep.subr.bf16.mxu0 %v10568_v40  ;;  %v10619_v38 = vld [vmem:[%s13994_s5 + $0x4e4] ss:$8 sps:$4 sm:$0xff]   ;;  %v10614_v40 = vld [vmem:[%s13990_s1 + $0x1110] ss:$12 sps:$4 sm:$0xff]  }
 0x2bd   : > { %7926 = vmatprep.subr.bf16.mxu1 %v10571_v41  ;;  %v10617_v41 = vld [vmem:[%s13994_s5 + $0x4e0] ss:$8 sps:$4 sm:$0xff]  }
 0x2bf   : > { %5335 = vmatpush1.bf16.msra.mxu0 %v10566_v42  ;;  %v10622_v42 = vld [vmem:[%s13990_s1 + $0x112c] ss:$12 sps:$4 sm:$0xff]  }
 0x2c0   : > { %7927 = vmatpush1.bf16.msra.mxu1 %v10569_v44  ;;  %5336 = vmatprep.subr.bf16.mxu0 %v10574_v46  ;;  %v10625_v44 = vld [vmem:[%s13994_s5 + $0x4f4] ss:$8 sps:$4 sm:$0xff]  }
 0x2c1   : > { %7928 = vmatprep.subr.bf16.mxu1 %v10577_v48  ;;  %v10620_v46 = vld [vmem:[%s13990_s1 + $0x1128] ss:$12 sps:$4 sm:$0xff]   ;;  %v10623_v48 = vld [vmem:[%s13994_s5 + $0x4f0] ss:$8 sps:$4 sm:$0xff]  }
 0x2c3   : > { %5337 = vmatpush1.bf16.msra.mxu0 %v10572_v54  ;;  %v10628_v54 = vld [vmem:[%s13990_s1 + $0x1144] ss:$12 sps:$4 sm:$0xff]  }
 0x2c4   : > { %7929 = vmatpush1.bf16.msra.mxu1 %v10575_v55  ;;  %5349 = vmatprep.subr.bf16.mxu0 %v10580_v56  ;;  %v10631_v55 = vld [vmem:[%s13994_s5 + $0x504] ss:$8 sps:$4 sm:$0xff]  }
 0x2c5   : > { %7930 = vmatprep.subr.bf16.mxu1 %v10583_v58  ;;  %v13350_v56 = vld [vmem:[%s12287_s18 + $0x28] sm:$0xff] }
 0x2c6   : > { %5339 = vmatmul.mubr.bf16.vlgmr.msra.gmra.mrb[0].mxu0 %v10897_v16  ;;  %v13353_v58 = vld [vmem:[%s12287_s18 + $0x68] sm:$0xff]  ;;  %v10637_v16 = vld [vmem:[%s13994_s5 + $0x514] ss:$8 sps:$4 sm:$0xff]  }
 0x2c7   : > { %5350 = vmatpush1.bf16.msra.mxu0 %v10578_v59  ;;  %5381 = vmatprep.mubr.bf16.mxu0 %v10898_v35  ;;  %v10626_v59 = vld [vmem:[%s13990_s1 + $0x1140] ss:$12 sps:$4 sm:$0xff]  }
 0x2c8   : > { %7931 = vmatpush1.bf16.msra.mxu1 %v10581_v1  ;;  %5351 = vmatprep.subr.bf16.mxu0 %v10586_v9  ;;  %v8918_v1 = vcombine.low %v13146_v3, %v13149_v7  ;;  %v10629_v9 = vld [vmem:[%s13994_s5 + $0x500] ss:$8 sps:$4 sm:$0xff]   ;;  %v10632_v3 = vld [vmem:[%s13990_s1 + $0x1158] ss:$12 sps:$4 sm:$0xff]  }
 0x2c9   : > { %7932 = vmatprep.subr.bf16.mxu1 %v10589_v15  ;;  %v10634_v15 = vld [vmem:[%s13990_s1 + $0x115c] ss:$12 sps:$4 sm:$0xff]   ;;  %v10635_v7 = vld [vmem:[%s13994_s5 + $0x510] ss:$8 sps:$4 sm:$0xff]   ;;  %v10640_v35 = vld [vmem:[%s13990_s1 + $0x1174] ss:$12 sps:$4 sm:$0xff]  }
 0x2cb   : > { %5352 = vmatpush1.bf16.msra.mxu0 %v10584_v17  ;;  %v8921_v17 = vcombine.high %v13350_v56, %v13353_v58 }
 0x2cc   : > { %7933 = vmatpush1.bf16.msra.mxu1 %v10587_v21  ;;  %5353 = vmatprep.subr.bf16.mxu0 %v10592_v8  ;;  %v10643_v21 = vld [vmem:[%s13994_s5 + $0x524] ss:$8 sps:$4 sm:$0xff]   ;;  %v10638_v8 = vld [vmem:[%s13990_s1 + $0x1170] ss:$12 sps:$4 sm:$0xff]  }
 0x2cd   : > { %7934 = vmatprep.subr.bf16.mxu1 %v10595_v12  ;;  %v10641_v12 = vld [vmem:[%s13994_s5 + $0x520] ss:$8 sps:$4 sm:$0xff]  }
 0x2cf   : > { %5354 = vmatpush1.bf16.msra.mxu0 %v10590_v11  ;;  %v10646_v11 = vld [vmem:[%s13990_s1 + $0x118c] ss:$12 sps:$4 sm:$0xff]  }
 0x2d0   : > { %7935 = vmatpush1.bf16.msra.mxu1 %v10593_v14  ;;  %5355 = vmatprep.subr.bf16.mxu0 %v10598_v26  ;;  %v10649_v14 = vld [vmem:[%s13994_s5 + $0x534] ss:$8 sps:$4 sm:$0xff]  }
 0x2d1   : > { %7936 = vmatprep.subr.bf16.mxu1 %v10601_v27  ;;  %v10644_v26 = vld [vmem:[%s13990_s1 + $0x1188] ss:$12 sps:$4 sm:$0xff]   ;;  %v10647_v27 = vld [vmem:[%s13994_s5 + $0x530] ss:$8 sps:$4 sm:$0xff]  }
 0x2d3   : > { %5356 = vmatpush1.bf16.msra.mxu0 %v10596_v22  ;;  %v10652_v22 = vld [vmem:[%s13990_s1 + $0x11a4] ss:$12 sps:$4 sm:$0xff]  }
 0x2d4   : > { %7937 = vmatpush1.bf16.msra.mxu1 %v10599_v25  ;;  %5357 = vmatprep.subr.bf16.mxu0 %v10604_v28  ;;  %v10655_v25 = vld [vmem:[%s13994_s5 + $0x544] ss:$8 sps:$4 sm:$0xff]  }
 0x2d5   : > { %7938 = vmatprep.subr.bf16.mxu1 %v10607_v29  ;;  %v10650_v28 = vld [vmem:[%s13990_s1 + $0x11a0] ss:$12 sps:$4 sm:$0xff]  }
 0x2d6   : > { %v10653_v29 = vld [vmem:[%s13994_s5 + $0x540] ss:$8 sps:$4 sm:$0xff]  }
 0x2d7   : > { %5358 = vmatpush1.bf16.msra.mxu0 %v10602_v30  ;;  %v10658_v30 = vld [vmem:[%s13990_s1 + $0x11bc] ss:$12 sps:$4 sm:$0xff]  }
 0x2d8   : > { %7939 = vmatpush1.bf16.msra.mxu1 %v10605_v32  ;;  %5359 = vmatprep.subr.bf16.mxu0 %v10610_v33  ;;  %v10661_v32 = vld [vmem:[%s13994_s5 + $0x554] ss:$8 sps:$4 sm:$0xff]   ;;  %v10656_v33 = vld [vmem:[%s13990_s1 + $0x11b8] ss:$12 sps:$4 sm:$0xff]  }
 0x2d9   : > { %7940 = vmatprep.subr.bf16.mxu1 %v10613_v34  ;;  %v10659_v34 = vld [vmem:[%s13994_s5 + $0x550] ss:$8 sps:$4 sm:$0xff]  }
 0x2db   : > { %5360 = vmatpush1.bf16.msra.mxu0 %v10608_v51  ;;  %v10664_v51 = vld [vmem:[%s13990_s1 + $0x11d4] ss:$12 sps:$4 sm:$0xff]  }
 0x2dc   : > { %7941 = vmatpush1.bf16.msra.mxu1 %v10611_v52  ;;  %5361 = vmatprep.subr.bf16.mxu0 %v10616_v36  ;;  %v10667_v52 = vld [vmem:[%s13994_s5 + $0x564] ss:$8 sps:$4 sm:$0xff]   ;;  %v10662_v36 = vld [vmem:[%s13990_s1 + $0x11d0] ss:$12 sps:$4 sm:$0xff]  }
 0x2dd   : > { %7942 = vmatprep.subr.bf16.mxu1 %v10619_v38  ;;  %v10665_v38 = vld [vmem:[%s13994_s5 + $0x560] ss:$8 sps:$4 sm:$0xff]  }
 0x2df   : > { %5362 = vmatpush1.bf16.msra.mxu0 %v10614_v40  ;;  %v10670_v40 = vld [vmem:[%s13990_s1 + $0x11ec] ss:$12 sps:$4 sm:$0xff]  }
 0x2e0   : > { %7943 = vmatpush1.bf16.msra.mxu1 %v10617_v41  ;;  %5363 = vmatprep.subr.bf16.mxu0 %v10622_v42  ;;  %v10673_v41 = vld [vmem:[%s13994_s5 + $0x574] ss:$8 sps:$4 sm:$0xff]  }
 0x2e1   : > { %7944 = vmatprep.subr.bf16.mxu1 %v10625_v44  ;;  %v10668_v42 = vld [vmem:[%s13990_s1 + $0x11e8] ss:$12 sps:$4 sm:$0xff]   ;;  %v10671_v44 = vld [vmem:[%s13994_s5 + $0x570] ss:$8 sps:$4 sm:$0xff]  }
 0x2e3   : > { %5364 = vmatpush1.bf16.msra.mxu0 %v10620_v46  ;;  %v10676_v46 = vld [vmem:[%s13990_s1 + $0x1204] ss:$12 sps:$4 sm:$0xff]  }
 0x2e4   : > { %7945 = vmatpush1.bf16.msra.mxu1 %v10623_v48  ;;  %5365 = vmatprep.subr.bf16.mxu0 %v10628_v54  ;;  %v10679_v48 = vld [vmem:[%s13994_s5 + $0x584] ss:$8 sps:$4 sm:$0xff]  }
 0x2e5   : > { %7957 = vmatprep.subr.bf16.mxu1 %v10631_v55  ;;  %v10674_v54 = vld [vmem:[%s13990_s1 + $0x1200] ss:$12 sps:$4 sm:$0xff]  }
 0x2e6   : > { %v10677_v55 = vld [vmem:[%s13994_s5 + $0x580] ss:$8 sps:$4 sm:$0xff]  }
 0x2e7   : > { %5366 = vmatpush1.bf16.msra.mxu0 %v10626_v59  ;;  %7947 = vmatmul.mubr.bf16.vlgmr.msra.gmra.mrb[52].mxu1 %v8918_v1  ;;  %v10682_v59 = vld [vmem:[%s13990_s1 + $0x121c] ss:$12 sps:$4 sm:$0xff]  }
 0x2e8   : > { %7958 = vmatpush1.bf16.msra.mxu1 %v10629_v9  ;;  %5367 = vmatprep.subr.bf16.mxu0 %v10634_v15  ;;  %v10685_v1 = vld [vmem:[%s13994_s5 + $0x594] ss:$8 sps:$4 sm:$0xff]   ;;  %v10899_v9 = vld [vmem:[%s11061_s12 + $0x58] ss:$108 sps:$4 sm:$0xff]  }
 0x2e9   : > { %7959 = vmatprep.subr.bf16.mxu1 %v10637_v16  ;;  %7989 = vmatprep.mubr.bf16.mxu1 %v8921_v17  ;;  %v10680_v15 = vld [vmem:[%s13990_s1 + $0x1218] ss:$12 sps:$4 sm:$0xff]  }
 0x2ea   : > { %v10900_v16 = vld [vmem:[%s11061_s12 + $0x64] ss:$108 sps:$4 sm:$0xff]  }
 0x2eb   : > { %5368 = vmatpush1.bf16.msra.mxu0 %v10632_v3  ;;  %v10683_v17 = vld [vmem:[%s13994_s5 + $0x590] ss:$8 sps:$4 sm:$0xff]   ;;  %v10688_v3 = vld [vmem:[%s13990_s1 + $0x1234] ss:$12 sps:$4 sm:$0xff]  }
 0x2ec   : > { %7960 = vmatpush1.bf16.msra.mxu1 %v10635_v7  ;;  %5369 = vmatprep.subr.bf16.mxu0 %v10640_v35  ;;  %v10691_v7 = vld [vmem:[%s13994_s5 + $0x5a4] ss:$8 sps:$4 sm:$0xff]   ;;  %v10686_v35 = vld [vmem:[%s13990_s1 + $0x1230] ss:$12 sps:$4 sm:$0xff]  }
 0x2ed   : > { %7961 = vmatprep.subr.bf16.mxu1 %v10643_v21  ;;  %v10689_v21 = vld [vmem:[%s13994_s5 + $0x5a0] ss:$8 sps:$4 sm:$0xff]  }
 0x2ef   : > { %5370 = vmatpush1.bf16.msra.mxu0 %v10638_v8  ;;  %v10694_v8 = vld [vmem:[%s13990_s1 + $0x124c] ss:$12 sps:$4 sm:$0xff]  }
 0x2f0   : > { %7962 = vmatpush1.bf16.msra.mxu1 %v10641_v12  ;;  %5371 = vmatprep.subr.bf16.mxu0 %v10646_v11  ;;  %v10697_v12 = vld [vmem:[%s13994_s5 + $0x5b4] ss:$8 sps:$4 sm:$0xff]  }
 0x2f1   : > { %7963 = vmatprep.subr.bf16.mxu1 %v10649_v14  ;;  %v10692_v11 = vld [vmem:[%s13990_s1 + $0x1248] ss:$12 sps:$4 sm:$0xff]   ;;  %v10695_v14 = vld [vmem:[%s13994_s5 + $0x5b0] ss:$8 sps:$4 sm:$0xff]  }
 0x2f3   : > { %5372 = vmatpush1.bf16.msra.mxu0 %v10644_v26  ;;  %v10700_v26 = vld [vmem:[%s13990_s1 + $0x1264] ss:$12 sps:$4 sm:$0xff]  }
 0x2f4   : > { %7964 = vmatpush1.bf16.msra.mxu1 %v10647_v27  ;;  %5373 = vmatprep.subr.bf16.mxu0 %v10652_v22  ;;  %v10703_v27 = vld [vmem:[%s13994_s5 + $0x5c4] ss:$8 sps:$4 sm:$0xff]  }
 0x2f5   : > { %7965 = vmatprep.subr.bf16.mxu1 %v10655_v25  ;;  %v10698_v22 = vld [vmem:[%s13990_s1 + $0x1260] ss:$12 sps:$4 sm:$0xff]  }
 0x2f6   : > { %v10701_v25 = vld [vmem:[%s13994_s5 + $0x5c0] ss:$8 sps:$4 sm:$0xff]  }
 0x2f7   : > { %5374 = vmatpush1.bf16.msra.mxu0 %v10650_v28  ;;  %v10706_v28 = vld [vmem:[%s13990_s1 + $0x127c] ss:$12 sps:$4 sm:$0xff]  }
 0x2f8   : > { %7966 = vmatpush1.bf16.msra.mxu1 %v10653_v29  ;;  %5375 = vmatprep.subr.bf16.mxu0 %v10658_v30  ;;  %v10709_v29 = vld [vmem:[%s13994_s5 + $0x5d4] ss:$8 sps:$4 sm:$0xff]   ;;  %v10704_v30 = vld [vmem:[%s13990_s1 + $0x1278] ss:$12 sps:$4 sm:$0xff]  }
 0x2f9   : > { %7967 = vmatprep.subr.bf16.mxu1 %v10661_v32  ;;  %v10707_v32 = vld [vmem:[%s13994_s5 + $0x5d0] ss:$8 sps:$4 sm:$0xff]  }
 0x2fb   : > { %5376 = vmatpush1.bf16.msra.mxu0 %v10656_v33  ;;  %v10712_v33 = vld [vmem:[%s13990_s1 + $0x1294] ss:$12 sps:$4 sm:$0xff]  }
 0x2fc   : > { %7968 = vmatpush1.bf16.msra.mxu1 %v10659_v34  ;;  %5377 = vmatprep.subr.bf16.mxu0 %v10664_v51  ;;  %v10715_v34 = vld [vmem:[%s13994_s5 + $0x5e4] ss:$8 sps:$4 sm:$0xff]   ;;  %v10710_v51 = vld [vmem:[%s13990_s1 + $0x1290] ss:$12 sps:$4 sm:$0xff]  }
 0x2fd   : > { %7969 = vmatprep.subr.bf16.mxu1 %v10667_v52  ;;  %v10713_v52 = vld [vmem:[%s13994_s5 + $0x5e0] ss:$8 sps:$4 sm:$0xff]  }
 0x2ff   : > { %5378 = vmatpush1.bf16.msra.mxu0 %v10662_v36  ;;  %v10718_v36 = vld [vmem:[%s13990_s1 + $0x12ac] ss:$12 sps:$4 sm:$0xff]  }
 0x300   : > { %7970 = vmatpush1.bf16.msra.mxu1 %v10665_v38  ;;  %5379 = vmatprep.subr.bf16.mxu0 %v10670_v40  ;;  %v10721_v38 = vld [vmem:[%s13994_s5 + $0x5f4] ss:$8 sps:$4 sm:$0xff]  }
 0x301   : > { %7971 = vmatprep.subr.bf16.mxu1 %v10673_v41  ;;  %v10716_v40 = vld [vmem:[%s13990_s1 + $0x12a8] ss:$12 sps:$4 sm:$0xff]   ;;  %v10719_v41 = vld [vmem:[%s13994_s5 + $0x5f0] ss:$8 sps:$4 sm:$0xff]  }
 0x303   : > { %5380 = vmatpush1.bf16.msra.mxu0 %v10668_v42  ;;  %v10724_v42 = vld [vmem:[%s13990_s1 + $0x12c4] ss:$12 sps:$4 sm:$0xff]  }
 0x304   : > { %7972 = vmatpush1.bf16.msra.mxu1 %v10671_v44  ;;  %5392 = vmatprep.subr.bf16.mxu0 %v10676_v46  ;;  %v10727_v44 = vld [vmem:[%s13994_s5 + $0x604] ss:$8 sps:$4 sm:$0xff]   ;;  %v13554_v46 = vld [vmem:[%s12287_s18 + $0x30] sm:$0xff] }
 0x305   : > { %7973 = vmatprep.subr.bf16.mxu1 %v10679_v48  ;;  %v13557_v48 = vld [vmem:[%s12287_s18 + $0x70] sm:$0xff] }
 0x306   : > { %5382 = vmatmul.mubr.bf16.vlgmr.msra.gmra.mrb[0].mxu0 %v10899_v9  ;;  %v10733_v9 = vld [vmem:[%s13994_s5 + $0x614] ss:$8 sps:$4 sm:$0xff]  }
 0x307   : > { %5393 = vmatpush1.bf16.msra.mxu0 %v10674_v54  ;;  %5424 = vmatprep.mubr.bf16.mxu0 %v10900_v16  ;;  %v10722_v54 = vld [vmem:[%s13990_s1 + $0x12c0] ss:$12 sps:$4 sm:$0xff]  }
 0x308   : > { %7974 = vmatpush1.bf16.msra.mxu1 %v10677_v55  ;;  %5394 = vmatprep.subr.bf16.mxu0 %v10682_v59  ;;  %v8920_v55 = vcombine.low %v13350_v56, %v13353_v58  ;;  %v10725_v59 = vld [vmem:[%s13994_s5 + $0x600] ss:$8 sps:$4 sm:$0xff]   ;;  %v10728_v56 = vld [vmem:[%s13990_s1 + $0x12d8] ss:$12 sps:$4 sm:$0xff]  }
 0x309   : > { %7975 = vmatprep.subr.bf16.mxu1 %v10685_v1  ;;  %v10730_v1 = vld [vmem:[%s13990_s1 + $0x12dc] ss:$12 sps:$4 sm:$0xff]   ;;  %v10731_v58 = vld [vmem:[%s13994_s5 + $0x610] ss:$8 sps:$4 sm:$0xff]   ;;  %v10736_v16 = vld [vmem:[%s13990_s1 + $0x12f4] ss:$12 sps:$4 sm:$0xff]  }
 0x30b   : > { %5395 = vmatpush1.bf16.msra.mxu0 %v10680_v15  ;;  %v8923_v15 = vcombine.high %v13554_v46, %v13557_v48 }
 0x30c   : > { %7976 = vmatpush1.bf16.msra.mxu1 %v10683_v17  ;;  %5396 = vmatprep.subr.bf16.mxu0 %v10688_v3  ;;  %v10739_v17 = vld [vmem:[%s13994_s5 + $0x624] ss:$8 sps:$4 sm:$0xff]   ;;  %v10734_v3 = vld [vmem:[%s13990_s1 + $0x12f0] ss:$12 sps:$4 sm:$0xff]  }
 0x30d   : > { %7977 = vmatprep.subr.bf16.mxu1 %v10691_v7  ;;  %v10737_v7 = vld [vmem:[%s13994_s5 + $0x620] ss:$8 sps:$4 sm:$0xff]  }
 0x30f   : > { %5397 = vmatpush1.bf16.msra.mxu0 %v10686_v35  ;;  %v10742_v35 = vld [vmem:[%s13990_s1 + $0x130c] ss:$12 sps:$4 sm:$0xff]  }
 0x310   : > { %7978 = vmatpush1.bf16.msra.mxu1 %v10689_v21  ;;  %5398 = vmatprep.subr.bf16.mxu0 %v10694_v8  ;;  %v10745_v21 = vld [vmem:[%s13994_s5 + $0x634] ss:$8 sps:$4 sm:$0xff]  }
 0x311   : > { %7979 = vmatprep.subr.bf16.mxu1 %v10697_v12  ;;  %v10740_v8 = vld [vmem:[%s13990_s1 + $0x1308] ss:$12 sps:$4 sm:$0xff]   ;;  %v10743_v12 = vld [vmem:[%s13994_s5 + $0x630] ss:$8 sps:$4 sm:$0xff]  }
 0x313   : > { %5399 = vmatpush1.bf16.msra.mxu0 %v10692_v11  ;;  %v10748_v11 = vld [vmem:[%s13990_s1 + $0x1324] ss:$12 sps:$4 sm:$0xff]  }
 0x314   : > { %7980 = vmatpush1.bf16.msra.mxu1 %v10695_v14  ;;  %5400 = vmatprep.subr.bf16.mxu0 %v10700_v26  ;;  %v10751_v14 = vld [vmem:[%s13994_s5 + $0x644] ss:$8 sps:$4 sm:$0xff]  }
 0x315   : > { %7981 = vmatprep.subr.bf16.mxu1 %v10703_v27  ;;  %v10746_v26 = vld [vmem:[%s13990_s1 + $0x1320] ss:$12 sps:$4 sm:$0xff]  }
 0x316   : > { %v10749_v27 = vld [vmem:[%s13994_s5 + $0x640] ss:$8 sps:$4 sm:$0xff]  }
 0x317   : > { %5401 = vmatpush1.bf16.msra.mxu0 %v10698_v22  ;;  %v10754_v22 = vld [vmem:[%s13990_s1 + $0x133c] ss:$12 sps:$4 sm:$0xff]  }
 0x318   : > { %7982 = vmatpush1.bf16.msra.mxu1 %v10701_v25  ;;  %5402 = vmatprep.subr.bf16.mxu0 %v10706_v28  ;;  %v10757_v25 = vld [vmem:[%s13994_s5 + $0x654] ss:$8 sps:$4 sm:$0xff]   ;;  %v10752_v28 = vld [vmem:[%s13990_s1 + $0x1338] ss:$12 sps:$4 sm:$0xff]  }
 0x319   : > { %7983 = vmatprep.subr.bf16.mxu1 %v10709_v29  ;;  %v10755_v29 = vld [vmem:[%s13994_s5 + $0x650] ss:$8 sps:$4 sm:$0xff]  }
 0x31b   : > { %5403 = vmatpush1.bf16.msra.mxu0 %v10704_v30  ;;  %v10760_v30 = vld [vmem:[%s13990_s1 + $0x1354] ss:$12 sps:$4 sm:$0xff]  }
 0x31c   : > { %7984 = vmatpush1.bf16.msra.mxu1 %v10707_v32  ;;  %5404 = vmatprep.subr.bf16.mxu0 %v10712_v33  ;;  %v10763_v32 = vld [vmem:[%s13994_s5 + $0x664] ss:$8 sps:$4 sm:$0xff]   ;;  %v10758_v33 = vld [vmem:[%s13990_s1 + $0x1350] ss:$12 sps:$4 sm:$0xff]  }
 0x31d   : > { %7985 = vmatprep.subr.bf16.mxu1 %v10715_v34  ;;  %v10761_v34 = vld [vmem:[%s13994_s5 + $0x660] ss:$8 sps:$4 sm:$0xff]  }
 0x31f   : > { %5405 = vmatpush1.bf16.msra.mxu0 %v10710_v51  ;;  %v10766_v51 = vld [vmem:[%s13990_s1 + $0x136c] ss:$12 sps:$4 sm:$0xff]  }
 0x320   : > { %7986 = vmatpush1.bf16.msra.mxu1 %v10713_v52  ;;  %5406 = vmatprep.subr.bf16.mxu0 %v10718_v36  ;;  %v10769_v52 = vld [vmem:[%s13994_s5 + $0x674] ss:$8 sps:$4 sm:$0xff]  }
 0x321   : > { %7987 = vmatprep.subr.bf16.mxu1 %v10721_v38  ;;  %v10764_v36 = vld [vmem:[%s13990_s1 + $0x1368] ss:$12 sps:$4 sm:$0xff]   ;;  %v10767_v38 = vld [vmem:[%s13994_s5 + $0x670] ss:$8 sps:$4 sm:$0xff]  }
 0x323   : > { %5407 = vmatpush1.bf16.msra.mxu0 %v10716_v40  ;;  %v10772_v40 = vld [vmem:[%s13990_s1 + $0x1384] ss:$12 sps:$4 sm:$0xff]  }
 0x324   : > { %7988 = vmatpush1.bf16.msra.mxu1 %v10719_v41  ;;  %5408 = vmatprep.subr.bf16.mxu0 %v10724_v42  ;;  %v10775_v41 = vld [vmem:[%s13994_s5 + $0x684] ss:$8 sps:$4 sm:$0xff]  }
 0x325   : > { %8000 = vmatprep.subr.bf16.mxu1 %v10727_v44  ;;  %v10770_v42 = vld [vmem:[%s13990_s1 + $0x1380] ss:$12 sps:$4 sm:$0xff]  }
 0x326   : > { %v10773_v44 = vld [vmem:[%s13994_s5 + $0x680] ss:$8 sps:$4 sm:$0xff]  }
 0x327   : > { %5409 = vmatpush1.bf16.msra.mxu0 %v10722_v54  ;;  %7990 = vmatmul.mubr.bf16.vlgmr.msra.gmra.mrb[52].mxu1 %v8920_v55  ;;  %v10778_v54 = vld [vmem:[%s13990_s1 + $0x139c] ss:$12 sps:$4 sm:$0xff]  }
 0x328   : > { %8001 = vmatpush1.bf16.msra.mxu1 %v10725_v59  ;;  %5410 = vmatprep.subr.bf16.mxu0 %v10730_v1  ;;  %v10781_v55 = vld [vmem:[%s13994_s5 + $0x694] ss:$8 sps:$4 sm:$0xff]   ;;  %v10901_v59 = vld [vmem:[%s11061_s12 + $0x60] ss:$108 sps:$4 sm:$0xff]   ;;  %v10776_v1 = vld [vmem:[%s13990_s1 + $0x1398] ss:$12 sps:$4 sm:$0xff]  }
 0x329   : > { %8002 = vmatprep.subr.bf16.mxu1 %v10733_v9  ;;  %8032 = vmatprep.mubr.bf16.mxu1 %v8923_v15  ;;  %v10915_v9 = vmov 0   ;;  %v10779_v15 = vld [vmem:[%s13994_s5 + $0x690] ss:$8 sps:$4 sm:$0xff]  }
 0x32b   : > { %5411 = vmatpush1.bf16.msra.mxu0 %v10728_v56  ;;  %v10784_v56 = vld [vmem:[%s13990_s1 + $0x13b4] ss:$12 sps:$4 sm:$0xff]  }
 0x32c   : > { %8003 = vmatpush1.bf16.msra.mxu1 %v10731_v58  ;;  %5412 = vmatprep.subr.bf16.mxu0 %v10736_v16  ;;  %v10787_v58 = vld [vmem:[%s13994_s5 + $0x6a4] ss:$8 sps:$4 sm:$0xff]   ;;  %v10782_v16 = vld [vmem:[%s13990_s1 + $0x13b0] ss:$12 sps:$4 sm:$0xff]  }
 0x32d   : > { %8004 = vmatprep.subr.bf16.mxu1 %v10739_v17  ;;  %v10785_v17 = vld [vmem:[%s13994_s5 + $0x6a0] ss:$8 sps:$4 sm:$0xff]  }
 0x32f   : > { %5413 = vmatpush1.bf16.msra.mxu0 %v10734_v3  ;;  %v10790_v3 = vld [vmem:[%s13990_s1 + $0x13cc] ss:$12 sps:$4 sm:$0xff]  }
 0x330   : > { %8005 = vmatpush1.bf16.msra.mxu1 %v10737_v7  ;;  %5414 = vmatprep.subr.bf16.mxu0 %v10742_v35  ;;  %v10793_v7 = vld [vmem:[%s13994_s5 + $0x6b4] ss:$8 sps:$4 sm:$0xff]  }
 0x331   : > { %8006 = vmatprep.subr.bf16.mxu1 %v10745_v21  ;;  %v10788_v35 = vld [vmem:[%s13990_s1 + $0x13c8] ss:$12 sps:$4 sm:$0xff]   ;;  %v10791_v21 = vld [vmem:[%s13994_s5 + $0x6b0] ss:$8 sps:$4 sm:$0xff]  }
 0x333   : > { %5415 = vmatpush1.bf16.msra.mxu0 %v10740_v8  ;;  %v10796_v8 = vld [vmem:[%s13990_s1 + $0x13e4] ss:$12 sps:$4 sm:$0xff]  }
 0x334   : > { %8007 = vmatpush1.bf16.msra.mxu1 %v10743_v12  ;;  %5416 = vmatprep.subr.bf16.mxu0 %v10748_v11  ;;  %v10799_v12 = vld [vmem:[%s13994_s5 + $0x6c4] ss:$8 sps:$4 sm:$0xff]  }
 0x335   : > { %8008 = vmatprep.subr.bf16.mxu1 %v10751_v14  ;;  %v10794_v11 = vld [vmem:[%s13990_s1 + $0x13e0] ss:$12 sps:$4 sm:$0xff]  }
 0x336   : > { %v10797_v14 = vld [vmem:[%s13994_s5 + $0x6c0] ss:$8 sps:$4 sm:$0xff]  }
 0x337   : > { %5417 = vmatpush1.bf16.msra.mxu0 %v10746_v26  ;;  %v10802_v26 = vld [vmem:[%s13990_s1 + $0x13fc] ss:$12 sps:$4 sm:$0xff]  }
 0x338   : > { %8009 = vmatpush1.bf16.msra.mxu1 %v10749_v27  ;;  %5418 = vmatprep.subr.bf16.mxu0 %v10754_v22  ;;  %v10805_v27 = vld [vmem:[%s13994_s5 + $0x6d4] ss:$8 sps:$4 sm:$0xff]   ;;  %v10800_v22 = vld [vmem:[%s13990_s1 + $0x13f8] ss:$12 sps:$4 sm:$0xff]  }
 0x339   : > { %8010 = vmatprep.subr.bf16.mxu1 %v10757_v25  ;;  %v10803_v25 = vld [vmem:[%s13994_s5 + $0x6d0] ss:$8 sps:$4 sm:$0xff]  }
 0x33b   : > { %5419 = vmatpush1.bf16.msra.mxu0 %v10752_v28  ;;  %v10808_v28 = vld [vmem:[%s13990_s1 + $0x1414] ss:$12 sps:$4 sm:$0xff]  }
 0x33c   : > { %8011 = vmatpush1.bf16.msra.mxu1 %v10755_v29  ;;  %5420 = vmatprep.subr.bf16.mxu0 %v10760_v30  ;;  %v10811_v29 = vld [vmem:[%s13994_s5 + $0x6e4] ss:$8 sps:$4 sm:$0xff]   ;;  %v10806_v30 = vld [vmem:[%s13990_s1 + $0x1410] ss:$12 sps:$4 sm:$0xff]  }
 0x33d   : > { %8012 = vmatprep.subr.bf16.mxu1 %v10763_v32  ;;  %v10809_v32 = vld [vmem:[%s13994_s5 + $0x6e0] ss:$8 sps:$4 sm:$0xff]  }
 0x33f   : > { %5421 = vmatpush1.bf16.msra.mxu0 %v10758_v33  ;;  %v10814_v33 = vld [vmem:[%s13990_s1 + $0x142c] ss:$12 sps:$4 sm:$0xff]  }
 0x340   : > { %8013 = vmatpush1.bf16.msra.mxu1 %v10761_v34  ;;  %5422 = vmatprep.subr.bf16.mxu0 %v10766_v51  ;;  %v10817_v34 = vld [vmem:[%s13994_s5 + $0x6f4] ss:$8 sps:$4 sm:$0xff]  }
 0x341   : > { %8014 = vmatprep.subr.bf16.mxu1 %v10769_v52  ;;  %v10812_v51 = vld [vmem:[%s13990_s1 + $0x1428] ss:$12 sps:$4 sm:$0xff]   ;;  %v10815_v52 = vld [vmem:[%s13994_s5 + $0x6f0] ss:$8 sps:$4 sm:$0xff]  }
 0x343   : > { %5423 = vmatpush1.bf16.msra.mxu0 %v10764_v36  ;;  %v10818_v36 = vld [vmem:[%s13990_s1 + $0xc8] ss:$12 sps:$4 sm:$0xff]  }
 0x344   : > { %8015 = vmatpush1.bf16.msra.mxu1 %v10767_v38  ;;  %5435 = vmatprep.subr.bf16.mxu0 %v10772_v40  ;;  %v10821_v38 = vld [vmem:[%s13994_s5 + $0x704] ss:$8 sps:$4 sm:$0xff]   ;;  %v8922_v40 = vcombine.low %v13554_v46, %v13557_v48  ;;  %v10826_v46 = vld [vmem:[%s13994_s5 + $0x714] ss:$8 sps:$4 sm:$0xff]  }
 0x345   : > { %8016 = vmatprep.subr.bf16.mxu1 %v10775_v41  ;;  %v10822_v41 = vld [vmem:[%s13990_s1 + $0x8] ss:$12 sps:$4 sm:$0xff]  }
 0x346   : > { %5425 = vmatmul.mubr.bf16.vlgmr.msra.gmra.mrb[0].mxu0 %v10901_v59  ;;  %v10902_v48 = vld [vmem:[%s11061_s12 + $0x68] ss:$108 sps:$4 sm:$0xff]  }
 0x347   : > { %5436 = vmatpush1.bf16.msra.mxu0 %v10770_v42  ;;  %5467 = vmatprep.mubr.bf16.mxu0 %v10915_v9  ;;  %v13762_v42 = vld [vmem:[%s12287_s18 + $0x38] sm:$0xff] }
 0x348   : > { %8017 = vmatpush1.bf16.msra.mxu1 %v10773_v44  ;;  %5437 = vmatprep.subr.bf16.mxu0 %v10778_v54  ;;  %v13765_v44 = vld [vmem:[%s12287_s18 + $0x78] sm:$0xff]  ;;  %v10819_v54 = vld [vmem:[%s13994_s5 + $0x700] ss:$8 sps:$4 sm:$0xff]  }
 0x349   : > { %8018 = vmatprep.subr.bf16.mxu1 %v10781_v55  ;;  %v10823_v55 = vld [vmem:[%s13990_s1 + $0xe0] ss:$12 sps:$4 sm:$0xff]   ;;  %v8925_v59 = vcombine.high %v13762_v42, %v13765_v44  ;;  %v10824_v9 = vld [vmem:[%s13994_s5 + $0x710] ss:$8 sps:$4 sm:$0xff]  }
 0x34b   : > { %5438 = vmatpush1.bf16.msra.mxu0 %v10776_v1  ;;  %v10827_v1 = vld [vmem:[%s13990_s1 + $0x20] ss:$12 sps:$4 sm:$0xff]  }
 0x34c   : > { %8019 = vmatpush1.bf16.msra.mxu1 %v10779_v15  ;;  %5439 = vmatprep.subr.bf16.mxu0 %v10784_v56  ;;  %v10828_v15 = vld [vmem:[%s13990_s1 + $0xf8] ss:$12 sps:$4 sm:$0xff]  }
 0x34d   : > { %8020 = vmatprep.subr.bf16.mxu1 %v10787_v58  ;;  %v10831_v56 = vld [vmem:[%s13994_s5 + $0x724] ss:$8 sps:$4 sm:$0xff]  }
 0x34e   : > { %v10903_v58 = vld [vmem:[%s11061_s12 + $0x4] ss:$108 sps:$4 sm:$0xff]  }
 0x34f   : > { %5440 = vmatpush1.bf16.msra.mxu0 %v10782_v16  ;;  %v10832_v16 = vld [vmem:[%s13990_s1 + $0x38] ss:$12 sps:$4 sm:$0xff]  }
 0x350   : > { %8021 = vmatpush1.bf16.msra.mxu1 %v10785_v17  ;;  %5441 = vmatprep.subr.bf16.mxu0 %v10790_v3  ;;  %v10829_v17 = vld [vmem:[%s13994_s5 + $0x720] ss:$8 sps:$4 sm:$0xff]   ;;  %v10833_v3 = vld [vmem:[%s13990_s1 + $0x110] ss:$12 sps:$4 sm:$0xff]  }
 0x351   : > { %8022 = vmatprep.subr.bf16.mxu1 %v10793_v7  ;;  %v10836_v7 = vld [vmem:[%s13994_s5 + $0x734] ss:$8 sps:$4 sm:$0xff]  }
 0x353   : > { %5442 = vmatpush1.bf16.msra.mxu0 %v10788_v35  ;;  %v10837_v35 = vld [vmem:[%s13990_s1 + $0x50] ss:$12 sps:$4 sm:$0xff]  }
 0x354   : > { %8023 = vmatpush1.bf16.msra.mxu1 %v10791_v21  ;;  %5443 = vmatprep.subr.bf16.mxu0 %v10796_v8  ;;  %v10834_v21 = vld [vmem:[%s13994_s5 + $0x730] ss:$8 sps:$4 sm:$0xff]   ;;  %v10838_v8 = vld [vmem:[%s13990_s1 + $0x128] ss:$12 sps:$4 sm:$0xff]  }
 0x355   : > { %8024 = vmatprep.subr.bf16.mxu1 %v10799_v12  ;;  %v10841_v12 = vld [vmem:[%s13994_s5 + $0x744] ss:$8 sps:$4 sm:$0xff]  }
 0x357   : > { %5444 = vmatpush1.bf16.msra.mxu0 %v10794_v11  ;;  %v10842_v11 = vld [vmem:[%s13990_s1 + $0x68] ss:$12 sps:$4 sm:$0xff]  }
 0x358   : > { %8025 = vmatpush1.bf16.msra.mxu1 %v10797_v14  ;;  %5445 = vmatprep.subr.bf16.mxu0 %v10802_v26  ;;  %v10839_v14 = vld [vmem:[%s13994_s5 + $0x740] ss:$8 sps:$4 sm:$0xff]  }
 0x359   : > { %8026 = vmatprep.subr.bf16.mxu1 %v10805_v27  ;;  %v10843_v26 = vld [vmem:[%s13990_s1 + $0x140] ss:$12 sps:$4 sm:$0xff]   ;;  %v10846_v27 = vld [vmem:[%s13994_s5 + $0x754] ss:$8 sps:$4 sm:$0xff]  }
 0x35b   : > { %5446 = vmatpush1.bf16.msra.mxu0 %v10800_v22  ;;  %v10847_v22 = vld [vmem:[%s13990_s1 + $0x80] ss:$12 sps:$4 sm:$0xff]  }
 0x35c   : > { %8027 = vmatpush1.bf16.msra.mxu1 %v10803_v25  ;;  %5447 = vmatprep.subr.bf16.mxu0 %v10808_v28  ;;  %v10844_v25 = vld [vmem:[%s13994_s5 + $0x750] ss:$8 sps:$4 sm:$0xff]  }
 0x35d   : > { %8028 = vmatprep.subr.bf16.mxu1 %v10811_v29  ;;  %v10848_v28 = vld [vmem:[%s13990_s1 + $0x158] ss:$12 sps:$4 sm:$0xff]  }
 0x35e   : > { %v10851_v29 = vld [vmem:[%s13994_s5 + $0x764] ss:$8 sps:$4 sm:$0xff]  }
 0x35f   : > { %5448 = vmatpush1.bf16.msra.mxu0 %v10806_v30  ;;  %v10852_v30 = vld [vmem:[%s13990_s1 + $0x98] ss:$12 sps:$4 sm:$0xff]  }
 0x360   : > { %8029 = vmatpush1.bf16.msra.mxu1 %v10809_v32  ;;  %5449 = vmatprep.subr.bf16.mxu0 %v10814_v33  ;;  %v10849_v32 = vld [vmem:[%s13994_s5 + $0x760] ss:$8 sps:$4 sm:$0xff]   ;;  %v10853_v33 = vld [vmem:[%s13990_s1 + $0x170] ss:$12 sps:$4 sm:$0xff]  }
 0x361   : > { %8030 = vmatprep.subr.bf16.mxu1 %v10817_v34  ;;  %v10856_v34 = vld [vmem:[%s13994_s5 + $0x774] ss:$8 sps:$4 sm:$0xff]  }
 0x363   : > { %5450 = vmatpush1.bf16.msra.mxu0 %v10812_v51  ;;  %v10857_v51 = vld [vmem:[%s13990_s1 + $0xb0] ss:$12 sps:$4 sm:$0xff]  }
 0x364   : > { %8031 = vmatpush1.bf16.msra.mxu1 %v10815_v52  ;;  %9186 = vmatprep.subr.bf16.mxu0 %v10818_v36  ;;  %v10854_v52 = vld [vmem:[%s13994_s5 + $0x770] ss:$8 sps:$4 sm:$0xff]   ;;  %v10860_v36 = vld [vmem:[%s13994_s5 + $0x784] ss:$8 sps:$4 sm:$0xff]  }
 0x365   : > { %8043 = vmatprep.subr.bf16.mxu1 %v10821_v38  ;;  %v10858_v38 = vld [vmem:[%s13994_s5 + $0x780] ss:$8 sps:$4 sm:$0xff]  }
 0x366   : > { %5468 = vmatmul.mubr.bf16.vlgmr.msra.gmra.mrb[0].mxu0 %v10902_v48  ;;  %v10869_v48 = vld [vmem:[%s13994_s5 + $0x7b4] ss:$8 sps:$4 sm:$0xff]  }
 0x367   : > { %9187 = vmatpush3.bf16.msra.mxu0 %v10822_v41  ;;  %8033 = vmatmul.mubr.bf16.vlgmr.msra.gmra.mrb[52].mxu1 %v8922_v40  ;;  %v10863_v40 = vld [vmem:[%s13994_s5 + $0x794] ss:$8 sps:$4 sm:$0xff]   ;;  %v10904_v41 = vld [vmem:[%s11061_s12] ss:$108 sps:$4 sm:$0xff]   ;;  %s9582_s12 = smul.u32 24, %s14000_s29 }
 0x368   : > { %8044 = vmatpush1.bf16.msra.mxu1 %v10819_v54  ;;  %9188 = vmatprep.subr.bf16.mxu0 %v10823_v55  ;;  %v10861_v54 = vld [vmem:[%s13994_s5 + $0x790] ss:$8 sps:$4 sm:$0xff]   ;;  %v10866_v55 = vld [vmem:[%s13994_s5 + $0x7a4] ss:$8 sps:$4 sm:$0xff]  }
 0x369   : > { %8045 = vmatprep.subr.bf16.mxu1 %v10826_v46  ;;  %5510 = vmatprep.mubr.bf16.mxu0 %v10903_v58  ;;  %v10864_v46 = vld [vmem:[%s13994_s5 + $0x7a0] ss:$8 sps:$4 sm:$0xff]   ;;  %v10878_v58 = vld [vmem:[%s13994_s5 + $0x7e4] ss:$8 sps:$4 sm:$0xff]   ;;  %s382_s18 = scalar_lea.vmem %s13997_s8, %s9582_s12 }
 0x36a   : > { %8075 = vmatprep.mubr.bf16.mxu1 %v8925_v59  ;;  %v10867_v59 = vld [vmem:[%s13994_s5 + $0x7b0] ss:$8 sps:$4 sm:$0xff]  }
 0x36b   : > { %9189 = vmatpush3.bf16.msra.mxu0 %v10827_v1  ;;  %v10872_v1 = vld [vmem:[%s13994_s5 + $0x7c4] ss:$8 sps:$4 sm:$0xff]  }
 0x36c   : > { %8046 = vmatpush1.bf16.msra.mxu1 %v10824_v9  ;;  %9190 = vmatprep.subr.bf16.mxu0 %v10828_v15  ;;  %v10870_v9 = vld [vmem:[%s13994_s5 + $0x7c0] ss:$8 sps:$4 sm:$0xff]   ;;  %v10875_v15 = vld [vmem:[%s13994_s5 + $0x7d4] ss:$8 sps:$4 sm:$0xff]  }
 0x36d   : > { %8047 = vmatprep.subr.bf16.mxu1 %v10831_v56  ;;  %v10873_v56 = vld [vmem:[%s13994_s5 + $0x7d0] ss:$8 sps:$4 sm:$0xff]  }
 0x36f   : > { %9191 = vmatpush3.bf16.msra.mxu0 %v10832_v16  ;;  %v10876_v16 = vld [vmem:[%s13994_s5 + $0x7e0] ss:$8 sps:$4 sm:$0xff]  }
 0x370   : > { %8048 = vmatpush1.bf16.msra.mxu1 %v10829_v17  ;;  %9192 = vmatprep.subr.bf16.mxu0 %v10833_v3  ;;  %v10881_v17 = vld [vmem:[%s13994_s5 + $0x7f4] ss:$8 sps:$4 sm:$0xff]   ;;  %v10879_v3 = vld [vmem:[%s13994_s5 + $0x7f0] ss:$8 sps:$4 sm:$0xff]  }
 0x371   : > { %8049 = vmatprep.subr.bf16.mxu1 %v10836_v7  ;;  %v8924_v7 = vcombine.low %v13762_v42, %v13765_v44  ;;  %v8126_v42 = vld [vmem:[%s382_s18] sm:$0xff]  ;;  %v8127_v44 = vld [vmem:[%s382_s18 + $0x8] sm:$0xff] }
 0x372   : > { %8132 = vst [vmem:[%s13918_s20 + $0x28] sm:$0xff] %v8126_v42  ;;  %8133 = vst [vmem:[%s13918_s20 + $0x30] sm:$0xff] %v8127_v44 }
 0x373   : > { %9193 = vmatpush3.bf16.msra.mxu0 %v10837_v35  ;;  %v8128_v35 = vld [vmem:[%s382_s18 + $0x10] sm:$0xff] }
 0x374   : > { %8050 = vmatpush1.bf16.msra.mxu1 %v10834_v21  ;;  %9194 = vmatprep.subr.bf16.mxu0 %v10838_v8  ;;  %v8129_v21 = vld [vmem:[%s382_s18 + $0x18] sm:$0xff]  ;;  %v8130_v8 = vld [vmem:[%s382_s18 + $0x20] sm:$0xff]  ;;  %8134 = vst [vmem:[%s13918_s20 + $0x38] sm:$0xff] %v8128_v35 }
 0x375   : > { %8051 = vmatprep.subr.bf16.mxu1 %v10841_v12  ;;  %v8131_v12 = vld [vmem:[%s382_s18 + $0x28] sm:$0xff]  ;;  %8135 = vst [vmem:[%s13918_s20 + $0x68] sm:$0xff] %v8129_v21  ;;  %8136 = vst [vmem:[%s13918_s20 + $0x70] sm:$0xff] %v8130_v8 }
 0x376   : > { %8137 = vst [vmem:[%s13918_s20 + $0x78] sm:$0xff] %v8131_v12 }
 0x377   : > { %9195 = vmatpush3.bf16.msra.mxu0 %v10842_v11  ;;  %v6054_v11 = vlaneseq }
 0x378   : > { %8052 = vmatpush1.bf16.msra.mxu1 %v10839_v14  ;;  %9196 = vmatprep.subr.bf16.mxu0 %v10843_v26 }
 0x379   : > { %8053 = vmatprep.subr.bf16.mxu1 %v10846_v27  ;;  %v6055_v14 = vshrl.u32 %v6054_v11, 7  ;;  %v6052_v27 = vld [vmem:[%s13991_s2] sm:$0x7] }
 0x37b   : > { %9197 = vmatpush3.bf16.msra.mxu0 %v10847_v22  ;;  %v13926_v26 = vsub.s32 0, %v6055_v14  ;;  %v13931_v22 = vsub.s32 1, %v6055_v14 }
 0x37c   : > { %8054 = vmatpush1.bf16.msra.mxu1 %v10844_v25  ;;  %9198 = vmatprep.subr.bf16.mxu0 %v10848_v28  ;;  %v6075_v25 = vld [vmem:[%s13992_s3] sm:$0x7] }
 0x37d   : > { %8055 = vmatprep.subr.bf16.mxu1 %v10851_v29  ;;  %v6057_v28 = vrot.slane %v6052_v27, %v13926_v26  ;;  %v6061_v29 = vrot.slane %v6052_v27, %v13931_v22 }
 0x37f   : > { %9199 = vmatpush3.bf16.msra.mxu0 %v10852_v30  ;;  %v6080_v30 = vrot.slane %v6075_v25, %v13926_v26 }
 0x380   : > { %8056 = vmatpush1.bf16.msra.mxu1 %v10849_v32  ;;  %9200 = vmatprep.subr.bf16.mxu0 %v10853_v33  ;;  %v6084_v33 = vrot.slane %v6075_v25, %v13931_v22 }
 0x381   : > { %8057 = vmatprep.subr.bf16.mxu1 %v10856_v34 }
 0x383   : > { %9201 = vmatpush3.bf16.msra.mxu0 %v10857_v51 }
 0x384   : > { %8058 = vmatpush1.bf16.msra.mxu1 %v10854_v52 }
 0x385   : > { %8059 = vmatprep.subr.bf16.mxu1 %v10860_v36 }
 0x386   : > { %5511 = vmatmul.mubr.bf16.vlgmr.msra.gmra.mrb[4].mxu0 %v10904_v41 }
 0x388   : > { %8060 = vmatpush1.bf16.msra.mxu1 %v10858_v38 }
 0x389   : > { %8061 = vmatprep.subr.bf16.mxu1 %v10863_v40 }
 0x38c   : > { %8062 = vmatpush1.bf16.msra.mxu1 %v10861_v54 }
 0x38d   : > { %8063 = vmatprep.subr.bf16.mxu1 %v10866_v55 }
 0x390   : > { %8064 = vmatpush1.bf16.msra.mxu1 %v10864_v46 }
 0x391   : > { %8065 = vmatprep.subr.bf16.mxu1 %v10869_v48 }
 0x394   : > { %8066 = vmatpush1.bf16.msra.mxu1 %v10867_v59 }
 0x395   : > { %8067 = vmatprep.subr.bf16.mxu1 %v10872_v1 }
 0x398   : > { %8068 = vmatpush1.bf16.msra.mxu1 %v10870_v9 }
 0x399   : > { %8069 = vmatprep.subr.bf16.mxu1 %v10875_v15 }
 0x39c   : > { %8070 = vmatpush1.bf16.msra.mxu1 %v10873_v56 }
 0x39d   : > { %8071 = vmatprep.subr.bf16.mxu1 %v10878_v58 }
 0x3a0   : > { %8072 = vmatpush1.bf16.msra.mxu1 %v10876_v16 }
 0x3a1   : > { %8073 = vmatprep.subr.bf16.mxu1 %v10881_v17 }
 0x3a4   : > { %8074 = vmatpush1.bf16.msra.mxu1 %v10879_v3 }
 0x3a7   : > { %8076 = vmatmul.mubr.bf16.vlgmr.msra.gmra.mrb[52].mxu1 %v8924_v7 }
 0x439   : > { %v5469_v32 = vpop.f32.mrb[0].mxu0 }
 0x43a   : > { %v6069_v34 = vmul.f32 %v6057_v28, %v5469_v32  ;;  %v5471_v51 = vpop.f32.mrb[1].mxu0  ;;  %v6064_v32 = vsub.s32 2, %v6055_v14 }
 0x43b   : > { %v6070_v52 = vmul.f32 %v6061_v29, %v5471_v51  ;;  %v5473_v36 = vpop.f32.mrb[2].mxu0 }
 0x43c   : > { %v6092_v38 = vadd.f32 %v6080_v30, %v6069_v34  ;;  %v6072_v40 = vmul.f32 %v6057_v28, %v5473_v36  ;;  %v5475_v41 = vpop.f32.mrb[3].mxu0 }
 0x43d   : > { %v6093_v54 = vadd.f32 %v6084_v33, %v6070_v52  ;;  %v6073_v55 = vmul.f32 %v6061_v29, %v5475_v41 }
 0x43e   : > { %v6098_v46 = vmax.f32 %v6092_v38, 0.0  ;;  %v6095_v48 = vadd.f32 %v6080_v30, %v6072_v40 }
 0x43f   : > { %v6099_v59 = vmax.f32 %v6093_v54, 0.0  ;;  %v6096_v1 = vadd.f32 %v6084_v33, %v6073_v55 }
 0x440   : > { %6104 = vst [vmem:[%s13918_s20] sm:$0xff] %v6098_v46  ;;  %v6101_v9 = vmax.f32 %v6095_v48, 0.0 }
 0x441   : > { %6105 = vst [vmem:[%s13918_s20 + $0x8] sm:$0xff] %v6099_v59  ;;  %v6102_v15 = vmax.f32 %v6096_v1, 0.0 }
 0x442   : > { %6107 = vst [vmem:[%s13918_s20 + $0x40] sm:$0xff] %v6101_v9 }
 0x443   : > { %6108 = vst [vmem:[%s13918_s20 + $0x48] sm:$0xff] %v6102_v15 }
 0x459   : > { %v9202_v56 = vpop.f32.mrb[4].mxu0 }
 0x45a   : > { %v9203_v58 = vpop.f32.mrb[5].mxu0 }
 0x45b   : > { %v9204_v16 = vadd.f32 %v9203_v58, %v9202_v56  ;;  %v9205_v17 = vpop.f32.mrb[6].mxu0 }
 0x45c   : > { %v9206_v3 = vpop.f32.mrb[7].mxu0 }
 0x45d   : > { %v5554_v7 = vadd.f32 %v11769_v18, %v9204_v16  ;;  %v9207_v42 = vadd.f32 %v9206_v3, %v9205_v17 }
 0x45f   : > { %v5595_v44 = vadd.f32 %v11876_v60, %v5554_v7  ;;  %v5557_v35 = vadd.f32 %v11780_v23, %v9207_v42 }
 0x461   : > { %v5636_v21 = vadd.f32 %v11975_v37, %v5595_v44  ;;  %v5598_v8 = vadd.f32 %v11884_v2, %v5557_v35 }
 0x463   : > { %v5677_v12 = vadd.f32 %v12082_v20, %v5636_v21  ;;  %v5639_v11 = vadd.f32 %v11986_v43, %v5598_v8 }
 0x465   : > { %v5718_v28 = vadd.f32 %v12184_v0, %v5677_v12  ;;  %v5680_v29 = vadd.f32 %v12090_v24, %v5639_v11 }
 0x467   : > { %v5759_v30 = vadd.f32 %v12271_v39, %v5718_v28  ;;  %v5721_v18 = vadd.f32 %v12192_v6, %v5680_v29 }
 0x469   : > { %v5800_v60 = vadd.f32 %v12386_v62, %v5759_v30  ;;  %v5762_v23 = vadd.f32 %v12280_v45, %v5721_v18  ;;  %v6065_v62 = vrot.slane %v6052_v27, %v6064_v32 }
 0x46b   : > { %v5841_v37 = vadd.f32 %v12491_v13, %v5800_v60  ;;  %v5803_v2 = vadd.f32 %v12397_v31, %v5762_v23  ;;  %v8086_v31 = vld [vmem:[%s13995_s6] sm:$0x3] }
 0x46d   : > { %v5882_v20 = vadd.f32 %v12604_v5, %v5841_v37  ;;  %v5844_v43 = vadd.f32 %v12499_v19, %v5803_v2  ;;  %v6088_v5 = vrot.slane %v6075_v25, %v6064_v32 }
 0x46f   : > { %v5923_v0 = vadd.f32 %v12700_v57, %v5882_v20  ;;  %v5885_v24 = vadd.f32 %v12609_v10, %v5844_v43  ;;  %v8102_v10 = vld [vmem:[%s13996_s7] sm:$0x3] }
 0x470   : > { %v8107_v25 = vrot.slane %v8102_v10, %v13926_v26 }
 0x471   : > { %v5964_v39 = vadd.f32 %v12810_v53, %v5923_v0  ;;  %v5926_v6 = vadd.f32 %v12714_v4, %v5885_v24 }
 0x473   : > { %v6005_v45 = vadd.f32 %v12912_v49, %v5964_v39  ;;  %v5967_v13 = vadd.f32 %v12824_v63, %v5926_v6  ;;  %v8091_v49 = vrot.slane %v8086_v31, %v13926_v26  ;;  %v8095_v63 = vrot.slane %v8086_v31, %v13931_v22 }
 0x475   : > { %v6046_v19 = vadd.f32 %v13022_v47, %v6005_v45  ;;  %v6008_v57 = vadd.f32 %v12926_v61, %v5967_v13  ;;  %v8111_v61 = vrot.slane %v8102_v10, %v13931_v22 }
 0x477   : > { %v6071_v4 = vmul.f32 %v6065_v62, %v6046_v19  ;;  %v6049_v53 = vadd.f32 %v13024_v50, %v6008_v57 }
 0x479   : > { %v6094_v14 = vadd.f32 %v6088_v5, %v6071_v4  ;;  %v6074_v27 = vmul.f32 %v6065_v62, %v6049_v53 }
 0x47a   : > { %v8077_v47 = vpop.f32.mrb[52].mxu1 }
 0x47b   : > { %v6100_v33 = vmax.f32 %v6094_v14, 0.0  ;;  %v6097_v34 = vadd.f32 %v6088_v5, %v6074_v27  ;;  %v8098_v51 = vmul.f32 %v8091_v49, %v8077_v47  ;;  %v8079_v52 = vpop.f32.mrb[53].mxu1 }
 0x47c   : > { %v8099_v36 = vmul.f32 %v8095_v63, %v8079_v52  ;;  %v8081_v50 = vpop.f32.mrb[54].mxu1 }
 0x47d   : > { %6106 = vst [vmem:[%s13918_s20 + $0x10] sm:$0xff] %v6100_v33  ;;  %v6103_v38 = vmax.f32 %v6097_v34, 0.0  ;;  %v8114_v40 = vadd.f32 %v8107_v25, %v8098_v51  ;;  %v8100_v41 = vmul.f32 %v8091_v49, %v8081_v50  ;;  %v8083_v54 = vpop.f32.mrb[55].mxu1 }
 0x47e   : > { %v8115_v26 = vadd.f32 %v8111_v61, %v8099_v36  ;;  %v8101_v55 = vmul.f32 %v8095_v63, %v8083_v54 }
 0x47f   : > { %6109 = vst [vmem:[%s13918_s20 + $0x50] sm:$0xff] %v6103_v38  ;;  %v8118_v46 = vmax.f32 %v8114_v40, 0.0  ;;  %v8116_v22 = vadd.f32 %v8107_v25, %v8100_v41 }
 0x480   : > { %v8119_v48 = vmax.f32 %v8115_v26, 0.0  ;;  %v8117_v59 = vadd.f32 %v8111_v61, %v8101_v55 }
 0x481   : > { %8122 = vst [vmem:[%s13918_s20 + $0x18] sm:$0xff] %v8118_v46  ;;  %v8120_v1 = vmax.f32 %v8116_v22, 0.0 }
 0x482   : > { %8123 = vst [vmem:[%s13918_s20 + $0x20] sm:$0xff] %v8119_v48  ;;  %v8121_v9 = vmax.f32 %v8117_v59, 0.0 }
 0x483   : > { %8124 = vst [vmem:[%s13918_s20 + $0x58] sm:$0xff] %v8120_v1 }
 0x484   : > { %8125 = vst [vmem:[%s13918_s20 + $0x60] sm:$0xff] %v8121_v9 }
 0x485 PF: > { %s19_s30 = sadd.s32 1, %s10911_s30  }
 0x486   : > { %p16_p4 = scmp.ge.s32.totalorder %s19_s30, 4  }
 0x488   :  { %18 = sbr.rel (!%p16_p4) target bundleno = 1 (0x1), region = 92 }

</bundles_post_ra>
